<compile_context>
chip_gen: v7x
topology: tpu7x:2x2x1
jax: 0.10.0
libtpu: 0.0.40
codegen_flags: <defaults>
</compile_context>

<pallas_src>
import functools

import jax
import jax.numpy as jnp
from jax import lax
from jax.experimental import pallas as pl
from jax.experimental.pallas import tpu as pltpu

_BN_EPS = 1e-5
_VMEM_LIMIT = 48 * 1024 * 1024   # <= 64 MiB so the kernels also fit on v7x.


def _round_up(x, m):
    return (x + m - 1) // m * m


def _pick_tile(dim, candidates):
    for c in candidates:
        if dim % c == 0:
            return c
    return dim


# ----------------------------------------------------------------------------
# Pallas kernels
# ----------------------------------------------------------------------------
def _matmul_bn_kernel(p_ref, w_ref, s_ref, b_ref, o_ref, acc_ref, *, relu):
    # Tiled im2col-matmul (MXU, bf16 in / f32 acc) + folded-BN affine (+ ReLU).
    @pl.when(pl.program_id(2) == 0)
    def _init():
        acc_ref[...] = jnp.zeros_like(acc_ref)

    acc_ref[...] += jnp.dot(p_ref[...], w_ref[...],
                            preferred_element_type=jnp.float32)

    @pl.when(pl.program_id(2) == pl.num_programs(2) - 1)
    def _epilogue():
        y = acc_ref[...] * s_ref[...] + b_ref[...]
        if relu:
            y = jnp.maximum(y, 0.0)
        o_ref[...] = y.astype(o_ref.dtype)


def _matmul_bn_add_relu_kernel(p_ref, w_ref, s_ref, b_ref, r_ref, o_ref, acc_ref):
    # Same as above + residual add (residual only touched in the epilogue;
    # it is stored/DMA'd in bf16 and upcast here).
    @pl.when(pl.program_id(2) == 0)
    def _init():
        acc_ref[...] = jnp.zeros_like(acc_ref)

    acc_ref[...] += jnp.dot(p_ref[...], w_ref[...],
                            preferred_element_type=jnp.float32)

    @pl.when(pl.program_id(2) == pl.num_programs(2) - 1)
    def _epilogue():
        y = (acc_ref[...] * s_ref[...] + b_ref[...]
             + r_ref[...].astype(jnp.float32))
        o_ref[...] = jnp.maximum(y, 0.0).astype(o_ref.dtype)


def _maxpool3_dense_kernel(x_ref, o_ref):
    # Dense (stride-1) 3x3 sliding max over a (-inf)-padded NHWC batch slice,
    # computed as 9 whole-tile shifted maxima (full-vreg VPU work, no per-pixel
    # unroll / scalar-window loads).  Compute in f32 vregs, store bf16.
    hd, wd = o_ref.shape[1], o_ref.shape[2]
    x = x_ref[...].astype(jnp.float32)
    m = x[:, 0:hd, 0:wd, :]
    for dy in range(3):
        for dx in range(3):
            if dy == 0 and dx == 0:
                continue
            m = jnp.maximum(m, x[:, dy:dy + hd, dx:dx + wd, :])
    o_ref[...] = m.astype(o_ref.dtype)


# ----------------------------------------------------------------------------
# Tiled fused matmul wrapper
# ----------------------------------------------------------------------------
def _tiled_matmul_bn(p, wmat, scale, bias, residual=None, *, relu=True):
    """(M,K)@(K,N) with folded-BN epilogue [+ residual] [+ ReLU] -> (M,N) bf16."""
    m, k = p.shape
    _, n = wmat.shape

    # Pad to tile-friendly shapes: lane-dense outputs (N >= 128), M multiple of
    # 16 (bf16 sublane packing), K multiple of 128.
    mp = _round_up(m, 16)
    if mp > 256:
        mp = _round_up(m, 256)
    kp = _round_up(k, 128)
    np_ = _round_up(n, 128)
    if np_ > 256:
        np_ = _round_up(n, 256)

    tm = min(mp, 256)
    tn = min(np_, 512)                      # one lane-dense pass over N when possible.
    tk = _pick_tile(kp, (512, 384, 256, 128))

    p = p.astype(jnp.bfloat16)
    wmat = wmat.astype(jnp.bfloat16)
    if mp != m or kp != k:
        p = jnp.pad(p, ((0, mp - m), (0, kp - k)))
    if kp != k or np_ != n:
        wmat = jnp.pad(wmat, ((0, kp - k), (0, np_ - n)))
    s2 = jnp.pad(scale.astype(jnp.float32), (0, np_ - n)).reshape(1, np_)
    b2 = jnp.pad(bias.astype(jnp.float32), (0, np_ - n)).reshape(1, np_)

    in_specs = [
        pl.BlockSpec((tm, tk), lambda i, j, kk: (i, kk)),
        pl.BlockSpec((tk, tn), lambda i, j, kk: (kk, j)),
        pl.BlockSpec((1, tn), lambda i, j, kk: (0, j)),
        pl.BlockSpec((1, tn), lambda i, j, kk: (0, j)),
    ]
    args = [p, wmat, s2, b2]

    if residual is None:
        kernel = functools.partial(_matmul_bn_kernel, relu=relu)
    else:
        r = residual.astype(jnp.bfloat16)
        if mp != m or np_ != n:
            r = jnp.pad(r, ((0, mp - m), (0, np_ - n)))
        in_specs.append(pl.BlockSpec((tm, tn), lambda i, j, kk: (i, j)))
        args.append(r)
        kernel = _matmul_bn_add_relu_kernel

    out = pl.pallas_call(
        kernel,
        grid=(mp // tm, np_ // tn, kp // tk),
        in_specs=in_specs,
        out_specs=pl.BlockSpec((tm, tn), lambda i, j, kk: (i, j)),
        out_shape=jax.ShapeDtypeStruct((mp, np_), jnp.bfloat16),
        scratch_shapes=[pltpu.VMEM((tm, tn), jnp.float32)],
        compiler_params=pltpu.CompilerParams(
            dimension_semantics=("parallel", "parallel", "arbitrary"),
            vmem_limit_bytes=_VMEM_LIMIT),
    )(*args)

    if mp != m or np_ != n:
        out = out[:m, :n]
    return out


# ----------------------------------------------------------------------------
# Glue: im2col patch extraction (plain JAX, bf16) + conv / maxpool wrappers
# ----------------------------------------------------------------------------
def _extract_patches(x, kh, kw, stride, pad):
    # x: NHWC.  NOTE: the patch matrix is still materialized in HBM (in bf16 to
    # halve its traffic); at these spatial sizes it is a few tens of KB and
    # weight streaming dominates.  Fully fusing the tap extraction into the
    # matmul kernel is the remaining known optimization.
    n, h, w, c = x.shape
    if pad > 0:
        x = jnp.pad(x, ((0, 0), (pad, pad), (pad, pad), (0, 0)))
    ho = (h + 2 * pad - kh) // stride + 1
    wo = (w + 2 * pad - kw) // stride + 1
    cols = []
    for dy in range(kh):
        for dx in range(kw):
            cols.append(
                x[:, dy:dy + stride * (ho - 1) + 1:stride,
                     dx:dx + stride * (wo - 1) + 1:stride, :])
    p = cols[0] if len(cols) == 1 else jnp.concatenate(cols, axis=-1)
    return p.reshape(n * ho * wo, kh * kw * c), ho, wo


def fused_conv_bn(x, w, scale, bias, *, stride, pad, relu=True, residual=None):
    """Conv2d(bias=False) + BatchNorm (folded) [+ residual] [+ ReLU], NHWC, bf16 out."""
    kh, kw, cin, cout = w.shape
    n = x.shape[0]
    xb = x.astype(jnp.bfloat16)

    if kh == 1 and kw == 1 and pad == 0:
        # 1x1 shortcut conv: no im2col — strided row selection + plain matmul.
        if stride > 1:
            xb = xb[:, ::stride, ::stride, :]
        ho, wo = xb.shape[1], xb.shape[2]
        p = xb.reshape(n * ho * wo, cin)
    else:
        p, ho, wo = _extract_patches(xb, kh, kw, stride, pad)

    wmat = w.reshape(kh * kw * cin, cout)
    r = None if residual is None else residual.reshape(n * ho * wo, cout)
    out = _tiled_matmul_bn(p, wmat, scale, bias, r, relu=relu)
    return out.reshape(n, ho, wo, cout)


def maxpool_3x3_s2_p1(x):
    """nn.MaxPool2d(3, 2, 1) on NHWC input (bf16 in / bf16 out)."""
    n, h, w, c = x.shape
    xp = jnp.pad(x, ((0, 0), (1, 1), (1, 1), (0, 0)),
                 constant_values=-jnp.inf)
    dense = pl.pallas_call(
        _maxpool3_dense_kernel,
        grid=(n,),
        in_specs=[pl.BlockSpec((1, h + 2, w + 2, c), lambda b: (b, 0, 0, 0))],
        out_specs=pl.BlockSpec((1, h, w, c), lambda b: (b, 0, 0, 0)),
        out_shape=jax.ShapeDtypeStruct((n, h, w, c), x.dtype),
        compiler_params=pltpu.CompilerParams(
            dimension_semantics=("parallel",),
            vmem_limit_bytes=_VMEM_LIMIT),
    )(xp)
    # TODO(synk): fold the stride-2 subsample (strided reads) directly into the
    # kernel; kept in glue for lowering robustness (stem-only, tiny tensor).
    return dense[:, ::2, ::2, :]


# ----------------------------------------------------------------------------
# Parameters (deterministic synthetic init; BN folded to scale/bias)
# ----------------------------------------------------------------------------
def init_params(key):
    keys = iter(jax.random.split(key, 256))

    def conv_bn_params(kh, kw, cin, cout):
        w = jax.random.normal(next(keys), (kh, kw, cin, cout), jnp.float32)
        w = w * (2.0 / (kh * kw * cin)) ** 0.5
        gamma = jax.random.uniform(next(keys), (cout,), jnp.float32, 0.8, 1.2)
        beta = jax.random.normal(next(keys), (cout,), jnp.float32) * 0.1
        mean = jax.random.normal(next(keys), (cout,), jnp.float32) * 0.1
        var = jax.random.uniform(next(keys), (cout,), jnp.float32, 0.8, 1.2)
        scale = gamma / jnp.sqrt(var + _BN_EPS)
        bias = beta - mean * scale
        return {"w": w, "scale": scale, "bias": bias}

    def make_layer(cin, cout, nblocks):
        blocks = [{
            "conv1": conv_bn_params(3, 3, cin, cout),
            "conv2": conv_bn_params(3, 3, cout, cout),
            "shortcut": conv_bn_params(1, 1, cin, cout),
        }]
        for _ in range(nblocks - 1):
            blocks.append({
                "conv1": conv_bn_params(3, 3, cout, cout),
                "conv2": conv_bn_params(3, 3, cout, cout),
            })
        return blocks

    params = {
        "pre": conv_bn_params(7, 7, 3, 64),
        "layer1": make_layer(64, 128, 3),
        "layer2": make_layer(128, 256, 4),
        "layer3": make_layer(256, 512, 6),
    }
    # TODO(synk): layer4 and fc exist in __init__ but are unused by forward(),
    # so they are intentionally not materialized here.
    return params


# ----------------------------------------------------------------------------
# Forward passes
# ----------------------------------------------------------------------------
def resnet34_forward(x_nchw, params):
    x = jnp.transpose(x_nchw, (0, 2, 3, 1)).astype(jnp.float32)   # NCHW -> NHWC

    # pre: Conv(3->64, 7, s2, p3) + BN + ReLU + MaxPool(3, 2, 1)
    pre = params["pre"]
    x = fused_conv_bn(x, pre["w"], pre["scale"], pre["bias"],
                      stride=2, pad=3, relu=True)
    x = maxpool_3x3_s2_p1(x)

    for name, layer_stride in (("layer1", 1), ("layer2", 2), ("layer3", 2)):
        for bi, bp in enumerate(params[name]):
            s = layer_stride if bi == 0 else 1
            left = fused_conv_bn(x, bp["conv1"]["w"], bp["conv1"]["scale"],
                                 bp["conv1"]["bias"], stride=s, pad=1, relu=True)
            if "shortcut" in bp:
                res = fused_conv_bn(x, bp["shortcut"]["w"],
                                    bp["shortcut"]["scale"],
                                    bp["shortcut"]["bias"],
                                    stride=s, pad=0, relu=False)
            else:
                res = x
            x = fused_conv_bn(left, bp["conv2"]["w"], bp["conv2"]["scale"],
                              bp["conv2"]["bias"], stride=1, pad=1,
                              residual=res)
    # NHWC -> NCHW; return f32 like the PyTorch module.
    return jnp.transpose(x, (0, 3, 1, 2)).astype(jnp.float32)


def _ref_conv_bn(x, p, *, stride, pad, relu, residual=None):
    y = lax.conv_general_dilated(
        x, p["w"], (stride, stride), ((pad, pad), (pad, pad)),
        dimension_numbers=("NHWC", "HWIO", "NHWC"),
        precision=lax.Precision.HIGHEST)
    y = y * p["scale"] + p["bias"]
    if residual is not None:
        y = y + residual
    if relu:
        y = jnp.maximum(y, 0.0)
    return y


def reference_forward(x_nchw, params):
    x = jnp.transpose(x_nchw, (0, 2, 3, 1)).astype(jnp.float32)
    x = _ref_conv_bn(x, params["pre"], stride=2, pad=3, relu=True)
    x = lax.reduce_window(x, -jnp.inf, lax.max, (1, 3, 3, 1), (1, 2, 2, 1),
                          [(0, 0), (1, 1), (1, 1), (0, 0)])
    for name, layer_stride in (("layer1", 1), ("layer2", 2), ("layer3", 2)):
        for bi, bp in enumerate(params[name]):
            s = layer_stride if bi == 0 else 1
            left = _ref_conv_bn(x, bp["conv1"], stride=s, pad=1, relu=True)
            if "shortcut" in bp:
                res = _ref_conv_bn(x, bp["shortcut"], stride=s, pad=0, relu=False)
            else:
                res = x
            x = _ref_conv_bn(left, bp["conv2"], stride=1, pad=1, relu=True,
                             residual=res)
    return jnp.transpose(x, (0, 3, 1, 2))


# ----------------------------------------------------------------------------
if __name__ == "__main__":
    key = jax.random.PRNGKey(0)
    kx, kp = jax.random.split(key)

    # PyTorch module expects NCHW with 3 input channels.
    x = jax.random.normal(kx, (2, 3, 16, 16), jnp.float32)
    params = init_params(kp)

    fwd = jax.jit(resnet34_forward)
    out = jax.block_until_ready(fwd(x, params))

    assert out.shape == (2, 512, 1, 1), out.shape
    assert bool(jnp.all(jnp.isfinite(out)))

    ref = jax.block_until_ready(jax.jit(reference_forward)(x, params))
    ref_scale = float(jnp.max(jnp.abs(ref)))
    max_diff = float(jnp.max(jnp.abs(out - ref)))
    # Kernels run the MXU in bf16 (f32 accumulation) and keep activations in
    # bf16 between layers, while the reference uses HIGHEST-precision f32
    # convs, so compare with a relative tolerance.
    tol = 5e-2 * max(1.0, ref_scale)
    assert max_diff < tol, f"mismatch vs reference: {max_diff} (tol {tol})"

    print("KERNEL_OK")
</pallas_src>

<mosaic_0001>
module attributes {stable_mosaic.version = 11 : i64} {
  func.func @_maxpool3_dense_kernel(%arg0: i32, %arg1: memref<1x10x10x64xbf16, #tpu.memory_space<vmem>>, %arg2: memref<1x8x8x64xbf16, #tpu.memory_space<vmem>>) attributes {dimension_semantics = [#tpu.dimension_semantics<parallel>], iteration_bounds = array<i64: 2>, scalar_prefetch = 0 : i64, scratch_operands = 0 : i64, tpu.core_type = #tpu.core_type<tc>, window_params = [{transform_indices = @transform_0, window_bounds = array<i64: 1, 10, 10, 64>}, {transform_indices = @transform_1, window_bounds = array<i64: 1, 8, 8, 64>}]} {
    %c0 = arith.constant 0 : index
    %c0_0 = arith.constant 0 : index
    %c0_1 = arith.constant 0 : index
    %c0_2 = arith.constant 0 : index
    %0 = vector.load %arg1[%c0, %c0_0, %c0_1, %c0_2] : memref<1x10x10x64xbf16, #tpu.memory_space<vmem>>, vector<1x10x10x64xbf16>
    %1 = arith.extf %0 : vector<1x10x10x64xbf16> to vector<1x10x10x64xf32>
    %2 = vector.extract_strided_slice %1 {offsets = [0, 0, 0, 0], sizes = [1, 8, 8, 64], strides = [1, 1, 1, 1]} : vector<1x10x10x64xf32> to vector<1x8x8x64xf32>
    %3 = vector.extract_strided_slice %1 {offsets = [0, 0, 1, 0], sizes = [1, 8, 8, 64], strides = [1, 1, 1, 1]} : vector<1x10x10x64xf32> to vector<1x8x8x64xf32>
    %4 = arith.maximumf %2, %3 : vector<1x8x8x64xf32>
    %5 = vector.extract_strided_slice %1 {offsets = [0, 0, 2, 0], sizes = [1, 8, 8, 64], strides = [1, 1, 1, 1]} : vector<1x10x10x64xf32> to vector<1x8x8x64xf32>
    %6 = arith.maximumf %4, %5 : vector<1x8x8x64xf32>
    %7 = vector.extract_strided_slice %1 {offsets = [0, 1, 0, 0], sizes = [1, 8, 8, 64], strides = [1, 1, 1, 1]} : vector<1x10x10x64xf32> to vector<1x8x8x64xf32>
    %8 = arith.maximumf %6, %7 : vector<1x8x8x64xf32>
    %9 = vector.extract_strided_slice %1 {offsets = [0, 1, 1, 0], sizes = [1, 8, 8, 64], strides = [1, 1, 1, 1]} : vector<1x10x10x64xf32> to vector<1x8x8x64xf32>
    %10 = arith.maximumf %8, %9 : vector<1x8x8x64xf32>
    %11 = vector.extract_strided_slice %1 {offsets = [0, 1, 2, 0], sizes = [1, 8, 8, 64], strides = [1, 1, 1, 1]} : vector<1x10x10x64xf32> to vector<1x8x8x64xf32>
    %12 = arith.maximumf %10, %11 : vector<1x8x8x64xf32>
    %13 = vector.extract_strided_slice %1 {offsets = [0, 2, 0, 0], sizes = [1, 8, 8, 64], strides = [1, 1, 1, 1]} : vector<1x10x10x64xf32> to vector<1x8x8x64xf32>
    %14 = arith.maximumf %12, %13 : vector<1x8x8x64xf32>
    %15 = vector.extract_strided_slice %1 {offsets = [0, 2, 1, 0], sizes = [1, 8, 8, 64], strides = [1, 1, 1, 1]} : vector<1x10x10x64xf32> to vector<1x8x8x64xf32>
    %16 = arith.maximumf %14, %15 : vector<1x8x8x64xf32>
    %17 = vector.extract_strided_slice %1 {offsets = [0, 2, 2, 0], sizes = [1, 8, 8, 64], strides = [1, 1, 1, 1]} : vector<1x10x10x64xf32> to vector<1x8x8x64xf32>
    %18 = arith.maximumf %16, %17 : vector<1x8x8x64xf32>
    %19 = arith.truncf %18 : vector<1x8x8x64xf32> to vector<1x8x8x64xbf16>
    %c0_3 = arith.constant 0 : index
    %c0_4 = arith.constant 0 : index
    %c0_5 = arith.constant 0 : index
    %c0_6 = arith.constant 0 : index
    %20 = vector.load %arg2[%c0_3, %c0_4, %c0_5, %c0_6] : memref<1x8x8x64xbf16, #tpu.memory_space<vmem>>, vector<1x8x8x64xbf16>
    tpu.vector_store %arg2[%c0_3, %c0_4, %c0_5, %c0_6], %19 {strides = array<i32>} : memref<1x8x8x64xbf16, #tpu.memory_space<vmem>>, vector<1x8x8x64xbf16>,
    return
  }
  func.func @transform_0(%arg0: i32) -> (i32, i32, i32, i32) {
    %c0_i32 = arith.constant 0 : i32
    %c0_i32_0 = arith.constant 0 : i32
    %c0_i32_1 = arith.constant 0 : i32
    %c0_i32_2 = arith.constant 0 : i32
    return %arg0, %c0_i32, %c0_i32_0, %c0_i32_1 : i32, i32, i32, i32
  }
  func.func @transform_1(%arg0: i32) -> (i32, i32, i32, i32) {
    %c0_i32 = arith.constant 0 : i32
    %c0_i32_0 = arith.constant 0 : i32
    %c0_i32_1 = arith.constant 0 : i32
    %c0_i32_2 = arith.constant 0 : i32
    return %arg0, %c0_i32, %c0_i32_0, %c0_i32_1 : i32, i32, i32, i32
  }
}

module attributes {stable_mosaic.version = 11 : i64} {
  func.func @_matmul_bn_kernel(%arg0: i32, %arg1: i32, %arg2: i32, %arg3: memref<128x256xbf16, #tpu.memory_space<vmem>>, %arg4: memref<256x128xbf16, #tpu.memory_space<vmem>>, %arg5: memref<1x128xf32, #tpu.memory_space<vmem>>, %arg6: memref<1x128xf32, #tpu.memory_space<vmem>>, %arg7: memref<128x128xbf16, #tpu.memory_space<vmem>>, %arg8: memref<128x128xf32, #tpu.memory_space<vmem>>) attributes {dimension_semantics = [#tpu.dimension_semantics<parallel>, #tpu.dimension_semantics<parallel>, #tpu.dimension_semantics<arbitrary>], iteration_bounds = array<i64: 1, 1, 1>, scalar_prefetch = 0 : i64, scratch_operands = 1 : i64, tpu.core_type = #tpu.core_type<tc>, window_params = [{transform_indices = @transform_0, window_bounds = array<i64: 128, 256>}, {transform_indices = @transform_1, window_bounds = array<i64: 256, 128>}, {transform_indices = @transform_2, window_bounds = array<i64: 1, 128>}, {transform_indices = @transform_3, window_bounds = array<i64: 1, 128>}, {transform_indices = @transform_4, window_bounds = array<i64: 128, 128>}]} {
    %c0_i32 = arith.constant 0 : i32
    %0 = arith.cmpi eq, %arg2, %c0_i32 : i32
    %1 = arith.extui %0 : i1 to i32
    %c0_i32_0 = arith.constant 0 : i32
    %2 = arith.cmpi ne, %1, %c0_i32_0 : i32
    scf.if %2 {
      %cst_10 = arith.constant 0.000000e+00 : f32
      %12 = vector.broadcast %cst_10 : f32 to vector<128x128xf32>
      %c0_11 = arith.constant 0 : index
      %c0_12 = arith.constant 0 : index
      %13 = vector.load %arg8[%c0_11, %c0_12] : memref<128x128xf32, #tpu.memory_space<vmem>>, vector<128x128xf32>
      tpu.vector_store %arg8[%c0_11, %c0_12], %12 {strides = array<i32>} : memref<128x128xf32, #tpu.memory_space<vmem>>, vector<128x128xf32>,
    } else {
    }
    %c0 = arith.constant 0 : index
    %c0_1 = arith.constant 0 : index
    %3 = vector.load %arg8[%c0, %c0_1] : memref<128x128xf32, #tpu.memory_space<vmem>>, vector<128x128xf32>
    %c0_2 = arith.constant 0 : index
    %c0_3 = arith.constant 0 : index
    %4 = vector.load %arg3[%c0_2, %c0_3] : memref<128x256xbf16, #tpu.memory_space<vmem>>, vector<128x256xbf16>
    %c0_4 = arith.constant 0 : index
    %c0_5 = arith.constant 0 : index
    %5 = vector.load %arg4[%c0_4, %c0_5] : memref<256x128xbf16, #tpu.memory_space<vmem>>, vector<256x128xbf16>
    %cst = arith.constant dense<0.000000e+00> : vector<128x128xf32>
    %6 = tpu.matmul %4, %5, %cst {dimension_numbers = #tpu.dot_dimension_numbers<[1], [0], [0], [1], [0, 0, 1, 1], [], []>} : vector<128x256xbf16>, vector<256x128xbf16>, vector<128x128xf32> -> vector<128x128xf32>
    %7 = arith.addf %3, %6 : vector<128x128xf32>
    %c0_6 = arith.constant 0 : index
    %c0_7 = arith.constant 0 : index
    %8 = vector.load %arg8[%c0_6, %c0_7] : memref<128x128xf32, #tpu.memory_space<vmem>>, vector<128x128xf32>
    tpu.vector_store %arg8[%c0_6, %c0_7], %7 {strides = array<i32>} : memref<128x128xf32, #tpu.memory_space<vmem>>, vector<128x128xf32>,
    %c0_i32_8 = arith.constant 0 : i32
    %9 = arith.cmpi eq, %arg2, %c0_i32_8 : i32
    %10 = arith.extui %9 : i1 to i32
    %c0_i32_9 = arith.constant 0 : i32
    %11 = arith.cmpi ne, %10, %c0_i32_9 : i32
    scf.if %11 {
      %c0_10 = arith.constant 0 : index
      %c0_11 = arith.constant 0 : index
      %12 = vector.load %arg8[%c0_10, %c0_11] : memref<128x128xf32, #tpu.memory_space<vmem>>, vector<128x128xf32>
      %c0_12 = arith.constant 0 : index
      %c0_13 = arith.constant 0 : index
      %13 = vector.load %arg5[%c0_12, %c0_13] : memref<1x128xf32, #tpu.memory_space<vmem>>, vector<1x128xf32>
      %14 = vector.broadcast %13 : vector<1x128xf32> to vector<128x128xf32>
      %15 = arith.mulf %12, %14 : vector<128x128xf32>
      %c0_14 = arith.constant 0 : index
      %c0_15 = arith.constant 0 : index
      %16 = vector.load %arg6[%c0_14, %c0_15] : memref<1x128xf32, #tpu.memory_space<vmem>>, vector<1x128xf32>
      %17 = vector.broadcast %16 : vector<1x128xf32> to vector<128x128xf32>
      %18 = arith.addf %15, %17 : vector<128x128xf32>
      %cst_16 = arith.constant 0.000000e+00 : f32
      %19 = vector.broadcast %cst_16 : f32 to vector<128x128xf32>
      %20 = arith.maximumf %18, %19 : vector<128x128xf32>
      %21 = arith.truncf %20 : vector<128x128xf32> to vector<128x128xbf16>
      %c0_17 = arith.constant 0 : index
      %c0_18 = arith.constant 0 : index
      %22 = vector.load %arg7[%c0_17, %c0_18] : memref<128x128xbf16, #tpu.memory_space<vmem>>, vector<128x128xbf16>
      tpu.vector_store %arg7[%c0_17, %c0_18], %21 {strides = array<i32>} : memref<128x128xbf16, #tpu.memory_space<vmem>>, vector<128x128xbf16>,
    } else {
    }
    return
  }
  func.func @transform_0(%arg0: i32, %arg1: i32, %arg2: i32) -> (i32, i32) {
    %c0_i32 = arith.constant 0 : i32
    return %arg0, %arg2 : i32, i32
  }
  func.func @transform_1(%arg0: i32, %arg1: i32, %arg2: i32) -> (i32, i32) {
    %c0_i32 = arith.constant 0 : i32
    return %arg2, %arg1 : i32, i32
  }
  func.func @transform_2(%arg0: i32, %arg1: i32, %arg2: i32) -> (i32, i32) {
    %c0_i32 = arith.constant 0 : i32
    %c0_i32_0 = arith.constant 0 : i32
    return %c0_i32, %arg1 : i32, i32
  }
  func.func @transform_3(%arg0: i32, %arg1: i32, %arg2: i32) -> (i32, i32) {
    %c0_i32 = arith.constant 0 : i32
    %c0_i32_0 = arith.constant 0 : i32
    return %c0_i32, %arg1 : i32, i32
  }
  func.func @transform_4(%arg0: i32, %arg1: i32, %arg2: i32) -> (i32, i32) {
    %c0_i32 = arith.constant 0 : i32
    return %arg0, %arg1 : i32, i32
  }
}

module attributes {stable_mosaic.version = 11 : i64} {
  func.func @_matmul_bn_kernel(%arg0: i32, %arg1: i32, %arg2: i32, %arg3: memref<32x128xbf16, #tpu.memory_space<vmem>>, %arg4: memref<128x128xbf16, #tpu.memory_space<vmem>>, %arg5: memref<1x128xf32, #tpu.memory_space<vmem>>, %arg6: memref<1x128xf32, #tpu.memory_space<vmem>>, %arg7: memref<32x128xbf16, #tpu.memory_space<vmem>>, %arg8: memref<32x128xf32, #tpu.memory_space<vmem>>) attributes {dimension_semantics = [#tpu.dimension_semantics<parallel>, #tpu.dimension_semantics<parallel>, #tpu.dimension_semantics<arbitrary>], iteration_bounds = array<i64: 1, 1, 5>, scalar_prefetch = 0 : i64, scratch_operands = 1 : i64, tpu.core_type = #tpu.core_type<tc>, window_params = [{transform_indices = @transform_0, window_bounds = array<i64: 32, 128>}, {transform_indices = @transform_1, window_bounds = array<i64: 128, 128>}, {transform_indices = @transform_2, window_bounds = array<i64: 1, 128>}, {transform_indices = @transform_3, window_bounds = array<i64: 1, 128>}, {transform_indices = @transform_4, window_bounds = array<i64: 32, 128>}]} {
    %c0_i32 = arith.constant 0 : i32
    %0 = arith.cmpi eq, %arg2, %c0_i32 : i32
    %1 = arith.extui %0 : i1 to i32
    %c0_i32_0 = arith.constant 0 : i32
    %2 = arith.cmpi ne, %1, %c0_i32_0 : i32
    scf.if %2 {
      %cst_9 = arith.constant 0.000000e+00 : f32
      %12 = vector.broadcast %cst_9 : f32 to vector<32x128xf32>
      %c0_10 = arith.constant 0 : index
      %c0_11 = arith.constant 0 : index
      %13 = vector.load %arg8[%c0_10, %c0_11] : memref<32x128xf32, #tpu.memory_space<vmem>>, vector<32x128xf32>
      tpu.vector_store %arg8[%c0_10, %c0_11], %12 {strides = array<i32>} : memref<32x128xf32, #tpu.memory_space<vmem>>, vector<32x128xf32>,
    } else {
    }
    %c0 = arith.constant 0 : index
    %c0_1 = arith.constant 0 : index
    %3 = vector.load %arg8[%c0, %c0_1] : memref<32x128xf32, #tpu.memory_space<vmem>>, vector<32x128xf32>
    %c0_2 = arith.constant 0 : index
    %c0_3 = arith.constant 0 : index
    %4 = vector.load %arg3[%c0_2, %c0_3] : memref<32x128xbf16, #tpu.memory_space<vmem>>, vector<32x128xbf16>
    %c0_4 = arith.constant 0 : index
    %c0_5 = arith.constant 0 : index
    %5 = vector.load %arg4[%c0_4, %c0_5] : memref<128x128xbf16, #tpu.memory_space<vmem>>, vector<128x128xbf16>
    %cst = arith.constant dense<0.000000e+00> : vector<32x128xf32>
    %6 = tpu.matmul %4, %5, %cst {dimension_numbers = #tpu.dot_dimension_numbers<[1], [0], [0], [1], [0, 0, 1, 1], [], []>} : vector<32x128xbf16>, vector<128x128xbf16>, vector<32x128xf32> -> vector<32x128xf32>
    %7 = arith.addf %3, %6 : vector<32x128xf32>
    %c0_6 = arith.constant 0 : index
    %c0_7 = arith.constant 0 : index
    %8 = vector.load %arg8[%c0_6, %c0_7] : memref<32x128xf32, #tpu.memory_space<vmem>>, vector<32x128xf32>
    tpu.vector_store %arg8[%c0_6, %c0_7], %7 {strides = array<i32>} : memref<32x128xf32, #tpu.memory_space<vmem>>, vector<32x128xf32>,
    %c4_i32 = arith.constant 4 : i32
    %9 = arith.cmpi eq, %arg2, %c4_i32 : i32
    %10 = arith.extui %9 : i1 to i32
    %c0_i32_8 = arith.constant 0 : i32
    %11 = arith.cmpi ne, %10, %c0_i32_8 : i32
    scf.if %11 {
      %c0_9 = arith.constant 0 : index
      %c0_10 = arith.constant 0 : index
      %12 = vector.load %arg8[%c0_9, %c0_10] : memref<32x128xf32, #tpu.memory_space<vmem>>, vector<32x128xf32>
      %c0_11 = arith.constant 0 : index
      %c0_12 = arith.constant 0 : index
      %13 = vector.load %arg5[%c0_11, %c0_12] : memref<1x128xf32, #tpu.memory_space<vmem>>, vector<1x128xf32>
      %14 = vector.broadcast %13 : vector<1x128xf32> to vector<32x128xf32>
      %15 = arith.mulf %12, %14 : vector<32x128xf32>
      %c0_13 = arith.constant 0 : index
      %c0_14 = arith.constant 0 : index
      %16 = vector.load %arg6[%c0_13, %c0_14] : memref<1x128xf32, #tpu.memory_space<vmem>>, vector<1x128xf32>
      %17 = vector.broadcast %16 : vector<1x128xf32> to vector<32x128xf32>
      %18 = arith.addf %15, %17 : vector<32x128xf32>
      %cst_15 = arith.constant 0.000000e+00 : f32
      %19 = vector.broadcast %cst_15 : f32 to vector<32x128xf32>
      %20 = arith.maximumf %18, %19 : vector<32x128xf32>
      %21 = arith.truncf %20 : vector<32x128xf32> to vector<32x128xbf16>
      %c0_16 = arith.constant 0 : index
      %c0_17 = arith.constant 0 : index
      %22 = vector.load %arg7[%c0_16, %c0_17] : memref<32x128xbf16, #tpu.memory_space<vmem>>, vector<32x128xbf16>
      tpu.vector_store %arg7[%c0_16, %c0_17], %21 {strides = array<i32>} : memref<32x128xbf16, #tpu.memory_space<vmem>>, vector<32x128xbf16>,
    } else {
    }
    return
  }
  func.func @transform_0(%arg0: i32, %arg1: i32, %arg2: i32) -> (i32, i32) {
    %c0_i32 = arith.constant 0 : i32
    return %arg0, %arg2 : i32, i32
  }
  func.func @transform_1(%arg0: i32, %arg1: i32, %arg2: i32) -> (i32, i32) {
    %c0_i32 = arith.constant 0 : i32
    return %arg2, %arg1 : i32, i32
  }
  func.func @transform_2(%arg0: i32, %arg1: i32, %arg2: i32) -> (i32, i32) {
    %c0_i32 = arith.constant 0 : i32
    %c0_i32_0 = arith.constant 0 : i32
    return %c0_i32, %arg1 : i32, i32
  }
  func.func @transform_3(%arg0: i32, %arg1: i32, %arg2: i32) -> (i32, i32) {
    %c0_i32 = arith.constant 0 : i32
    %c0_i32_0 = arith.constant 0 : i32
    return %c0_i32, %arg1 : i32, i32
  }
  func.func @transform_4(%arg0: i32, %arg1: i32, %arg2: i32) -> (i32, i32) {
    %c0_i32 = arith.constant 0 : i32
    return %arg0, %arg1 : i32, i32
  }
}

module attributes {stable_mosaic.version = 11 : i64} {
  func.func @_matmul_bn_kernel(%arg0: i32, %arg1: i32, %arg2: i32, %arg3: memref<32x128xbf16, #tpu.memory_space<vmem>>, %arg4: memref<128x128xbf16, #tpu.memory_space<vmem>>, %arg5: memref<1x128xf32, #tpu.memory_space<vmem>>, %arg6: memref<1x128xf32, #tpu.memory_space<vmem>>, %arg7: memref<32x128xbf16, #tpu.memory_space<vmem>>, %arg8: memref<32x128xf32, #tpu.memory_space<vmem>>) attributes {dimension_semantics = [#tpu.dimension_semantics<parallel>, #tpu.dimension_semantics<parallel>, #tpu.dimension_semantics<arbitrary>], iteration_bounds = array<i64: 1, 1, 1>, scalar_prefetch = 0 : i64, scratch_operands = 1 : i64, tpu.core_type = #tpu.core_type<tc>, window_params = [{transform_indices = @transform_0, window_bounds = array<i64: 32, 128>}, {transform_indices = @transform_1, window_bounds = array<i64: 128, 128>}, {transform_indices = @transform_2, window_bounds = array<i64: 1, 128>}, {transform_indices = @transform_3, window_bounds = array<i64: 1, 128>}, {transform_indices = @transform_4, window_bounds = array<i64: 32, 128>}]} {
    %c0_i32 = arith.constant 0 : i32
    %0 = arith.cmpi eq, %arg2, %c0_i32 : i32
    %1 = arith.extui %0 : i1 to i32
    %c0_i32_0 = arith.constant 0 : i32
    %2 = arith.cmpi ne, %1, %c0_i32_0 : i32
    scf.if %2 {
      %cst_10 = arith.constant 0.000000e+00 : f32
      %12 = vector.broadcast %cst_10 : f32 to vector<32x128xf32>
      %c0_11 = arith.constant 0 : index
      %c0_12 = arith.constant 0 : index
      %13 = vector.load %arg8[%c0_11, %c0_12] : memref<32x128xf32, #tpu.memory_space<vmem>>, vector<32x128xf32>
      tpu.vector_store %arg8[%c0_11, %c0_12], %12 {strides = array<i32>} : memref<32x128xf32, #tpu.memory_space<vmem>>, vector<32x128xf32>,
    } else {
    }
    %c0 = arith.constant 0 : index
    %c0_1 = arith.constant 0 : index
    %3 = vector.load %arg8[%c0, %c0_1] : memref<32x128xf32, #tpu.memory_space<vmem>>, vector<32x128xf32>
    %c0_2 = arith.constant 0 : index
    %c0_3 = arith.constant 0 : index
    %4 = vector.load %arg3[%c0_2, %c0_3] : memref<32x128xbf16, #tpu.memory_space<vmem>>, vector<32x128xbf16>
    %c0_4 = arith.constant 0 : index
    %c0_5 = arith.constant 0 : index
    %5 = vector.load %arg4[%c0_4, %c0_5] : memref<128x128xbf16, #tpu.memory_space<vmem>>, vector<128x128xbf16>
    %cst = arith.constant dense<0.000000e+00> : vector<32x128xf32>
    %6 = tpu.matmul %4, %5, %cst {dimension_numbers = #tpu.dot_dimension_numbers<[1], [0], [0], [1], [0, 0, 1, 1], [], []>} : vector<32x128xbf16>, vector<128x128xbf16>, vector<32x128xf32> -> vector<32x128xf32>
    %7 = arith.addf %3, %6 : vector<32x128xf32>
    %c0_6 = arith.constant 0 : index
    %c0_7 = arith.constant 0 : index
    %8 = vector.load %arg8[%c0_6, %c0_7] : memref<32x128xf32, #tpu.memory_space<vmem>>, vector<32x128xf32>
    tpu.vector_store %arg8[%c0_6, %c0_7], %7 {strides = array<i32>} : memref<32x128xf32, #tpu.memory_space<vmem>>, vector<32x128xf32>,
    %c0_i32_8 = arith.constant 0 : i32
    %9 = arith.cmpi eq, %arg2, %c0_i32_8 : i32
    %10 = arith.extui %9 : i1 to i32
    %c0_i32_9 = arith.constant 0 : i32
    %11 = arith.cmpi ne, %10, %c0_i32_9 : i32
    scf.if %11 {
      %c0_10 = arith.constant 0 : index
      %c0_11 = arith.constant 0 : index
      %12 = vector.load %arg8[%c0_10, %c0_11] : memref<32x128xf32, #tpu.memory_space<vmem>>, vector<32x128xf32>
      %c0_12 = arith.constant 0 : index
      %c0_13 = arith.constant 0 : index
      %13 = vector.load %arg5[%c0_12, %c0_13] : memref<1x128xf32, #tpu.memory_space<vmem>>, vector<1x128xf32>
      %14 = vector.broadcast %13 : vector<1x128xf32> to vector<32x128xf32>
      %15 = arith.mulf %12, %14 : vector<32x128xf32>
      %c0_14 = arith.constant 0 : index
      %c0_15 = arith.constant 0 : index
      %16 = vector.load %arg6[%c0_14, %c0_15] : memref<1x128xf32, #tpu.memory_space<vmem>>, vector<1x128xf32>
      %17 = vector.broadcast %16 : vector<1x128xf32> to vector<32x128xf32>
      %18 = arith.addf %15, %17 : vector<32x128xf32>
      %19 = arith.truncf %18 : vector<32x128xf32> to vector<32x128xbf16>
      %c0_16 = arith.constant 0 : index
      %c0_17 = arith.constant 0 : index
      %20 = vector.load %arg7[%c0_16, %c0_17] : memref<32x128xbf16, #tpu.memory_space<vmem>>, vector<32x128xbf16>
      tpu.vector_store %arg7[%c0_16, %c0_17], %19 {strides = array<i32>} : memref<32x128xbf16, #tpu.memory_space<vmem>>, vector<32x128xbf16>,
    } else {
    }
    return
  }
  func.func @transform_0(%arg0: i32, %arg1: i32, %arg2: i32) -> (i32, i32) {
    %c0_i32 = arith.constant 0 : i32
    return %arg0, %arg2 : i32, i32
  }
  func.func @transform_1(%arg0: i32, %arg1: i32, %arg2: i32) -> (i32, i32) {
    %c0_i32 = arith.constant 0 : i32
    return %arg2, %arg1 : i32, i32
  }
  func.func @transform_2(%arg0: i32, %arg1: i32, %arg2: i32) -> (i32, i32) {
    %c0_i32 = arith.constant 0 : i32
    %c0_i32_0 = arith.constant 0 : i32
    return %c0_i32, %arg1 : i32, i32
  }
  func.func @transform_3(%arg0: i32, %arg1: i32, %arg2: i32) -> (i32, i32) {
    %c0_i32 = arith.constant 0 : i32
    %c0_i32_0 = arith.constant 0 : i32
    return %c0_i32, %arg1 : i32, i32
  }
  func.func @transform_4(%arg0: i32, %arg1: i32, %arg2: i32) -> (i32, i32) {
    %c0_i32 = arith.constant 0 : i32
    return %arg0, %arg1 : i32, i32
  }
}

module attributes {stable_mosaic.version = 11 : i64} {
  func.func @_matmul_bn_add_relu_kernel(%arg0: i32, %arg1: i32, %arg2: i32, %arg3: memref<32x384xbf16, #tpu.memory_space<vmem>>, %arg4: memref<384x128xbf16, #tpu.memory_space<vmem>>, %arg5: memref<1x128xf32, #tpu.memory_space<vmem>>, %arg6: memref<1x128xf32, #tpu.memory_space<vmem>>, %arg7: memref<32x128xbf16, #tpu.memory_space<vmem>>, %arg8: memref<32x128xbf16, #tpu.memory_space<vmem>>, %arg9: memref<32x128xf32, #tpu.memory_space<vmem>>) attributes {dimension_semantics = [#tpu.dimension_semantics<parallel>, #tpu.dimension_semantics<parallel>, #tpu.dimension_semantics<arbitrary>], iteration_bounds = array<i64: 1, 1, 3>, scalar_prefetch = 0 : i64, scratch_operands = 1 : i64, tpu.core_type = #tpu.core_type<tc>, window_params = [{transform_indices = @transform_0, window_bounds = array<i64: 32, 384>}, {transform_indices = @transform_1, window_bounds = array<i64: 384, 128>}, {transform_indices = @transform_2, window_bounds = array<i64: 1, 128>}, {transform_indices = @transform_3, window_bounds = array<i64: 1, 128>}, {transform_indices = @transform_4, window_bounds = array<i64: 32, 128>}, {transform_indices = @transform_5, window_bounds = array<i64: 32, 128>}]} {
    %c0_i32 = arith.constant 0 : i32
    %0 = arith.cmpi eq, %arg2, %c0_i32 : i32
    %1 = arith.extui %0 : i1 to i32
    %c0_i32_0 = arith.constant 0 : i32
    %2 = arith.cmpi ne, %1, %c0_i32_0 : i32
    scf.if %2 {
      %cst_9 = arith.constant 0.000000e+00 : f32
      %12 = vector.broadcast %cst_9 : f32 to vector<32x128xf32>
      %c0_10 = arith.constant 0 : index
      %c0_11 = arith.constant 0 : index
      %13 = vector.load %arg9[%c0_10, %c0_11] : memref<32x128xf32, #tpu.memory_space<vmem>>, vector<32x128xf32>
      tpu.vector_store %arg9[%c0_10, %c0_11], %12 {strides = array<i32>} : memref<32x128xf32, #tpu.memory_space<vmem>>, vector<32x128xf32>,
    } else {
    }
    %c0 = arith.constant 0 : index
    %c0_1 = arith.constant 0 : index
    %3 = vector.load %arg9[%c0, %c0_1] : memref<32x128xf32, #tpu.memory_space<vmem>>, vector<32x128xf32>
    %c0_2 = arith.constant 0 : index
    %c0_3 = arith.constant 0 : index
    %4 = vector.load %arg3[%c0_2, %c0_3] : memref<32x384xbf16, #tpu.memory_space<vmem>>, vector<32x384xbf16>
    %c0_4 = arith.constant 0 : index
    %c0_5 = arith.constant 0 : index
    %5 = vector.load %arg4[%c0_4, %c0_5] : memref<384x128xbf16, #tpu.memory_space<vmem>>, vector<384x128xbf16>
    %cst = arith.constant dense<0.000000e+00> : vector<32x128xf32>
    %6 = tpu.matmul %4, %5, %cst {dimension_numbers = #tpu.dot_dimension_numbers<[1], [0], [0], [1], [0, 0, 1, 1], [], []>} : vector<32x384xbf16>, vector<384x128xbf16>, vector<32x128xf32> -> vector<32x128xf32>
    %7 = arith.addf %3, %6 : vector<32x128xf32>
    %c0_6 = arith.constant 0 : index
    %c0_7 = arith.constant 0 : index
    %8 = vector.load %arg9[%c0_6, %c0_7] : memref<32x128xf32, #tpu.memory_space<vmem>>, vector<32x128xf32>
    tpu.vector_store %arg9[%c0_6, %c0_7], %7 {strides = array<i32>} : memref<32x128xf32, #tpu.memory_space<vmem>>, vector<32x128xf32>,
    %c2_i32 = arith.constant 2 : i32
    %9 = arith.cmpi eq, %arg2, %c2_i32 : i32
    %10 = arith.extui %9 : i1 to i32
    %c0_i32_8 = arith.constant 0 : i32
    %11 = arith.cmpi ne, %10, %c0_i32_8 : i32
    scf.if %11 {
      %c0_9 = arith.constant 0 : index
      %c0_10 = arith.constant 0 : index
      %12 = vector.load %arg9[%c0_9, %c0_10] : memref<32x128xf32, #tpu.memory_space<vmem>>, vector<32x128xf32>
      %c0_11 = arith.constant 0 : index
      %c0_12 = arith.constant 0 : index
      %13 = vector.load %arg5[%c0_11, %c0_12] : memref<1x128xf32, #tpu.memory_space<vmem>>, vector<1x128xf32>
      %14 = vector.broadcast %13 : vector<1x128xf32> to vector<32x128xf32>
      %15 = arith.mulf %12, %14 : vector<32x128xf32>
      %c0_13 = arith.constant 0 : index
      %c0_14 = arith.constant 0 : index
      %16 = vector.load %arg6[%c0_13, %c0_14] : memref<1x128xf32, #tpu.memory_space<vmem>>, vector<1x128xf32>
      %17 = vector.broadcast %16 : vector<1x128xf32> to vector<32x128xf32>
      %18 = arith.addf %15, %17 : vector<32x128xf32>
      %c0_15 = arith.constant 0 : index
      %c0_16 = arith.constant 0 : index
      %19 = vector.load %arg7[%c0_15, %c0_16] : memref<32x128xbf16, #tpu.memory_space<vmem>>, vector<32x128xbf16>
      %20 = arith.extf %19 : vector<32x128xbf16> to vector<32x128xf32>
      %21 = arith.addf %18, %20 : vector<32x128xf32>
      %cst_17 = arith.constant 0.000000e+00 : f32
      %22 = vector.broadcast %cst_17 : f32 to vector<32x128xf32>
      %23 = arith.maximumf %21, %22 : vector<32x128xf32>
      %24 = arith.truncf %23 : vector<32x128xf32> to vector<32x128xbf16>
      %c0_18 = arith.constant 0 : index
      %c0_19 = arith.constant 0 : index
      %25 = vector.load %arg8[%c0_18, %c0_19] : memref<32x128xbf16, #tpu.memory_space<vmem>>, vector<32x128xbf16>
      tpu.vector_store %arg8[%c0_18, %c0_19], %24 {strides = array<i32>} : memref<32x128xbf16, #tpu.memory_space<vmem>>, vector<32x128xbf16>,
    } else {
    }
    return
  }
  func.func @transform_0(%arg0: i32, %arg1: i32, %arg2: i32) -> (i32, i32) {
    %c0_i32 = arith.constant 0 : i32
    return %arg0, %arg2 : i32, i32
  }
  func.func @transform_1(%arg0: i32, %arg1: i32, %arg2: i32) -> (i32, i32) {
    %c0_i32 = arith.constant 0 : i32
    return %arg2, %arg1 : i32, i32
  }
  func.func @transform_2(%arg0: i32, %arg1: i32, %arg2: i32) -> (i32, i32) {
    %c0_i32 = arith.constant 0 : i32
    %c0_i32_0 = arith.constant 0 : i32
    return %c0_i32, %arg1 : i32, i32
  }
  func.func @transform_3(%arg0: i32, %arg1: i32, %arg2: i32) -> (i32, i32) {
    %c0_i32 = arith.constant 0 : i32
    %c0_i32_0 = arith.constant 0 : i32
    return %c0_i32, %arg1 : i32, i32
  }
  func.func @transform_4(%arg0: i32, %arg1: i32, %arg2: i32) -> (i32, i32) {
    %c0_i32 = arith.constant 0 : i32
    return %arg0, %arg1 : i32, i32
  }
  func.func @transform_5(%arg0: i32, %arg1: i32, %arg2: i32) -> (i32, i32) {
    %c0_i32 = arith.constant 0 : i32
    return %arg0, %arg1 : i32, i32
  }
}

module attributes {stable_mosaic.version = 11 : i64} {
  func.func @_matmul_bn_kernel(%arg0: i32, %arg1: i32, %arg2: i32, %arg3: memref<32x384xbf16, #tpu.memory_space<vmem>>, %arg4: memref<384x128xbf16, #tpu.memory_space<vmem>>, %arg5: memref<1x128xf32, #tpu.memory_space<vmem>>, %arg6: memref<1x128xf32, #tpu.memory_space<vmem>>, %arg7: memref<32x128xbf16, #tpu.memory_space<vmem>>, %arg8: memref<32x128xf32, #tpu.memory_space<vmem>>) attributes {dimension_semantics = [#tpu.dimension_semantics<parallel>, #tpu.dimension_semantics<parallel>, #tpu.dimension_semantics<arbitrary>], iteration_bounds = array<i64: 1, 1, 3>, scalar_prefetch = 0 : i64, scratch_operands = 1 : i64, tpu.core_type = #tpu.core_type<tc>, window_params = [{transform_indices = @transform_0, window_bounds = array<i64: 32, 384>}, {transform_indices = @transform_1, window_bounds = array<i64: 384, 128>}, {transform_indices = @transform_2, window_bounds = array<i64: 1, 128>}, {transform_indices = @transform_3, window_bounds = array<i64: 1, 128>}, {transform_indices = @transform_4, window_bounds = array<i64: 32, 128>}]} {
    %c0_i32 = arith.constant 0 : i32
    %0 = arith.cmpi eq, %arg2, %c0_i32 : i32
    %1 = arith.extui %0 : i1 to i32
    %c0_i32_0 = arith.constant 0 : i32
    %2 = arith.cmpi ne, %1, %c0_i32_0 : i32
    scf.if %2 {
      %cst_9 = arith.constant 0.000000e+00 : f32
      %12 = vector.broadcast %cst_9 : f32 to vector<32x128xf32>
      %c0_10 = arith.constant 0 : index
      %c0_11 = arith.constant 0 : index
      %13 = vector.load %arg8[%c0_10, %c0_11] : memref<32x128xf32, #tpu.memory_space<vmem>>, vector<32x128xf32>
      tpu.vector_store %arg8[%c0_10, %c0_11], %12 {strides = array<i32>} : memref<32x128xf32, #tpu.memory_space<vmem>>, vector<32x128xf32>,
    } else {
    }
    %c0 = arith.constant 0 : index
    %c0_1 = arith.constant 0 : index
    %3 = vector.load %arg8[%c0, %c0_1] : memref<32x128xf32, #tpu.memory_space<vmem>>, vector<32x128xf32>
    %c0_2 = arith.constant 0 : index
    %c0_3 = arith.constant 0 : index
    %4 = vector.load %arg3[%c0_2, %c0_3] : memref<32x384xbf16, #tpu.memory_space<vmem>>, vector<32x384xbf16>
    %c0_4 = arith.constant 0 : index
    %c0_5 = arith.constant 0 : index
    %5 = vector.load %arg4[%c0_4, %c0_5] : memref<384x128xbf16, #tpu.memory_space<vmem>>, vector<384x128xbf16>
    %cst = arith.constant dense<0.000000e+00> : vector<32x128xf32>
    %6 = tpu.matmul %4, %5, %cst {dimension_numbers = #tpu.dot_dimension_numbers<[1], [0], [0], [1], [0, 0, 1, 1], [], []>} : vector<32x384xbf16>, vector<384x128xbf16>, vector<32x128xf32> -> vector<32x128xf32>
    %7 = arith.addf %3, %6 : vector<32x128xf32>
    %c0_6 = arith.constant 0 : index
    %c0_7 = arith.constant 0 : index
    %8 = vector.load %arg8[%c0_6, %c0_7] : memref<32x128xf32, #tpu.memory_space<vmem>>, vector<32x128xf32>
    tpu.vector_store %arg8[%c0_6, %c0_7], %7 {strides = array<i32>} : memref<32x128xf32, #tpu.memory_space<vmem>>, vector<32x128xf32>,
    %c2_i32 = arith.constant 2 : i32
    %9 = arith.cmpi eq, %arg2, %c2_i32 : i32
    %10 = arith.extui %9 : i1 to i32
    %c0_i32_8 = arith.constant 0 : i32
    %11 = arith.cmpi ne, %10, %c0_i32_8 : i32
    scf.if %11 {
      %c0_9 = arith.constant 0 : index
      %c0_10 = arith.constant 0 : index
      %12 = vector.load %arg8[%c0_9, %c0_10] : memref<32x128xf32, #tpu.memory_space<vmem>>, vector<32x128xf32>
      %c0_11 = arith.constant 0 : index
      %c0_12 = arith.constant 0 : index
      %13 = vector.load %arg5[%c0_11, %c0_12] : memref<1x128xf32, #tpu.memory_space<vmem>>, vector<1x128xf32>
      %14 = vector.broadcast %13 : vector<1x128xf32> to vector<32x128xf32>
      %15 = arith.mulf %12, %14 : vector<32x128xf32>
      %c0_13 = arith.constant 0 : index
      %c0_14 = arith.constant 0 : index
      %16 = vector.load %arg6[%c0_13, %c0_14] : memref<1x128xf32, #tpu.memory_space<vmem>>, vector<1x128xf32>
      %17 = vector.broadcast %16 : vector<1x128xf32> to vector<32x128xf32>
      %18 = arith.addf %15, %17 : vector<32x128xf32>
      %cst_15 = arith.constant 0.000000e+00 : f32
      %19 = vector.broadcast %cst_15 : f32 to vector<32x128xf32>
      %20 = arith.maximumf %18, %19 : vector<32x128xf32>
      %21 = arith.truncf %20 : vector<32x128xf32> to vector<32x128xbf16>
      %c0_16 = arith.constant 0 : index
      %c0_17 = arith.constant 0 : index
      %22 = vector.load %arg7[%c0_16, %c0_17] : memref<32x128xbf16, #tpu.memory_space<vmem>>, vector<32x128xbf16>
      tpu.vector_store %arg7[%c0_16, %c0_17], %21 {strides = array<i32>} : memref<32x128xbf16, #tpu.memory_space<vmem>>, vector<32x128xbf16>,
    } else {
    }
    return
  }
  func.func @transform_0(%arg0: i32, %arg1: i32, %arg2: i32) -> (i32, i32) {
    %c0_i32 = arith.constant 0 : i32
    return %arg0, %arg2 : i32, i32
  }
  func.func @transform_1(%arg0: i32, %arg1: i32, %arg2: i32) -> (i32, i32) {
    %c0_i32 = arith.constant 0 : i32
    return %arg2, %arg1 : i32, i32
  }
  func.func @transform_2(%arg0: i32, %arg1: i32, %arg2: i32) -> (i32, i32) {
    %c0_i32 = arith.constant 0 : i32
    %c0_i32_0 = arith.constant 0 : i32
    return %c0_i32, %arg1 : i32, i32
  }
  func.func @transform_3(%arg0: i32, %arg1: i32, %arg2: i32) -> (i32, i32) {
    %c0_i32 = arith.constant 0 : i32
    %c0_i32_0 = arith.constant 0 : i32
    return %c0_i32, %arg1 : i32, i32
  }
  func.func @transform_4(%arg0: i32, %arg1: i32, %arg2: i32) -> (i32, i32) {
    %c0_i32 = arith.constant 0 : i32
    return %arg0, %arg1 : i32, i32
  }
}

module attributes {stable_mosaic.version = 11 : i64} {
  func.func @_matmul_bn_kernel(%arg0: i32, %arg1: i32, %arg2: i32, %arg3: memref<16x384xbf16, #tpu.memory_space<vmem>>, %arg4: memref<384x256xbf16, #tpu.memory_space<vmem>>, %arg5: memref<1x256xf32, #tpu.memory_space<vmem>>, %arg6: memref<1x256xf32, #tpu.memory_space<vmem>>, %arg7: memref<16x256xbf16, #tpu.memory_space<vmem>>, %arg8: memref<16x256xf32, #tpu.memory_space<vmem>>) attributes {dimension_semantics = [#tpu.dimension_semantics<parallel>, #tpu.dimension_semantics<parallel>, #tpu.dimension_semantics<arbitrary>], iteration_bounds = array<i64: 1, 1, 3>, scalar_prefetch = 0 : i64, scratch_operands = 1 : i64, tpu.core_type = #tpu.core_type<tc>, window_params = [{transform_indices = @transform_0, window_bounds = array<i64: 16, 384>}, {transform_indices = @transform_1, window_bounds = array<i64: 384, 256>}, {transform_indices = @transform_2, window_bounds = array<i64: 1, 256>}, {transform_indices = @transform_3, window_bounds = array<i64: 1, 256>}, {transform_indices = @transform_4, window_bounds = array<i64: 16, 256>}]} {
    %c0_i32 = arith.constant 0 : i32
    %0 = arith.cmpi eq, %arg2, %c0_i32 : i32
    %1 = arith.extui %0 : i1 to i32
    %c0_i32_0 = arith.constant 0 : i32
    %2 = arith.cmpi ne, %1, %c0_i32_0 : i32
    scf.if %2 {
      %cst_9 = arith.constant 0.000000e+00 : f32
      %12 = vector.broadcast %cst_9 : f32 to vector<16x256xf32>
      %c0_10 = arith.constant 0 : index
      %c0_11 = arith.constant 0 : index
      %13 = vector.load %arg8[%c0_10, %c0_11] : memref<16x256xf32, #tpu.memory_space<vmem>>, vector<16x256xf32>
      tpu.vector_store %arg8[%c0_10, %c0_11], %12 {strides = array<i32>} : memref<16x256xf32, #tpu.memory_space<vmem>>, vector<16x256xf32>,
    } else {
    }
    %c0 = arith.constant 0 : index
    %c0_1 = arith.constant 0 : index
    %3 = vector.load %arg8[%c0, %c0_1] : memref<16x256xf32, #tpu.memory_space<vmem>>, vector<16x256xf32>
    %c0_2 = arith.constant 0 : index
    %c0_3 = arith.constant 0 : index
    %4 = vector.load %arg3[%c0_2, %c0_3] : memref<16x384xbf16, #tpu.memory_space<vmem>>, vector<16x384xbf16>
    %c0_4 = arith.constant 0 : index
    %c0_5 = arith.constant 0 : index
    %5 = vector.load %arg4[%c0_4, %c0_5] : memref<384x256xbf16, #tpu.memory_space<vmem>>, vector<384x256xbf16>
    %cst = arith.constant dense<0.000000e+00> : vector<16x256xf32>
    %6 = tpu.matmul %4, %5, %cst {dimension_numbers = #tpu.dot_dimension_numbers<[1], [0], [0], [1], [0, 0, 1, 1], [], []>} : vector<16x384xbf16>, vector<384x256xbf16>, vector<16x256xf32> -> vector<16x256xf32>
    %7 = arith.addf %3, %6 : vector<16x256xf32>
    %c0_6 = arith.constant 0 : index
    %c0_7 = arith.constant 0 : index
    %8 = vector.load %arg8[%c0_6, %c0_7] : memref<16x256xf32, #tpu.memory_space<vmem>>, vector<16x256xf32>
    tpu.vector_store %arg8[%c0_6, %c0_7], %7 {strides = array<i32>} : memref<16x256xf32, #tpu.memory_space<vmem>>, vector<16x256xf32>,
    %c2_i32 = arith.constant 2 : i32
    %9 = arith.cmpi eq, %arg2, %c2_i32 : i32
    %10 = arith.extui %9 : i1 to i32
    %c0_i32_8 = arith.constant 0 : i32
    %11 = arith.cmpi ne, %10, %c0_i32_8 : i32
    scf.if %11 {
      %c0_9 = arith.constant 0 : index
      %c0_10 = arith.constant 0 : index
      %12 = vector.load %arg8[%c0_9, %c0_10] : memref<16x256xf32, #tpu.memory_space<vmem>>, vector<16x256xf32>
      %c0_11 = arith.constant 0 : index
      %c0_12 = arith.constant 0 : index
      %13 = vector.load %arg5[%c0_11, %c0_12] : memref<1x256xf32, #tpu.memory_space<vmem>>, vector<1x256xf32>
      %14 = vector.broadcast %13 : vector<1x256xf32> to vector<16x256xf32>
      %15 = arith.mulf %12, %14 : vector<16x256xf32>
      %c0_13 = arith.constant 0 : index
      %c0_14 = arith.constant 0 : index
      %16 = vector.load %arg6[%c0_13, %c0_14] : memref<1x256xf32, #tpu.memory_space<vmem>>, vector<1x256xf32>
      %17 = vector.broadcast %16 : vector<1x256xf32> to vector<16x256xf32>
      %18 = arith.addf %15, %17 : vector<16x256xf32>
      %cst_15 = arith.constant 0.000000e+00 : f32
      %19 = vector.broadcast %cst_15 : f32 to vector<16x256xf32>
      %20 = arith.maximumf %18, %19 : vector<16x256xf32>
      %21 = arith.truncf %20 : vector<16x256xf32> to vector<16x256xbf16>
      %c0_16 = arith.constant 0 : index
      %c0_17 = arith.constant 0 : index
      %22 = vector.load %arg7[%c0_16, %c0_17] : memref<16x256xbf16, #tpu.memory_space<vmem>>, vector<16x256xbf16>
      tpu.vector_store %arg7[%c0_16, %c0_17], %21 {strides = array<i32>} : memref<16x256xbf16, #tpu.memory_space<vmem>>, vector<16x256xbf16>,
    } else {
    }
    return
  }
  func.func @transform_0(%arg0: i32, %arg1: i32, %arg2: i32) -> (i32, i32) {
    %c0_i32 = arith.constant 0 : i32
    return %arg0, %arg2 : i32, i32
  }
  func.func @transform_1(%arg0: i32, %arg1: i32, %arg2: i32) -> (i32, i32) {
    %c0_i32 = arith.constant 0 : i32
    return %arg2, %arg1 : i32, i32
  }
  func.func @transform_2(%arg0: i32, %arg1: i32, %arg2: i32) -> (i32, i32) {
    %c0_i32 = arith.constant 0 : i32
    %c0_i32_0 = arith.constant 0 : i32
    return %c0_i32, %arg1 : i32, i32
  }
  func.func @transform_3(%arg0: i32, %arg1: i32, %arg2: i32) -> (i32, i32) {
    %c0_i32 = arith.constant 0 : i32
    %c0_i32_0 = arith.constant 0 : i32
    return %c0_i32, %arg1 : i32, i32
  }
  func.func @transform_4(%arg0: i32, %arg1: i32, %arg2: i32) -> (i32, i32) {
    %c0_i32 = arith.constant 0 : i32
    return %arg0, %arg1 : i32, i32
  }
}

module attributes {stable_mosaic.version = 11 : i64} {
  func.func @_matmul_bn_kernel(%arg0: i32, %arg1: i32, %arg2: i32, %arg3: memref<16x128xbf16, #tpu.memory_space<vmem>>, %arg4: memref<128x256xbf16, #tpu.memory_space<vmem>>, %arg5: memref<1x256xf32, #tpu.memory_space<vmem>>, %arg6: memref<1x256xf32, #tpu.memory_space<vmem>>, %arg7: memref<16x256xbf16, #tpu.memory_space<vmem>>, %arg8: memref<16x256xf32, #tpu.memory_space<vmem>>) attributes {dimension_semantics = [#tpu.dimension_semantics<parallel>, #tpu.dimension_semantics<parallel>, #tpu.dimension_semantics<arbitrary>], iteration_bounds = array<i64: 1, 1, 1>, scalar_prefetch = 0 : i64, scratch_operands = 1 : i64, tpu.core_type = #tpu.core_type<tc>, window_params = [{transform_indices = @transform_0, window_bounds = array<i64: 16, 128>}, {transform_indices = @transform_1, window_bounds = array<i64: 128, 256>}, {transform_indices = @transform_2, window_bounds = array<i64: 1, 256>}, {transform_indices = @transform_3, window_bounds = array<i64: 1, 256>}, {transform_indices = @transform_4, window_bounds = array<i64: 16, 256>}]} {
    %c0_i32 = arith.constant 0 : i32
    %0 = arith.cmpi eq, %arg2, %c0_i32 : i32
    %1 = arith.extui %0 : i1 to i32
    %c0_i32_0 = arith.constant 0 : i32
    %2 = arith.cmpi ne, %1, %c0_i32_0 : i32
    scf.if %2 {
      %cst_10 = arith.constant 0.000000e+00 : f32
      %12 = vector.broadcast %cst_10 : f32 to vector<16x256xf32>
      %c0_11 = arith.constant 0 : index
      %c0_12 = arith.constant 0 : index
      %13 = vector.load %arg8[%c0_11, %c0_12] : memref<16x256xf32, #tpu.memory_space<vmem>>, vector<16x256xf32>
      tpu.vector_store %arg8[%c0_11, %c0_12], %12 {strides = array<i32>} : memref<16x256xf32, #tpu.memory_space<vmem>>, vector<16x256xf32>,
    } else {
    }
    %c0 = arith.constant 0 : index
    %c0_1 = arith.constant 0 : index
    %3 = vector.load %arg8[%c0, %c0_1] : memref<16x256xf32, #tpu.memory_space<vmem>>, vector<16x256xf32>
    %c0_2 = arith.constant 0 : index
    %c0_3 = arith.constant 0 : index
    %4 = vector.load %arg3[%c0_2, %c0_3] : memref<16x128xbf16, #tpu.memory_space<vmem>>, vector<16x128xbf16>
    %c0_4 = arith.constant 0 : index
    %c0_5 = arith.constant 0 : index
    %5 = vector.load %arg4[%c0_4, %c0_5] : memref<128x256xbf16, #tpu.memory_space<vmem>>, vector<128x256xbf16>
    %cst = arith.constant dense<0.000000e+00> : vector<16x256xf32>
    %6 = tpu.matmul %4, %5, %cst {dimension_numbers = #tpu.dot_dimension_numbers<[1], [0], [0], [1], [0, 0, 1, 1], [], []>} : vector<16x128xbf16>, vector<128x256xbf16>, vector<16x256xf32> -> vector<16x256xf32>
    %7 = arith.addf %3, %6 : vector<16x256xf32>
    %c0_6 = arith.constant 0 : index
    %c0_7 = arith.constant 0 : index
    %8 = vector.load %arg8[%c0_6, %c0_7] : memref<16x256xf32, #tpu.memory_space<vmem>>, vector<16x256xf32>
    tpu.vector_store %arg8[%c0_6, %c0_7], %7 {strides = array<i32>} : memref<16x256xf32, #tpu.memory_space<vmem>>, vector<16x256xf32>,
    %c0_i32_8 = arith.constant 0 : i32
    %9 = arith.cmpi eq, %arg2, %c0_i32_8 : i32
    %10 = arith.extui %9 : i1 to i32
    %c0_i32_9 = arith.constant 0 : i32
    %11 = arith.cmpi ne, %10, %c0_i32_9 : i32
    scf.if %11 {
      %c0_10 = arith.constant 0 : index
      %c0_11 = arith.constant 0 : index
      %12 = vector.load %arg8[%c0_10, %c0_11] : memref<16x256xf32, #tpu.memory_space<vmem>>, vector<16x256xf32>
      %c0_12 = arith.constant 0 : index
      %c0_13 = arith.constant 0 : index
      %13 = vector.load %arg5[%c0_12, %c0_13] : memref<1x256xf32, #tpu.memory_space<vmem>>, vector<1x256xf32>
      %14 = vector.broadcast %13 : vector<1x256xf32> to vector<16x256xf32>
      %15 = arith.mulf %12, %14 : vector<16x256xf32>
      %c0_14 = arith.constant 0 : index
      %c0_15 = arith.constant 0 : index
      %16 = vector.load %arg6[%c0_14, %c0_15] : memref<1x256xf32, #tpu.memory_space<vmem>>, vector<1x256xf32>
      %17 = vector.broadcast %16 : vector<1x256xf32> to vector<16x256xf32>
      %18 = arith.addf %15, %17 : vector<16x256xf32>
      %19 = arith.truncf %18 : vector<16x256xf32> to vector<16x256xbf16>
      %c0_16 = arith.constant 0 : index
      %c0_17 = arith.constant 0 : index
      %20 = vector.load %arg7[%c0_16, %c0_17] : memref<16x256xbf16, #tpu.memory_space<vmem>>, vector<16x256xbf16>
      tpu.vector_store %arg7[%c0_16, %c0_17], %19 {strides = array<i32>} : memref<16x256xbf16, #tpu.memory_space<vmem>>, vector<16x256xbf16>,
    } else {
    }
    return
  }
  func.func @transform_0(%arg0: i32, %arg1: i32, %arg2: i32) -> (i32, i32) {
    %c0_i32 = arith.constant 0 : i32
    return %arg0, %arg2 : i32, i32
  }
  func.func @transform_1(%arg0: i32, %arg1: i32, %arg2: i32) -> (i32, i32) {
    %c0_i32 = arith.constant 0 : i32
    return %arg2, %arg1 : i32, i32
  }
  func.func @transform_2(%arg0: i32, %arg1: i32, %arg2: i32) -> (i32, i32) {
    %c0_i32 = arith.constant 0 : i32
    %c0_i32_0 = arith.constant 0 : i32
    return %c0_i32, %arg1 : i32, i32
  }
  func.func @transform_3(%arg0: i32, %arg1: i32, %arg2: i32) -> (i32, i32) {
    %c0_i32 = arith.constant 0 : i32
    %c0_i32_0 = arith.constant 0 : i32
    return %c0_i32, %arg1 : i32, i32
  }
  func.func @transform_4(%arg0: i32, %arg1: i32, %arg2: i32) -> (i32, i32) {
    %c0_i32 = arith.constant 0 : i32
    return %arg0, %arg1 : i32, i32
  }
}

module attributes {stable_mosaic.version = 11 : i64} {
  func.func @_matmul_bn_add_relu_kernel(%arg0: i32, %arg1: i32, %arg2: i32, %arg3: memref<16x384xbf16, #tpu.memory_space<vmem>>, %arg4: memref<384x256xbf16, #tpu.memory_space<vmem>>, %arg5: memref<1x256xf32, #tpu.memory_space<vmem>>, %arg6: memref<1x256xf32, #tpu.memory_space<vmem>>, %arg7: memref<16x256xbf16, #tpu.memory_space<vmem>>, %arg8: memref<16x256xbf16, #tpu.memory_space<vmem>>, %arg9: memref<16x256xf32, #tpu.memory_space<vmem>>) attributes {dimension_semantics = [#tpu.dimension_semantics<parallel>, #tpu.dimension_semantics<parallel>, #tpu.dimension_semantics<arbitrary>], iteration_bounds = array<i64: 1, 1, 6>, scalar_prefetch = 0 : i64, scratch_operands = 1 : i64, tpu.core_type = #tpu.core_type<tc>, window_params = [{transform_indices = @transform_0, window_bounds = array<i64: 16, 384>}, {transform_indices = @transform_1, window_bounds = array<i64: 384, 256>}, {transform_indices = @transform_2, window_bounds = array<i64: 1, 256>}, {transform_indices = @transform_3, window_bounds = array<i64: 1, 256>}, {transform_indices = @transform_4, window_bounds = array<i64: 16, 256>}, {transform_indices = @transform_5, window_bounds = array<i64: 16, 256>}]} {
    %c0_i32 = arith.constant 0 : i32
    %0 = arith.cmpi eq, %arg2, %c0_i32 : i32
    %1 = arith.extui %0 : i1 to i32
    %c0_i32_0 = arith.constant 0 : i32
    %2 = arith.cmpi ne, %1, %c0_i32_0 : i32
    scf.if %2 {
      %cst_9 = arith.constant 0.000000e+00 : f32
      %12 = vector.broadcast %cst_9 : f32 to vector<16x256xf32>
      %c0_10 = arith.constant 0 : index
      %c0_11 = arith.constant 0 : index
      %13 = vector.load %arg9[%c0_10, %c0_11] : memref<16x256xf32, #tpu.memory_space<vmem>>, vector<16x256xf32>
      tpu.vector_store %arg9[%c0_10, %c0_11], %12 {strides = array<i32>} : memref<16x256xf32, #tpu.memory_space<vmem>>, vector<16x256xf32>,
    } else {
    }
    %c0 = arith.constant 0 : index
    %c0_1 = arith.constant 0 : index
    %3 = vector.load %arg9[%c0, %c0_1] : memref<16x256xf32, #tpu.memory_space<vmem>>, vector<16x256xf32>
    %c0_2 = arith.constant 0 : index
    %c0_3 = arith.constant 0 : index
    %4 = vector.load %arg3[%c0_2, %c0_3] : memref<16x384xbf16, #tpu.memory_space<vmem>>, vector<16x384xbf16>
    %c0_4 = arith.constant 0 : index
    %c0_5 = arith.constant 0 : index
    %5 = vector.load %arg4[%c0_4, %c0_5] : memref<384x256xbf16, #tpu.memory_space<vmem>>, vector<384x256xbf16>
    %cst = arith.constant dense<0.000000e+00> : vector<16x256xf32>
    %6 = tpu.matmul %4, %5, %cst {dimension_numbers = #tpu.dot_dimension_numbers<[1], [0], [0], [1], [0, 0, 1, 1], [], []>} : vector<16x384xbf16>, vector<384x256xbf16>, vector<16x256xf32> -> vector<16x256xf32>
    %7 = arith.addf %3, %6 : vector<16x256xf32>
    %c0_6 = arith.constant 0 : index
    %c0_7 = arith.constant 0 : index
    %8 = vector.load %arg9[%c0_6, %c0_7] : memref<16x256xf32, #tpu.memory_space<vmem>>, vector<16x256xf32>
    tpu.vector_store %arg9[%c0_6, %c0_7], %7 {strides = array<i32>} : memref<16x256xf32, #tpu.memory_space<vmem>>, vector<16x256xf32>,
    %c5_i32 = arith.constant 5 : i32
    %9 = arith.cmpi eq, %arg2, %c5_i32 : i32
    %10 = arith.extui %9 : i1 to i32
    %c0_i32_8 = arith.constant 0 : i32
    %11 = arith.cmpi ne, %10, %c0_i32_8 : i32
    scf.if %11 {
      %c0_9 = arith.constant 0 : index
      %c0_10 = arith.constant 0 : index
      %12 = vector.load %arg9[%c0_9, %c0_10] : memref<16x256xf32, #tpu.memory_space<vmem>>, vector<16x256xf32>
      %c0_11 = arith.constant 0 : index
      %c0_12 = arith.constant 0 : index
      %13 = vector.load %arg5[%c0_11, %c0_12] : memref<1x256xf32, #tpu.memory_space<vmem>>, vector<1x256xf32>
      %14 = vector.broadcast %13 : vector<1x256xf32> to vector<16x256xf32>
      %15 = arith.mulf %12, %14 : vector<16x256xf32>
      %c0_13 = arith.constant 0 : index
      %c0_14 = arith.constant 0 : index
      %16 = vector.load %arg6[%c0_13, %c0_14] : memref<1x256xf32, #tpu.memory_space<vmem>>, vector<1x256xf32>
      %17 = vector.broadcast %16 : vector<1x256xf32> to vector<16x256xf32>
      %18 = arith.addf %15, %17 : vector<16x256xf32>
      %c0_15 = arith.constant 0 : index
      %c0_16 = arith.constant 0 : index
      %19 = vector.load %arg7[%c0_15, %c0_16] : memref<16x256xbf16, #tpu.memory_space<vmem>>, vector<16x256xbf16>
      %20 = arith.extf %19 : vector<16x256xbf16> to vector<16x256xf32>
      %21 = arith.addf %18, %20 : vector<16x256xf32>
      %cst_17 = arith.constant 0.000000e+00 : f32
      %22 = vector.broadcast %cst_17 : f32 to vector<16x256xf32>
      %23 = arith.maximumf %21, %22 : vector<16x256xf32>
      %24 = arith.truncf %23 : vector<16x256xf32> to vector<16x256xbf16>
      %c0_18 = arith.constant 0 : index
      %c0_19 = arith.constant 0 : index
      %25 = vector.load %arg8[%c0_18, %c0_19] : memref<16x256xbf16, #tpu.memory_space<vmem>>, vector<16x256xbf16>
      tpu.vector_store %arg8[%c0_18, %c0_19], %24 {strides = array<i32>} : memref<16x256xbf16, #tpu.memory_space<vmem>>, vector<16x256xbf16>,
    } else {
    }
    return
  }
  func.func @transform_0(%arg0: i32, %arg1: i32, %arg2: i32) -> (i32, i32) {
    %c0_i32 = arith.constant 0 : i32
    return %arg0, %arg2 : i32, i32
  }
  func.func @transform_1(%arg0: i32, %arg1: i32, %arg2: i32) -> (i32, i32) {
    %c0_i32 = arith.constant 0 : i32
    return %arg2, %arg1 : i32, i32
  }
  func.func @transform_2(%arg0: i32, %arg1: i32, %arg2: i32) -> (i32, i32) {
    %c0_i32 = arith.constant 0 : i32
    %c0_i32_0 = arith.constant 0 : i32
    return %c0_i32, %arg1 : i32, i32
  }
  func.func @transform_3(%arg0: i32, %arg1: i32, %arg2: i32) -> (i32, i32) {
    %c0_i32 = arith.constant 0 : i32
    %c0_i32_0 = arith.constant 0 : i32
    return %c0_i32, %arg1 : i32, i32
  }
  func.func @transform_4(%arg0: i32, %arg1: i32, %arg2: i32) -> (i32, i32) {
    %c0_i32 = arith.constant 0 : i32
    return %arg0, %arg1 : i32, i32
  }
  func.func @transform_5(%arg0: i32, %arg1: i32, %arg2: i32) -> (i32, i32) {
    %c0_i32 = arith.constant 0 : i32
    return %arg0, %arg1 : i32, i32
  }
}

module attributes {stable_mosaic.version = 11 : i64} {
  func.func @_matmul_bn_kernel(%arg0: i32, %arg1: i32, %arg2: i32, %arg3: memref<16x384xbf16, #tpu.memory_space<vmem>>, %arg4: memref<384x256xbf16, #tpu.memory_space<vmem>>, %arg5: memref<1x256xf32, #tpu.memory_space<vmem>>, %arg6: memref<1x256xf32, #tpu.memory_space<vmem>>, %arg7: memref<16x256xbf16, #tpu.memory_space<vmem>>, %arg8: memref<16x256xf32, #tpu.memory_space<vmem>>) attributes {dimension_semantics = [#tpu.dimension_semantics<parallel>, #tpu.dimension_semantics<parallel>, #tpu.dimension_semantics<arbitrary>], iteration_bounds = array<i64: 1, 1, 6>, scalar_prefetch = 0 : i64, scratch_operands = 1 : i64, tpu.core_type = #tpu.core_type<tc>, window_params = [{transform_indices = @transform_0, window_bounds = array<i64: 16, 384>}, {transform_indices = @transform_1, window_bounds = array<i64: 384, 256>}, {transform_indices = @transform_2, window_bounds = array<i64: 1, 256>}, {transform_indices = @transform_3, window_bounds = array<i64: 1, 256>}, {transform_indices = @transform_4, window_bounds = array<i64: 16, 256>}]} {
    %c0_i32 = arith.constant 0 : i32
    %0 = arith.cmpi eq, %arg2, %c0_i32 : i32
    %1 = arith.extui %0 : i1 to i32
    %c0_i32_0 = arith.constant 0 : i32
    %2 = arith.cmpi ne, %1, %c0_i32_0 : i32
    scf.if %2 {
      %cst_9 = arith.constant 0.000000e+00 : f32
      %12 = vector.broadcast %cst_9 : f32 to vector<16x256xf32>
      %c0_10 = arith.constant 0 : index
      %c0_11 = arith.constant 0 : index
      %13 = vector.load %arg8[%c0_10, %c0_11] : memref<16x256xf32, #tpu.memory_space<vmem>>, vector<16x256xf32>
      tpu.vector_store %arg8[%c0_10, %c0_11], %12 {strides = array<i32>} : memref<16x256xf32, #tpu.memory_space<vmem>>, vector<16x256xf32>,
    } else {
    }
    %c0 = arith.constant 0 : index
    %c0_1 = arith.constant 0 : index
    %3 = vector.load %arg8[%c0, %c0_1] : memref<16x256xf32, #tpu.memory_space<vmem>>, vector<16x256xf32>
    %c0_2 = arith.constant 0 : index
    %c0_3 = arith.constant 0 : index
    %4 = vector.load %arg3[%c0_2, %c0_3] : memref<16x384xbf16, #tpu.memory_space<vmem>>, vector<16x384xbf16>
    %c0_4 = arith.constant 0 : index
    %c0_5 = arith.constant 0 : index
    %5 = vector.load %arg4[%c0_4, %c0_5] : memref<384x256xbf16, #tpu.memory_space<vmem>>, vector<384x256xbf16>
    %cst = arith.constant dense<0.000000e+00> : vector<16x256xf32>
    %6 = tpu.matmul %4, %5, %cst {dimension_numbers = #tpu.dot_dimension_numbers<[1], [0], [0], [1], [0, 0, 1, 1], [], []>} : vector<16x384xbf16>, vector<384x256xbf16>, vector<16x256xf32> -> vector<16x256xf32>
    %7 = arith.addf %3, %6 : vector<16x256xf32>
    %c0_6 = arith.constant 0 : index
    %c0_7 = arith.constant 0 : index
    %8 = vector.load %arg8[%c0_6, %c0_7] : memref<16x256xf32, #tpu.memory_space<vmem>>, vector<16x256xf32>
    tpu.vector_store %arg8[%c0_6, %c0_7], %7 {strides = array<i32>} : memref<16x256xf32, #tpu.memory_space<vmem>>, vector<16x256xf32>,
    %c5_i32 = arith.constant 5 : i32
    %9 = arith.cmpi eq, %arg2, %c5_i32 : i32
    %10 = arith.extui %9 : i1 to i32
    %c0_i32_8 = arith.constant 0 : i32
    %11 = arith.cmpi ne, %10, %c0_i32_8 : i32
    scf.if %11 {
      %c0_9 = arith.constant 0 : index
      %c0_10 = arith.constant 0 : index
      %12 = vector.load %arg8[%c0_9, %c0_10] : memref<16x256xf32, #tpu.memory_space<vmem>>, vector<16x256xf32>
      %c0_11 = arith.constant 0 : index
      %c0_12 = arith.constant 0 : index
      %13 = vector.load %arg5[%c0_11, %c0_12] : memref<1x256xf32, #tpu.memory_space<vmem>>, vector<1x256xf32>
      %14 = vector.broadcast %13 : vector<1x256xf32> to vector<16x256xf32>
      %15 = arith.mulf %12, %14 : vector<16x256xf32>
      %c0_13 = arith.constant 0 : index
      %c0_14 = arith.constant 0 : index
      %16 = vector.load %arg6[%c0_13, %c0_14] : memref<1x256xf32, #tpu.memory_space<vmem>>, vector<1x256xf32>
      %17 = vector.broadcast %16 : vector<1x256xf32> to vector<16x256xf32>
      %18 = arith.addf %15, %17 : vector<16x256xf32>
      %cst_15 = arith.constant 0.000000e+00 : f32
      %19 = vector.broadcast %cst_15 : f32 to vector<16x256xf32>
      %20 = arith.maximumf %18, %19 : vector<16x256xf32>
      %21 = arith.truncf %20 : vector<16x256xf32> to vector<16x256xbf16>
      %c0_16 = arith.constant 0 : index
      %c0_17 = arith.constant 0 : index
      %22 = vector.load %arg7[%c0_16, %c0_17] : memref<16x256xbf16, #tpu.memory_space<vmem>>, vector<16x256xbf16>
      tpu.vector_store %arg7[%c0_16, %c0_17], %21 {strides = array<i32>} : memref<16x256xbf16, #tpu.memory_space<vmem>>, vector<16x256xbf16>,
    } else {
    }
    return
  }
  func.func @transform_0(%arg0: i32, %arg1: i32, %arg2: i32) -> (i32, i32) {
    %c0_i32 = arith.constant 0 : i32
    return %arg0, %arg2 : i32, i32
  }
  func.func @transform_1(%arg0: i32, %arg1: i32, %arg2: i32) -> (i32, i32) {
    %c0_i32 = arith.constant 0 : i32
    return %arg2, %arg1 : i32, i32
  }
  func.func @transform_2(%arg0: i32, %arg1: i32, %arg2: i32) -> (i32, i32) {
    %c0_i32 = arith.constant 0 : i32
    %c0_i32_0 = arith.constant 0 : i32
    return %c0_i32, %arg1 : i32, i32
  }
  func.func @transform_3(%arg0: i32, %arg1: i32, %arg2: i32) -> (i32, i32) {
    %c0_i32 = arith.constant 0 : i32
    %c0_i32_0 = arith.constant 0 : i32
    return %c0_i32, %arg1 : i32, i32
  }
  func.func @transform_4(%arg0: i32, %arg1: i32, %arg2: i32) -> (i32, i32) {
    %c0_i32 = arith.constant 0 : i32
    return %arg0, %arg1 : i32, i32
  }
}

module attributes {stable_mosaic.version = 11 : i64} {
  func.func @_matmul_bn_kernel(%arg0: i32, %arg1: i32, %arg2: i32, %arg3: memref<16x384xbf16, #tpu.memory_space<vmem>>, %arg4: memref<384x512xbf16, #tpu.memory_space<vmem>>, %arg5: memref<1x512xf32, #tpu.memory_space<vmem>>, %arg6: memref<1x512xf32, #tpu.memory_space<vmem>>, %arg7: memref<16x512xbf16, #tpu.memory_space<vmem>>, %arg8: memref<16x512xf32, #tpu.memory_space<vmem>>) attributes {dimension_semantics = [#tpu.dimension_semantics<parallel>, #tpu.dimension_semantics<parallel>, #tpu.dimension_semantics<arbitrary>], iteration_bounds = array<i64: 1, 1, 6>, scalar_prefetch = 0 : i64, scratch_operands = 1 : i64, tpu.core_type = #tpu.core_type<tc>, window_params = [{transform_indices = @transform_0, window_bounds = array<i64: 16, 384>}, {transform_indices = @transform_1, window_bounds = array<i64: 384, 512>}, {transform_indices = @transform_2, window_bounds = array<i64: 1, 512>}, {transform_indices = @transform_3, window_bounds = array<i64: 1, 512>}, {transform_indices = @transform_4, window_bounds = array<i64: 16, 512>}]} {
    %c0_i32 = arith.constant 0 : i32
    %0 = arith.cmpi eq, %arg2, %c0_i32 : i32
    %1 = arith.extui %0 : i1 to i32
    %c0_i32_0 = arith.constant 0 : i32
    %2 = arith.cmpi ne, %1, %c0_i32_0 : i32
    scf.if %2 {
      %cst_9 = arith.constant 0.000000e+00 : f32
      %12 = vector.broadcast %cst_9 : f32 to vector<16x512xf32>
      %c0_10 = arith.constant 0 : index
      %c0_11 = arith.constant 0 : index
      %13 = vector.load %arg8[%c0_10, %c0_11] : memref<16x512xf32, #tpu.memory_space<vmem>>, vector<16x512xf32>
      tpu.vector_store %arg8[%c0_10, %c0_11], %12 {strides = array<i32>} : memref<16x512xf32, #tpu.memory_space<vmem>>, vector<16x512xf32>,
    } else {
    }
    %c0 = arith.constant 0 : index
    %c0_1 = arith.constant 0 : index
    %3 = vector.load %arg8[%c0, %c0_1] : memref<16x512xf32, #tpu.memory_space<vmem>>, vector<16x512xf32>
    %c0_2 = arith.constant 0 : index
    %c0_3 = arith.constant 0 : index
    %4 = vector.load %arg3[%c0_2, %c0_3] : memref<16x384xbf16, #tpu.memory_space<vmem>>, vector<16x384xbf16>
    %c0_4 = arith.constant 0 : index
    %c0_5 = arith.constant 0 : index
    %5 = vector.load %arg4[%c0_4, %c0_5] : memref<384x512xbf16, #tpu.memory_space<vmem>>, vector<384x512xbf16>
    %cst = arith.constant dense<0.000000e+00> : vector<16x512xf32>
    %6 = tpu.matmul %4, %5, %cst {dimension_numbers = #tpu.dot_dimension_numbers<[1], [0], [0], [1], [0, 0, 1, 1], [], []>} : vector<16x384xbf16>, vector<384x512xbf16>, vector<16x512xf32> -> vector<16x512xf32>
    %7 = arith.addf %3, %6 : vector<16x512xf32>
    %c0_6 = arith.constant 0 : index
    %c0_7 = arith.constant 0 : index
    %8 = vector.load %arg8[%c0_6, %c0_7] : memref<16x512xf32, #tpu.memory_space<vmem>>, vector<16x512xf32>
    tpu.vector_store %arg8[%c0_6, %c0_7], %7 {strides = array<i32>} : memref<16x512xf32, #tpu.memory_space<vmem>>, vector<16x512xf32>,
    %c5_i32 = arith.constant 5 : i32
    %9 = arith.cmpi eq, %arg2, %c5_i32 : i32
    %10 = arith.extui %9 : i1 to i32
    %c0_i32_8 = arith.constant 0 : i32
    %11 = arith.cmpi ne, %10, %c0_i32_8 : i32
    scf.if %11 {
      %c0_9 = arith.constant 0 : index
      %c0_10 = arith.constant 0 : index
      %12 = vector.load %arg8[%c0_9, %c0_10] : memref<16x512xf32, #tpu.memory_space<vmem>>, vector<16x512xf32>
      %c0_11 = arith.constant 0 : index
      %c0_12 = arith.constant 0 : index
      %13 = vector.load %arg5[%c0_11, %c0_12] : memref<1x512xf32, #tpu.memory_space<vmem>>, vector<1x512xf32>
      %14 = vector.broadcast %13 : vector<1x512xf32> to vector<16x512xf32>
      %15 = arith.mulf %12, %14 : vector<16x512xf32>
      %c0_13 = arith.constant 0 : index
      %c0_14 = arith.constant 0 : index
      %16 = vector.load %arg6[%c0_13, %c0_14] : memref<1x512xf32, #tpu.memory_space<vmem>>, vector<1x512xf32>
      %17 = vector.broadcast %16 : vector<1x512xf32> to vector<16x512xf32>
      %18 = arith.addf %15, %17 : vector<16x512xf32>
      %cst_15 = arith.constant 0.000000e+00 : f32
      %19 = vector.broadcast %cst_15 : f32 to vector<16x512xf32>
      %20 = arith.maximumf %18, %19 : vector<16x512xf32>
      %21 = arith.truncf %20 : vector<16x512xf32> to vector<16x512xbf16>
      %c0_16 = arith.constant 0 : index
      %c0_17 = arith.constant 0 : index
      %22 = vector.load %arg7[%c0_16, %c0_17] : memref<16x512xbf16, #tpu.memory_space<vmem>>, vector<16x512xbf16>
      tpu.vector_store %arg7[%c0_16, %c0_17], %21 {strides = array<i32>} : memref<16x512xbf16, #tpu.memory_space<vmem>>, vector<16x512xbf16>,
    } else {
    }
    return
  }
  func.func @transform_0(%arg0: i32, %arg1: i32, %arg2: i32) -> (i32, i32) {
    %c0_i32 = arith.constant 0 : i32
    return %arg0, %arg2 : i32, i32
  }
  func.func @transform_1(%arg0: i32, %arg1: i32, %arg2: i32) -> (i32, i32) {
    %c0_i32 = arith.constant 0 : i32
    return %arg2, %arg1 : i32, i32
  }
  func.func @transform_2(%arg0: i32, %arg1: i32, %arg2: i32) -> (i32, i32) {
    %c0_i32 = arith.constant 0 : i32
    %c0_i32_0 = arith.constant 0 : i32
    return %c0_i32, %arg1 : i32, i32
  }
  func.func @transform_3(%arg0: i32, %arg1: i32, %arg2: i32) -> (i32, i32) {
    %c0_i32 = arith.constant 0 : i32
    %c0_i32_0 = arith.constant 0 : i32
    return %c0_i32, %arg1 : i32, i32
  }
  func.func @transform_4(%arg0: i32, %arg1: i32, %arg2: i32) -> (i32, i32) {
    %c0_i32 = arith.constant 0 : i32
    return %arg0, %arg1 : i32, i32
  }
}

module attributes {stable_mosaic.version = 11 : i64} {
  func.func @_matmul_bn_kernel(%arg0: i32, %arg1: i32, %arg2: i32, %arg3: memref<16x256xbf16, #tpu.memory_space<vmem>>, %arg4: memref<256x512xbf16, #tpu.memory_space<vmem>>, %arg5: memref<1x512xf32, #tpu.memory_space<vmem>>, %arg6: memref<1x512xf32, #tpu.memory_space<vmem>>, %arg7: memref<16x512xbf16, #tpu.memory_space<vmem>>, %arg8: memref<16x512xf32, #tpu.memory_space<vmem>>) attributes {dimension_semantics = [#tpu.dimension_semantics<parallel>, #tpu.dimension_semantics<parallel>, #tpu.dimension_semantics<arbitrary>], iteration_bounds = array<i64: 1, 1, 1>, scalar_prefetch = 0 : i64, scratch_operands = 1 : i64, tpu.core_type = #tpu.core_type<tc>, window_params = [{transform_indices = @transform_0, window_bounds = array<i64: 16, 256>}, {transform_indices = @transform_1, window_bounds = array<i64: 256, 512>}, {transform_indices = @transform_2, window_bounds = array<i64: 1, 512>}, {transform_indices = @transform_3, window_bounds = array<i64: 1, 512>}, {transform_indices = @transform_4, window_bounds = array<i64: 16, 512>}]} {
    %c0_i32 = arith.constant 0 : i32
    %0 = arith.cmpi eq, %arg2, %c0_i32 : i32
    %1 = arith.extui %0 : i1 to i32
    %c0_i32_0 = arith.constant 0 : i32
    %2 = arith.cmpi ne, %1, %c0_i32_0 : i32
    scf.if %2 {
      %cst_10 = arith.constant 0.000000e+00 : f32
      %12 = vector.broadcast %cst_10 : f32 to vector<16x512xf32>
      %c0_11 = arith.constant 0 : index
      %c0_12 = arith.constant 0 : index
      %13 = vector.load %arg8[%c0_11, %c0_12] : memref<16x512xf32, #tpu.memory_space<vmem>>, vector<16x512xf32>
      tpu.vector_store %arg8[%c0_11, %c0_12], %12 {strides = array<i32>} : memref<16x512xf32, #tpu.memory_space<vmem>>, vector<16x512xf32>,
    } else {
    }
    %c0 = arith.constant 0 : index
    %c0_1 = arith.constant 0 : index
    %3 = vector.load %arg8[%c0, %c0_1] : memref<16x512xf32, #tpu.memory_space<vmem>>, vector<16x512xf32>
    %c0_2 = arith.constant 0 : index
    %c0_3 = arith.constant 0 : index
    %4 = vector.load %arg3[%c0_2, %c0_3] : memref<16x256xbf16, #tpu.memory_space<vmem>>, vector<16x256xbf16>
    %c0_4 = arith.constant 0 : index
    %c0_5 = arith.constant 0 : index
    %5 = vector.load %arg4[%c0_4, %c0_5] : memref<256x512xbf16, #tpu.memory_space<vmem>>, vector<256x512xbf16>
    %cst = arith.constant dense<0.000000e+00> : vector<16x512xf32>
    %6 = tpu.matmul %4, %5, %cst {dimension_numbers = #tpu.dot_dimension_numbers<[1], [0], [0], [1], [0, 0, 1, 1], [], []>} : vector<16x256xbf16>, vector<256x512xbf16>, vector<16x512xf32> -> vector<16x512xf32>
    %7 = arith.addf %3, %6 : vector<16x512xf32>
    %c0_6 = arith.constant 0 : index
    %c0_7 = arith.constant 0 : index
    %8 = vector.load %arg8[%c0_6, %c0_7] : memref<16x512xf32, #tpu.memory_space<vmem>>, vector<16x512xf32>
    tpu.vector_store %arg8[%c0_6, %c0_7], %7 {strides = array<i32>} : memref<16x512xf32, #tpu.memory_space<vmem>>, vector<16x512xf32>,
    %c0_i32_8 = arith.constant 0 : i32
    %9 = arith.cmpi eq, %arg2, %c0_i32_8 : i32
    %10 = arith.extui %9 : i1 to i32
    %c0_i32_9 = arith.constant 0 : i32
    %11 = arith.cmpi ne, %10, %c0_i32_9 : i32
    scf.if %11 {
      %c0_10 = arith.constant 0 : index
      %c0_11 = arith.constant 0 : index
      %12 = vector.load %arg8[%c0_10, %c0_11] : memref<16x512xf32, #tpu.memory_space<vmem>>, vector<16x512xf32>
      %c0_12 = arith.constant 0 : index
      %c0_13 = arith.constant 0 : index
      %13 = vector.load %arg5[%c0_12, %c0_13] : memref<1x512xf32, #tpu.memory_space<vmem>>, vector<1x512xf32>
      %14 = vector.broadcast %13 : vector<1x512xf32> to vector<16x512xf32>
      %15 = arith.mulf %12, %14 : vector<16x512xf32>
      %c0_14 = arith.constant 0 : index
      %c0_15 = arith.constant 0 : index
      %16 = vector.load %arg6[%c0_14, %c0_15] : memref<1x512xf32, #tpu.memory_space<vmem>>, vector<1x512xf32>
      %17 = vector.broadcast %16 : vector<1x512xf32> to vector<16x512xf32>
      %18 = arith.addf %15, %17 : vector<16x512xf32>
      %19 = arith.truncf %18 : vector<16x512xf32> to vector<16x512xbf16>
      %c0_16 = arith.constant 0 : index
      %c0_17 = arith.constant 0 : index
      %20 = vector.load %arg7[%c0_16, %c0_17] : memref<16x512xbf16, #tpu.memory_space<vmem>>, vector<16x512xbf16>
      tpu.vector_store %arg7[%c0_16, %c0_17], %19 {strides = array<i32>} : memref<16x512xbf16, #tpu.memory_space<vmem>>, vector<16x512xbf16>,
    } else {
    }
    return
  }
  func.func @transform_0(%arg0: i32, %arg1: i32, %arg2: i32) -> (i32, i32) {
    %c0_i32 = arith.constant 0 : i32
    return %arg0, %arg2 : i32, i32
  }
  func.func @transform_1(%arg0: i32, %arg1: i32, %arg2: i32) -> (i32, i32) {
    %c0_i32 = arith.constant 0 : i32
    return %arg2, %arg1 : i32, i32
  }
  func.func @transform_2(%arg0: i32, %arg1: i32, %arg2: i32) -> (i32, i32) {
    %c0_i32 = arith.constant 0 : i32
    %c0_i32_0 = arith.constant 0 : i32
    return %c0_i32, %arg1 : i32, i32
  }
  func.func @transform_3(%arg0: i32, %arg1: i32, %arg2: i32) -> (i32, i32) {
    %c0_i32 = arith.constant 0 : i32
    %c0_i32_0 = arith.constant 0 : i32
    return %c0_i32, %arg1 : i32, i32
  }
  func.func @transform_4(%arg0: i32, %arg1: i32, %arg2: i32) -> (i32, i32) {
    %c0_i32 = arith.constant 0 : i32
    return %arg0, %arg1 : i32, i32
  }
}

module attributes {stable_mosaic.version = 11 : i64} {
  func.func @_matmul_bn_add_relu_kernel(%arg0: i32, %arg1: i32, %arg2: i32, %arg3: memref<16x512xbf16, #tpu.memory_space<vmem>>, %arg4: memref<512x512xbf16, #tpu.memory_space<vmem>>, %arg5: memref<1x512xf32, #tpu.memory_space<vmem>>, %arg6: memref<1x512xf32, #tpu.memory_space<vmem>>, %arg7: memref<16x512xbf16, #tpu.memory_space<vmem>>, %arg8: memref<16x512xbf16, #tpu.memory_space<vmem>>, %arg9: memref<16x512xf32, #tpu.memory_space<vmem>>) attributes {dimension_semantics = [#tpu.dimension_semantics<parallel>, #tpu.dimension_semantics<parallel>, #tpu.dimension_semantics<arbitrary>], iteration_bounds = array<i64: 1, 1, 9>, scalar_prefetch = 0 : i64, scratch_operands = 1 : i64, tpu.core_type = #tpu.core_type<tc>, window_params = [{transform_indices = @transform_0, window_bounds = array<i64: 16, 512>}, {transform_indices = @transform_1, window_bounds = array<i64: 512, 512>}, {transform_indices = @transform_2, window_bounds = array<i64: 1, 512>}, {transform_indices = @transform_3, window_bounds = array<i64: 1, 512>}, {transform_indices = @transform_4, window_bounds = array<i64: 16, 512>}, {transform_indices = @transform_5, window_bounds = array<i64: 16, 512>}]} {
    %c0_i32 = arith.constant 0 : i32
    %0 = arith.cmpi eq, %arg2, %c0_i32 : i32
    %1 = arith.extui %0 : i1 to i32
    %c0_i32_0 = arith.constant 0 : i32
    %2 = arith.cmpi ne, %1, %c0_i32_0 : i32
    scf.if %2 {
      %cst_9 = arith.constant 0.000000e+00 : f32
      %12 = vector.broadcast %cst_9 : f32 to vector<16x512xf32>
      %c0_10 = arith.constant 0 : index
      %c0_11 = arith.constant 0 : index
      %13 = vector.load %arg9[%c0_10, %c0_11] : memref<16x512xf32, #tpu.memory_space<vmem>>, vector<16x512xf32>
      tpu.vector_store %arg9[%c0_10, %c0_11], %12 {strides = array<i32>} : memref<16x512xf32, #tpu.memory_space<vmem>>, vector<16x512xf32>,
    } else {
    }
    %c0 = arith.constant 0 : index
    %c0_1 = arith.constant 0 : index
    %3 = vector.load %arg9[%c0, %c0_1] : memref<16x512xf32, #tpu.memory_space<vmem>>, vector<16x512xf32>
    %c0_2 = arith.constant 0 : index
    %c0_3 = arith.constant 0 : index
    %4 = vector.load %arg3[%c0_2, %c0_3] : memref<16x512xbf16, #tpu.memory_space<vmem>>, vector<16x512xbf16>
    %c0_4 = arith.constant 0 : index
    %c0_5 = arith.constant 0 : index
    %5 = vector.load %arg4[%c0_4, %c0_5] : memref<512x512xbf16, #tpu.memory_space<vmem>>, vector<512x512xbf16>
    %cst = arith.constant dense<0.000000e+00> : vector<16x512xf32>
    %6 = tpu.matmul %4, %5, %cst {dimension_numbers = #tpu.dot_dimension_numbers<[1], [0], [0], [1], [0, 0, 1, 1], [], []>} : vector<16x512xbf16>, vector<512x512xbf16>, vector<16x512xf32> -> vector<16x512xf32>
    %7 = arith.addf %3, %6 : vector<16x512xf32>
    %c0_6 = arith.constant 0 : index
    %c0_7 = arith.constant 0 : index
    %8 = vector.load %arg9[%c0_6, %c0_7] : memref<16x512xf32, #tpu.memory_space<vmem>>, vector<16x512xf32>
    tpu.vector_store %arg9[%c0_6, %c0_7], %7 {strides = array<i32>} : memref<16x512xf32, #tpu.memory_space<vmem>>, vector<16x512xf32>,
    %c8_i32 = arith.constant 8 : i32
    %9 = arith.cmpi eq, %arg2, %c8_i32 : i32
    %10 = arith.extui %9 : i1 to i32
    %c0_i32_8 = arith.constant 0 : i32
    %11 = arith.cmpi ne, %10, %c0_i32_8 : i32
    scf.if %11 {
      %c0_9 = arith.constant 0 : index
      %c0_10 = arith.constant 0 : index
      %12 = vector.load %arg9[%c0_9, %c0_10] : memref<16x512xf32, #tpu.memory_space<vmem>>, vector<16x512xf32>
      %c0_11 = arith.constant 0 : index
      %c0_12 = arith.constant 0 : index
      %13 = vector.load %arg5[%c0_11, %c0_12] : memref<1x512xf32, #tpu.memory_space<vmem>>, vector<1x512xf32>
      %14 = vector.broadcast %13 : vector<1x512xf32> to vector<16x512xf32>
      %15 = arith.mulf %12, %14 : vector<16x512xf32>
      %c0_13 = arith.constant 0 : index
      %c0_14 = arith.constant 0 : index
      %16 = vector.load %arg6[%c0_13, %c0_14] : memref<1x512xf32, #tpu.memory_space<vmem>>, vector<1x512xf32>
      %17 = vector.broadcast %16 : vector<1x512xf32> to vector<16x512xf32>
      %18 = arith.addf %15, %17 : vector<16x512xf32>
      %c0_15 = arith.constant 0 : index
      %c0_16 = arith.constant 0 : index
      %19 = vector.load %arg7[%c0_15, %c0_16] : memref<16x512xbf16, #tpu.memory_space<vmem>>, vector<16x512xbf16>
      %20 = arith.extf %19 : vector<16x512xbf16> to vector<16x512xf32>
      %21 = arith.addf %18, %20 : vector<16x512xf32>
      %cst_17 = arith.constant 0.000000e+00 : f32
      %22 = vector.broadcast %cst_17 : f32 to vector<16x512xf32>
      %23 = arith.maximumf %21, %22 : vector<16x512xf32>
      %24 = arith.truncf %23 : vector<16x512xf32> to vector<16x512xbf16>
      %c0_18 = arith.constant 0 : index
      %c0_19 = arith.constant 0 : index
      %25 = vector.load %arg8[%c0_18, %c0_19] : memref<16x512xbf16, #tpu.memory_space<vmem>>, vector<16x512xbf16>
      tpu.vector_store %arg8[%c0_18, %c0_19], %24 {strides = array<i32>} : memref<16x512xbf16, #tpu.memory_space<vmem>>, vector<16x512xbf16>,
    } else {
    }
    return
  }
  func.func @transform_0(%arg0: i32, %arg1: i32, %arg2: i32) -> (i32, i32) {
    %c0_i32 = arith.constant 0 : i32
    return %arg0, %arg2 : i32, i32
  }
  func.func @transform_1(%arg0: i32, %arg1: i32, %arg2: i32) -> (i32, i32) {
    %c0_i32 = arith.constant 0 : i32
    return %arg2, %arg1 : i32, i32
  }
  func.func @transform_2(%arg0: i32, %arg1: i32, %arg2: i32) -> (i32, i32) {
    %c0_i32 = arith.constant 0 : i32
    %c0_i32_0 = arith.constant 0 : i32
    return %c0_i32, %arg1 : i32, i32
  }
  func.func @transform_3(%arg0: i32, %arg1: i32, %arg2: i32) -> (i32, i32) {
    %c0_i32 = arith.constant 0 : i32
    %c0_i32_0 = arith.constant 0 : i32
    return %c0_i32, %arg1 : i32, i32
  }
  func.func @transform_4(%arg0: i32, %arg1: i32, %arg2: i32) -> (i32, i32) {
    %c0_i32 = arith.constant 0 : i32
    return %arg0, %arg1 : i32, i32
  }
  func.func @transform_5(%arg0: i32, %arg1: i32, %arg2: i32) -> (i32, i32) {
    %c0_i32 = arith.constant 0 : i32
    return %arg0, %arg1 : i32, i32
  }
}

module attributes {stable_mosaic.version = 11 : i64} {
  func.func @_matmul_bn_kernel(%arg0: i32, %arg1: i32, %arg2: i32, %arg3: memref<16x512xbf16, #tpu.memory_space<vmem>>, %arg4: memref<512x512xbf16, #tpu.memory_space<vmem>>, %arg5: memref<1x512xf32, #tpu.memory_space<vmem>>, %arg6: memref<1x512xf32, #tpu.memory_space<vmem>>, %arg7: memref<16x512xbf16, #tpu.memory_space<vmem>>, %arg8: memref<16x512xf32, #tpu.memory_space<vmem>>) attributes {dimension_semantics = [#tpu.dimension_semantics<parallel>, #tpu.dimension_semantics<parallel>, #tpu.dimension_semantics<arbitrary>], iteration_bounds = array<i64: 1, 1, 9>, scalar_prefetch = 0 : i64, scratch_operands = 1 : i64, tpu.core_type = #tpu.core_type<tc>, window_params = [{transform_indices = @transform_0, window_bounds = array<i64: 16, 512>}, {transform_indices = @transform_1, window_bounds = array<i64: 512, 512>}, {transform_indices = @transform_2, window_bounds = array<i64: 1, 512>}, {transform_indices = @transform_3, window_bounds = array<i64: 1, 512>}, {transform_indices = @transform_4, window_bounds = array<i64: 16, 512>}]} {
    %c0_i32 = arith.constant 0 : i32
    %0 = arith.cmpi eq, %arg2, %c0_i32 : i32
    %1 = arith.extui %0 : i1 to i32
    %c0_i32_0 = arith.constant 0 : i32
    %2 = arith.cmpi ne, %1, %c0_i32_0 : i32
    scf.if %2 {
      %cst_9 = arith.constant 0.000000e+00 : f32
      %12 = vector.broadcast %cst_9 : f32 to vector<16x512xf32>
      %c0_10 = arith.constant 0 : index
      %c0_11 = arith.constant 0 : index
      %13 = vector.load %arg8[%c0_10, %c0_11] : memref<16x512xf32, #tpu.memory_space<vmem>>, vector<16x512xf32>
      tpu.vector_store %arg8[%c0_10, %c0_11], %12 {strides = array<i32>} : memref<16x512xf32, #tpu.memory_space<vmem>>, vector<16x512xf32>,
    } else {
    }
    %c0 = arith.constant 0 : index
    %c0_1 = arith.constant 0 : index
    %3 = vector.load %arg8[%c0, %c0_1] : memref<16x512xf32, #tpu.memory_space<vmem>>, vector<16x512xf32>
    %c0_2 = arith.constant 0 : index
    %c0_3 = arith.constant 0 : index
    %4 = vector.load %arg3[%c0_2, %c0_3] : memref<16x512xbf16, #tpu.memory_space<vmem>>, vector<16x512xbf16>
    %c0_4 = arith.constant 0 : index
    %c0_5 = arith.constant 0 : index
    %5 = vector.load %arg4[%c0_4, %c0_5] : memref<512x512xbf16, #tpu.memory_space<vmem>>, vector<512x512xbf16>
    %cst = arith.constant dense<0.000000e+00> : vector<16x512xf32>
    %6 = tpu.matmul %4, %5, %cst {dimension_numbers = #tpu.dot_dimension_numbers<[1], [0], [0], [1], [0, 0, 1, 1], [], []>} : vector<16x512xbf16>, vector<512x512xbf16>, vector<16x512xf32> -> vector<16x512xf32>
    %7 = arith.addf %3, %6 : vector<16x512xf32>
    %c0_6 = arith.constant 0 : index
    %c0_7 = arith.constant 0 : index
    %8 = vector.load %arg8[%c0_6, %c0_7] : memref<16x512xf32, #tpu.memory_space<vmem>>, vector<16x512xf32>
    tpu.vector_store %arg8[%c0_6, %c0_7], %7 {strides = array<i32>} : memref<16x512xf32, #tpu.memory_space<vmem>>, vector<16x512xf32>,
    %c8_i32 = arith.constant 8 : i32
    %9 = arith.cmpi eq, %arg2, %c8_i32 : i32
    %10 = arith.extui %9 : i1 to i32
    %c0_i32_8 = arith.constant 0 : i32
    %11 = arith.cmpi ne, %10, %c0_i32_8 : i32
    scf.if %11 {
      %c0_9 = arith.constant 0 : index
      %c0_10 = arith.constant 0 : index
      %12 = vector.load %arg8[%c0_9, %c0_10] : memref<16x512xf32, #tpu.memory_space<vmem>>, vector<16x512xf32>
      %c0_11 = arith.constant 0 : index
      %c0_12 = arith.constant 0 : index
      %13 = vector.load %arg5[%c0_11, %c0_12] : memref<1x512xf32, #tpu.memory_space<vmem>>, vector<1x512xf32>
      %14 = vector.broadcast %13 : vector<1x512xf32> to vector<16x512xf32>
      %15 = arith.mulf %12, %14 : vector<16x512xf32>
      %c0_13 = arith.constant 0 : index
      %c0_14 = arith.constant 0 : index
      %16 = vector.load %arg6[%c0_13, %c0_14] : memref<1x512xf32, #tpu.memory_space<vmem>>, vector<1x512xf32>
      %17 = vector.broadcast %16 : vector<1x512xf32> to vector<16x512xf32>
      %18 = arith.addf %15, %17 : vector<16x512xf32>
      %cst_15 = arith.constant 0.000000e+00 : f32
      %19 = vector.broadcast %cst_15 : f32 to vector<16x512xf32>
      %20 = arith.maximumf %18, %19 : vector<16x512xf32>
      %21 = arith.truncf %20 : vector<16x512xf32> to vector<16x512xbf16>
      %c0_16 = arith.constant 0 : index
      %c0_17 = arith.constant 0 : index
      %22 = vector.load %arg7[%c0_16, %c0_17] : memref<16x512xbf16, #tpu.memory_space<vmem>>, vector<16x512xbf16>
      tpu.vector_store %arg7[%c0_16, %c0_17], %21 {strides = array<i32>} : memref<16x512xbf16, #tpu.memory_space<vmem>>, vector<16x512xbf16>,
    } else {
    }
    return
  }
  func.func @transform_0(%arg0: i32, %arg1: i32, %arg2: i32) -> (i32, i32) {
    %c0_i32 = arith.constant 0 : i32
    return %arg0, %arg2 : i32, i32
  }
  func.func @transform_1(%arg0: i32, %arg1: i32, %arg2: i32) -> (i32, i32) {
    %c0_i32 = arith.constant 0 : i32
    return %arg2, %arg1 : i32, i32
  }
  func.func @transform_2(%arg0: i32, %arg1: i32, %arg2: i32) -> (i32, i32) {
    %c0_i32 = arith.constant 0 : i32
    %c0_i32_0 = arith.constant 0 : i32
    return %c0_i32, %arg1 : i32, i32
  }
  func.func @transform_3(%arg0: i32, %arg1: i32, %arg2: i32) -> (i32, i32) {
    %c0_i32 = arith.constant 0 : i32
    %c0_i32_0 = arith.constant 0 : i32
    return %c0_i32, %arg1 : i32, i32
  }
  func.func @transform_4(%arg0: i32, %arg1: i32, %arg2: i32) -> (i32, i32) {
    %c0_i32 = arith.constant 0 : i32
    return %arg0, %arg1 : i32, i32
  }
}

</mosaic_0001>

<bundles_post_ra>
// kernel: resnet34_forward.32
= control target key start
LH: loop header
LB: loop body
LE: loop exit
PB: predicated region body
PF: predicated region fallthrough
CT: control target
= control target key end

     0   :  { %s433_s6 = smov 0   ;;  %s514_s0 = inlined_call_operand.vmem [shape: bf16[2,10,10,64], index: 0, kind: input, shape index: {}]   ;;  %s515_s1 = inlined_call_operand.vmem [shape: bf16[2,8,8,64], index: 1, kind: output, shape index: {}]  }
   0x1 LB: > { %s395_s7 = sadd.s32 4294967295, %s421_s6   ;;  %p399_p0 = scmp.ge.s32.totalorder %s421_s6, 1  ;;  %s421_s6 = sphi %s433_s6, %s11_s6  }
   0x2   : > { %p87_p1 = scmp.lt.s32.totalorder %s421_s6, 3 }
   0x4   : > { %p88_p2 = pnand %p399_p0, %p87_p1 }
   0x5   : > { %p107_p3 = scmp.lt.s32.totalorder (!%p88_p2), %s395_s7, 1  ;;  %vm173_vm0 = vcmask (!%p88_p2), 1046528   ;;  %vm214_vm1 = vcmask (!%p88_p2), 1045504   ;;  %vm331_vm2 = vcmask (!%p88_p2), 519168  }
   0x6   : > { %91 = sbr.rel (%p88_p2) target bundleno = 65 (0x41), region = 24 }
   0xd   : > { %s517_s7 = smov (!%p107_p3, %s395_s7), 1 }
   0xe   : > { %s406_s8 = smul.u32 80, %s517_s7  ;;  %s405_s12 = sshll.u32 %s517_s7, 5 }
   0xf   : > { %s481_s15 = scalar_lea.vmem %s515_s1, %s405_s12 }
  0x10   : > { %s447_s11 = scalar_lea.vmem %s514_s0, %s406_s8 }
  0x11   : > { %v117_v0 = vld [vmem:[%s447_s11] ss:$8 sps:$4 sm:$0xff]   ;;  %v118_v1 = vld [vmem:[%s447_s11 + $0x4] sm:$0x1]  ;;  %v120_v2 = vld [vmem:[%s447_s11 + $0xc] sm:$0x1] }
  0x12   : > { %v121_v3 = vld [vmem:[%s447_s11 + $0x10] ss:$8 sps:$4 sm:$0xff]   ;;  %v122_v4 = vld [vmem:[%s447_s11 + $0x14] sm:$0x1]  ;;  %v137_v5 = vunpack.c.l.bf16 %v117_v0  ;;  %v138_v6 = vunpack.c.l.bf16 %v118_v1  ;;  %v139_v7 = vunpack.c.h.bf16 %v117_v0  ;;  %v140_v8 = vunpack.c.l.bf16 %v120_v2  ;;  %v124_v9 = vld [vmem:[%s447_s11 + $0x1c] sm:$0x1] }
  0x13   : > { %v141_v10 = vunpack.c.l.bf16 %v121_v3  ;;  %v142_v11 = vunpack.c.l.bf16 %v122_v4  ;;  %v143_v12 = vunpack.c.h.bf16 %v121_v3  ;;  %v144_v13 = vunpack.c.l.bf16 %v124_v9  ;;  %v125_v26 = vld [vmem:[%s447_s11 + $0x20] ss:$8 sps:$4 sm:$0xff]   ;;  %v126_v35 = vld [vmem:[%s447_s11 + $0x24] sm:$0x1]  ;;  %v128_v48 = vld [vmem:[%s447_s11 + $0x2c] sm:$0x1] }
  0x14   : > { %v174_v14 = vrot.slane %v137_v5, 1  ;;  %v175_v15 = vrot.slane %v138_v6, 1  ;;  %v177_v16 = vrot.slane %v139_v7, 1  ;;  %v178_v17 = vrot.slane %v140_v8, 1  ;;  %v129_v57 = vld [vmem:[%s447_s11 + $0x30] ss:$8 sps:$4 sm:$0xff]  }
  0x15   : > { %v180_v18 = vrot.slane %v141_v10, 1  ;;  %v181_v19 = vrot.slane %v142_v11, 1  ;;  %v215_v20 = vrot.slane %v137_v5, 2  ;;  %v216_v21 = vrot.slane %v138_v6, 2 }
  0x16   : > { %v176_v22 = vsel %vm173_vm0, %v174_v14, %v175_v15  ;;  %v179_v23 = vsel %vm173_vm0, %v177_v16, %v178_v17  ;;  %v218_v24 = vrot.slane %v139_v7, 2  ;;  %v219_v25 = vrot.slane %v140_v8, 2 }
  0x17   : > { %v459_v27 = vsel %vm173_vm0, %v180_v18, %v181_v19  ;;  %v206_v28 = vmax.f32 %v137_v5, %v176_v22  ;;  %v207_v29 = vmax.f32 %v139_v7, %v179_v23  ;;  %v217_v30 = vsel %vm214_vm1, %v215_v20, %v216_v21 }
  0x18   : > { %v208_v31 = vmax.f32 %v141_v10, %v459_v27  ;;  %v220_v32 = vsel %vm214_vm1, %v218_v24, %v219_v25  ;;  %v221_v33 = vrot.slane %v141_v10, 2  ;;  %v222_v34 = vrot.slane %v142_v11, 2  ;;  %v130_v11 = vld [vmem:[%s447_s11 + $0x34] sm:$0x1] }
  0x19   : > { %v247_v36 = vmax.f32 %v206_v28, %v217_v30  ;;  %v248_v37 = vmax.f32 %v207_v29, %v220_v32  ;;  %v145_v38 = vunpack.c.l.bf16 %v125_v26  ;;  %v183_v39 = vrot.slane %v143_v12, 1 }
  0x1a   : > { %v223_v40 = vsel %vm214_vm1, %v221_v33, %v222_v34  ;;  %v184_v41 = vrot.slane %v144_v13, 1  ;;  %v224_v42 = vrot.slane %v143_v12, 2  ;;  %v225_v43 = vrot.slane %v144_v13, 2 }
  0x1b   : > { %v249_v44 = vmax.f32 %v208_v31, %v223_v40  ;;  %v255_v45 = vmax.f32 %v247_v36, %v139_v7  ;;  %v256_v46 = vmax.f32 %v248_v37, %v141_v10  ;;  %v146_v47 = vunpack.c.l.bf16 %v126_v35  ;;  %v132_v31 = vld [vmem:[%s447_s11 + $0x3c] sm:$0x1] }
  0x1c   : > { %v185_v49 = vsel %vm173_vm0, %v183_v39, %v184_v41  ;;  %v226_v50 = vsel %vm214_vm1, %v224_v42, %v225_v43  ;;  %v147_v51 = vunpack.c.h.bf16 %v125_v26  ;;  %v186_v52 = vrot.slane %v145_v38, 1 }
  0x1d   : > { %v257_v53 = vmax.f32 %v249_v44, %v143_v12  ;;  %v269_v54 = vmax.f32 %v255_v45, %v179_v23  ;;  %v270_v55 = vmax.f32 %v256_v46, %v459_v27  ;;  %v209_v56 = vmax.f32 %v143_v12, %v185_v49 }
  0x1e   : > { %v187_v58 = vrot.slane %v146_v47, 1  ;;  %v227_v59 = vrot.slane %v145_v38, 2  ;;  %v228_v60 = vrot.slane %v146_v47, 2  ;;  %v148_v61 = vunpack.c.l.bf16 %v128_v48  ;;  %v133_v48 = vld [vmem:[%s447_s11 + $0x40] ss:$8 sps:$4 sm:$0xff]  }
  0x1f   : > { %v281_v62 = vmax.f32 %v269_v54, %v220_v32  ;;  %v282_v63 = vmax.f32 %v270_v55, %v223_v40  ;;  %v250_v0 = vmax.f32 %v209_v56, %v226_v50  ;;  %v271_v1 = vmax.f32 %v257_v53, %v185_v49 }
  0x20   : > { %v188_v2 = vsel %vm173_vm0, %v186_v52, %v187_v58  ;;  %v229_v3 = vsel %vm214_vm1, %v227_v59, %v228_v60  ;;  %v149_v4 = vunpack.c.l.bf16 %v129_v57  ;;  %v189_v5 = vrot.slane %v147_v51, 1 }
  0x21   : > { %v289_v6 = vmax.f32 %v281_v62, %v141_v10  ;;  %v258_v7 = vmax.f32 %v250_v0, %v145_v38  ;;  %v283_v8 = vmax.f32 %v271_v1, %v226_v50  ;;  %v290_v9 = vmax.f32 %v282_v63, %v143_v12 }
  0x22   : > { %v210_v13 = vmax.f32 %v145_v38, %v188_v2  ;;  %v190_v14 = vrot.slane %v148_v61, 1  ;;  %v230_v15 = vrot.slane %v147_v51, 2  ;;  %v231_v16 = vrot.slane %v148_v61, 2 }
  0x23   : > { %v303_v17 = vmax.f32 %v289_v6, %v459_v27  ;;  %v304_v18 = vmax.f32 %v290_v9, %v185_v49  ;;  %v272_v19 = vmax.f32 %v258_v7, %v188_v2  ;;  %v291_v20 = vmax.f32 %v283_v8, %v145_v38 }
  0x24   : > { %v251_v21 = vmax.f32 %v210_v13, %v229_v3  ;;  %v191_v22 = vsel %vm173_vm0, %v189_v5, %v190_v14  ;;  %v232_v10 = vsel %vm214_vm1, %v230_v15, %v231_v16  ;;  %v150_v23 = vunpack.c.l.bf16 %v130_v11 }
  0x25   : > { %v315_v24 = vmax.f32 %v303_v17, %v223_v40  ;;  %v316_v12 = vmax.f32 %v304_v18, %v226_v50  ;;  %v284_v25 = vmax.f32 %v272_v19, %v229_v3  ;;  %v305_v26 = vmax.f32 %v291_v20, %v188_v2  ;;  %v136_v2 = vld [vmem:[%s447_s11 + $0x4c] sm:$0x1] }
  0x26   : > { %v259_v27 = vmax.f32 %v251_v21, %v147_v51  ;;  %v211_v28 = vmax.f32 %v147_v51, %v191_v22  ;;  %v151_v29 = vunpack.c.h.bf16 %v129_v57  ;;  %v192_v30 = vrot.slane %v149_v4, 1  ;;  %v134_v57 = vld [vmem:[%s447_s11 + $0x44] sm:$0x1] }
  0x27   : > { %v323_v32 = vpack.c.bf16 %v315_v24, %v315_v24  ;;  %v324_v33 = vpack.c.bf16 %v316_v12, %v316_v12  ;;  %v317_v34 = vmax.f32 %v305_v26, %v229_v3  ;;  %v292_v35 = vmax.f32 %v284_v25, %v147_v51 }
  0x28   : > { %v252_v36 = vmax.f32 %v211_v28, %v232_v10  ;;  %v273_v37 = vmax.f32 %v259_v27, %v191_v22  ;;  %v193_v38 = vrot.slane %v150_v23, 1  ;;  %v233_v39 = vrot.slane %v149_v4, 2 }
  0x29   : > { %332 = vst.msk [vmem:[%s481_s15] sm:$0xf] %vm331_vm2, %v323_v32  ;;  %333 = vst.msk [vmem:[%s481_s15 + $0x4] sm:$0xf] %vm331_vm2, %v324_v33  ;;  %v325_v40 = vpack.c.bf16 %v317_v34, %v317_v34  ;;  %v306_v41 = vmax.f32 %v292_v35, %v191_v22  ;;  %v234_v42 = vrot.slane %v150_v23, 2  ;;  %v152_v43 = vunpack.c.l.bf16 %v132_v31 }
  0x2a   : > { %v260_v44 = vmax.f32 %v252_v36, %v149_v4  ;;  %v285_v45 = vmax.f32 %v273_v37, %v232_v10  ;;  %v194_v46 = vsel %vm173_vm0, %v192_v30, %v193_v38  ;;  %v195_v47 = vrot.slane %v151_v29, 1 }
  0x2b   : > { %334 = vst.msk [vmem:[%s481_s15 + $0x8] sm:$0xf] %vm331_vm2, %v325_v40  ;;  %v318_v49 = vmax.f32 %v306_v41, %v232_v10  ;;  %v212_v50 = vmax.f32 %v149_v4, %v194_v46  ;;  %v235_v51 = vsel %vm214_vm1, %v233_v39, %v234_v42  ;;  %v196_v52 = vrot.slane %v152_v43, 1 }
  0x2c   : > { %v274_v53 = vmax.f32 %v260_v44, %v194_v46  ;;  %v293_v54 = vmax.f32 %v285_v45, %v149_v4  ;;  %v236_v55 = vrot.slane %v151_v29, 2  ;;  %v237_v56 = vrot.slane %v152_v43, 2 }
  0x2d   : > { %v326_v58 = vpack.c.bf16 %v318_v49, %v318_v49  ;;  %v253_v59 = vmax.f32 %v212_v50, %v235_v51  ;;  %v197_v60 = vsel %vm173_vm0, %v195_v47, %v196_v52  ;;  %v153_v61 = vunpack.c.l.bf16 %v133_v48 }
  0x2e   : > { %v286_v62 = vmax.f32 %v274_v53, %v235_v51  ;;  %v307_v63 = vmax.f32 %v293_v54, %v194_v46  ;;  %v213_v0 = vmax.f32 %v151_v29, %v197_v60  ;;  %v238_v1 = vsel %vm214_vm1, %v236_v55, %v237_v56 }
  0x2f   : > { %335 = vst.msk [vmem:[%s481_s15 + $0xc] sm:$0xf] %vm331_vm2, %v326_v58  ;;  %v261_v3 = vmax.f32 %v253_v59, %v151_v29  ;;  %v154_v5 = vunpack.c.l.bf16 %v134_v57  ;;  %v265_v6 = vrot.slane %v153_v61, 1  ;;  %v277_v4 = vrot.slane %v153_v61, 2 }
  0x30   : > { %v319_v7 = vmax.f32 %v307_v63, %v235_v51  ;;  %v254_v8 = vmax.f32 %v213_v0, %v238_v1  ;;  %v294_v9 = vmax.f32 %v286_v62, %v151_v29  ;;  %v155_v11 = vunpack.c.h.bf16 %v133_v48 }
  0x31   : > { %v275_v13 = vmax.f32 %v261_v3, %v197_v60  ;;  %v266_v14 = vrot.slane %v154_v5, 1  ;;  %v278_v15 = vrot.slane %v154_v5, 2  ;;  %v156_v16 = vunpack.c.l.bf16 %v136_v2 }
  0x32   : > { %v327_v17 = vpack.c.bf16 %v319_v7, %v319_v7  ;;  %v308_v18 = vmax.f32 %v294_v9, %v197_v60  ;;  %v262_v19 = vmax.f32 %v254_v8, %v153_v61  ;;  %v299_v20 = vrot.slane %v155_v11, 1 }
  0x33   : > { %v287_v21 = vmax.f32 %v275_v13, %v238_v1  ;;  %v267_v22 = vsel %vm173_vm0, %v265_v6, %v266_v14  ;;  %v279_v10 = vsel %vm214_vm1, %v277_v4, %v278_v15  ;;  %v300_v23 = vrot.slane %v156_v16, 1 }
  0x34   : > { %336 = vst.msk [vmem:[%s481_s15 + $0x10] sm:$0xf] %vm331_vm2, %v327_v17  ;;  %v320_v24 = vmax.f32 %v308_v18, %v238_v1  ;;  %v276_v12 = vmax.f32 %v262_v19, %v267_v22  ;;  %v311_v26 = vrot.slane %v155_v11, 2  ;;  %v312_v27 = vrot.slane %v156_v16, 2 }
  0x35   : > { %v295_v25 = vmax.f32 %v287_v21, %v153_v61  ;;  %v301_v31 = vsel %vm173_vm0, %v299_v20, %v300_v23 }
  0x36   : > { %v328_v28 = vpack.c.bf16 %v320_v24, %v320_v24  ;;  %v288_v29 = vmax.f32 %v276_v12, %v279_v10  ;;  %v313_v34 = vsel %vm214_vm1, %v311_v26, %v312_v27 }
  0x37   : > { %v309_v30 = vmax.f32 %v295_v25, %v267_v22 }
  0x38   : > { %337 = vst.msk [vmem:[%s481_s15 + $0x14] sm:$0xf] %vm331_vm2, %v328_v28  ;;  %v296_v32 = vmax.f32 %v288_v29, %v155_v11 }
  0x39   : > { %v321_v33 = vmax.f32 %v309_v30, %v279_v10 }
  0x3a   : > { %v310_v35 = vmax.f32 %v296_v32, %v301_v31 }
  0x3b   : > { %v329_v36 = vpack.c.bf16 %v321_v33, %v321_v33 }
  0x3c   : > { %v322_v37 = vmax.f32 %v310_v35, %v313_v34 }
  0x3d   : > { %338 = vst.msk [vmem:[%s481_s15 + $0x18] sm:$0xf] %vm331_vm2, %v329_v36 }
  0x3e   : > { %v330_v38 = vpack.c.bf16 %v322_v37, %v322_v37 }
  0x40   : > { %339 = vst.msk [vmem:[%s481_s15 + $0x1c] sm:$0xf] %vm331_vm2, %v330_v38 }
  0x41 PF: > { %s11_s6 = sadd.s32 1, %s421_s6  }
  0x42   : > { %p8_p4 = scmp.ge.s32.totalorder %s11_s6, 4  }
  0x44   :  { %10 = sbr.rel (!%p8_p4) target bundleno = 1 (0x1), region = 54 }

// kernel: resnet34_forward.31
= control target key start
LH: loop header
LB: loop body
LE: loop exit
PB: predicated region body
PF: predicated region fallthrough
CT: control target
= control target key end

     0   :  { %s992_s1 = inlined_call_operand.vmem [shape: bf16[256,128], index: 1, kind: input, shape index: {}]   ;;  %s993_s0 = inlined_call_operand.vmem [shape: bf16[128,256], index: 0, kind: input, shape index: {}]   ;;  %s994_s2 = inlined_call_operand.vmem [shape: f32[1,128], index: 2, kind: input, shape index: {}]   ;;  %s995_s3 = inlined_call_operand.vmem [shape: f32[1,128], index: 3, kind: input, shape index: {}]   ;;  %s996_s4 = inlined_call_operand.vmem [shape: bf16[128,128], index: 4, kind: output, shape index: {}]  }
   0x1   :  { %v765_v0 = vld [vmem:[%s992_s1 + $0x40] sm:$0xff]   ;;  %v767_v2 = vld [vmem:[%s992_s1 + $0x48] sm:$0xff]   ;;  %v769_v4 = vld [vmem:[%s992_s1 + $0x50] sm:$0xff]  }
   0x2   :  { %v766_v1 = vld [vmem:[%s992_s1] sm:$0xff]   ;;  %685 = vmatprep.subr.bf16.mxu0 %v765_v0  ;;  %749 = vmatprep.subr.bf16.mxu1 %v765_v0  ;;  %v768_v3 = vld [vmem:[%s992_s1 + $0x8] sm:$0xff]   ;;  %v770_v5 = vld [vmem:[%s992_s1 + $0x10] sm:$0xff]  }
   0x3   :  { %686 = vmatpush3.bf16.msra.mxu0 %v766_v1  ;;  %757 = vmatpush3.bf16.msra.mxu1 %v766_v1  ;;  %v771_v6 = vld [vmem:[%s992_s1 + $0x58] sm:$0xff]   ;;  %v773_v8 = vld [vmem:[%s992_s1 + $0x60] sm:$0xff]   ;;  %v775_v10 = vld [vmem:[%s992_s1 + $0x68] sm:$0xff]  }
   0x4   :  { %687 = vmatprep.subr.bf16.mxu0 %v767_v2  ;;  %750 = vmatprep.subr.bf16.mxu1 %v767_v2  ;;  %v772_v7 = vld [vmem:[%s992_s1 + $0x18] sm:$0xff]   ;;  %v774_v9 = vld [vmem:[%s992_s1 + $0x20] sm:$0xff]   ;;  %v776_v13 = vld [vmem:[%s992_s1 + $0x28] sm:$0xff]  }
   0x5   :  { %v783_v11 = vld [vmem:[%s993_s0 + $0x4] ss:$8 sps:$4 sm:$0xff]   ;;  %v777_v14 = vld [vmem:[%s992_s1 + $0x70] sm:$0xff]   ;;  %v779_v16 = vld [vmem:[%s992_s1 + $0x78] sm:$0xff]  }
   0x6   :  { %v786_v12 = vld [vmem:[%s993_s0 + $0x44] ss:$8 sps:$4 sm:$0xff]   ;;  %310 = vmatprep.mubr.bf16.mxu0 %v783_v11  ;;  %v778_v15 = vld [vmem:[%s992_s1 + $0x30] sm:$0xff]   ;;  %v780_v17 = vld [vmem:[%s992_s1 + $0x38] sm:$0xff]  }
   0x7   :  { %688 = vmatpush3.bf16.msra.mxu0 %v768_v3  ;;  %758 = vmatpush3.bf16.msra.mxu1 %v768_v3  ;;  %v781_v18 = vld [vmem:[%s993_s0] ss:$8 sps:$4 sm:$0xff]   ;;  %v787_v20 = vld [vmem:[%s993_s0 + $0x14] ss:$8 sps:$4 sm:$0xff]   ;;  %v791_v22 = vld [vmem:[%s993_s0 + $0x10] ss:$8 sps:$4 sm:$0xff]  }
   0x8   :  { %689 = vmatprep.subr.bf16.mxu0 %v769_v4  ;;  %751 = vmatprep.subr.bf16.mxu1 %v769_v4  ;;  %v784_v19 = vld [vmem:[%s993_s0 + $0x40] ss:$8 sps:$4 sm:$0xff]   ;;  %v789_v21 = vld [vmem:[%s993_s0 + $0x54] ss:$8 sps:$4 sm:$0xff]   ;;  %v792_v23 = vld [vmem:[%s993_s0 + $0x50] ss:$8 sps:$4 sm:$0xff]  }
   0x9   :  { %342 = vmatprep.mubr.bf16.mxu1 %v786_v12  ;;  %v793_v24 = vld [vmem:[%s993_s0 + $0x24] ss:$8 sps:$4 sm:$0xff]   ;;  %v797_v26 = vld [vmem:[%s993_s0 + $0x20] ss:$8 sps:$4 sm:$0xff]   ;;  %v799_v28 = vld [vmem:[%s993_s0 + $0x34] ss:$8 sps:$4 sm:$0xff]  }
   0xa   :  { %v795_v25 = vld [vmem:[%s993_s0 + $0x64] ss:$8 sps:$4 sm:$0xff]   ;;  %v798_v27 = vld [vmem:[%s993_s0 + $0x60] ss:$8 sps:$4 sm:$0xff]   ;;  %v801_v29 = vld [vmem:[%s993_s0 + $0x74] ss:$8 sps:$4 sm:$0xff]  }
   0xb   :  { %690 = vmatpush3.bf16.msra.mxu0 %v770_v5  ;;  %759 = vmatpush3.bf16.msra.mxu1 %v770_v5  ;;  %v803_v30 = vld [vmem:[%s993_s0 + $0x30] ss:$8 sps:$4 sm:$0xff]   ;;  %v929_v35 = vld [vmem:[%s994_s2] ss:$0 sm:$0xff] }
   0xc   :  { %691 = vmatprep.subr.bf16.mxu0 %v771_v6  ;;  %752 = vmatprep.subr.bf16.mxu1 %v771_v6  ;;  %v804_v31 = vld [vmem:[%s993_s0 + $0x70] ss:$8 sps:$4 sm:$0xff]   ;;  %v934_v41 = vld [vmem:[%s995_s3] ss:$0 sm:$0xff] }
   0xf   :  { %692 = vmatpush3.bf16.msra.mxu0 %v772_v7  ;;  %760 = vmatpush3.bf16.msra.mxu1 %v772_v7 }
  0x10   :  { %693 = vmatprep.subr.bf16.mxu0 %v773_v8  ;;  %753 = vmatprep.subr.bf16.mxu1 %v773_v8 }
  0x13   :  { %694 = vmatpush3.bf16.msra.mxu0 %v774_v9  ;;  %761 = vmatpush3.bf16.msra.mxu1 %v774_v9 }
  0x14   :  { %695 = vmatprep.subr.bf16.mxu0 %v775_v10  ;;  %754 = vmatprep.subr.bf16.mxu1 %v775_v10 }
  0x17   :  { %696 = vmatpush3.bf16.msra.mxu0 %v776_v13  ;;  %762 = vmatpush3.bf16.msra.mxu1 %v776_v13 }
  0x18   :  { %697 = vmatprep.subr.bf16.mxu0 %v777_v14  ;;  %755 = vmatprep.subr.bf16.mxu1 %v777_v14 }
  0x1b   :  { %698 = vmatpush3.bf16.msra.mxu0 %v778_v15  ;;  %763 = vmatpush3.bf16.msra.mxu1 %v778_v15 }
  0x1c   :  { %699 = vmatprep.subr.bf16.mxu0 %v779_v16  ;;  %756 = vmatprep.subr.bf16.mxu1 %v779_v16 }
  0x1f   :  { %700 = vmatpush3.bf16.msra.mxu0 %v780_v17  ;;  %764 = vmatpush3.bf16.msra.mxu1 %v780_v17 }
  0x22   :  { %311 = vmatmul.mubr.bf16.vlgmr.msra.gmra.mrb[0].mxu0 %v781_v18  ;;  %343 = vmatmul.mubr.bf16.vlgmr.msra.gmra.mrb[0].mxu1 %v784_v19 }
  0x23   :  { %318 = vmatprep.mubr.bf16.mxu0 %v787_v20  ;;  %350 = vmatprep.mubr.bf16.mxu1 %v789_v21 }
  0x2a   :  { %319 = vmatmul.mubr.bf16.gmra.mrb[4].mxu0 %v791_v22  ;;  %351 = vmatmul.mubr.bf16.gmra.mrb[4].mxu1 %v792_v23 }
  0x2b   :  { %326 = vmatprep.mubr.bf16.mxu0 %v793_v24  ;;  %358 = vmatprep.mubr.bf16.mxu1 %v795_v25 }
  0x32   :  { %327 = vmatmul.mubr.bf16.gmra.mrb[8].mxu0 %v797_v26  ;;  %359 = vmatmul.mubr.bf16.gmra.mrb[8].mxu1 %v798_v27 }
  0x33   :  { %334 = vmatprep.mubr.bf16.mxu0 %v799_v28  ;;  %366 = vmatprep.mubr.bf16.mxu1 %v801_v29 }
  0x3a   :  { %335 = vmatmul.mubr.bf16.gmra.mrb[12].mxu0 %v803_v30  ;;  %367 = vmatmul.mubr.bf16.gmra.mrb[12].mxu1 %v804_v31 }
  0xf5   :  { %v701_v32 = vpop.f32.mrb[0].mxu0  ;;  %v725_v33 = vpop.f32.mrb[0].mxu1 }
  0xf6   :  { %v702_v34 = vpop.f32.mrb[1].mxu0  ;;  %v726_v36 = vpop.f32.mrb[1].mxu1 }
  0xf7   :  { %v703_v37 = vadd.f32 %v702_v34, %v701_v32  ;;  %v727_v38 = vadd.f32 %v726_v36, %v725_v33  ;;  %v704_v39 = vpop.f32.mrb[2].mxu0  ;;  %v728_v40 = vpop.f32.mrb[2].mxu1 }
  0xf8   :  { %v705_v42 = vpop.f32.mrb[3].mxu0  ;;  %v729_v43 = vpop.f32.mrb[3].mxu1 }
  0xf9   :  { %v433_v44 = vmul.f32 %v703_v37, %v929_v35  ;;  %v441_v45 = vmul.f32 %v727_v38, %v929_v35  ;;  %v706_v46 = vadd.f32 %v705_v42, %v704_v39  ;;  %v730_v47 = vadd.f32 %v729_v43, %v728_v40 }
  0xfb   :  { %v456_v48 = vadd.f32 %v934_v41, %v433_v44  ;;  %v464_v49 = vadd.f32 %v934_v41, %v441_v45  ;;  %v434_v50 = vmul.f32 %v706_v46, %v929_v35  ;;  %v442_v51 = vmul.f32 %v730_v47, %v929_v35 }
  0xfd   :  { %v457_v52 = vadd.f32 %v934_v41, %v434_v50  ;;  %v465_v53 = vadd.f32 %v934_v41, %v442_v51  ;;  %v707_v54 = vpop.f32.mrb[4].mxu0  ;;  %v731_v55 = vpop.f32.mrb[4].mxu1  ;;  %v472_v56 = vmax.f32 %v456_v48, 0.0  ;;  %v480_v57 = vmax.f32 %v464_v49, 0.0 }
  0xfe   :  { %v708_v58 = vpop.f32.mrb[5].mxu0  ;;  %v732_v59 = vpop.f32.mrb[5].mxu1 }
  0xff   :  { %v473_v60 = vmax.f32 %v457_v52, 0.0  ;;  %v481_v61 = vmax.f32 %v465_v53, 0.0  ;;  %v709_v62 = vadd.f32 %v708_v58, %v707_v54  ;;  %v733_v63 = vadd.f32 %v732_v59, %v731_v55  ;;  %v710_v0 = vpop.f32.mrb[6].mxu0  ;;  %v734_v1 = vpop.f32.mrb[6].mxu1 }
 0x100   :  { %v711_v2 = vpop.f32.mrb[7].mxu0  ;;  %v735_v3 = vpop.f32.mrb[7].mxu1 }
 0x101   :  { %v641_v4 = vpack.c.bf16 %v473_v60, %v472_v56  ;;  %v661_v5 = vpack.c.bf16 %v481_v61, %v480_v57  ;;  %v435_v6 = vmul.f32 %v709_v62, %v929_v35  ;;  %v443_v7 = vmul.f32 %v733_v63, %v929_v35 }
 0x102   :  { %v712_v8 = vadd.f32 %v711_v2, %v710_v0  ;;  %v736_v9 = vadd.f32 %v735_v3, %v734_v1 }
 0x103   :  { %642 = vst [vmem:[%s996_s4] sm:$0xff] %v641_v4   ;;  %681 = vst [vmem:[%s996_s4 + $0x20] sm:$0xff] %v661_v5   ;;  %v458_v10 = vadd.f32 %v934_v41, %v435_v6  ;;  %v466_v11 = vadd.f32 %v934_v41, %v443_v7 }
 0x104   :  { %v436_v12 = vmul.f32 %v712_v8, %v929_v35  ;;  %v444_v13 = vmul.f32 %v736_v9, %v929_v35 }
 0x105   :  { %v713_v14 = vpop.f32.mrb[8].mxu0  ;;  %v737_v15 = vpop.f32.mrb[8].mxu1  ;;  %v474_v24 = vmax.f32 %v458_v10, 0.0  ;;  %v482_v25 = vmax.f32 %v466_v11, 0.0 }
 0x106   :  { %v459_v16 = vadd.f32 %v934_v41, %v436_v12  ;;  %v467_v17 = vadd.f32 %v934_v41, %v444_v13  ;;  %v714_v18 = vpop.f32.mrb[9].mxu0  ;;  %v738_v19 = vpop.f32.mrb[9].mxu1 }
 0x107   :  { %v715_v20 = vadd.f32 %v714_v18, %v713_v14  ;;  %v739_v21 = vadd.f32 %v738_v19, %v737_v15  ;;  %v716_v22 = vpop.f32.mrb[10].mxu0  ;;  %v740_v23 = vpop.f32.mrb[10].mxu1 }
 0x108   :  { %v475_v26 = vmax.f32 %v459_v16, 0.0  ;;  %v483_v27 = vmax.f32 %v467_v17, 0.0  ;;  %v717_v28 = vpop.f32.mrb[11].mxu0  ;;  %v741_v29 = vpop.f32.mrb[11].mxu1 }
 0x109   :  { %v437_v30 = vmul.f32 %v715_v20, %v929_v35  ;;  %v445_v31 = vmul.f32 %v739_v21, %v929_v35  ;;  %v718_v32 = vadd.f32 %v717_v28, %v716_v22  ;;  %v742_v33 = vadd.f32 %v741_v29, %v740_v23 }
 0x10a   :  { %v646_v34 = vpack.c.bf16 %v475_v26, %v474_v24  ;;  %v666_v36 = vpack.c.bf16 %v483_v27, %v482_v25 }
 0x10b   :  { %v460_v37 = vadd.f32 %v934_v41, %v437_v30  ;;  %v468_v38 = vadd.f32 %v934_v41, %v445_v31  ;;  %v438_v39 = vmul.f32 %v718_v32, %v929_v35  ;;  %v446_v40 = vmul.f32 %v742_v33, %v929_v35 }
 0x10c   :  { %678 = vst [vmem:[%s996_s4 + $0x8] sm:$0xff] %v646_v34   ;;  %682 = vst [vmem:[%s996_s4 + $0x28] sm:$0xff] %v666_v36  }
 0x10d   :  { %v461_v42 = vadd.f32 %v934_v41, %v438_v39  ;;  %v469_v43 = vadd.f32 %v934_v41, %v446_v40  ;;  %v719_v44 = vpop.f32.mrb[12].mxu0  ;;  %v743_v45 = vpop.f32.mrb[12].mxu1  ;;  %v476_v46 = vmax.f32 %v460_v37, 0.0  ;;  %v484_v47 = vmax.f32 %v468_v38, 0.0 }
 0x10e   :  { %v720_v48 = vpop.f32.mrb[13].mxu0  ;;  %v744_v49 = vpop.f32.mrb[13].mxu1 }
 0x10f   :  { %v477_v50 = vmax.f32 %v461_v42, 0.0  ;;  %v485_v51 = vmax.f32 %v469_v43, 0.0  ;;  %v721_v52 = vadd.f32 %v720_v48, %v719_v44  ;;  %v745_v53 = vadd.f32 %v744_v49, %v743_v45  ;;  %v722_v54 = vpop.f32.mrb[14].mxu0  ;;  %v746_v55 = vpop.f32.mrb[14].mxu1 }
 0x110   :  { %v723_v56 = vpop.f32.mrb[15].mxu0  ;;  %v747_v57 = vpop.f32.mrb[15].mxu1 }
 0x111   :  { %v651_v58 = vpack.c.bf16 %v477_v50, %v476_v46  ;;  %v671_v59 = vpack.c.bf16 %v485_v51, %v484_v47  ;;  %v439_v60 = vmul.f32 %v721_v52, %v929_v35  ;;  %v447_v61 = vmul.f32 %v745_v53, %v929_v35 }
 0x112   :  { %v724_v62 = vadd.f32 %v723_v56, %v722_v54  ;;  %v748_v63 = vadd.f32 %v747_v57, %v746_v55 }
 0x113   :  { %679 = vst [vmem:[%s996_s4 + $0x10] sm:$0xff] %v651_v58   ;;  %683 = vst [vmem:[%s996_s4 + $0x30] sm:$0xff] %v671_v59   ;;  %v462_v0 = vadd.f32 %v934_v41, %v439_v60  ;;  %v470_v1 = vadd.f32 %v934_v41, %v447_v61 }
 0x114   :  { %v440_v2 = vmul.f32 %v724_v62, %v929_v35  ;;  %v448_v3 = vmul.f32 %v748_v63, %v929_v35 }
 0x115   :  { %v478_v6 = vmax.f32 %v462_v0, 0.0  ;;  %v486_v7 = vmax.f32 %v470_v1, 0.0 }
 0x116   :  { %v463_v4 = vadd.f32 %v934_v41, %v440_v2  ;;  %v471_v5 = vadd.f32 %v934_v41, %v448_v3 }
 0x118   :  { %v479_v8 = vmax.f32 %v463_v4, 0.0  ;;  %v487_v9 = vmax.f32 %v471_v5, 0.0 }
 0x11a   :  { %v656_v10 = vpack.c.bf16 %v479_v8, %v478_v6  ;;  %v676_v11 = vpack.c.bf16 %v487_v9, %v486_v7 }
 0x11c   :  { %680 = vst [vmem:[%s996_s4 + $0x18] sm:$0xff] %v656_v10   ;;  %684 = vst [vmem:[%s996_s4 + $0x38] sm:$0xff] %v676_v11  }

// kernel: resnet34_forward.33
= control target key start
LH: loop header
LB: loop body
LE: loop exit
PB: predicated region body
PF: predicated region fallthrough
CT: control target
= control target key end

     0   :  { %s867_s15 = smov 0   ;;  %s869_s16 = smov 0   ;;  %s963_s0 = inlined_call_operand.vmem [shape: bf16[32,640], index: 0, kind: input, shape index: {}]   ;;  %s964_s1 = inlined_call_operand.vmem [shape: bf16[640,128], index: 1, kind: input, shape index: {}]   ;;  %s965_s2 = inlined_call_operand.vmem [shape: f32[1,128], index: 2, kind: input, shape index: {}]   ;;  %s966_s3 = inlined_call_operand.vmem [shape: f32[1,128], index: 3, kind: input, shape index: {}]   ;;  %s967_s4 = inlined_call_operand.vmem [shape: bf16[32,128], index: 4, kind: output, shape index: {}]  }
   0x1   :  { %s871_s17 = smov 0   ;;  %s873_s18 = smov 0  }
   0x2   :  { %s875_s19 = smov 0  }
   0x3 LB: > { %s26_s20 = sadd.s32 1, %s835_s18  ;;  %p49_p1 = scmp.ne.s32.totalorder %s827_s16, %s823_s15  ;;  %s839_s19 = sphi %s875_s19, %s14_s19   ;;  %s835_s18 = sphi %s873_s18, %s971_s18   ;;  %s831_s17 = sphi %s871_s17, %s970_s17   ;;  %s827_s16 = sphi %s869_s16, %s969_s16   ;;  %s823_s15 = sphi %s867_s15, %s968_s15  }
   0x4   : > { %p27_p0 = scmp.ge.s32.totalorder %s26_s20, 5  ;;  %p50_p2 = scmp.eq.s32.totalorder %s839_s19, 0 }
   0x5   : > { %s42_s22 = sadd.s32 1, %s827_s16  ;;  %p676_p5 = scmp.ge.s32.totalorder %s839_s19, 5 }
   0x6   : > { %s973_s20 = smov (%p27_p0, %s26_s20), 0  ;;  %p51_p3 = por %p50_p2, %p49_p1 }
   0x7   : > { %s38_s21 = ssub.s32 %s835_s18, %s973_s20  ;;  %195 = sbr.rel (%p676_p5) target bundleno = 21 (0x15), region = 24 }
   0x8   : > { %p40_p4 = scmp.eq.s32.totalorder %s38_s21, 0 }
   0xa   : > { %s902_s23 = scalar_select %p40_p4, %s827_s16, %s42_s22  }
   0xe   : > { %198 = sbr.rel (!%p51_p3) target bundleno = 21 (0x15), region = 28  ;;  %s200_s24 = sand.u32 (%p51_p3), 1, %s827_s16  }
   0xf   : > { %s678_s25 = sshll.u32 (%p51_p3), %s835_s18, 2  ;;  %s677_s26 = sshll.u32 (%p51_p3), %s200_s24, 4 }
  0x10   : > { %s207_s29 = scalar_lea.vmem (%p51_p3), %s963_s0, %s678_s25  ;;  %s202_s30 = scalar_lea.vmem (%p51_p3), [#allocation3], %s677_s26 }
  0x11   : > { %v223_v0 = vld [vmem:[%s207_s29] sm:$0xf] (%p51_p3)  ;;  %v225_v1 = vld [vmem:[%s207_s29 + $0x14] sm:$0xf] (%p51_p3)  ;;  %v227_v2 = vld [vmem:[%s207_s29 + $0x28] sm:$0xf] (%p51_p3) }
  0x12   : > { %224 = vst [vmem:[%s202_s30] sm:$0xf] (%p51_p3), %v223_v0  ;;  %226 = vst [vmem:[%s202_s30 + $0x4] sm:$0xf] (%p51_p3), %v225_v1  ;;  %v229_v3 = vld [vmem:[%s207_s29 + $0x3c] sm:$0xf] (%p51_p3) }
  0x13   : > { %228 = vst [vmem:[%s202_s30 + $0x8] sm:$0xf] (%p51_p3), %v227_v2  ;;  %230 = vst [vmem:[%s202_s30 + $0xc] sm:$0xf] (%p51_p3), %v229_v3 }
  0x15 PF: > { %p679_p6 = scmp.ge.s32.totalorder %s839_s19, 1  ;;  %p272_p7 = scmp.lt.s32.totalorder %s839_s19, 6 }
  0x17   : > { %p273_p8 = pnand %p679_p6, %p272_p7 }
  0x18   : > { %s279_s5 = sand.u32 (!%p273_p8), 1, %s823_s15   ;;  %s681_s6 = sshll.u32 (!%p273_p8), %s831_s17, 4 }
  0x19   : > { %276 = sbr.rel (%p273_p8) target bundleno = 306 (0x132), region = 73  ;;  %s914_s7 = sshll.u32 (!%p273_p8), %s279_s5, 4 }
  0x1a   : > { %p323_p9 = scmp.lt.s32.totalorder (!%p273_p8), %s681_s6, 79  ;;  %s281_s12 = scalar_lea.vmem (!%p273_p8), [#allocation3], %s914_s7 }
  0x1b   : > { %p683_p10 = scmp.ne.s32.totalorder (!%p273_p8), %s831_s17, 0 }
  0x20   : > { %s975_s6 = smov (!%p323_p9, %s681_s6), 79  ;;  %350 = sbr.rel (%p683_p10) target bundleno = 39 (0x27), region = 81 }
  0x21   : > { %s682_s8 = sshll.u32 %s975_s6, 2  ;;  %v841_v4 = vmov (!%p683_p10), 0.0  }
  0x22   : > { %s919_s11 = scalar_lea.vmem %s964_s1, %s682_s8  ;;  %351 = vst [vmem:[#allocation2] sm:$0xff] (!%p683_p10), %v841_v4  ;;  %352 = vst [vmem:[#allocation2 + $0x8] sm:$0xff] (!%p683_p10), %v841_v4 }
  0x23   : > { %353 = vst [vmem:[#allocation2 + $0x10] sm:$0xff] (!%p683_p10), %v841_v4  ;;  %354 = vst [vmem:[#allocation2 + $0x18] sm:$0xff] (!%p683_p10), %v841_v4 }
  0x27 PF: > { %v791_v5 = vld [vmem:[%s919_s11] sm:$0xff]   ;;  %v792_v6 = vld [vmem:[%s919_s11 + $0x8] sm:$0xff]   ;;  %v793_v7 = vld [vmem:[%s919_s11 + $0x10] sm:$0xff]   ;;  %p694_p11 = scmp.ne.s32.totalorder %s831_s17, 4 }
  0x28   : > { %730 = vmatprep.subr.bf16.mxu0 %v791_v5  ;;  %v794_v8 = vld [vmem:[%s919_s11 + $0x18] sm:$0xff]   ;;  %v799_v9 = vld [vmem:[%s281_s12] sm:$0xff]   ;;  %v796_v11 = vld [vmem:[%s919_s11 + $0x28] sm:$0xff]  }
  0x29   : > { %731 = vmatpush3.bf16.msra.mxu0 %v791_v5  ;;  %746 = vmatprep.mubr.bf16.mxu0 %v799_v9  ;;  %v795_v10 = vld [vmem:[%s919_s11 + $0x20] sm:$0xff]   ;;  %v797_v12 = vld [vmem:[%s919_s11 + $0x30] sm:$0xff]   ;;  %v798_v13 = vld [vmem:[%s919_s11 + $0x38] sm:$0xff]  }
  0x2a   : > { %732 = vmatprep.subr.bf16.mxu0 %v792_v6  ;;  %v800_v14 = vld [vmem:[%s281_s12 + $0x8] sm:$0xff]   ;;  %v357_v15 = vld [vmem:[#allocation2 + $0x10] sm:$0xff]  ;;  %v355_v16 = vld [vmem:[#allocation2] sm:$0xff] }
  0x2b   : > { %v358_v18 = vld [vmem:[#allocation2 + $0x18] sm:$0xff]  ;;  %v356_v21 = vld [vmem:[#allocation2 + $0x8] sm:$0xff]  ;;  %v695_v29 = vld [vmem:[%s965_s2] ss:$0 sm:$0xff] (!%p694_p11) }
  0x2c   : > { %v696_v32 = vld [vmem:[%s966_s3] ss:$0 sm:$0xff] (!%p694_p11) }
  0x2d   : > { %733 = vmatpush3.bf16.msra.mxu0 %v792_v6 }
  0x2e   : > { %734 = vmatprep.subr.bf16.mxu0 %v793_v7 }
  0x31   : > { %735 = vmatpush3.bf16.msra.mxu0 %v793_v7 }
  0x32   : > { %736 = vmatprep.subr.bf16.mxu0 %v794_v8 }
  0x35   : > { %737 = vmatpush3.bf16.msra.mxu0 %v794_v8 }
  0x36   : > { %738 = vmatprep.subr.bf16.mxu0 %v795_v10 }
  0x39   : > { %739 = vmatpush3.bf16.msra.mxu0 %v795_v10 }
  0x3a   : > { %740 = vmatprep.subr.bf16.mxu0 %v796_v11 }
  0x3d   : > { %741 = vmatpush3.bf16.msra.mxu0 %v796_v11 }
  0x3e   : > { %742 = vmatprep.subr.bf16.mxu0 %v797_v12 }
  0x41   : > { %743 = vmatpush3.bf16.msra.mxu0 %v797_v12 }
  0x42   : > { %744 = vmatprep.subr.bf16.mxu0 %v798_v13 }
  0x45   : > { %745 = vmatpush3.bf16.msra.mxu0 %v798_v13 }
  0x48   : > { %747 = vmatmul.mubr.bf16.vlgmr.msra.gmra.mrb[0].mxu0 %v800_v14 }
 0x11b   : > { %v748_v17 = vpop.f32.mrb[0].mxu0  ;;  %499 = sbr.rel (%p694_p11) target bundleno = 306 (0x132), region = 85 }
 0x11c   : > { %v490_v19 = vadd.f32 %v748_v17, %v357_v15  ;;  %v473_v20 = vpop.f32.mrb[1].mxu0 }
 0x11d   : > { %v488_v22 = vadd.f32 %v473_v20, %v355_v16  ;;  %v749_v23 = vpop.f32.mrb[2].mxu0 }
 0x11e   : > { %494 = vst [vmem:[#allocation2 + $0x10] sm:$0xff] %v490_v19  ;;  %v491_v24 = vadd.f32 %v749_v23, %v358_v18  ;;  %v476_v25 = vpop.f32.mrb[3].mxu0 }
 0x11f   : > { %492 = vst [vmem:[#allocation2] sm:$0xff] %v488_v22  ;;  %v489_v26 = vadd.f32 %v476_v25, %v356_v21 }
 0x120   : > { %495 = vst [vmem:[#allocation2 + $0x18] sm:$0xff] %v491_v24 }
 0x121   : > { %493 = vst [vmem:[#allocation2 + $0x8] sm:$0xff] %v489_v26 }
 0x125   : > { %v502_v33 = vld [vmem:[#allocation2 + $0x10] sm:$0xff] }
 0x126   : > { %v500_v27 = vld [vmem:[#allocation2] sm:$0xff]  ;;  %v513_v35 = vmul.f32 %v695_v29, %v502_v33 }
 0x127   : > { %v511_v30 = vmul.f32 %v695_v29, %v500_v27  ;;  %v503_v34 = vld [vmem:[#allocation2 + $0x18] sm:$0xff] }
 0x128   : > { %v501_v28 = vld [vmem:[#allocation2 + $0x8] sm:$0xff]  ;;  %v514_v36 = vmul.f32 %v695_v29, %v503_v34  ;;  %v524_v39 = vadd.f32 %v696_v32, %v513_v35 }
 0x129   : > { %v512_v31 = vmul.f32 %v695_v29, %v501_v28  ;;  %v522_v37 = vadd.f32 %v696_v32, %v511_v30 }
 0x12a   : > { %v525_v40 = vadd.f32 %v696_v32, %v514_v36  ;;  %v528_v43 = vmax.f32 %v524_v39, 0.0 }
 0x12b   : > { %v523_v38 = vadd.f32 %v696_v32, %v512_v31  ;;  %v526_v41 = vmax.f32 %v522_v37, 0.0 }
 0x12c   : > { %v529_v44 = vmax.f32 %v525_v40, 0.0 }
 0x12d   : > { %v527_v42 = vmax.f32 %v523_v38, 0.0 }
 0x12e   : > { %v717_v46 = vpack.c.bf16 %v529_v44, %v528_v43 }
 0x12f   : > { %v712_v45 = vpack.c.bf16 %v527_v42, %v526_v41 }
 0x130   : > { %719 = vst [vmem:[%s967_s4 + $0x8] sm:$0xff] %v717_v46  }
 0x131   : > { %713 = vst [vmem:[%s967_s4] sm:$0xff] %v712_v45  }
 0x132 PF: > { %s14_s19 = sadd.s32 1, %s839_s19   ;;  %s968_s15 = smov %s827_s16 }
 0x133   : > { %p11_p12 = scmp.ge.s32.totalorder %s14_s19, 7   ;;  %s969_s16 = smov %s902_s23 }
 0x134   : > { %s970_s17 = smov %s835_s18  ;;  %s971_s18 = smov %s973_s20 }
 0x135   :  { %13 = sbr.rel (!%p11_p12) target bundleno = 3 (0x3), region = 129 }

// kernel: resnet34_forward.34
= control target key start
LH: loop header
LB: loop body
LE: loop exit
PB: predicated region body
PF: predicated region fallthrough
CT: control target
= control target key end

     0   :  { %s358_s1 = inlined_call_operand.vmem [shape: bf16[128,128], index: 1, kind: input, shape index: {}]   ;;  %s359_s0 = inlined_call_operand.vmem [shape: bf16[32,128], index: 0, kind: input, shape index: {}]   ;;  %s360_s2 = inlined_call_operand.vmem [shape: f32[1,128], index: 2, kind: input, shape index: {}]   ;;  %s361_s3 = inlined_call_operand.vmem [shape: f32[1,128], index: 3, kind: input, shape index: {}]   ;;  %s362_s4 = inlined_call_operand.vmem [shape: bf16[32,128], index: 4, kind: output, shape index: {}]  }
   0x1   :  { %v281_v0 = vld [vmem:[%s358_s1] sm:$0xff]   ;;  %v282_v1 = vld [vmem:[%s358_s1 + $0x8] sm:$0xff]   ;;  %v283_v2 = vld [vmem:[%s358_s1 + $0x10] sm:$0xff]  }
   0x2   :  { %261 = vmatprep.subr.bf16.mxu0 %v281_v0  ;;  %v284_v3 = vld [vmem:[%s358_s1 + $0x18] sm:$0xff]   ;;  %v289_v4 = vld [vmem:[%s359_s0] sm:$0xff]   ;;  %v286_v6 = vld [vmem:[%s358_s1 + $0x28] sm:$0xff]  }
   0x3   :  { %262 = vmatpush3.bf16.msra.mxu0 %v281_v0  ;;  %277 = vmatprep.mubr.bf16.mxu0 %v289_v4  ;;  %v285_v5 = vld [vmem:[%s358_s1 + $0x20] sm:$0xff]   ;;  %v287_v7 = vld [vmem:[%s358_s1 + $0x30] sm:$0xff]   ;;  %v288_v8 = vld [vmem:[%s358_s1 + $0x38] sm:$0xff]  }
   0x4   :  { %263 = vmatprep.subr.bf16.mxu0 %v282_v1  ;;  %v290_v9 = vld [vmem:[%s359_s0 + $0x8] sm:$0xff]   ;;  %v230_v10 = vld [vmem:[%s360_s2] ss:$0 sm:$0xff] }
   0x5   :  { %v231_v14 = vld [vmem:[%s361_s3] ss:$0 sm:$0xff] }
   0x7   :  { %264 = vmatpush3.bf16.msra.mxu0 %v282_v1 }
   0x8   :  { %265 = vmatprep.subr.bf16.mxu0 %v283_v2 }
   0xb   :  { %266 = vmatpush3.bf16.msra.mxu0 %v283_v2 }
   0xc   :  { %267 = vmatprep.subr.bf16.mxu0 %v284_v3 }
   0xf   :  { %268 = vmatpush3.bf16.msra.mxu0 %v284_v3 }
  0x10   :  { %269 = vmatprep.subr.bf16.mxu0 %v285_v5 }
  0x13   :  { %270 = vmatpush3.bf16.msra.mxu0 %v285_v5 }
  0x14   :  { %271 = vmatprep.subr.bf16.mxu0 %v286_v6 }
  0x17   :  { %272 = vmatpush3.bf16.msra.mxu0 %v286_v6 }
  0x18   :  { %273 = vmatprep.subr.bf16.mxu0 %v287_v7 }
  0x1b   :  { %274 = vmatpush3.bf16.msra.mxu0 %v287_v7 }
  0x1c   :  { %275 = vmatprep.subr.bf16.mxu0 %v288_v8 }
  0x1f   :  { %276 = vmatpush3.bf16.msra.mxu0 %v288_v8 }
  0x22   :  { %278 = vmatmul.mubr.bf16.vlgmr.msra.gmra.mrb[0].mxu0 %v290_v9 }
  0xf5   :  { %v279_v11 = vpop.f32.mrb[0].mxu0 }
  0xf6   :  { %v183_v12 = vmul.f32 %v279_v11, %v230_v10  ;;  %v144_v13 = vpop.f32.mrb[1].mxu0 }
  0xf7   :  { %v181_v15 = vmul.f32 %v230_v10, %v144_v13  ;;  %v280_v16 = vpop.f32.mrb[2].mxu0 }
  0xf8   :  { %v184_v17 = vmul.f32 %v280_v16, %v230_v10  ;;  %v147_v18 = vpop.f32.mrb[3].mxu0  ;;  %v194_v20 = vadd.f32 %v231_v14, %v183_v12 }
  0xf9   :  { %v182_v19 = vmul.f32 %v230_v10, %v147_v18  ;;  %v192_v22 = vadd.f32 %v231_v14, %v181_v15 }
  0xfa   :  { %v195_v21 = vadd.f32 %v231_v14, %v184_v17 }
  0xfb   :  { %v193_v23 = vadd.f32 %v231_v14, %v182_v19 }
  0xfc   :  { %v248_v24 = vpack.c.bf16 %v195_v21, %v194_v20 }
  0xfd   :  { %v243_v25 = vpack.c.bf16 %v193_v23, %v192_v22 }
  0xfe   :  { %250 = vst [vmem:[%s362_s4 + $0x8] sm:$0xff] %v248_v24  }
  0xff   :  { %244 = vst [vmem:[%s362_s4] sm:$0xff] %v243_v25  }

// kernel: resnet34_forward.35
= control target key start
LH: loop header
LB: loop body
LE: loop exit
PB: predicated region body
PF: predicated region fallthrough
CT: control target
= control target key end

     0   :  { %s1247_s18 = smov 0   ;;  %s1249_s19 = smov 0   ;;  %s1366_s0 = inlined_call_operand.vmem [shape: bf16[32,1152], index: 0, kind: input, shape index: {}]   ;;  %s1367_s1 = inlined_call_operand.vmem [shape: bf16[1152,128], index: 1, kind: input, shape index: {}]   ;;  %s1368_s2 = inlined_call_operand.vmem [shape: f32[1,128], index: 2, kind: input, shape index: {}]   ;;  %s1369_s3 = inlined_call_operand.vmem [shape: f32[1,128], index: 3, kind: input, shape index: {}]   ;;  %s1370_s4 = inlined_call_operand.vmem [shape: bf16[32,128], index: 4, kind: input, shape index: {}]   ;;  %s1371_s5 = inlined_call_operand.vmem [shape: bf16[32,128], index: 5, kind: output, shape index: {}]  }
   0x1   :  { %s1251_s20 = smov 0   ;;  %s1253_s21 = smov 0  }
   0x2   :  { %s1255_s22 = smov 0  }
   0x3 LB: > { %s27_s23 = sadd.s32 1, %s1210_s21  ;;  %p50_p1 = scmp.ne.s32.totalorder %s1202_s19, %s1198_s18  ;;  %s1214_s22 = sphi %s1255_s22, %s15_s22   ;;  %s1210_s21 = sphi %s1253_s21, %s1375_s21   ;;  %s1206_s20 = sphi %s1251_s20, %s1374_s20   ;;  %s1202_s19 = sphi %s1249_s19, %s1373_s19   ;;  %s1198_s18 = sphi %s1247_s18, %s1372_s18  }
   0x4   : > { %p28_p0 = scmp.ge.s32.totalorder %s27_s23, 3  ;;  %p51_p2 = scmp.eq.s32.totalorder %s1214_s22, 0 }
   0x5   : > { %s43_s25 = sadd.s32 1, %s1202_s19  ;;  %p964_p5 = scmp.ge.s32.totalorder %s1214_s22, 3 }
   0x6   : > { %s1377_s23 = smov (%p28_p0, %s27_s23), 0  ;;  %p52_p3 = por %p51_p2, %p50_p1 }
   0x7   : > { %s39_s24 = ssub.s32 %s1210_s21, %s1377_s23  ;;  %236 = sbr.rel (%p964_p5) target bundleno = 23 (0x17), region = 28 }
   0x8   : > { %p41_p4 = scmp.eq.s32.totalorder %s39_s24, 0 }
   0xa   : > { %s1282_s26 = scalar_select %p41_p4, %s1202_s19, %s43_s25  }
   0xe   : > { %239 = sbr.rel (!%p52_p3) target bundleno = 23 (0x17), region = 32  ;;  %s241_s27 = sand.u32 (%p52_p3), 1, %s1202_s19  }
   0xf   : > { %s1018_s28 = smul.u32 (%p52_p3), 12, %s1210_s21 }
  0x10   : > { %s1101_s29 = smul.u32 (%p52_p3), 48, %s241_s27 }
  0x11   : > { %s249_s7 = scalar_lea.vmem (%p52_p3), %s1366_s0, %s1018_s28 }
  0x12   : > { %v264_v0 = vld [vmem:[%s249_s7] sm:$0xff] (%p52_p3)  ;;  %v268_v2 = vld [vmem:[%s249_s7 + $0x48] sm:$0xff] (%p52_p3)  ;;  %s243_s8 = scalar_lea.vmem (%p52_p3), [#allocation3], %s1101_s29  ;;  %v970_v6 = vld [vmem:[%s249_s7 + $0x50] sm:$0xf] (%p52_p3) }
  0x13   : > { %v266_v1 = vld [vmem:[%s249_s7 + $0x24] sm:$0xff] (%p52_p3)  ;;  %265 = vst [vmem:[%s243_s8] sm:$0xff] (%p52_p3), %v264_v0  ;;  %269 = vst [vmem:[%s243_s8 + $0x18] sm:$0xff] (%p52_p3), %v268_v2  ;;  %v270_v3 = vld [vmem:[%s249_s7 + $0x6c] sm:$0xff] (%p52_p3) }
  0x14   : > { %267 = vst [vmem:[%s243_s8 + $0xc] sm:$0xff] (%p52_p3), %v266_v1  ;;  %v966_v4 = vld [vmem:[%s249_s7 + $0x8] sm:$0xf] (%p52_p3)  ;;  %v968_v5 = vld [vmem:[%s249_s7 + $0x2c] sm:$0xf] (%p52_p3)  ;;  %271 = vst [vmem:[%s243_s8 + $0x24] sm:$0xff] (%p52_p3), %v270_v3 }
  0x15   : > { %967 = vst [vmem:[%s243_s8 + $0x8] sm:$0xf] %v966_v4  ;;  %969 = vst [vmem:[%s243_s8 + $0x14] sm:$0xf] %v968_v5  ;;  %v972_v7 = vld [vmem:[%s249_s7 + $0x74] sm:$0xf] }
  0x16   : > { %971 = vst [vmem:[%s243_s8 + $0x20] sm:$0xf] %v970_v6  ;;  %973 = vst [vmem:[%s243_s8 + $0x2c] sm:$0xf] %v972_v7 }
  0x17 PF: > { %p974_p6 = scmp.ge.s32.totalorder %s1214_s22, 1  ;;  %p303_p7 = scmp.lt.s32.totalorder %s1214_s22, 4 }
  0x19   : > { %p304_p8 = pnand %p974_p6, %p303_p7 }
  0x1a   : > { %s310_s9 = sand.u32 (!%p304_p8), 1, %s1198_s18   ;;  %s364_s10 = smul.u32 (!%p304_p8), 48, %s1206_s20 }
  0x1b   : > { %307 = sbr.rel (%p304_p8) target bundleno = 322 (0x142), region = 62  ;;  %p976_p10 = scmp.ne.s32.totalorder (!%p304_p8), %s1206_s20, 0 }
  0x1c   : > { %s1102_s11 = smul.u32 (!%p304_p8), 48, %s310_s9  ;;  %p365_p9 = scmp.lt.s32.totalorder (!%p304_p8), %s364_s10, 143 }
  0x1e   : > { %s1299_s16 = scalar_lea.vmem (!%p304_p8), [#allocation3], %s1102_s11 }
  0x22   : > { %s1379_s10 = smov (!%p365_p9, %s364_s10), 143  ;;  %401 = sbr.rel (%p976_p10) target bundleno = 41 (0x29), region = 70 }
  0x23   : > { %s975_s12 = sshll.u32 %s1379_s10, 2  ;;  %v1216_v8 = vmov (!%p976_p10), 0.0  }
  0x24   : > { %s1297_s15 = scalar_lea.vmem %s1367_s1, %s975_s12  ;;  %402 = vst [vmem:[#allocation2] sm:$0xff] (!%p976_p10), %v1216_v8  ;;  %403 = vst [vmem:[#allocation2 + $0x8] sm:$0xff] (!%p976_p10), %v1216_v8 }
  0x25   : > { %404 = vst [vmem:[#allocation2 + $0x10] sm:$0xff] (!%p976_p10), %v1216_v8  ;;  %405 = vst [vmem:[#allocation2 + $0x18] sm:$0xff] (!%p976_p10), %v1216_v8 }
  0x29 PF: > { %v1144_v9 = vld [vmem:[%s1297_s15 + $0x40] sm:$0xff]   ;;  %v1147_v12 = vld [vmem:[%s1297_s15 + $0x48] sm:$0xff]   ;;  %v1150_v15 = vld [vmem:[%s1297_s15 + $0x50] sm:$0xff]   ;;  %p1007_p11 = scmp.ne.s32.totalorder %s1206_s20, 2 }
  0x2a   : > { %v1145_v10 = vld [vmem:[%s1297_s15] sm:$0xff]   ;;  %1043 = vmatprep.subr.bf16.mxu0 %v1144_v9  ;;  %v1148_v13 = vld [vmem:[%s1297_s15 + $0x8] sm:$0xff]   ;;  %v1151_v16 = vld [vmem:[%s1297_s15 + $0x10] sm:$0xff]  }
  0x2b   : > { %v1146_v11 = vld [vmem:[%s1297_s15 + $0x80] sm:$0xff]   ;;  %1044 = vmatpush3.bf16.msra.mxu0 %v1145_v10  ;;  %v1149_v14 = vld [vmem:[%s1297_s15 + $0x88] sm:$0xff]   ;;  %v1152_v17 = vld [vmem:[%s1297_s15 + $0x90] sm:$0xff]  }
  0x2c   : > { %1081 = vmatprep.subr.bf16.mxu1 %v1146_v11  ;;  %1045 = vmatprep.subr.bf16.mxu0 %v1147_v12  ;;  %v1153_v18 = vld [vmem:[%s1297_s15 + $0x58] sm:$0xff]   ;;  %v1156_v21 = vld [vmem:[%s1297_s15 + $0x60] sm:$0xff]   ;;  %v1159_v24 = vld [vmem:[%s1297_s15 + $0x68] sm:$0xff]  }
  0x2d   : > { %1082 = vmatpush3.bf16.msra.mxu1 %v1146_v11  ;;  %v1154_v19 = vld [vmem:[%s1297_s15 + $0x18] sm:$0xff]   ;;  %v1158_v22 = vld [vmem:[%s1297_s15 + $0xa0] sm:$0xff]   ;;  %v1161_v25 = vld [vmem:[%s1297_s15 + $0xa8] sm:$0xff]  }
  0x2e   : > { %1083 = vmatprep.subr.bf16.mxu1 %v1149_v14  ;;  %v1155_v20 = vld [vmem:[%s1297_s15 + $0x98] sm:$0xff]   ;;  %v1157_v23 = vld [vmem:[%s1297_s15 + $0x20] sm:$0xff]   ;;  %v1160_v26 = vld [vmem:[%s1297_s15 + $0x28] sm:$0xff]  }
  0x2f   : > { %1046 = vmatpush3.bf16.msra.mxu0 %v1148_v13  ;;  %v1162_v27 = vld [vmem:[%s1297_s15 + $0x70] sm:$0xff]   ;;  %v1165_v30 = vld [vmem:[%s1297_s15 + $0x78] sm:$0xff]   ;;  %v406_v45 = vld [vmem:[#allocation2] sm:$0xff] }
  0x30   : > { %1047 = vmatprep.subr.bf16.mxu0 %v1150_v15  ;;  %v1163_v28 = vld [vmem:[%s1297_s15 + $0x30] sm:$0xff]   ;;  %v1167_v31 = vld [vmem:[%s1297_s15 + $0xb8] sm:$0xff]   ;;  %v407_v50 = vld [vmem:[#allocation2 + $0x8] sm:$0xff] }
  0x31   : > { %1084 = vmatpush3.bf16.msra.mxu1 %v1149_v14  ;;  %v1164_v29 = vld [vmem:[%s1297_s15 + $0xb0] sm:$0xff]   ;;  %v1166_v34 = vld [vmem:[%s1297_s15 + $0x38] sm:$0xff]   ;;  %v1008_v5 = vld [vmem:[%s1368_s2] ss:$0 sm:$0xff] (!%p1007_p11) }
  0x32   : > { %1085 = vmatprep.subr.bf16.mxu1 %v1152_v17  ;;  %v1170_v32 = vld [vmem:[%s1299_s16 + $0x4] ss:$12 sps:$4 sm:$0xff]   ;;  %v1171_v33 = vld [vmem:[%s1299_s16 + $0x8] ss:$12 sps:$4 sm:$0xff]   ;;  %v1168_v35 = vld [vmem:[%s1299_s16] ss:$12 sps:$4 sm:$0xff]  }
  0x33   : > { %1048 = vmatpush3.bf16.msra.mxu0 %v1151_v16  ;;  %674 = vmatprep.mubr.bf16.mxu0 %v1170_v32  ;;  %v1173_v36 = vld [vmem:[%s1299_s16 + $0x1c] ss:$12 sps:$4 sm:$0xff]   ;;  %v1172_v37 = vld [vmem:[%s1299_s16 + $0x20] ss:$12 sps:$4 sm:$0xff]   ;;  %v1175_v38 = vld [vmem:[%s1299_s16 + $0x18] ss:$12 sps:$4 sm:$0xff]  }
  0x34   : > { %1049 = vmatprep.subr.bf16.mxu0 %v1153_v18  ;;  %1097 = vmatprep.mubr.bf16.mxu1 %v1171_v33  ;;  %v408_v59 = vld [vmem:[#allocation2 + $0x10] sm:$0xff]  ;;  %v409_v63 = vld [vmem:[#allocation2 + $0x18] sm:$0xff]  ;;  %v1009_v8 = vld [vmem:[%s1369_s3] ss:$0 sm:$0xff] (!%p1007_p11) }
  0x35   : > { %1086 = vmatpush3.bf16.msra.mxu1 %v1152_v17  ;;  %v1024_v9 = vld [vmem:[%s1370_s4] sm:$0xff] (!%p1007_p11)   ;;  %v1041_v15 = vld [vmem:[%s1370_s4 + $0x8] sm:$0xff] (!%p1007_p11)  }
  0x36   : > { %1087 = vmatprep.subr.bf16.mxu1 %v1155_v20  ;;  %v1025_v11 = vunpack.c.l.bf16 (!%p1007_p11), %v1024_v9  ;;  %v1026_v12 = vunpack.c.h.bf16 (!%p1007_p11), %v1024_v9 }
  0x37   : > { %1050 = vmatpush3.bf16.msra.mxu0 %v1154_v19  ;;  %v1029_v19 = vunpack.c.l.bf16 (!%p1007_p11), %v1041_v15 }
  0x38   : > { %1051 = vmatprep.subr.bf16.mxu0 %v1156_v21  ;;  %v1030_v21 = vunpack.c.h.bf16 (!%p1007_p11), %v1041_v15 }
  0x39   : > { %1088 = vmatpush3.bf16.msra.mxu1 %v1155_v20 }
  0x3a   : > { %1089 = vmatprep.subr.bf16.mxu1 %v1158_v22 }
  0x3b   : > { %1052 = vmatpush3.bf16.msra.mxu0 %v1157_v23 }
  0x3c   : > { %1053 = vmatprep.subr.bf16.mxu0 %v1159_v24 }
  0x3d   : > { %1090 = vmatpush3.bf16.msra.mxu1 %v1158_v22 }
  0x3e   : > { %1091 = vmatprep.subr.bf16.mxu1 %v1161_v25 }
  0x3f   : > { %1054 = vmatpush3.bf16.msra.mxu0 %v1160_v26 }
  0x40   : > { %1055 = vmatprep.subr.bf16.mxu0 %v1162_v27 }
  0x41   : > { %1092 = vmatpush3.bf16.msra.mxu1 %v1161_v25 }
  0x42   : > { %1093 = vmatprep.subr.bf16.mxu1 %v1164_v29 }
  0x43   : > { %1056 = vmatpush3.bf16.msra.mxu0 %v1163_v28 }
  0x44   : > { %1057 = vmatprep.subr.bf16.mxu0 %v1165_v30 }
  0x45   : > { %1094 = vmatpush3.bf16.msra.mxu1 %v1164_v29 }
  0x46   : > { %1095 = vmatprep.subr.bf16.mxu1 %v1167_v31 }
  0x47   : > { %1058 = vmatpush3.bf16.msra.mxu0 %v1166_v34 }
  0x49   : > { %1096 = vmatpush3.bf16.msra.mxu1 %v1167_v31 }
  0x4a   : > { %675 = vmatmul.mubr.bf16.vlgmr.msra.gmra.mrb[0].mxu0 %v1168_v35 }
  0x4b   : > { %682 = vmatprep.mubr.bf16.mxu0 %v1173_v36 }
  0x4c   : > { %1098 = vmatmul.mubr.bf16.vlgmr.msra.gmra.mrb[0].mxu1 %v1172_v37 }
  0x52   : > { %683 = vmatmul.mubr.bf16.gmra.mrb[4].mxu0 %v1175_v38 }
 0x11d   : > { %v1059_v39 = vpop.f32.mrb[0].mxu0 }
 0x11e   : > { %v1060_v40 = vpop.f32.mrb[1].mxu0 }
 0x11f   : > { %v1061_v41 = vadd.f32 %v1060_v40, %v1059_v39  ;;  %v1062_v42 = vpop.f32.mrb[2].mxu0  ;;  %v1099_v43 = vpop.f32.mrb[0].mxu1 }
 0x120   : > { %v1063_v44 = vpop.f32.mrb[3].mxu0  ;;  %v725_v46 = vpop.f32.mrb[1].mxu1 }
 0x121   : > { %v1064_v47 = vadd.f32 %v1063_v44, %v1062_v42  ;;  %v726_v48 = vadd.f32 %v1061_v41, %v725_v46  ;;  %v1100_v49 = vpop.f32.mrb[2].mxu1 }
 0x122   : > { %v728_v51 = vpop.f32.mrb[3].mxu1 }
 0x123   : > { %v740_v52 = vadd.f32 %v726_v48, %v406_v45  ;;  %v729_v53 = vadd.f32 %v1064_v47, %v728_v51 }
 0x125   : > { %744 = vst [vmem:[#allocation2] sm:$0xff] %v740_v52  ;;  %v741_v54 = vadd.f32 %v729_v53, %v407_v50  ;;  %v1065_v55 = vpop.f32.mrb[4].mxu0 }
 0x126   : > { %v1066_v56 = vpop.f32.mrb[5].mxu0 }
 0x127   : > { %745 = vst [vmem:[#allocation2 + $0x8] sm:$0xff] %v741_v54  ;;  %v1067_v57 = vadd.f32 %v1066_v56, %v1065_v55  ;;  %v1068_v58 = vpop.f32.mrb[6].mxu0 }
 0x128   : > { %v1069_v60 = vpop.f32.mrb[7].mxu0 }
 0x129   : > { %v734_v61 = vadd.f32 %v1099_v43, %v1067_v57  ;;  %v1070_v62 = vadd.f32 %v1069_v60, %v1068_v58  ;;  %751 = sbr.rel (%p1007_p11) target bundleno = 322 (0x142), region = 74 }
 0x12b   : > { %v742_v0 = vadd.f32 %v734_v61, %v408_v59  ;;  %v737_v1 = vadd.f32 %v1100_v49, %v1070_v62 }
 0x12c   : > { %v752_v3 = vld [vmem:[#allocation2] sm:$0xff] (!%p1007_p11) }
 0x12d   : > { %746 = vst [vmem:[#allocation2 + $0x10] sm:$0xff] %v742_v0  ;;  %v743_v2 = vadd.f32 %v737_v1, %v409_v63  ;;  %v763_v6 = vmul.f32 (!%p1007_p11), %v1008_v5, %v752_v3 }
 0x12e   : > { %v753_v4 = vld [vmem:[#allocation2 + $0x8] sm:$0xff] (!%p1007_p11) }
 0x12f   : > { %747 = vst [vmem:[#allocation2 + $0x18] sm:$0xff] %v743_v2  ;;  %v764_v7 = vmul.f32 (!%p1007_p11), %v1008_v5, %v753_v4  ;;  %v774_v16 = vadd.f32 (!%p1007_p11), %v1009_v8, %v763_v6 }
 0x131   : > { %v775_v17 = vadd.f32 %v1009_v8, %v764_v7  ;;  %v786_v22 = vadd.f32 %v1025_v11, %v774_v16 }
 0x133   : > { %v787_v23 = vadd.f32 %v1026_v12, %v775_v17  ;;  %v790_v26 = vmax.f32 %v786_v22, 0.0 }
 0x134   : > { %v754_v10 = vld [vmem:[#allocation2 + $0x10] sm:$0xff] }
 0x135   : > { %v765_v14 = vmul.f32 %v1008_v5, %v754_v10  ;;  %v791_v27 = vmax.f32 %v787_v23, 0.0 }
 0x136   : > { %v755_v13 = vld [vmem:[#allocation2 + $0x18] sm:$0xff] }
 0x137   : > { %v766_v18 = vmul.f32 %v1008_v5, %v755_v13  ;;  %v776_v20 = vadd.f32 %v1009_v8, %v765_v14  ;;  %v1034_v30 = vpack.c.bf16 %v791_v27, %v790_v26 }
 0x139   : > { %v777_v24 = vadd.f32 %v1009_v8, %v766_v18  ;;  %v788_v25 = vadd.f32 %v1029_v19, %v776_v20  ;;  %1035 = vst [vmem:[%s1371_s5] sm:$0xff] %v1034_v30  }
 0x13b   : > { %v789_v28 = vadd.f32 %v1030_v21, %v777_v24  ;;  %v792_v29 = vmax.f32 %v788_v25, 0.0 }
 0x13d   : > { %v793_v31 = vmax.f32 %v789_v28, 0.0 }
 0x13f   : > { %v1039_v32 = vpack.c.bf16 %v793_v31, %v792_v29 }
 0x141   : > { %1042 = vst [vmem:[%s1371_s5 + $0x8] sm:$0xff] %v1039_v32  }
 0x142 PF: > { %s15_s22 = sadd.s32 1, %s1214_s22   ;;  %s1372_s18 = smov %s1202_s19 }
 0x143   : > { %p12_p12 = scmp.ge.s32.totalorder %s15_s22, 5   ;;  %s1373_s19 = smov %s1282_s26 }
 0x144   : > { %s1374_s20 = smov %s1210_s21  ;;  %s1375_s21 = smov %s1377_s23 }
 0x145   :  { %14 = sbr.rel (!%p12_p12) target bundleno = 3 (0x3), region = 127 }

// kernel: resnet34_forward.36
= control target key start
LH: loop header
LB: loop body
LE: loop exit
PB: predicated region body
PF: predicated region fallthrough
CT: control target
= control target key end

     0   :  { %s1142_s15 = smov 0   ;;  %s1144_s16 = smov 0   ;;  %s1255_s0 = inlined_call_operand.vmem [shape: bf16[32,1152], index: 0, kind: input, shape index: {}]   ;;  %s1256_s1 = inlined_call_operand.vmem [shape: bf16[1152,128], index: 1, kind: input, shape index: {}]   ;;  %s1257_s2 = inlined_call_operand.vmem [shape: f32[1,128], index: 2, kind: input, shape index: {}]   ;;  %s1258_s3 = inlined_call_operand.vmem [shape: f32[1,128], index: 3, kind: input, shape index: {}]   ;;  %s1259_s4 = inlined_call_operand.vmem [shape: bf16[32,128], index: 4, kind: output, shape index: {}]  }
   0x1   :  { %s1146_s17 = smov 0   ;;  %s1148_s18 = smov 0  }
   0x2   :  { %s1150_s19 = smov 0  }
   0x3 LB: > { %s26_s20 = sadd.s32 1, %s1110_s18  ;;  %p49_p1 = scmp.ne.s32.totalorder %s1102_s16, %s1098_s15  ;;  %s1114_s19 = sphi %s1150_s19, %s14_s19   ;;  %s1110_s18 = sphi %s1148_s18, %s1263_s18   ;;  %s1106_s17 = sphi %s1146_s17, %s1262_s17   ;;  %s1102_s16 = sphi %s1144_s16, %s1261_s16   ;;  %s1098_s15 = sphi %s1142_s15, %s1260_s15  }
   0x4   : > { %p27_p0 = scmp.ge.s32.totalorder %s26_s20, 3  ;;  %p50_p2 = scmp.eq.s32.totalorder %s1114_s19, 0 }
   0x5   : > { %s42_s22 = sadd.s32 1, %s1102_s16  ;;  %p873_p5 = scmp.ge.s32.totalorder %s1114_s19, 3 }
   0x6   : > { %s1265_s20 = smov (%p27_p0, %s26_s20), 0  ;;  %p51_p3 = por %p50_p2, %p49_p1 }
   0x7   : > { %s38_s21 = ssub.s32 %s1110_s18, %s1265_s20  ;;  %195 = sbr.rel (%p873_p5) target bundleno = 23 (0x17), region = 24 }
   0x8   : > { %p40_p4 = scmp.eq.s32.totalorder %s38_s21, 0 }
   0xa   : > { %s1177_s23 = scalar_select %p40_p4, %s1102_s16, %s42_s22  }
   0xe   : > { %198 = sbr.rel (!%p51_p3) target bundleno = 23 (0x17), region = 28  ;;  %s200_s24 = sand.u32 (%p51_p3), 1, %s1102_s16  }
   0xf   : > { %s927_s25 = smul.u32 (%p51_p3), 12, %s1110_s18 }
  0x10   : > { %s1001_s26 = smul.u32 (%p51_p3), 48, %s200_s24 }
  0x11   : > { %s208_s29 = scalar_lea.vmem (%p51_p3), %s1255_s0, %s927_s25 }
  0x12   : > { %v223_v0 = vld [vmem:[%s208_s29] sm:$0xff] (%p51_p3)  ;;  %v227_v2 = vld [vmem:[%s208_s29 + $0x48] sm:$0xff] (%p51_p3)  ;;  %s202_s30 = scalar_lea.vmem (%p51_p3), [#allocation3], %s1001_s26  ;;  %v879_v6 = vld [vmem:[%s208_s29 + $0x50] sm:$0xf] (%p51_p3) }
  0x13   : > { %v225_v1 = vld [vmem:[%s208_s29 + $0x24] sm:$0xff] (%p51_p3)  ;;  %224 = vst [vmem:[%s202_s30] sm:$0xff] (%p51_p3), %v223_v0  ;;  %228 = vst [vmem:[%s202_s30 + $0x18] sm:$0xff] (%p51_p3), %v227_v2  ;;  %v229_v3 = vld [vmem:[%s208_s29 + $0x6c] sm:$0xff] (%p51_p3) }
  0x14   : > { %226 = vst [vmem:[%s202_s30 + $0xc] sm:$0xff] (%p51_p3), %v225_v1  ;;  %v875_v4 = vld [vmem:[%s208_s29 + $0x8] sm:$0xf] (%p51_p3)  ;;  %v877_v5 = vld [vmem:[%s208_s29 + $0x2c] sm:$0xf] (%p51_p3)  ;;  %230 = vst [vmem:[%s202_s30 + $0x24] sm:$0xff] (%p51_p3), %v229_v3 }
  0x15   : > { %876 = vst [vmem:[%s202_s30 + $0x8] sm:$0xf] %v875_v4  ;;  %878 = vst [vmem:[%s202_s30 + $0x14] sm:$0xf] %v877_v5  ;;  %v881_v7 = vld [vmem:[%s208_s29 + $0x74] sm:$0xf] }
  0x16   : > { %880 = vst [vmem:[%s202_s30 + $0x20] sm:$0xf] %v879_v6  ;;  %882 = vst [vmem:[%s202_s30 + $0x2c] sm:$0xf] %v881_v7 }
  0x17 PF: > { %p883_p6 = scmp.ge.s32.totalorder %s1114_s19, 1  ;;  %p262_p7 = scmp.lt.s32.totalorder %s1114_s19, 4 }
  0x19   : > { %p263_p8 = pnand %p883_p6, %p262_p7 }
  0x1a   : > { %s269_s5 = sand.u32 (!%p263_p8), 1, %s1098_s15   ;;  %s313_s6 = smul.u32 (!%p263_p8), 48, %s1106_s17 }
  0x1b   : > { %266 = sbr.rel (%p263_p8) target bundleno = 320 (0x140), region = 58  ;;  %p885_p10 = scmp.ne.s32.totalorder (!%p263_p8), %s1106_s17, 0 }
  0x1c   : > { %s1002_s7 = smul.u32 (!%p263_p8), 48, %s269_s5  ;;  %p314_p9 = scmp.lt.s32.totalorder (!%p263_p8), %s313_s6, 143 }
  0x1e   : > { %s1194_s12 = scalar_lea.vmem (!%p263_p8), [#allocation3], %s1002_s7 }
  0x22   : > { %s1267_s6 = smov (!%p314_p9, %s313_s6), 143  ;;  %341 = sbr.rel (%p885_p10) target bundleno = 41 (0x29), region = 66 }
  0x23   : > { %s884_s8 = sshll.u32 %s1267_s6, 2  ;;  %v1116_v8 = vmov (!%p885_p10), 0.0  }
  0x24   : > { %s1192_s11 = scalar_lea.vmem %s1256_s1, %s884_s8  ;;  %342 = vst [vmem:[#allocation2] sm:$0xff] (!%p885_p10), %v1116_v8  ;;  %343 = vst [vmem:[#allocation2 + $0x8] sm:$0xff] (!%p885_p10), %v1116_v8 }
  0x25   : > { %344 = vst [vmem:[#allocation2 + $0x10] sm:$0xff] (!%p885_p10), %v1116_v8  ;;  %345 = vst [vmem:[#allocation2 + $0x18] sm:$0xff] (!%p885_p10), %v1116_v8 }
  0x29 PF: > { %v1044_v9 = vld [vmem:[%s1192_s11 + $0x40] sm:$0xff]   ;;  %v1047_v12 = vld [vmem:[%s1192_s11 + $0x48] sm:$0xff]   ;;  %v1050_v15 = vld [vmem:[%s1192_s11 + $0x50] sm:$0xff]   ;;  %p916_p11 = scmp.ne.s32.totalorder %s1106_s17, 2 }
  0x2a   : > { %v1045_v10 = vld [vmem:[%s1192_s11] sm:$0xff]   ;;  %943 = vmatprep.subr.bf16.mxu0 %v1044_v9  ;;  %v1048_v13 = vld [vmem:[%s1192_s11 + $0x8] sm:$0xff]   ;;  %v1051_v16 = vld [vmem:[%s1192_s11 + $0x10] sm:$0xff]  }
  0x2b   : > { %v1046_v11 = vld [vmem:[%s1192_s11 + $0x80] sm:$0xff]   ;;  %944 = vmatpush3.bf16.msra.mxu0 %v1045_v10  ;;  %v1049_v14 = vld [vmem:[%s1192_s11 + $0x88] sm:$0xff]   ;;  %v1052_v17 = vld [vmem:[%s1192_s11 + $0x90] sm:$0xff]  }
  0x2c   : > { %981 = vmatprep.subr.bf16.mxu1 %v1046_v11  ;;  %945 = vmatprep.subr.bf16.mxu0 %v1047_v12  ;;  %v1053_v18 = vld [vmem:[%s1192_s11 + $0x58] sm:$0xff]   ;;  %v1056_v21 = vld [vmem:[%s1192_s11 + $0x60] sm:$0xff]   ;;  %v1059_v24 = vld [vmem:[%s1192_s11 + $0x68] sm:$0xff]  }
  0x2d   : > { %982 = vmatpush3.bf16.msra.mxu1 %v1046_v11  ;;  %v1054_v19 = vld [vmem:[%s1192_s11 + $0x18] sm:$0xff]   ;;  %v1058_v22 = vld [vmem:[%s1192_s11 + $0xa0] sm:$0xff]   ;;  %v1061_v25 = vld [vmem:[%s1192_s11 + $0xa8] sm:$0xff]  }
  0x2e   : > { %983 = vmatprep.subr.bf16.mxu1 %v1049_v14  ;;  %v1055_v20 = vld [vmem:[%s1192_s11 + $0x98] sm:$0xff]   ;;  %v1057_v23 = vld [vmem:[%s1192_s11 + $0x20] sm:$0xff]   ;;  %v1060_v26 = vld [vmem:[%s1192_s11 + $0x28] sm:$0xff]  }
  0x2f   : > { %946 = vmatpush3.bf16.msra.mxu0 %v1048_v13  ;;  %v1062_v27 = vld [vmem:[%s1192_s11 + $0x70] sm:$0xff]   ;;  %v1065_v30 = vld [vmem:[%s1192_s11 + $0x78] sm:$0xff]   ;;  %v346_v45 = vld [vmem:[#allocation2] sm:$0xff] }
  0x30   : > { %947 = vmatprep.subr.bf16.mxu0 %v1050_v15  ;;  %v1063_v28 = vld [vmem:[%s1192_s11 + $0x30] sm:$0xff]   ;;  %v1067_v31 = vld [vmem:[%s1192_s11 + $0xb8] sm:$0xff]   ;;  %v347_v50 = vld [vmem:[#allocation2 + $0x8] sm:$0xff] }
  0x31   : > { %984 = vmatpush3.bf16.msra.mxu1 %v1049_v14  ;;  %v1064_v29 = vld [vmem:[%s1192_s11 + $0xb0] sm:$0xff]   ;;  %v1066_v34 = vld [vmem:[%s1192_s11 + $0x38] sm:$0xff]   ;;  %v917_v5 = vld [vmem:[%s1257_s2] ss:$0 sm:$0xff] (!%p916_p11) }
  0x32   : > { %985 = vmatprep.subr.bf16.mxu1 %v1052_v17  ;;  %v1070_v32 = vld [vmem:[%s1194_s12 + $0x4] ss:$12 sps:$4 sm:$0xff]   ;;  %v1071_v33 = vld [vmem:[%s1194_s12 + $0x8] ss:$12 sps:$4 sm:$0xff]   ;;  %v1068_v35 = vld [vmem:[%s1194_s12] ss:$12 sps:$4 sm:$0xff]  }
  0x33   : > { %948 = vmatpush3.bf16.msra.mxu0 %v1051_v16  ;;  %614 = vmatprep.mubr.bf16.mxu0 %v1070_v32  ;;  %v1073_v36 = vld [vmem:[%s1194_s12 + $0x1c] ss:$12 sps:$4 sm:$0xff]   ;;  %v1072_v37 = vld [vmem:[%s1194_s12 + $0x20] ss:$12 sps:$4 sm:$0xff]   ;;  %v1075_v38 = vld [vmem:[%s1194_s12 + $0x18] ss:$12 sps:$4 sm:$0xff]  }
  0x34   : > { %949 = vmatprep.subr.bf16.mxu0 %v1053_v18  ;;  %997 = vmatprep.mubr.bf16.mxu1 %v1071_v33  ;;  %v348_v59 = vld [vmem:[#allocation2 + $0x10] sm:$0xff]  ;;  %v349_v63 = vld [vmem:[#allocation2 + $0x18] sm:$0xff]  ;;  %v918_v8 = vld [vmem:[%s1258_s3] ss:$0 sm:$0xff] (!%p916_p11) }
  0x35   : > { %986 = vmatpush3.bf16.msra.mxu1 %v1052_v17 }
  0x36   : > { %987 = vmatprep.subr.bf16.mxu1 %v1055_v20 }
  0x37   : > { %950 = vmatpush3.bf16.msra.mxu0 %v1054_v19 }
  0x38   : > { %951 = vmatprep.subr.bf16.mxu0 %v1056_v21 }
  0x39   : > { %988 = vmatpush3.bf16.msra.mxu1 %v1055_v20 }
  0x3a   : > { %989 = vmatprep.subr.bf16.mxu1 %v1058_v22 }
  0x3b   : > { %952 = vmatpush3.bf16.msra.mxu0 %v1057_v23 }
  0x3c   : > { %953 = vmatprep.subr.bf16.mxu0 %v1059_v24 }
  0x3d   : > { %990 = vmatpush3.bf16.msra.mxu1 %v1058_v22 }
  0x3e   : > { %991 = vmatprep.subr.bf16.mxu1 %v1061_v25 }
  0x3f   : > { %954 = vmatpush3.bf16.msra.mxu0 %v1060_v26 }
  0x40   : > { %955 = vmatprep.subr.bf16.mxu0 %v1062_v27 }
  0x41   : > { %992 = vmatpush3.bf16.msra.mxu1 %v1061_v25 }
  0x42   : > { %993 = vmatprep.subr.bf16.mxu1 %v1064_v29 }
  0x43   : > { %956 = vmatpush3.bf16.msra.mxu0 %v1063_v28 }
  0x44   : > { %957 = vmatprep.subr.bf16.mxu0 %v1065_v30 }
  0x45   : > { %994 = vmatpush3.bf16.msra.mxu1 %v1064_v29 }
  0x46   : > { %995 = vmatprep.subr.bf16.mxu1 %v1067_v31 }
  0x47   : > { %958 = vmatpush3.bf16.msra.mxu0 %v1066_v34 }
  0x49   : > { %996 = vmatpush3.bf16.msra.mxu1 %v1067_v31 }
  0x4a   : > { %615 = vmatmul.mubr.bf16.vlgmr.msra.gmra.mrb[0].mxu0 %v1068_v35 }
  0x4b   : > { %622 = vmatprep.mubr.bf16.mxu0 %v1073_v36 }
  0x4c   : > { %998 = vmatmul.mubr.bf16.vlgmr.msra.gmra.mrb[0].mxu1 %v1072_v37 }
  0x52   : > { %623 = vmatmul.mubr.bf16.gmra.mrb[4].mxu0 %v1075_v38 }
 0x11d   : > { %v959_v39 = vpop.f32.mrb[0].mxu0 }
 0x11e   : > { %v960_v40 = vpop.f32.mrb[1].mxu0 }
 0x11f   : > { %v961_v41 = vadd.f32 %v960_v40, %v959_v39  ;;  %v962_v42 = vpop.f32.mrb[2].mxu0  ;;  %v999_v43 = vpop.f32.mrb[0].mxu1 }
 0x120   : > { %v963_v44 = vpop.f32.mrb[3].mxu0  ;;  %v665_v46 = vpop.f32.mrb[1].mxu1 }
 0x121   : > { %v964_v47 = vadd.f32 %v963_v44, %v962_v42  ;;  %v666_v48 = vadd.f32 %v961_v41, %v665_v46  ;;  %v1000_v49 = vpop.f32.mrb[2].mxu1 }
 0x122   : > { %v668_v51 = vpop.f32.mrb[3].mxu1 }
 0x123   : > { %v680_v52 = vadd.f32 %v666_v48, %v346_v45  ;;  %v669_v53 = vadd.f32 %v964_v47, %v668_v51 }
 0x125   : > { %684 = vst [vmem:[#allocation2] sm:$0xff] %v680_v52  ;;  %v681_v54 = vadd.f32 %v669_v53, %v347_v50  ;;  %v965_v55 = vpop.f32.mrb[4].mxu0 }
 0x126   : > { %v966_v56 = vpop.f32.mrb[5].mxu0 }
 0x127   : > { %685 = vst [vmem:[#allocation2 + $0x8] sm:$0xff] %v681_v54  ;;  %v967_v57 = vadd.f32 %v966_v56, %v965_v55  ;;  %v968_v58 = vpop.f32.mrb[6].mxu0 }
 0x128   : > { %v969_v60 = vpop.f32.mrb[7].mxu0 }
 0x129   : > { %v674_v61 = vadd.f32 %v999_v43, %v967_v57  ;;  %v970_v62 = vadd.f32 %v969_v60, %v968_v58  ;;  %691 = sbr.rel (%p916_p11) target bundleno = 320 (0x140), region = 70 }
 0x12b   : > { %v682_v0 = vadd.f32 %v674_v61, %v348_v59  ;;  %v677_v1 = vadd.f32 %v1000_v49, %v970_v62 }
 0x12c   : > { %v692_v3 = vld [vmem:[#allocation2] sm:$0xff] (!%p916_p11) }
 0x12d   : > { %686 = vst [vmem:[#allocation2 + $0x10] sm:$0xff] %v682_v0  ;;  %v683_v2 = vadd.f32 %v677_v1, %v349_v63  ;;  %v703_v6 = vmul.f32 (!%p916_p11), %v917_v5, %v692_v3 }
 0x12e   : > { %v693_v4 = vld [vmem:[#allocation2 + $0x8] sm:$0xff] (!%p916_p11) }
 0x12f   : > { %687 = vst [vmem:[#allocation2 + $0x18] sm:$0xff] %v683_v2  ;;  %v704_v7 = vmul.f32 (!%p916_p11), %v917_v5, %v693_v4  ;;  %v714_v13 = vadd.f32 (!%p916_p11), %v918_v8, %v703_v6 }
 0x131   : > { %v715_v14 = vadd.f32 %v918_v8, %v704_v7  ;;  %v718_v17 = vmax.f32 %v714_v13, 0.0 }
 0x133   : > { %v719_v18 = vmax.f32 %v715_v14, 0.0 }
 0x134   : > { %v694_v9 = vld [vmem:[#allocation2 + $0x10] sm:$0xff] }
 0x135   : > { %v705_v11 = vmul.f32 %v917_v5, %v694_v9  ;;  %v935_v21 = vpack.c.bf16 %v719_v18, %v718_v17 }
 0x136   : > { %v695_v10 = vld [vmem:[#allocation2 + $0x18] sm:$0xff] }
 0x137   : > { %v706_v12 = vmul.f32 %v917_v5, %v695_v10  ;;  %v716_v15 = vadd.f32 %v918_v8, %v705_v11  ;;  %936 = vst [vmem:[%s1259_s4] sm:$0xff] %v935_v21  }
 0x139   : > { %v717_v16 = vadd.f32 %v918_v8, %v706_v12  ;;  %v720_v19 = vmax.f32 %v716_v15, 0.0 }
 0x13b   : > { %v721_v20 = vmax.f32 %v717_v16, 0.0 }
 0x13d   : > { %v940_v22 = vpack.c.bf16 %v721_v20, %v720_v19 }
 0x13f   : > { %942 = vst [vmem:[%s1259_s4 + $0x8] sm:$0xff] %v940_v22  }
 0x140 PF: > { %s14_s19 = sadd.s32 1, %s1114_s19   ;;  %s1260_s15 = smov %s1102_s16 }
 0x141   : > { %p11_p12 = scmp.ge.s32.totalorder %s14_s19, 5   ;;  %s1261_s16 = smov %s1177_s23 }
 0x142   : > { %s1262_s17 = smov %s1110_s18  ;;  %s1263_s18 = smov %s1265_s20 }
 0x143   :  { %13 = sbr.rel (!%p11_p12) target bundleno = 3 (0x3), region = 120 }

// kernel: resnet34_forward.40
= control target key start
LH: loop header
LB: loop body
LE: loop exit
PB: predicated region body
PF: predicated region fallthrough
CT: control target
= control target key end

     0   :  { %s1231_s15 = smov 0   ;;  %s1233_s16 = smov 0   ;;  %s1365_s0 = inlined_call_operand.vmem [shape: bf16[16,1152], index: 0, kind: input, shape index: {}]   ;;  %s1366_s1 = inlined_call_operand.vmem [shape: bf16[1152,256], index: 1, kind: input, shape index: {}]   ;;  %s1367_s2 = inlined_call_operand.vmem [shape: f32[1,256], index: 2, kind: input, shape index: {}]   ;;  %s1368_s3 = inlined_call_operand.vmem [shape: f32[1,256], index: 3, kind: input, shape index: {}]   ;;  %s1369_s4 = inlined_call_operand.vmem [shape: bf16[16,256], index: 4, kind: output, shape index: {}]  }
   0x1   :  { %s1235_s17 = smov 0   ;;  %s1237_s18 = smov 0  }
   0x2   :  { %s1239_s19 = smov 0  }
   0x3 LB: > { %s26_s20 = sadd.s32 1, %s1198_s18  ;;  %p49_p1 = scmp.ne.s32.totalorder %s1190_s16, %s1186_s15  ;;  %s1202_s19 = sphi %s1239_s19, %s14_s19   ;;  %s1198_s18 = sphi %s1237_s18, %s1373_s18   ;;  %s1194_s17 = sphi %s1235_s17, %s1372_s17   ;;  %s1190_s16 = sphi %s1233_s16, %s1371_s16   ;;  %s1186_s15 = sphi %s1231_s15, %s1370_s15  }
   0x4   : > { %p27_p0 = scmp.ge.s32.totalorder %s26_s20, 3  ;;  %p50_p2 = scmp.eq.s32.totalorder %s1202_s19, 0 }
   0x5   : > { %s42_s22 = sadd.s32 1, %s1190_s16  ;;  %p968_p5 = scmp.ge.s32.totalorder %s1202_s19, 3 }
   0x6   : > { %s1375_s20 = smov (%p27_p0, %s26_s20), 0  ;;  %p51_p3 = por %p50_p2, %p49_p1 }
   0x7   : > { %s38_s21 = ssub.s32 %s1198_s18, %s1375_s20  ;;  %199 = sbr.rel (%p968_p5) target bundleno = 21 (0x15), region = 24 }
   0x8   : > { %p40_p4 = scmp.eq.s32.totalorder %s38_s21, 0 }
   0xa   : > { %s1266_s23 = scalar_select %p40_p4, %s1190_s16, %s42_s22  }
   0xe   : > { %202 = sbr.rel (!%p51_p3) target bundleno = 21 (0x15), region = 28  ;;  %s204_s24 = sand.u32 (%p51_p3), 1, %s1190_s16  }
   0xf   : > { %s1036_s25 = smul.u32 (%p51_p3), 12, %s1198_s18 }
  0x10   : > { %s1044_s26 = smul.u32 (%p51_p3), 24, %s204_s24 }
  0x11   : > { %s212_s29 = scalar_lea.vmem (%p51_p3), %s1365_s0, %s1036_s25 }
  0x12   : > { %v227_v0 = vld [vmem:[%s212_s29] sm:$0xff] (%p51_p3)  ;;  %v970_v2 = vld [vmem:[%s212_s29 + $0x8] sm:$0xf] (%p51_p3)  ;;  %s206_s30 = scalar_lea.vmem (%p51_p3), [#allocation3], %s1044_s26  ;;  %v972_v3 = vld [vmem:[%s212_s29 + $0x2c] sm:$0xf] (%p51_p3) }
  0x13   : > { %v229_v1 = vld [vmem:[%s212_s29 + $0x24] sm:$0xff] (%p51_p3)  ;;  %228 = vst [vmem:[%s206_s30] sm:$0xff] (%p51_p3), %v227_v0  ;;  %971 = vst [vmem:[%s206_s30 + $0x8] sm:$0xf] (%p51_p3), %v970_v2 }
  0x14   : > { %230 = vst [vmem:[%s206_s30 + $0xc] sm:$0xff] (%p51_p3), %v229_v1  ;;  %973 = vst [vmem:[%s206_s30 + $0x14] sm:$0xf] (%p51_p3), %v972_v3 }
  0x15 PF: > { %p974_p6 = scmp.ge.s32.totalorder %s1202_s19, 1  ;;  %p261_p7 = scmp.lt.s32.totalorder %s1202_s19, 4 }
  0x17   : > { %p262_p8 = pnand %p974_p6, %p261_p7 }
  0x18   : > { %s268_s5 = sand.u32 (!%p262_p8), 1, %s1186_s15   ;;  %s318_s6 = smul.u32 (!%p262_p8), 48, %s1194_s17 }
  0x19   : > { %265 = sbr.rel (%p262_p8) target bundleno = 340 (0x154), region = 58  ;;  %p977_p10 = scmp.ne.s32.totalorder (!%p262_p8), %s1194_s17, 0 }
  0x1a   : > { %s1045_s7 = smul.u32 (!%p262_p8), 24, %s268_s5  ;;  %p320_p9 = scmp.lt.s32.totalorder (!%p262_p8), %s318_s6, 143 }
  0x1c   : > { %s1283_s12 = scalar_lea.vmem (!%p262_p8), [#allocation3], %s1045_s7 }
  0x20   : > { %s1377_s6 = smov (!%p320_p9, %s318_s6), 143  ;;  %356 = sbr.rel (%p977_p10) target bundleno = 39 (0x27), region = 66 }
  0x21   : > { %s1037_s8 = sshll.u32 %s1377_s6, 3  ;;  %v1204_v4 = vmov (!%p977_p10), 0.0  }
  0x22   : > { %s1281_s11 = scalar_lea.vmem %s1366_s1, %s1037_s8  ;;  %357 = vst [vmem:[#allocation2] sm:$0xff] (!%p977_p10), %v1204_v4  ;;  %358 = vst [vmem:[#allocation2 + $0x8] sm:$0xff] (!%p977_p10), %v1204_v4 }
  0x23   : > { %359 = vst [vmem:[#allocation2 + $0x10] sm:$0xff] (!%p977_p10), %v1204_v4  ;;  %360 = vst [vmem:[#allocation2 + $0x18] sm:$0xff] (!%p977_p10), %v1204_v4 }
  0x27 PF: > { %v1088_v5 = vld [vmem:[%s1281_s11 + $0x4] ss:$8 sps:$4 sm:$0xff]   ;;  %v1090_v6 = vld [vmem:[%s1281_s11] ss:$8 sps:$4 sm:$0xff]   ;;  %v1205_v7 = vmov 0   ;;  %p1029_p11 = scmp.ne.s32.totalorder %s1194_s17, 2 }
  0x28   : > { %748 = vmatprep.mubr.bf16.mxu0 %v1205_v7  ;;  %673 = vmatprep.subr.bf16.mxu1 %v1088_v5  ;;  %v1091_v8 = vld [vmem:[%s1281_s11 + $0x14] ss:$8 sps:$4 sm:$0xff]   ;;  %v1093_v9 = vld [vmem:[%s1281_s11 + $0x10] ss:$8 sps:$4 sm:$0xff]   ;;  %v1094_v10 = vld [vmem:[%s1281_s11 + $0x24] ss:$8 sps:$4 sm:$0xff]  }
  0x29   : > { %674 = vmatpush1.bf16.msra.mxu1 %v1090_v6  ;;  %v1096_v11 = vld [vmem:[%s1281_s11 + $0x20] ss:$8 sps:$4 sm:$0xff]   ;;  %v1097_v12 = vld [vmem:[%s1281_s11 + $0x34] ss:$8 sps:$4 sm:$0xff]   ;;  %v1099_v13 = vld [vmem:[%s1281_s11 + $0x30] ss:$8 sps:$4 sm:$0xff]  }
  0x2a   : > { %675 = vmatprep.subr.bf16.mxu1 %v1091_v8  ;;  %v1112_v14 = vld [vmem:[%s1281_s11 + $0x104] ss:$8 sps:$4 sm:$0xff]   ;;  %v1114_v15 = vld [vmem:[%s1281_s11 + $0x100] ss:$8 sps:$4 sm:$0xff]   ;;  %v1118_v17 = vld [vmem:[%s1281_s11 + $0x114] ss:$8 sps:$4 sm:$0xff]  }
  0x2b   : > { %v1100_v16 = vld [vmem:[%s1281_s11 + $0x44] ss:$8 sps:$4 sm:$0xff]   ;;  %716 = vmatprep.subr.bf16.mxu0 %v1112_v14  ;;  %v1120_v18 = vld [vmem:[%s1281_s11 + $0x110] ss:$8 sps:$4 sm:$0xff]   ;;  %v1102_v19 = vld [vmem:[%s1281_s11 + $0x40] ss:$8 sps:$4 sm:$0xff]  }
  0x2c   : > { %717 = vmatpush1.bf16.msra.mxu0 %v1114_v15  ;;  %v1103_v20 = vld [vmem:[%s1281_s11 + $0x54] ss:$8 sps:$4 sm:$0xff]   ;;  %v1124_v21 = vld [vmem:[%s1281_s11 + $0x124] ss:$8 sps:$4 sm:$0xff]   ;;  %v1126_v22 = vld [vmem:[%s1281_s11 + $0x120] ss:$8 sps:$4 sm:$0xff]  }
  0x2d   : > { %676 = vmatpush1.bf16.msra.mxu1 %v1093_v9  ;;  %718 = vmatprep.subr.bf16.mxu0 %v1118_v17  ;;  %v1105_v23 = vld [vmem:[%s1281_s11 + $0x50] ss:$8 sps:$4 sm:$0xff]   ;;  %v1130_v24 = vld [vmem:[%s1281_s11 + $0x134] ss:$8 sps:$4 sm:$0xff]   ;;  %v1106_v25 = vld [vmem:[%s1281_s11 + $0x64] ss:$8 sps:$4 sm:$0xff]  }
  0x2e   : > { %677 = vmatprep.subr.bf16.mxu1 %v1094_v10  ;;  %v1132_v26 = vld [vmem:[%s1281_s11 + $0x130] ss:$8 sps:$4 sm:$0xff]   ;;  %v1108_v27 = vld [vmem:[%s1281_s11 + $0x60] ss:$8 sps:$4 sm:$0xff]   ;;  %v1136_v28 = vld [vmem:[%s1281_s11 + $0x144] ss:$8 sps:$4 sm:$0xff]  }
  0x2f   : > { %v1109_v29 = vld [vmem:[%s1281_s11 + $0x74] ss:$8 sps:$4 sm:$0xff]   ;;  %v1138_v30 = vld [vmem:[%s1281_s11 + $0x140] ss:$8 sps:$4 sm:$0xff]   ;;  %v1111_v31 = vld [vmem:[%s1281_s11 + $0x70] ss:$8 sps:$4 sm:$0xff]  }
  0x30   : > { %719 = vmatpush1.bf16.msra.mxu0 %v1120_v18  ;;  %v1142_v32 = vld [vmem:[%s1281_s11 + $0x154] ss:$8 sps:$4 sm:$0xff]   ;;  %v1115_v33 = vld [vmem:[%s1281_s11 + $0x84] ss:$8 sps:$4 sm:$0xff]   ;;  %v1144_v34 = vld [vmem:[%s1281_s11 + $0x150] ss:$8 sps:$4 sm:$0xff]  }
  0x31   : > { %678 = vmatpush1.bf16.msra.mxu1 %v1096_v11  ;;  %720 = vmatprep.subr.bf16.mxu0 %v1124_v21  ;;  %v1117_v35 = vld [vmem:[%s1281_s11 + $0x80] ss:$8 sps:$4 sm:$0xff]   ;;  %v1148_v36 = vld [vmem:[%s1281_s11 + $0x164] ss:$8 sps:$4 sm:$0xff]   ;;  %v1121_v37 = vld [vmem:[%s1281_s11 + $0x94] ss:$8 sps:$4 sm:$0xff]  }
  0x32   : > { %679 = vmatprep.subr.bf16.mxu1 %v1097_v12  ;;  %v1150_v38 = vld [vmem:[%s1281_s11 + $0x160] ss:$8 sps:$4 sm:$0xff]   ;;  %v1123_v40 = vld [vmem:[%s1281_s11 + $0x90] ss:$8 sps:$4 sm:$0xff]   ;;  %v1154_v41 = vld [vmem:[%s1281_s11 + $0x174] ss:$8 sps:$4 sm:$0xff]  }
  0x33   : > { %v1163_v39 = vld [vmem:[%s1283_s12 + $0x4] ss:$12 sps:$4 sm:$0xff]   ;;  %v1160_v46 = vld [vmem:[%s1283_s12 + $0x8] ss:$12 sps:$4 sm:$0xff]   ;;  %v1161_v56 = vld [vmem:[%s1283_s12] ss:$12 sps:$4 sm:$0xff]  }
  0x34   : > { %721 = vmatpush1.bf16.msra.mxu0 %v1126_v22  ;;  %v1127_v42 = vld [vmem:[%s1281_s11 + $0xa4] ss:$8 sps:$4 sm:$0xff]   ;;  %705 = vmatprep.mubr.bf16.mxu1 %v1163_v39  ;;  %v1156_v43 = vld [vmem:[%s1281_s11 + $0x170] ss:$8 sps:$4 sm:$0xff]   ;;  %v1129_v44 = vld [vmem:[%s1281_s11 + $0xa0] ss:$8 sps:$4 sm:$0xff]  }
  0x35   : > { %680 = vmatpush1.bf16.msra.mxu1 %v1099_v13  ;;  %722 = vmatprep.subr.bf16.mxu0 %v1130_v24  ;;  %v1133_v45 = vld [vmem:[%s1281_s11 + $0xb4] ss:$8 sps:$4 sm:$0xff]   ;;  %v1135_v47 = vld [vmem:[%s1281_s11 + $0xb0] ss:$8 sps:$4 sm:$0xff]   ;;  %v1139_v48 = vld [vmem:[%s1281_s11 + $0xc4] ss:$8 sps:$4 sm:$0xff]   ;;  %v777_v13 = vlaneseq (!%p1029_p11) }
  0x36   : > { %681 = vmatprep.subr.bf16.mxu1 %v1100_v16  ;;  %v1141_v49 = vld [vmem:[%s1281_s11 + $0xc0] ss:$8 sps:$4 sm:$0xff]   ;;  %v1145_v50 = vld [vmem:[%s1281_s11 + $0xd4] ss:$8 sps:$4 sm:$0xff]   ;;  %v1147_v51 = vld [vmem:[%s1281_s11 + $0xd0] ss:$8 sps:$4 sm:$0xff]  }
  0x37   : > { %v1151_v52 = vld [vmem:[%s1281_s11 + $0xe4] ss:$8 sps:$4 sm:$0xff]   ;;  %v1153_v53 = vld [vmem:[%s1281_s11 + $0xe0] ss:$8 sps:$4 sm:$0xff]   ;;  %v1157_v54 = vld [vmem:[%s1281_s11 + $0xf4] ss:$8 sps:$4 sm:$0xff]  }
  0x38   : > { %723 = vmatpush1.bf16.msra.mxu0 %v1132_v26  ;;  %v1159_v55 = vld [vmem:[%s1281_s11 + $0xf0] ss:$8 sps:$4 sm:$0xff]   ;;  %v361_v61 = vld [vmem:[#allocation2] sm:$0xff]  ;;  %v362_v0 = vld [vmem:[#allocation2 + $0x8] sm:$0xff]  ;;  %v778_v14 = vshrl.u32 (!%p1029_p11), %v777_v13, 7 }
  0x39   : > { %682 = vmatpush1.bf16.msra.mxu1 %v1102_v19  ;;  %724 = vmatprep.subr.bf16.mxu0 %v1136_v28  ;;  %v363_v3 = vld [vmem:[#allocation2 + $0x10] sm:$0xff]  ;;  %v364_v7 = vld [vmem:[#allocation2 + $0x18] sm:$0xff]  ;;  %v775_v15 = vld [vmem:[%s1367_s2] sm:$0x3] (!%p1029_p11) }
  0x3a   : > { %683 = vmatprep.subr.bf16.mxu1 %v1103_v20  ;;  %v791_v16 = vld [vmem:[%s1368_s3] sm:$0x3] (!%p1029_p11)  ;;  %v779_v18 = vsub.s32 (!%p1029_p11), 0, %v778_v14  ;;  %v783_v19 = vsub.s32 (!%p1029_p11), 1, %v778_v14 }
  0x3c   : > { %725 = vmatpush1.bf16.msra.mxu0 %v1138_v30  ;;  %v784_v24 = vrot.slane (!%p1029_p11), %v775_v15, %v783_v19  ;;  %v800_v26 = vrot.slane (!%p1029_p11), %v791_v16, %v783_v19 }
  0x3d   : > { %684 = vmatpush1.bf16.msra.mxu1 %v1105_v23  ;;  %726 = vmatprep.subr.bf16.mxu0 %v1142_v32  ;;  %v780_v23 = vrot.slane (!%p1029_p11), %v775_v15, %v779_v18 }
  0x3e   : > { %685 = vmatprep.subr.bf16.mxu1 %v1106_v25  ;;  %v796_v25 = vrot.slane (!%p1029_p11), %v791_v16, %v779_v18 }
  0x40   : > { %727 = vmatpush1.bf16.msra.mxu0 %v1144_v34 }
  0x41   : > { %686 = vmatpush1.bf16.msra.mxu1 %v1108_v27  ;;  %728 = vmatprep.subr.bf16.mxu0 %v1148_v36 }
  0x42   : > { %687 = vmatprep.subr.bf16.mxu1 %v1109_v29 }
  0x44   : > { %729 = vmatpush1.bf16.msra.mxu0 %v1150_v38 }
  0x45   : > { %688 = vmatpush1.bf16.msra.mxu1 %v1111_v31  ;;  %730 = vmatprep.subr.bf16.mxu0 %v1154_v41 }
  0x46   : > { %689 = vmatprep.subr.bf16.mxu1 %v1115_v33 }
  0x48   : > { %731 = vmatpush1.bf16.msra.mxu0 %v1156_v43 }
  0x49   : > { %690 = vmatpush1.bf16.msra.mxu1 %v1117_v35 }
  0x4a   : > { %691 = vmatprep.subr.bf16.mxu1 %v1121_v37 }
  0x4b   : > { %749 = vmatmul.mubr.bf16.vlgmr.msra.gmra.mrb[0].mxu0 %v1160_v46 }
  0x4d   : > { %692 = vmatpush1.bf16.msra.mxu1 %v1123_v40 }
  0x4e   : > { %693 = vmatprep.subr.bf16.mxu1 %v1127_v42 }
  0x51   : > { %694 = vmatpush1.bf16.msra.mxu1 %v1129_v44 }
  0x52   : > { %695 = vmatprep.subr.bf16.mxu1 %v1133_v45 }
  0x55   : > { %696 = vmatpush1.bf16.msra.mxu1 %v1135_v47 }
  0x56   : > { %697 = vmatprep.subr.bf16.mxu1 %v1139_v48 }
  0x59   : > { %698 = vmatpush1.bf16.msra.mxu1 %v1141_v49 }
  0x5a   : > { %699 = vmatprep.subr.bf16.mxu1 %v1145_v50 }
  0x5d   : > { %700 = vmatpush1.bf16.msra.mxu1 %v1147_v51 }
  0x5e   : > { %701 = vmatprep.subr.bf16.mxu1 %v1151_v52 }
  0x61   : > { %702 = vmatpush1.bf16.msra.mxu1 %v1153_v53 }
  0x62   : > { %703 = vmatprep.subr.bf16.mxu1 %v1157_v54 }
  0x65   : > { %704 = vmatpush1.bf16.msra.mxu1 %v1159_v55 }
  0x68   : > { %706 = vmatmul.mubr.bf16.vlgmr.msra.gmra.mrb[0].mxu1 %v1161_v56 }
 0x11e   : > { %v750_v57 = vpop.f32.mrb[0].mxu0 }
 0x11f   : > { %v752_v58 = vpop.f32.mrb[1].mxu0 }
 0x120   : > { %v754_v59 = vpop.f32.mrb[2].mxu0 }
 0x121   : > { %v756_v60 = vpop.f32.mrb[3].mxu0 }
 0x13b   : > { %v707_v62 = vpop.f32.mrb[0].mxu1 }
 0x13c   : > { %v751_v63 = vadd.f32 %v750_v57, %v707_v62  ;;  %v709_v1 = vpop.f32.mrb[1].mxu1 }
 0x13d   : > { %v753_v2 = vadd.f32 %v752_v58, %v709_v1  ;;  %v711_v4 = vpop.f32.mrb[2].mxu1  ;;  %770 = sbr.rel (%p1029_p11) target bundleno = 340 (0x154), region = 70 }
 0x13e   : > { %v759_v5 = vadd.f32 %v751_v63, %v361_v61  ;;  %v755_v6 = vadd.f32 %v754_v59, %v711_v4  ;;  %v713_v8 = vpop.f32.mrb[3].mxu1 }
 0x13f   : > { %v760_v9 = vadd.f32 %v753_v2, %v362_v0  ;;  %v757_v10 = vadd.f32 %v756_v60, %v713_v8 }
 0x140   : > { %763 = vst [vmem:[#allocation2] sm:$0xff] %v759_v5  ;;  %v761_v11 = vadd.f32 %v755_v6, %v363_v3 }
 0x141   : > { %764 = vst [vmem:[#allocation2 + $0x8] sm:$0xff] %v760_v9  ;;  %v762_v12 = vadd.f32 %v757_v10, %v364_v7 }
 0x142   : > { %765 = vst [vmem:[#allocation2 + $0x10] sm:$0xff] %v761_v11 }
 0x143   : > { %766 = vst [vmem:[#allocation2 + $0x18] sm:$0xff] %v762_v12 }
 0x147   : > { %v771_v17 = vld [vmem:[#allocation2] sm:$0xff] }
 0x148   : > { %v772_v20 = vld [vmem:[#allocation2 + $0x8] sm:$0xff]  ;;  %v787_v27 = vmul.f32 %v780_v23, %v771_v17 }
 0x149   : > { %v773_v21 = vld [vmem:[#allocation2 + $0x10] sm:$0xff]  ;;  %v788_v28 = vmul.f32 %v784_v24, %v772_v20 }
 0x14a   : > { %v774_v22 = vld [vmem:[#allocation2 + $0x18] sm:$0xff]  ;;  %v789_v29 = vmul.f32 %v780_v23, %v773_v21  ;;  %v803_v31 = vadd.f32 %v796_v25, %v787_v27 }
 0x14b   : > { %v790_v30 = vmul.f32 %v784_v24, %v774_v22  ;;  %v804_v32 = vadd.f32 %v800_v26, %v788_v28 }
 0x14c   : > { %v805_v33 = vadd.f32 %v796_v25, %v789_v29  ;;  %v807_v35 = vmax.f32 %v803_v31, 0.0 }
 0x14d   : > { %v806_v34 = vadd.f32 %v800_v26, %v790_v30  ;;  %v808_v36 = vmax.f32 %v804_v32, 0.0 }
 0x14e   : > { %v809_v37 = vmax.f32 %v805_v33, 0.0 }
 0x14f   : > { %v810_v38 = vmax.f32 %v806_v34, 0.0  ;;  %v1038_v39 = vpack.c.bf16 %v808_v36, %v807_v35 }
 0x151   : > { %v1039_v40 = vpack.c.bf16 %v810_v38, %v809_v37  ;;  %823 = vst [vmem:[%s1369_s4] sm:$0xff] %v1038_v39 }
 0x153   : > { %824 = vst [vmem:[%s1369_s4 + $0x8] sm:$0xff] %v1039_v40 }
 0x154 PF: > { %s14_s19 = sadd.s32 1, %s1202_s19   ;;  %s1370_s15 = smov %s1190_s16 }
 0x155   : > { %p11_p12 = scmp.ge.s32.totalorder %s14_s19, 5   ;;  %s1371_s16 = smov %s1266_s23 }
 0x156   : > { %s1372_s17 = smov %s1198_s18  ;;  %s1373_s18 = smov %s1375_s20 }
 0x157   :  { %13 = sbr.rel (!%p11_p12) target bundleno = 3 (0x3), region = 120 }

// kernel: resnet34_forward.41
= control target key start
LH: loop header
LB: loop body
LE: loop exit
PB: predicated region body
PF: predicated region fallthrough
CT: control target
= control target key end

     0   :  { %v289_v1 = vmov 0   ;;  %v194_v18 = vlaneseq  ;;  %s378_s1 = inlined_call_operand.vmem [shape: bf16[128,256], index: 1, kind: input, shape index: {}]   ;;  %s379_s0 = inlined_call_operand.vmem [shape: bf16[16,128], index: 0, kind: input, shape index: {}]   ;;  %s380_s2 = inlined_call_operand.vmem [shape: f32[1,256], index: 2, kind: input, shape index: {}]   ;;  %s381_s3 = inlined_call_operand.vmem [shape: f32[1,256], index: 3, kind: input, shape index: {}]   ;;  %s382_s4 = inlined_call_operand.vmem [shape: bf16[16,256], index: 4, kind: output, shape index: {}]  }
   0x1   :  { %v264_v0 = vld [vmem:[%s378_s1 + $0x4] ss:$8 sps:$4 sm:$0xff]   ;;  %166 = vmatprep.mubr.bf16.mxu0 %v289_v1  ;;  %v266_v2 = vld [vmem:[%s378_s1] ss:$8 sps:$4 sm:$0xff]   ;;  %v267_v3 = vld [vmem:[%s378_s1 + $0x14] ss:$8 sps:$4 sm:$0xff]  }
   0x2   :  { %134 = vmatprep.subr.bf16.mxu0 %v264_v0  ;;  %v269_v4 = vld [vmem:[%s378_s1 + $0x10] ss:$8 sps:$4 sm:$0xff]   ;;  %v270_v5 = vld [vmem:[%s378_s1 + $0x24] ss:$8 sps:$4 sm:$0xff]   ;;  %v272_v6 = vld [vmem:[%s378_s1 + $0x20] ss:$8 sps:$4 sm:$0xff]  }
   0x3   :  { %135 = vmatpush1.bf16.msra.mxu0 %v266_v2  ;;  %v273_v7 = vld [vmem:[%s378_s1 + $0x34] ss:$8 sps:$4 sm:$0xff]   ;;  %v275_v8 = vld [vmem:[%s378_s1 + $0x30] ss:$8 sps:$4 sm:$0xff]   ;;  %v276_v9 = vld [vmem:[%s378_s1 + $0x44] ss:$8 sps:$4 sm:$0xff]  }
   0x4   :  { %136 = vmatprep.subr.bf16.mxu0 %v267_v3  ;;  %v278_v10 = vld [vmem:[%s378_s1 + $0x40] ss:$8 sps:$4 sm:$0xff]   ;;  %v279_v11 = vld [vmem:[%s378_s1 + $0x54] ss:$8 sps:$4 sm:$0xff]   ;;  %v281_v12 = vld [vmem:[%s378_s1 + $0x50] ss:$8 sps:$4 sm:$0xff]  }
   0x5   :  { %v282_v13 = vld [vmem:[%s378_s1 + $0x64] ss:$8 sps:$4 sm:$0xff]   ;;  %v284_v14 = vld [vmem:[%s378_s1 + $0x60] ss:$8 sps:$4 sm:$0xff]   ;;  %v285_v15 = vld [vmem:[%s378_s1 + $0x74] ss:$8 sps:$4 sm:$0xff]  }
   0x6   :  { %v287_v16 = vld [vmem:[%s378_s1 + $0x70] ss:$8 sps:$4 sm:$0xff]   ;;  %v288_v17 = vld [vmem:[%s379_s0] sm:$0xff]   ;;  %v195_v19 = vshrl.u32 %v194_v18, 7 }
   0x7   :  { %137 = vmatpush1.bf16.msra.mxu0 %v269_v4  ;;  %v192_v21 = vld [vmem:[%s380_s2] sm:$0x3] }
   0x8   :  { %138 = vmatprep.subr.bf16.mxu0 %v270_v5  ;;  %v196_v20 = vsub.s32 0, %v195_v19  ;;  %v200_v22 = vsub.s32 1, %v195_v19  ;;  %v208_v23 = vld [vmem:[%s381_s3] sm:$0x3] }
   0xa   :  { %v197_v24 = vrot.slane %v192_v21, %v196_v20  ;;  %v201_v25 = vrot.slane %v192_v21, %v200_v22  ;;  %v213_v26 = vrot.slane %v208_v23, %v196_v20  ;;  %v217_v28 = vrot.slane %v208_v23, %v200_v22 }
   0xb   :  { %139 = vmatpush1.bf16.msra.mxu0 %v272_v6 }
   0xc   :  { %140 = vmatprep.subr.bf16.mxu0 %v273_v7 }
   0xf   :  { %141 = vmatpush1.bf16.msra.mxu0 %v275_v8 }
  0x10   :  { %142 = vmatprep.subr.bf16.mxu0 %v276_v9 }
  0x13   :  { %143 = vmatpush1.bf16.msra.mxu0 %v278_v10 }
  0x14   :  { %144 = vmatprep.subr.bf16.mxu0 %v279_v11 }
  0x17   :  { %145 = vmatpush1.bf16.msra.mxu0 %v281_v12 }
  0x18   :  { %146 = vmatprep.subr.bf16.mxu0 %v282_v13 }
  0x1b   :  { %147 = vmatpush1.bf16.msra.mxu0 %v284_v14 }
  0x1c   :  { %148 = vmatprep.subr.bf16.mxu0 %v285_v15 }
  0x1f   :  { %149 = vmatpush1.bf16.msra.mxu0 %v287_v16 }
  0x22   :  { %167 = vmatmul.mubr.bf16.vlgmr.msra.gmra.mrb[0].mxu0 %v288_v17 }
  0xf5   :  { %v168_v27 = vpop.f32.mrb[0].mxu0 }
  0xf6   :  { %v204_v29 = vmul.f32 %v197_v24, %v168_v27  ;;  %v170_v30 = vpop.f32.mrb[1].mxu0 }
  0xf7   :  { %v205_v31 = vmul.f32 %v201_v25, %v170_v30  ;;  %v172_v32 = vpop.f32.mrb[2].mxu0 }
  0xf8   :  { %v220_v33 = vadd.f32 %v213_v26, %v204_v29  ;;  %v206_v34 = vmul.f32 %v197_v24, %v172_v32  ;;  %v174_v35 = vpop.f32.mrb[3].mxu0 }
  0xf9   :  { %v221_v36 = vadd.f32 %v217_v28, %v205_v31  ;;  %v207_v37 = vmul.f32 %v201_v25, %v174_v35 }
  0xfa   :  { %v222_v38 = vadd.f32 %v213_v26, %v206_v34 }
  0xfb   :  { %v261_v39 = vpack.c.bf16 %v221_v36, %v220_v33  ;;  %v223_v40 = vadd.f32 %v217_v28, %v207_v37 }
  0xfd   :  { %236 = vst [vmem:[%s382_s4] sm:$0xff] %v261_v39  ;;  %v262_v41 = vpack.c.bf16 %v223_v40, %v222_v38 }
  0xff   :  { %237 = vst [vmem:[%s382_s4 + $0x8] sm:$0xff] %v262_v41 }

// kernel: resnet34_forward.42
= control target key start
LH: loop header
LB: loop body
LE: loop exit
PB: predicated region body
PF: predicated region fallthrough
CT: control target
= control target key end

     0   :  { %s1336_s18 = smov 0   ;;  %s1338_s19 = smov 0   ;;  %s1476_s0 = inlined_call_operand.vmem [shape: bf16[16,2304], index: 0, kind: input, shape index: {}]   ;;  %s1477_s1 = inlined_call_operand.vmem [shape: bf16[2304,256], index: 1, kind: input, shape index: {}]   ;;  %s1478_s2 = inlined_call_operand.vmem [shape: f32[1,256], index: 2, kind: input, shape index: {}]   ;;  %s1479_s3 = inlined_call_operand.vmem [shape: f32[1,256], index: 3, kind: input, shape index: {}]   ;;  %s1480_s4 = inlined_call_operand.vmem [shape: bf16[16,256], index: 4, kind: input, shape index: {}]   ;;  %s1481_s5 = inlined_call_operand.vmem [shape: bf16[16,256], index: 5, kind: output, shape index: {}]  }
   0x1   :  { %s1340_s20 = smov 0   ;;  %s1342_s21 = smov 0  }
   0x2   :  { %s1344_s22 = smov 0  }
   0x3 LB: > { %s27_s23 = sadd.s32 1, %s1298_s21  ;;  %p50_p1 = scmp.ne.s32.totalorder %s1290_s19, %s1286_s18  ;;  %s1302_s22 = sphi %s1344_s22, %s15_s22   ;;  %s1298_s21 = sphi %s1342_s21, %s1485_s21   ;;  %s1294_s20 = sphi %s1340_s20, %s1484_s20   ;;  %s1290_s19 = sphi %s1338_s19, %s1483_s19   ;;  %s1286_s18 = sphi %s1336_s18, %s1482_s18  }
   0x4   : > { %p28_p0 = scmp.ge.s32.totalorder %s27_s23, 6  ;;  %p51_p2 = scmp.eq.s32.totalorder %s1302_s22, 0 }
   0x5   : > { %s43_s25 = sadd.s32 1, %s1290_s19  ;;  %p1068_p5 = scmp.ge.s32.totalorder %s1302_s22, 6 }
   0x6   : > { %s1487_s23 = smov (%p28_p0, %s27_s23), 0  ;;  %p52_p3 = por %p51_p2, %p50_p1 }
   0x7   : > { %s39_s24 = ssub.s32 %s1298_s21, %s1487_s23  ;;  %243 = sbr.rel (%p1068_p5) target bundleno = 21 (0x15), region = 28 }
   0x8   : > { %p41_p4 = scmp.eq.s32.totalorder %s39_s24, 0 }
   0xa   : > { %s1371_s26 = scalar_select %p41_p4, %s1290_s19, %s43_s25  }
   0xe   : > { %246 = sbr.rel (!%p52_p3) target bundleno = 21 (0x15), region = 32  ;;  %s248_s27 = sand.u32 (%p52_p3), 1, %s1290_s19  }
   0xf   : > { %s1136_s28 = smul.u32 (%p52_p3), 12, %s1298_s21 }
  0x10   : > { %s1144_s29 = smul.u32 (%p52_p3), 24, %s248_s27 }
  0x11   : > { %s256_s7 = scalar_lea.vmem (%p52_p3), %s1476_s0, %s1136_s28 }
  0x12   : > { %v271_v0 = vld [vmem:[%s256_s7] sm:$0xff] (%p52_p3)  ;;  %v273_v1 = vld [vmem:[%s256_s7 + $0x48] sm:$0xff] (%p52_p3)  ;;  %s250_s8 = scalar_lea.vmem (%p52_p3), [#allocation3], %s1144_s29  ;;  %v1072_v3 = vld [vmem:[%s256_s7 + $0x50] sm:$0xf] (%p52_p3) }
  0x13   : > { %v1070_v2 = vld [vmem:[%s256_s7 + $0x8] sm:$0xf] (%p52_p3)  ;;  %272 = vst [vmem:[%s250_s8] sm:$0xff] (%p52_p3), %v271_v0  ;;  %274 = vst [vmem:[%s250_s8 + $0xc] sm:$0xff] (%p52_p3), %v273_v1 }
  0x14   : > { %1071 = vst [vmem:[%s250_s8 + $0x8] sm:$0xf] (%p52_p3), %v1070_v2  ;;  %1073 = vst [vmem:[%s250_s8 + $0x14] sm:$0xf] (%p52_p3), %v1072_v3 }
  0x15 PF: > { %p1074_p6 = scmp.ge.s32.totalorder %s1302_s22, 1  ;;  %p305_p7 = scmp.lt.s32.totalorder %s1302_s22, 7 }
  0x17   : > { %p306_p8 = pnand %p1074_p6, %p305_p7 }
  0x18   : > { %s312_s9 = sand.u32 (!%p306_p8), 1, %s1286_s18   ;;  %s374_s10 = smul.u32 (!%p306_p8), 48, %s1294_s20 }
  0x19   : > { %309 = sbr.rel (%p306_p8) target bundleno = 342 (0x156), region = 62  ;;  %p1077_p10 = scmp.ne.s32.totalorder (!%p306_p8), %s1294_s20, 0 }
  0x1a   : > { %s1145_s11 = smul.u32 (!%p306_p8), 24, %s312_s9  ;;  %p376_p9 = scmp.lt.s32.totalorder (!%p306_p8), %s374_s10, 287 }
  0x1c   : > { %s1388_s16 = scalar_lea.vmem (!%p306_p8), [#allocation3], %s1145_s11 }
  0x20   : > { %s1489_s10 = smov (!%p376_p9, %s374_s10), 287  ;;  %424 = sbr.rel (%p1077_p10) target bundleno = 39 (0x27), region = 70 }
  0x21   : > { %s1137_s12 = sshll.u32 %s1489_s10, 3  ;;  %v1304_v4 = vmov (!%p1077_p10), 0.0  }
  0x22   : > { %s1386_s15 = scalar_lea.vmem %s1477_s1, %s1137_s12  ;;  %425 = vst [vmem:[#allocation2] sm:$0xff] (!%p1077_p10), %v1304_v4  ;;  %426 = vst [vmem:[#allocation2 + $0x8] sm:$0xff] (!%p1077_p10), %v1304_v4 }
  0x23   : > { %427 = vst [vmem:[#allocation2 + $0x10] sm:$0xff] (!%p1077_p10), %v1304_v4  ;;  %428 = vst [vmem:[#allocation2 + $0x18] sm:$0xff] (!%p1077_p10), %v1304_v4 }
  0x27 PF: > { %v1188_v5 = vld [vmem:[%s1386_s15 + $0x4] ss:$8 sps:$4 sm:$0xff]   ;;  %v1190_v6 = vld [vmem:[%s1386_s15] ss:$8 sps:$4 sm:$0xff]   ;;  %v1305_v7 = vmov 0   ;;  %p1129_p11 = scmp.ne.s32.totalorder %s1294_s20, 5 }
  0x28   : > { %816 = vmatprep.mubr.bf16.mxu0 %v1305_v7  ;;  %741 = vmatprep.subr.bf16.mxu1 %v1188_v5  ;;  %v1191_v8 = vld [vmem:[%s1386_s15 + $0x14] ss:$8 sps:$4 sm:$0xff]   ;;  %v1193_v9 = vld [vmem:[%s1386_s15 + $0x10] ss:$8 sps:$4 sm:$0xff]   ;;  %v1194_v10 = vld [vmem:[%s1386_s15 + $0x24] ss:$8 sps:$4 sm:$0xff]  }
  0x29   : > { %742 = vmatpush1.bf16.msra.mxu1 %v1190_v6  ;;  %v1196_v11 = vld [vmem:[%s1386_s15 + $0x20] ss:$8 sps:$4 sm:$0xff]   ;;  %v1197_v12 = vld [vmem:[%s1386_s15 + $0x34] ss:$8 sps:$4 sm:$0xff]   ;;  %v1199_v13 = vld [vmem:[%s1386_s15 + $0x30] ss:$8 sps:$4 sm:$0xff]  }
  0x2a   : > { %743 = vmatprep.subr.bf16.mxu1 %v1191_v8  ;;  %v1212_v14 = vld [vmem:[%s1386_s15 + $0x104] ss:$8 sps:$4 sm:$0xff]   ;;  %v1214_v15 = vld [vmem:[%s1386_s15 + $0x100] ss:$8 sps:$4 sm:$0xff]   ;;  %v1218_v17 = vld [vmem:[%s1386_s15 + $0x114] ss:$8 sps:$4 sm:$0xff]  }
  0x2b   : > { %v1200_v16 = vld [vmem:[%s1386_s15 + $0x44] ss:$8 sps:$4 sm:$0xff]   ;;  %784 = vmatprep.subr.bf16.mxu0 %v1212_v14  ;;  %v1220_v18 = vld [vmem:[%s1386_s15 + $0x110] ss:$8 sps:$4 sm:$0xff]   ;;  %v1202_v19 = vld [vmem:[%s1386_s15 + $0x40] ss:$8 sps:$4 sm:$0xff]  }
  0x2c   : > { %785 = vmatpush1.bf16.msra.mxu0 %v1214_v15  ;;  %v1203_v20 = vld [vmem:[%s1386_s15 + $0x54] ss:$8 sps:$4 sm:$0xff]   ;;  %v1224_v21 = vld [vmem:[%s1386_s15 + $0x124] ss:$8 sps:$4 sm:$0xff]   ;;  %v1226_v22 = vld [vmem:[%s1386_s15 + $0x120] ss:$8 sps:$4 sm:$0xff]  }
  0x2d   : > { %744 = vmatpush1.bf16.msra.mxu1 %v1193_v9  ;;  %786 = vmatprep.subr.bf16.mxu0 %v1218_v17  ;;  %v1205_v23 = vld [vmem:[%s1386_s15 + $0x50] ss:$8 sps:$4 sm:$0xff]   ;;  %v1230_v24 = vld [vmem:[%s1386_s15 + $0x134] ss:$8 sps:$4 sm:$0xff]   ;;  %v1206_v25 = vld [vmem:[%s1386_s15 + $0x64] ss:$8 sps:$4 sm:$0xff]  }
  0x2e   : > { %745 = vmatprep.subr.bf16.mxu1 %v1194_v10  ;;  %v1232_v26 = vld [vmem:[%s1386_s15 + $0x130] ss:$8 sps:$4 sm:$0xff]   ;;  %v1208_v27 = vld [vmem:[%s1386_s15 + $0x60] ss:$8 sps:$4 sm:$0xff]   ;;  %v1236_v28 = vld [vmem:[%s1386_s15 + $0x144] ss:$8 sps:$4 sm:$0xff]  }
  0x2f   : > { %v1209_v29 = vld [vmem:[%s1386_s15 + $0x74] ss:$8 sps:$4 sm:$0xff]   ;;  %v1238_v30 = vld [vmem:[%s1386_s15 + $0x140] ss:$8 sps:$4 sm:$0xff]   ;;  %v1211_v31 = vld [vmem:[%s1386_s15 + $0x70] ss:$8 sps:$4 sm:$0xff]  }
  0x30   : > { %787 = vmatpush1.bf16.msra.mxu0 %v1220_v18  ;;  %v1242_v32 = vld [vmem:[%s1386_s15 + $0x154] ss:$8 sps:$4 sm:$0xff]   ;;  %v1215_v33 = vld [vmem:[%s1386_s15 + $0x84] ss:$8 sps:$4 sm:$0xff]   ;;  %v1244_v34 = vld [vmem:[%s1386_s15 + $0x150] ss:$8 sps:$4 sm:$0xff]  }
  0x31   : > { %746 = vmatpush1.bf16.msra.mxu1 %v1196_v11  ;;  %788 = vmatprep.subr.bf16.mxu0 %v1224_v21  ;;  %v1217_v35 = vld [vmem:[%s1386_s15 + $0x80] ss:$8 sps:$4 sm:$0xff]   ;;  %v1248_v36 = vld [vmem:[%s1386_s15 + $0x164] ss:$8 sps:$4 sm:$0xff]   ;;  %v1221_v37 = vld [vmem:[%s1386_s15 + $0x94] ss:$8 sps:$4 sm:$0xff]  }
  0x32   : > { %747 = vmatprep.subr.bf16.mxu1 %v1197_v12  ;;  %v1250_v38 = vld [vmem:[%s1386_s15 + $0x160] ss:$8 sps:$4 sm:$0xff]   ;;  %v1223_v40 = vld [vmem:[%s1386_s15 + $0x90] ss:$8 sps:$4 sm:$0xff]   ;;  %v1254_v41 = vld [vmem:[%s1386_s15 + $0x174] ss:$8 sps:$4 sm:$0xff]  }
  0x33   : > { %v1263_v39 = vld [vmem:[%s1388_s16 + $0x4] ss:$12 sps:$4 sm:$0xff]   ;;  %v1260_v46 = vld [vmem:[%s1388_s16 + $0x8] ss:$12 sps:$4 sm:$0xff]   ;;  %v1261_v56 = vld [vmem:[%s1388_s16] ss:$12 sps:$4 sm:$0xff]  }
  0x34   : > { %789 = vmatpush1.bf16.msra.mxu0 %v1226_v22  ;;  %v1227_v42 = vld [vmem:[%s1386_s15 + $0xa4] ss:$8 sps:$4 sm:$0xff]   ;;  %773 = vmatprep.mubr.bf16.mxu1 %v1263_v39  ;;  %v1256_v43 = vld [vmem:[%s1386_s15 + $0x170] ss:$8 sps:$4 sm:$0xff]   ;;  %v1229_v44 = vld [vmem:[%s1386_s15 + $0xa0] ss:$8 sps:$4 sm:$0xff]  }
  0x35   : > { %748 = vmatpush1.bf16.msra.mxu1 %v1199_v13  ;;  %790 = vmatprep.subr.bf16.mxu0 %v1230_v24  ;;  %v1233_v45 = vld [vmem:[%s1386_s15 + $0xb4] ss:$8 sps:$4 sm:$0xff]   ;;  %v1235_v47 = vld [vmem:[%s1386_s15 + $0xb0] ss:$8 sps:$4 sm:$0xff]   ;;  %v1239_v48 = vld [vmem:[%s1386_s15 + $0xc4] ss:$8 sps:$4 sm:$0xff]   ;;  %v845_v13 = vlaneseq (!%p1129_p11) }
  0x36   : > { %749 = vmatprep.subr.bf16.mxu1 %v1200_v16  ;;  %v1241_v49 = vld [vmem:[%s1386_s15 + $0xc0] ss:$8 sps:$4 sm:$0xff]   ;;  %v1245_v50 = vld [vmem:[%s1386_s15 + $0xd4] ss:$8 sps:$4 sm:$0xff]   ;;  %v1247_v51 = vld [vmem:[%s1386_s15 + $0xd0] ss:$8 sps:$4 sm:$0xff]  }
  0x37   : > { %v1251_v52 = vld [vmem:[%s1386_s15 + $0xe4] ss:$8 sps:$4 sm:$0xff]   ;;  %v1253_v53 = vld [vmem:[%s1386_s15 + $0xe0] ss:$8 sps:$4 sm:$0xff]   ;;  %v1257_v54 = vld [vmem:[%s1386_s15 + $0xf4] ss:$8 sps:$4 sm:$0xff]  }
  0x38   : > { %791 = vmatpush1.bf16.msra.mxu0 %v1232_v26  ;;  %v1259_v55 = vld [vmem:[%s1386_s15 + $0xf0] ss:$8 sps:$4 sm:$0xff]   ;;  %v429_v61 = vld [vmem:[#allocation2] sm:$0xff]  ;;  %v430_v0 = vld [vmem:[#allocation2 + $0x8] sm:$0xff]  ;;  %v846_v14 = vshrl.u32 (!%p1129_p11), %v845_v13, 7 }
  0x39   : > { %750 = vmatpush1.bf16.msra.mxu1 %v1202_v19  ;;  %792 = vmatprep.subr.bf16.mxu0 %v1236_v28  ;;  %v431_v3 = vld [vmem:[#allocation2 + $0x10] sm:$0xff]  ;;  %v432_v7 = vld [vmem:[#allocation2 + $0x18] sm:$0xff]  ;;  %v843_v15 = vld [vmem:[%s1478_s2] sm:$0x3] (!%p1129_p11) }
  0x3a   : > { %751 = vmatprep.subr.bf16.mxu1 %v1203_v20  ;;  %v859_v16 = vld [vmem:[%s1479_s3] sm:$0x3] (!%p1129_p11)  ;;  %v847_v18 = vsub.s32 (!%p1129_p11), 0, %v846_v14  ;;  %v851_v19 = vsub.s32 (!%p1129_p11), 1, %v846_v14  ;;  %v876_v21 = vld [vmem:[%s1480_s4 + $0x8] sm:$0xff] (!%p1129_p11) }
  0x3b   : > { %v875_v20 = vld [vmem:[%s1480_s4] sm:$0xff] (!%p1129_p11) }
  0x3c   : > { %793 = vmatpush1.bf16.msra.mxu0 %v1238_v30  ;;  %v852_v26 = vrot.slane (!%p1129_p11), %v843_v15, %v851_v19  ;;  %v868_v28 = vrot.slane (!%p1129_p11), %v859_v16, %v851_v19  ;;  %v878_v30 = vunpack.c.h.bf16 (!%p1129_p11), %v875_v20 }
  0x3d   : > { %752 = vmatpush1.bf16.msra.mxu1 %v1205_v23  ;;  %794 = vmatprep.subr.bf16.mxu0 %v1242_v32  ;;  %v880_v32 = vunpack.c.h.bf16 (!%p1129_p11), %v876_v21 }
  0x3e   : > { %753 = vmatprep.subr.bf16.mxu1 %v1206_v25  ;;  %v848_v25 = vrot.slane (!%p1129_p11), %v843_v15, %v847_v18 }
  0x40   : > { %795 = vmatpush1.bf16.msra.mxu0 %v1244_v34 }
  0x41   : > { %754 = vmatpush1.bf16.msra.mxu1 %v1208_v27  ;;  %796 = vmatprep.subr.bf16.mxu0 %v1248_v36  ;;  %v864_v27 = vrot.slane (!%p1129_p11), %v859_v16, %v847_v18 }
  0x42   : > { %755 = vmatprep.subr.bf16.mxu1 %v1209_v29  ;;  %v877_v29 = vunpack.c.l.bf16 (!%p1129_p11), %v875_v20 }
  0x44   : > { %797 = vmatpush1.bf16.msra.mxu0 %v1250_v38 }
  0x45   : > { %756 = vmatpush1.bf16.msra.mxu1 %v1211_v31  ;;  %798 = vmatprep.subr.bf16.mxu0 %v1254_v41  ;;  %v879_v31 = vunpack.c.l.bf16 (!%p1129_p11), %v876_v21 }
  0x46   : > { %757 = vmatprep.subr.bf16.mxu1 %v1215_v33 }
  0x48   : > { %799 = vmatpush1.bf16.msra.mxu0 %v1256_v43 }
  0x49   : > { %758 = vmatpush1.bf16.msra.mxu1 %v1217_v35 }
  0x4a   : > { %759 = vmatprep.subr.bf16.mxu1 %v1221_v37 }
  0x4b   : > { %817 = vmatmul.mubr.bf16.vlgmr.msra.gmra.mrb[0].mxu0 %v1260_v46 }
  0x4d   : > { %760 = vmatpush1.bf16.msra.mxu1 %v1223_v40 }
  0x4e   : > { %761 = vmatprep.subr.bf16.mxu1 %v1227_v42 }
  0x51   : > { %762 = vmatpush1.bf16.msra.mxu1 %v1229_v44 }
  0x52   : > { %763 = vmatprep.subr.bf16.mxu1 %v1233_v45 }
  0x55   : > { %764 = vmatpush1.bf16.msra.mxu1 %v1235_v47 }
  0x56   : > { %765 = vmatprep.subr.bf16.mxu1 %v1239_v48 }
  0x59   : > { %766 = vmatpush1.bf16.msra.mxu1 %v1241_v49 }
  0x5a   : > { %767 = vmatprep.subr.bf16.mxu1 %v1245_v50 }
  0x5d   : > { %768 = vmatpush1.bf16.msra.mxu1 %v1247_v51 }
  0x5e   : > { %769 = vmatprep.subr.bf16.mxu1 %v1251_v52 }
  0x61   : > { %770 = vmatpush1.bf16.msra.mxu1 %v1253_v53 }
  0x62   : > { %771 = vmatprep.subr.bf16.mxu1 %v1257_v54 }
  0x65   : > { %772 = vmatpush1.bf16.msra.mxu1 %v1259_v55 }
  0x68   : > { %774 = vmatmul.mubr.bf16.vlgmr.msra.gmra.mrb[0].mxu1 %v1261_v56 }
 0x11e   : > { %v818_v57 = vpop.f32.mrb[0].mxu0 }
 0x11f   : > { %v820_v58 = vpop.f32.mrb[1].mxu0 }
 0x120   : > { %v822_v59 = vpop.f32.mrb[2].mxu0 }
 0x121   : > { %v824_v60 = vpop.f32.mrb[3].mxu0 }
 0x13b   : > { %v775_v62 = vpop.f32.mrb[0].mxu1 }
 0x13c   : > { %v819_v63 = vadd.f32 %v818_v57, %v775_v62  ;;  %v777_v1 = vpop.f32.mrb[1].mxu1 }
 0x13d   : > { %v821_v2 = vadd.f32 %v820_v58, %v777_v1  ;;  %v779_v4 = vpop.f32.mrb[2].mxu1  ;;  %838 = sbr.rel (%p1129_p11) target bundleno = 342 (0x156), region = 74 }
 0x13e   : > { %v827_v5 = vadd.f32 %v819_v63, %v429_v61  ;;  %v823_v6 = vadd.f32 %v822_v59, %v779_v4  ;;  %v781_v8 = vpop.f32.mrb[3].mxu1 }
 0x13f   : > { %v828_v9 = vadd.f32 %v821_v2, %v430_v0  ;;  %v825_v10 = vadd.f32 %v824_v60, %v781_v8 }
 0x140   : > { %831 = vst [vmem:[#allocation2] sm:$0xff] %v827_v5  ;;  %v829_v11 = vadd.f32 %v823_v6, %v431_v3 }
 0x141   : > { %832 = vst [vmem:[#allocation2 + $0x8] sm:$0xff] %v828_v9  ;;  %v830_v12 = vadd.f32 %v825_v10, %v432_v7 }
 0x142   : > { %833 = vst [vmem:[#allocation2 + $0x10] sm:$0xff] %v829_v11 }
 0x143   : > { %834 = vst [vmem:[#allocation2 + $0x18] sm:$0xff] %v830_v12 }
 0x147   : > { %v839_v17 = vld [vmem:[#allocation2] sm:$0xff] }
 0x148   : > { %v840_v22 = vld [vmem:[#allocation2 + $0x8] sm:$0xff]  ;;  %v855_v33 = vmul.f32 %v848_v25, %v839_v17 }
 0x149   : > { %v841_v23 = vld [vmem:[#allocation2 + $0x10] sm:$0xff]  ;;  %v856_v34 = vmul.f32 %v852_v26, %v840_v22 }
 0x14a   : > { %v842_v24 = vld [vmem:[#allocation2 + $0x18] sm:$0xff]  ;;  %v857_v35 = vmul.f32 %v848_v25, %v841_v23  ;;  %v871_v37 = vadd.f32 %v864_v27, %v855_v33 }
 0x14b   : > { %v858_v36 = vmul.f32 %v852_v26, %v842_v24  ;;  %v872_v38 = vadd.f32 %v868_v28, %v856_v34 }
 0x14c   : > { %v873_v39 = vadd.f32 %v864_v27, %v857_v35  ;;  %v881_v41 = vadd.f32 %v877_v29, %v871_v37 }
 0x14d   : > { %v874_v40 = vadd.f32 %v868_v28, %v858_v36  ;;  %v882_v42 = vadd.f32 %v878_v30, %v872_v38 }
 0x14e   : > { %v883_v43 = vadd.f32 %v879_v31, %v873_v39  ;;  %v885_v45 = vmax.f32 %v881_v41, 0.0 }
 0x14f   : > { %v884_v44 = vadd.f32 %v880_v32, %v874_v40  ;;  %v886_v46 = vmax.f32 %v882_v42, 0.0 }
 0x150   : > { %v887_v47 = vmax.f32 %v883_v43, 0.0 }
 0x151   : > { %v888_v48 = vmax.f32 %v884_v44, 0.0  ;;  %v1138_v49 = vpack.c.bf16 %v886_v46, %v885_v45 }
 0x153   : > { %v1139_v50 = vpack.c.bf16 %v888_v48, %v887_v47  ;;  %901 = vst [vmem:[%s1481_s5] sm:$0xff] %v1138_v49 }
 0x155   : > { %902 = vst [vmem:[%s1481_s5 + $0x8] sm:$0xff] %v1139_v50 }
 0x156 PF: > { %s15_s22 = sadd.s32 1, %s1302_s22   ;;  %s1482_s18 = smov %s1290_s19 }
 0x157   : > { %p12_p12 = scmp.ge.s32.totalorder %s15_s22, 8   ;;  %s1483_s19 = smov %s1371_s26 }
 0x158   : > { %s1484_s20 = smov %s1298_s21  ;;  %s1485_s21 = smov %s1487_s23 }
 0x159   :  { %14 = sbr.rel (!%p12_p12) target bundleno = 3 (0x3), region = 127 }

// kernel: resnet34_forward.43
= control target key start
LH: loop header
LB: loop body
LE: loop exit
PB: predicated region body
PF: predicated region fallthrough
CT: control target
= control target key end

     0   :  { %s1231_s15 = smov 0   ;;  %s1233_s16 = smov 0   ;;  %s1365_s0 = inlined_call_operand.vmem [shape: bf16[16,2304], index: 0, kind: input, shape index: {}]   ;;  %s1366_s1 = inlined_call_operand.vmem [shape: bf16[2304,256], index: 1, kind: input, shape index: {}]   ;;  %s1367_s2 = inlined_call_operand.vmem [shape: f32[1,256], index: 2, kind: input, shape index: {}]   ;;  %s1368_s3 = inlined_call_operand.vmem [shape: f32[1,256], index: 3, kind: input, shape index: {}]   ;;  %s1369_s4 = inlined_call_operand.vmem [shape: bf16[16,256], index: 4, kind: output, shape index: {}]  }
   0x1   :  { %s1235_s17 = smov 0   ;;  %s1237_s18 = smov 0  }
   0x2   :  { %s1239_s19 = smov 0  }
   0x3 LB: > { %s26_s20 = sadd.s32 1, %s1198_s18  ;;  %p49_p1 = scmp.ne.s32.totalorder %s1190_s16, %s1186_s15  ;;  %s1202_s19 = sphi %s1239_s19, %s14_s19   ;;  %s1198_s18 = sphi %s1237_s18, %s1373_s18   ;;  %s1194_s17 = sphi %s1235_s17, %s1372_s17   ;;  %s1190_s16 = sphi %s1233_s16, %s1371_s16   ;;  %s1186_s15 = sphi %s1231_s15, %s1370_s15  }
   0x4   : > { %p27_p0 = scmp.ge.s32.totalorder %s26_s20, 6  ;;  %p50_p2 = scmp.eq.s32.totalorder %s1202_s19, 0 }
   0x5   : > { %s42_s22 = sadd.s32 1, %s1190_s16  ;;  %p968_p5 = scmp.ge.s32.totalorder %s1202_s19, 6 }
   0x6   : > { %s1375_s20 = smov (%p27_p0, %s26_s20), 0  ;;  %p51_p3 = por %p50_p2, %p49_p1 }
   0x7   : > { %s38_s21 = ssub.s32 %s1198_s18, %s1375_s20  ;;  %199 = sbr.rel (%p968_p5) target bundleno = 21 (0x15), region = 24 }
   0x8   : > { %p40_p4 = scmp.eq.s32.totalorder %s38_s21, 0 }
   0xa   : > { %s1266_s23 = scalar_select %p40_p4, %s1190_s16, %s42_s22  }
   0xe   : > { %202 = sbr.rel (!%p51_p3) target bundleno = 21 (0x15), region = 28  ;;  %s204_s24 = sand.u32 (%p51_p3), 1, %s1190_s16  }
   0xf   : > { %s1036_s25 = smul.u32 (%p51_p3), 12, %s1198_s18 }
  0x10   : > { %s1044_s26 = smul.u32 (%p51_p3), 24, %s204_s24 }
  0x11   : > { %s212_s29 = scalar_lea.vmem (%p51_p3), %s1365_s0, %s1036_s25 }
  0x12   : > { %v227_v0 = vld [vmem:[%s212_s29] sm:$0xff] (%p51_p3)  ;;  %v229_v1 = vld [vmem:[%s212_s29 + $0x48] sm:$0xff] (%p51_p3)  ;;  %s206_s30 = scalar_lea.vmem (%p51_p3), [#allocation3], %s1044_s26  ;;  %v972_v3 = vld [vmem:[%s212_s29 + $0x50] sm:$0xf] (%p51_p3) }
  0x13   : > { %v970_v2 = vld [vmem:[%s212_s29 + $0x8] sm:$0xf] (%p51_p3)  ;;  %228 = vst [vmem:[%s206_s30] sm:$0xff] (%p51_p3), %v227_v0  ;;  %230 = vst [vmem:[%s206_s30 + $0xc] sm:$0xff] (%p51_p3), %v229_v1 }
  0x14   : > { %971 = vst [vmem:[%s206_s30 + $0x8] sm:$0xf] (%p51_p3), %v970_v2  ;;  %973 = vst [vmem:[%s206_s30 + $0x14] sm:$0xf] (%p51_p3), %v972_v3 }
  0x15 PF: > { %p974_p6 = scmp.ge.s32.totalorder %s1202_s19, 1  ;;  %p261_p7 = scmp.lt.s32.totalorder %s1202_s19, 7 }
  0x17   : > { %p262_p8 = pnand %p974_p6, %p261_p7 }
  0x18   : > { %s268_s5 = sand.u32 (!%p262_p8), 1, %s1186_s15   ;;  %s318_s6 = smul.u32 (!%p262_p8), 48, %s1194_s17 }
  0x19   : > { %265 = sbr.rel (%p262_p8) target bundleno = 340 (0x154), region = 58  ;;  %p977_p10 = scmp.ne.s32.totalorder (!%p262_p8), %s1194_s17, 0 }
  0x1a   : > { %s1045_s7 = smul.u32 (!%p262_p8), 24, %s268_s5  ;;  %p320_p9 = scmp.lt.s32.totalorder (!%p262_p8), %s318_s6, 287 }
  0x1c   : > { %s1283_s12 = scalar_lea.vmem (!%p262_p8), [#allocation3], %s1045_s7 }
  0x20   : > { %s1377_s6 = smov (!%p320_p9, %s318_s6), 287  ;;  %356 = sbr.rel (%p977_p10) target bundleno = 39 (0x27), region = 66 }
  0x21   : > { %s1037_s8 = sshll.u32 %s1377_s6, 3  ;;  %v1204_v4 = vmov (!%p977_p10), 0.0  }
  0x22   : > { %s1281_s11 = scalar_lea.vmem %s1366_s1, %s1037_s8  ;;  %357 = vst [vmem:[#allocation2] sm:$0xff] (!%p977_p10), %v1204_v4  ;;  %358 = vst [vmem:[#allocation2 + $0x8] sm:$0xff] (!%p977_p10), %v1204_v4 }
  0x23   : > { %359 = vst [vmem:[#allocation2 + $0x10] sm:$0xff] (!%p977_p10), %v1204_v4  ;;  %360 = vst [vmem:[#allocation2 + $0x18] sm:$0xff] (!%p977_p10), %v1204_v4 }
  0x27 PF: > { %v1088_v5 = vld [vmem:[%s1281_s11 + $0x4] ss:$8 sps:$4 sm:$0xff]   ;;  %v1090_v6 = vld [vmem:[%s1281_s11] ss:$8 sps:$4 sm:$0xff]   ;;  %v1205_v7 = vmov 0   ;;  %p1029_p11 = scmp.ne.s32.totalorder %s1194_s17, 5 }
  0x28   : > { %748 = vmatprep.mubr.bf16.mxu0 %v1205_v7  ;;  %673 = vmatprep.subr.bf16.mxu1 %v1088_v5  ;;  %v1091_v8 = vld [vmem:[%s1281_s11 + $0x14] ss:$8 sps:$4 sm:$0xff]   ;;  %v1093_v9 = vld [vmem:[%s1281_s11 + $0x10] ss:$8 sps:$4 sm:$0xff]   ;;  %v1094_v10 = vld [vmem:[%s1281_s11 + $0x24] ss:$8 sps:$4 sm:$0xff]  }
  0x29   : > { %674 = vmatpush1.bf16.msra.mxu1 %v1090_v6  ;;  %v1096_v11 = vld [vmem:[%s1281_s11 + $0x20] ss:$8 sps:$4 sm:$0xff]   ;;  %v1097_v12 = vld [vmem:[%s1281_s11 + $0x34] ss:$8 sps:$4 sm:$0xff]   ;;  %v1099_v13 = vld [vmem:[%s1281_s11 + $0x30] ss:$8 sps:$4 sm:$0xff]  }
  0x2a   : > { %675 = vmatprep.subr.bf16.mxu1 %v1091_v8  ;;  %v1112_v14 = vld [vmem:[%s1281_s11 + $0x104] ss:$8 sps:$4 sm:$0xff]   ;;  %v1114_v15 = vld [vmem:[%s1281_s11 + $0x100] ss:$8 sps:$4 sm:$0xff]   ;;  %v1118_v17 = vld [vmem:[%s1281_s11 + $0x114] ss:$8 sps:$4 sm:$0xff]  }
  0x2b   : > { %v1100_v16 = vld [vmem:[%s1281_s11 + $0x44] ss:$8 sps:$4 sm:$0xff]   ;;  %716 = vmatprep.subr.bf16.mxu0 %v1112_v14  ;;  %v1120_v18 = vld [vmem:[%s1281_s11 + $0x110] ss:$8 sps:$4 sm:$0xff]   ;;  %v1102_v19 = vld [vmem:[%s1281_s11 + $0x40] ss:$8 sps:$4 sm:$0xff]  }
  0x2c   : > { %717 = vmatpush1.bf16.msra.mxu0 %v1114_v15  ;;  %v1103_v20 = vld [vmem:[%s1281_s11 + $0x54] ss:$8 sps:$4 sm:$0xff]   ;;  %v1124_v21 = vld [vmem:[%s1281_s11 + $0x124] ss:$8 sps:$4 sm:$0xff]   ;;  %v1126_v22 = vld [vmem:[%s1281_s11 + $0x120] ss:$8 sps:$4 sm:$0xff]  }
  0x2d   : > { %676 = vmatpush1.bf16.msra.mxu1 %v1093_v9  ;;  %718 = vmatprep.subr.bf16.mxu0 %v1118_v17  ;;  %v1105_v23 = vld [vmem:[%s1281_s11 + $0x50] ss:$8 sps:$4 sm:$0xff]   ;;  %v1130_v24 = vld [vmem:[%s1281_s11 + $0x134] ss:$8 sps:$4 sm:$0xff]   ;;  %v1106_v25 = vld [vmem:[%s1281_s11 + $0x64] ss:$8 sps:$4 sm:$0xff]  }
  0x2e   : > { %677 = vmatprep.subr.bf16.mxu1 %v1094_v10  ;;  %v1132_v26 = vld [vmem:[%s1281_s11 + $0x130] ss:$8 sps:$4 sm:$0xff]   ;;  %v1108_v27 = vld [vmem:[%s1281_s11 + $0x60] ss:$8 sps:$4 sm:$0xff]   ;;  %v1136_v28 = vld [vmem:[%s1281_s11 + $0x144] ss:$8 sps:$4 sm:$0xff]  }
  0x2f   : > { %v1109_v29 = vld [vmem:[%s1281_s11 + $0x74] ss:$8 sps:$4 sm:$0xff]   ;;  %v1138_v30 = vld [vmem:[%s1281_s11 + $0x140] ss:$8 sps:$4 sm:$0xff]   ;;  %v1111_v31 = vld [vmem:[%s1281_s11 + $0x70] ss:$8 sps:$4 sm:$0xff]  }
  0x30   : > { %719 = vmatpush1.bf16.msra.mxu0 %v1120_v18  ;;  %v1142_v32 = vld [vmem:[%s1281_s11 + $0x154] ss:$8 sps:$4 sm:$0xff]   ;;  %v1115_v33 = vld [vmem:[%s1281_s11 + $0x84] ss:$8 sps:$4 sm:$0xff]   ;;  %v1144_v34 = vld [vmem:[%s1281_s11 + $0x150] ss:$8 sps:$4 sm:$0xff]  }
  0x31   : > { %678 = vmatpush1.bf16.msra.mxu1 %v1096_v11  ;;  %720 = vmatprep.subr.bf16.mxu0 %v1124_v21  ;;  %v1117_v35 = vld [vmem:[%s1281_s11 + $0x80] ss:$8 sps:$4 sm:$0xff]   ;;  %v1148_v36 = vld [vmem:[%s1281_s11 + $0x164] ss:$8 sps:$4 sm:$0xff]   ;;  %v1121_v37 = vld [vmem:[%s1281_s11 + $0x94] ss:$8 sps:$4 sm:$0xff]  }
  0x32   : > { %679 = vmatprep.subr.bf16.mxu1 %v1097_v12  ;;  %v1150_v38 = vld [vmem:[%s1281_s11 + $0x160] ss:$8 sps:$4 sm:$0xff]   ;;  %v1123_v40 = vld [vmem:[%s1281_s11 + $0x90] ss:$8 sps:$4 sm:$0xff]   ;;  %v1154_v41 = vld [vmem:[%s1281_s11 + $0x174] ss:$8 sps:$4 sm:$0xff]  }
  0x33   : > { %v1163_v39 = vld [vmem:[%s1283_s12 + $0x4] ss:$12 sps:$4 sm:$0xff]   ;;  %v1160_v46 = vld [vmem:[%s1283_s12 + $0x8] ss:$12 sps:$4 sm:$0xff]   ;;  %v1161_v56 = vld [vmem:[%s1283_s12] ss:$12 sps:$4 sm:$0xff]  }
  0x34   : > { %721 = vmatpush1.bf16.msra.mxu0 %v1126_v22  ;;  %v1127_v42 = vld [vmem:[%s1281_s11 + $0xa4] ss:$8 sps:$4 sm:$0xff]   ;;  %705 = vmatprep.mubr.bf16.mxu1 %v1163_v39  ;;  %v1156_v43 = vld [vmem:[%s1281_s11 + $0x170] ss:$8 sps:$4 sm:$0xff]   ;;  %v1129_v44 = vld [vmem:[%s1281_s11 + $0xa0] ss:$8 sps:$4 sm:$0xff]  }
  0x35   : > { %680 = vmatpush1.bf16.msra.mxu1 %v1099_v13  ;;  %722 = vmatprep.subr.bf16.mxu0 %v1130_v24  ;;  %v1133_v45 = vld [vmem:[%s1281_s11 + $0xb4] ss:$8 sps:$4 sm:$0xff]   ;;  %v1135_v47 = vld [vmem:[%s1281_s11 + $0xb0] ss:$8 sps:$4 sm:$0xff]   ;;  %v1139_v48 = vld [vmem:[%s1281_s11 + $0xc4] ss:$8 sps:$4 sm:$0xff]   ;;  %v777_v13 = vlaneseq (!%p1029_p11) }
  0x36   : > { %681 = vmatprep.subr.bf16.mxu1 %v1100_v16  ;;  %v1141_v49 = vld [vmem:[%s1281_s11 + $0xc0] ss:$8 sps:$4 sm:$0xff]   ;;  %v1145_v50 = vld [vmem:[%s1281_s11 + $0xd4] ss:$8 sps:$4 sm:$0xff]   ;;  %v1147_v51 = vld [vmem:[%s1281_s11 + $0xd0] ss:$8 sps:$4 sm:$0xff]  }
  0x37   : > { %v1151_v52 = vld [vmem:[%s1281_s11 + $0xe4] ss:$8 sps:$4 sm:$0xff]   ;;  %v1153_v53 = vld [vmem:[%s1281_s11 + $0xe0] ss:$8 sps:$4 sm:$0xff]   ;;  %v1157_v54 = vld [vmem:[%s1281_s11 + $0xf4] ss:$8 sps:$4 sm:$0xff]  }
  0x38   : > { %723 = vmatpush1.bf16.msra.mxu0 %v1132_v26  ;;  %v1159_v55 = vld [vmem:[%s1281_s11 + $0xf0] ss:$8 sps:$4 sm:$0xff]   ;;  %v361_v61 = vld [vmem:[#allocation2] sm:$0xff]  ;;  %v362_v0 = vld [vmem:[#allocation2 + $0x8] sm:$0xff]  ;;  %v778_v14 = vshrl.u32 (!%p1029_p11), %v777_v13, 7 }
  0x39   : > { %682 = vmatpush1.bf16.msra.mxu1 %v1102_v19  ;;  %724 = vmatprep.subr.bf16.mxu0 %v1136_v28  ;;  %v363_v3 = vld [vmem:[#allocation2 + $0x10] sm:$0xff]  ;;  %v364_v7 = vld [vmem:[#allocation2 + $0x18] sm:$0xff]  ;;  %v775_v15 = vld [vmem:[%s1367_s2] sm:$0x3] (!%p1029_p11) }
  0x3a   : > { %683 = vmatprep.subr.bf16.mxu1 %v1103_v20  ;;  %v791_v16 = vld [vmem:[%s1368_s3] sm:$0x3] (!%p1029_p11)  ;;  %v779_v18 = vsub.s32 (!%p1029_p11), 0, %v778_v14  ;;  %v783_v19 = vsub.s32 (!%p1029_p11), 1, %v778_v14 }
  0x3c   : > { %725 = vmatpush1.bf16.msra.mxu0 %v1138_v30  ;;  %v784_v24 = vrot.slane (!%p1029_p11), %v775_v15, %v783_v19  ;;  %v800_v26 = vrot.slane (!%p1029_p11), %v791_v16, %v783_v19 }
  0x3d   : > { %684 = vmatpush1.bf16.msra.mxu1 %v1105_v23  ;;  %726 = vmatprep.subr.bf16.mxu0 %v1142_v32  ;;  %v780_v23 = vrot.slane (!%p1029_p11), %v775_v15, %v779_v18 }
  0x3e   : > { %685 = vmatprep.subr.bf16.mxu1 %v1106_v25  ;;  %v796_v25 = vrot.slane (!%p1029_p11), %v791_v16, %v779_v18 }
  0x40   : > { %727 = vmatpush1.bf16.msra.mxu0 %v1144_v34 }
  0x41   : > { %686 = vmatpush1.bf16.msra.mxu1 %v1108_v27  ;;  %728 = vmatprep.subr.bf16.mxu0 %v1148_v36 }
  0x42   : > { %687 = vmatprep.subr.bf16.mxu1 %v1109_v29 }
  0x44   : > { %729 = vmatpush1.bf16.msra.mxu0 %v1150_v38 }
  0x45   : > { %688 = vmatpush1.bf16.msra.mxu1 %v1111_v31  ;;  %730 = vmatprep.subr.bf16.mxu0 %v1154_v41 }
  0x46   : > { %689 = vmatprep.subr.bf16.mxu1 %v1115_v33 }
  0x48   : > { %731 = vmatpush1.bf16.msra.mxu0 %v1156_v43 }
  0x49   : > { %690 = vmatpush1.bf16.msra.mxu1 %v1117_v35 }
  0x4a   : > { %691 = vmatprep.subr.bf16.mxu1 %v1121_v37 }
  0x4b   : > { %749 = vmatmul.mubr.bf16.vlgmr.msra.gmra.mrb[0].mxu0 %v1160_v46 }
  0x4d   : > { %692 = vmatpush1.bf16.msra.mxu1 %v1123_v40 }
  0x4e   : > { %693 = vmatprep.subr.bf16.mxu1 %v1127_v42 }
  0x51   : > { %694 = vmatpush1.bf16.msra.mxu1 %v1129_v44 }
  0x52   : > { %695 = vmatprep.subr.bf16.mxu1 %v1133_v45 }
  0x55   : > { %696 = vmatpush1.bf16.msra.mxu1 %v1135_v47 }
  0x56   : > { %697 = vmatprep.subr.bf16.mxu1 %v1139_v48 }
  0x59   : > { %698 = vmatpush1.bf16.msra.mxu1 %v1141_v49 }
  0x5a   : > { %699 = vmatprep.subr.bf16.mxu1 %v1145_v50 }
  0x5d   : > { %700 = vmatpush1.bf16.msra.mxu1 %v1147_v51 }
  0x5e   : > { %701 = vmatprep.subr.bf16.mxu1 %v1151_v52 }
  0x61   : > { %702 = vmatpush1.bf16.msra.mxu1 %v1153_v53 }
  0x62   : > { %703 = vmatprep.subr.bf16.mxu1 %v1157_v54 }
  0x65   : > { %704 = vmatpush1.bf16.msra.mxu1 %v1159_v55 }
  0x68   : > { %706 = vmatmul.mubr.bf16.vlgmr.msra.gmra.mrb[0].mxu1 %v1161_v56 }
 0x11e   : > { %v750_v57 = vpop.f32.mrb[0].mxu0 }
 0x11f   : > { %v752_v58 = vpop.f32.mrb[1].mxu0 }
 0x120   : > { %v754_v59 = vpop.f32.mrb[2].mxu0 }
 0x121   : > { %v756_v60 = vpop.f32.mrb[3].mxu0 }
 0x13b   : > { %v707_v62 = vpop.f32.mrb[0].mxu1 }
 0x13c   : > { %v751_v63 = vadd.f32 %v750_v57, %v707_v62  ;;  %v709_v1 = vpop.f32.mrb[1].mxu1 }
 0x13d   : > { %v753_v2 = vadd.f32 %v752_v58, %v709_v1  ;;  %v711_v4 = vpop.f32.mrb[2].mxu1  ;;  %770 = sbr.rel (%p1029_p11) target bundleno = 340 (0x154), region = 70 }
 0x13e   : > { %v759_v5 = vadd.f32 %v751_v63, %v361_v61  ;;  %v755_v6 = vadd.f32 %v754_v59, %v711_v4  ;;  %v713_v8 = vpop.f32.mrb[3].mxu1 }
 0x13f   : > { %v760_v9 = vadd.f32 %v753_v2, %v362_v0  ;;  %v757_v10 = vadd.f32 %v756_v60, %v713_v8 }
 0x140   : > { %763 = vst [vmem:[#allocation2] sm:$0xff] %v759_v5  ;;  %v761_v11 = vadd.f32 %v755_v6, %v363_v3 }
 0x141   : > { %764 = vst [vmem:[#allocation2 + $0x8] sm:$0xff] %v760_v9  ;;  %v762_v12 = vadd.f32 %v757_v10, %v364_v7 }
 0x142   : > { %765 = vst [vmem:[#allocation2 + $0x10] sm:$0xff] %v761_v11 }
 0x143   : > { %766 = vst [vmem:[#allocation2 + $0x18] sm:$0xff] %v762_v12 }
 0x147   : > { %v771_v17 = vld [vmem:[#allocation2] sm:$0xff] }
 0x148   : > { %v772_v20 = vld [vmem:[#allocation2 + $0x8] sm:$0xff]  ;;  %v787_v27 = vmul.f32 %v780_v23, %v771_v17 }
 0x149   : > { %v773_v21 = vld [vmem:[#allocation2 + $0x10] sm:$0xff]  ;;  %v788_v28 = vmul.f32 %v784_v24, %v772_v20 }
 0x14a   : > { %v774_v22 = vld [vmem:[#allocation2 + $0x18] sm:$0xff]  ;;  %v789_v29 = vmul.f32 %v780_v23, %v773_v21  ;;  %v803_v31 = vadd.f32 %v796_v25, %v787_v27 }
 0x14b   : > { %v790_v30 = vmul.f32 %v784_v24, %v774_v22  ;;  %v804_v32 = vadd.f32 %v800_v26, %v788_v28 }
 0x14c   : > { %v805_v33 = vadd.f32 %v796_v25, %v789_v29  ;;  %v807_v35 = vmax.f32 %v803_v31, 0.0 }
 0x14d   : > { %v806_v34 = vadd.f32 %v800_v26, %v790_v30  ;;  %v808_v36 = vmax.f32 %v804_v32, 0.0 }
 0x14e   : > { %v809_v37 = vmax.f32 %v805_v33, 0.0 }
 0x14f   : > { %v810_v38 = vmax.f32 %v806_v34, 0.0  ;;  %v1038_v39 = vpack.c.bf16 %v808_v36, %v807_v35 }
 0x151   : > { %v1039_v40 = vpack.c.bf16 %v810_v38, %v809_v37  ;;  %823 = vst [vmem:[%s1369_s4] sm:$0xff] %v1038_v39 }
 0x153   : > { %824 = vst [vmem:[%s1369_s4 + $0x8] sm:$0xff] %v1039_v40 }
 0x154 PF: > { %s14_s19 = sadd.s32 1, %s1202_s19   ;;  %s1370_s15 = smov %s1190_s16 }
 0x155   : > { %p11_p12 = scmp.ge.s32.totalorder %s14_s19, 8   ;;  %s1371_s16 = smov %s1266_s23 }
 0x156   : > { %s1372_s17 = smov %s1198_s18  ;;  %s1373_s18 = smov %s1375_s20 }
 0x157   :  { %13 = sbr.rel (!%p11_p12) target bundleno = 3 (0x3), region = 120 }

// kernel: resnet34_forward.49
= control target key start
LH: loop header
LB: loop body
LE: loop exit
PB: predicated region body
PF: predicated region fallthrough
CT: control target
= control target key end

     0   :  { %s1799_s15 = smov 0   ;;  %s1801_s16 = smov 0   ;;  %s1987_s0 = inlined_call_operand.vmem [shape: bf16[16,2304], index: 0, kind: input, shape index: {}]   ;;  %s1988_s1 = inlined_call_operand.vmem [shape: bf16[2304,512], index: 1, kind: input, shape index: {}]   ;;  %s1989_s2 = inlined_call_operand.vmem [shape: f32[1,512], index: 2, kind: input, shape index: {}]   ;;  %s1990_s3 = inlined_call_operand.vmem [shape: f32[1,512], index: 3, kind: input, shape index: {}]   ;;  %s1991_s4 = inlined_call_operand.vmem [shape: bf16[16,512], index: 4, kind: output, shape index: {}]  }
   0x1   :  { %s1803_s17 = smov 0   ;;  %s1805_s18 = smov 0  }
   0x2   :  { %s1807_s19 = smov 0  }
   0x3 LB: > { %s26_s20 = sadd.s32 1, %s1766_s18  ;;  %p49_p1 = scmp.ne.s32.totalorder %s1758_s16, %s1754_s15  ;;  %s1770_s19 = sphi %s1807_s19, %s14_s19   ;;  %s1766_s18 = sphi %s1805_s18, %s1995_s18   ;;  %s1762_s17 = sphi %s1803_s17, %s1994_s17   ;;  %s1758_s16 = sphi %s1801_s16, %s1993_s16   ;;  %s1754_s15 = sphi %s1799_s15, %s1992_s15  }
   0x4   : > { %p27_p0 = scmp.ge.s32.totalorder %s26_s20, 6  ;;  %p50_p2 = scmp.eq.s32.totalorder %s1770_s19, 0 }
   0x5   : > { %s42_s22 = sadd.s32 1, %s1758_s16  ;;  %p1408_p5 = scmp.ge.s32.totalorder %s1770_s19, 6 }
   0x6   : > { %s1997_s20 = smov (%p27_p0, %s26_s20), 0  ;;  %p51_p3 = por %p50_p2, %p49_p1 }
   0x7   : > { %s38_s21 = ssub.s32 %s1766_s18, %s1997_s20  ;;  %199 = sbr.rel (%p1408_p5) target bundleno = 21 (0x15), region = 24 }
   0x8   : > { %p40_p4 = scmp.eq.s32.totalorder %s38_s21, 0 }
   0xa   : > { %s1834_s23 = scalar_select %p40_p4, %s1758_s16, %s42_s22  }
   0xe   : > { %202 = sbr.rel (!%p51_p3) target bundleno = 21 (0x15), region = 28  ;;  %s204_s24 = sand.u32 (%p51_p3), 1, %s1758_s16  }
   0xf   : > { %s1526_s25 = smul.u32 (%p51_p3), 12, %s1766_s18 }
  0x10   : > { %s1540_s26 = smul.u32 (%p51_p3), 24, %s204_s24 }
  0x11   : > { %s212_s29 = scalar_lea.vmem (%p51_p3), %s1987_s0, %s1526_s25 }
  0x12   : > { %v227_v0 = vld [vmem:[%s212_s29] sm:$0xff] (%p51_p3)  ;;  %v229_v1 = vld [vmem:[%s212_s29 + $0x48] sm:$0xff] (%p51_p3)  ;;  %s206_s30 = scalar_lea.vmem (%p51_p3), [#allocation3], %s1540_s26  ;;  %v1412_v3 = vld [vmem:[%s212_s29 + $0x50] sm:$0xf] (%p51_p3) }
  0x13   : > { %v1410_v2 = vld [vmem:[%s212_s29 + $0x8] sm:$0xf] (%p51_p3)  ;;  %228 = vst [vmem:[%s206_s30] sm:$0xff] (%p51_p3), %v227_v0  ;;  %230 = vst [vmem:[%s206_s30 + $0xc] sm:$0xff] (%p51_p3), %v229_v1 }
  0x14   : > { %1411 = vst [vmem:[%s206_s30 + $0x8] sm:$0xf] (%p51_p3), %v1410_v2  ;;  %1413 = vst [vmem:[%s206_s30 + $0x14] sm:$0xf] (%p51_p3), %v1412_v3 }
  0x15 PF: > { %p1414_p6 = scmp.ge.s32.totalorder %s1770_s19, 1  ;;  %p261_p7 = scmp.lt.s32.totalorder %s1770_s19, 7 }
  0x17   : > { %p262_p8 = pnand %p1414_p6, %p261_p7 }
  0x18   : > { %s268_s5 = sand.u32 (!%p262_p8), 1, %s1754_s15   ;;  %s318_s6 = smul.u32 (!%p262_p8), 48, %s1762_s17 }
  0x19   : > { %265 = sbr.rel (%p262_p8) target bundleno = 370 (0x172), region = 58  ;;  %p1417_p10 = scmp.ne.s32.totalorder (!%p262_p8), %s1762_s17, 0 }
  0x1a   : > { %s1541_s7 = smul.u32 (!%p262_p8), 24, %s268_s5  ;;  %p320_p9 = scmp.lt.s32.totalorder (!%p262_p8), %s318_s6, 287 }
  0x1c   : > { %s1851_s12 = scalar_lea.vmem (!%p262_p8), [#allocation3], %s1541_s7 }
  0x20   : > { %s1999_s6 = smov (!%p320_p9, %s318_s6), 287  ;;  %356 = sbr.rel (%p1417_p10) target bundleno = 39 (0x27), region = 66 }
  0x21   : > { %s1527_s8 = sshll.u32 %s1999_s6, 4  ;;  %v1772_v4 = vmov (!%p1417_p10), 0.0  }
  0x22   : > { %s1849_s11 = scalar_lea.vmem %s1988_s1, %s1527_s8  ;;  %357 = vst [vmem:[#allocation2] sm:$0xff] (!%p1417_p10), %v1772_v4  ;;  %358 = vst [vmem:[#allocation2 + $0x8] sm:$0xff] (!%p1417_p10), %v1772_v4 }
  0x23   : > { %359 = vst [vmem:[#allocation2 + $0x10] sm:$0xff] (!%p1417_p10), %v1772_v4  ;;  %360 = vst [vmem:[#allocation2 + $0x18] sm:$0xff] (!%p1417_p10), %v1772_v4 }
  0x24   : > { %361 = vst [vmem:[#allocation2 + $0x20] sm:$0xff] (!%p1417_p10), %v1772_v4  ;;  %362 = vst [vmem:[#allocation2 + $0x28] sm:$0xff] (!%p1417_p10), %v1772_v4 }
  0x25   : > { %363 = vst [vmem:[#allocation2 + $0x30] sm:$0xff] (!%p1417_p10), %v1772_v4  ;;  %364 = vst [vmem:[#allocation2 + $0x38] sm:$0xff] (!%p1417_p10), %v1772_v4 }
  0x27 PF: > { %v1584_v5 = vld [vmem:[%s1849_s11 + $0x4] ss:$16 sps:$4 sm:$0xff]   ;;  %v1586_v6 = vld [vmem:[%s1849_s11 + $0xc] ss:$16 sps:$4 sm:$0xff]   ;;  %v1588_v7 = vld [vmem:[%s1849_s11] ss:$16 sps:$4 sm:$0xff]  }
  0x28   : > { %969 = vmatprep.subr.bf16.mxu0 %v1584_v5  ;;  %v1589_v8 = vld [vmem:[%s1849_s11 + $0x8] ss:$16 sps:$4 sm:$0xff]   ;;  %1055 = vmatprep.subr.bf16.mxu1 %v1586_v6  ;;  %v1590_v9 = vld [vmem:[%s1849_s11 + $0x24] ss:$16 sps:$4 sm:$0xff]   ;;  %v1592_v10 = vld [vmem:[%s1849_s11 + $0x2c] ss:$16 sps:$4 sm:$0xff]  }
  0x29   : > { %970 = vmatpush1.bf16.msra.mxu0 %v1588_v7  ;;  %1056 = vmatpush1.bf16.msra.mxu1 %v1589_v8  ;;  %v1594_v11 = vld [vmem:[%s1849_s11 + $0x20] ss:$16 sps:$4 sm:$0xff]   ;;  %v1595_v12 = vld [vmem:[%s1849_s11 + $0x28] ss:$16 sps:$4 sm:$0xff]   ;;  %v1596_v13 = vld [vmem:[%s1849_s11 + $0x44] ss:$16 sps:$4 sm:$0xff]  }
  0x2a   : > { %971 = vmatprep.subr.bf16.mxu0 %v1590_v9  ;;  %1057 = vmatprep.subr.bf16.mxu1 %v1592_v10  ;;  %v1598_v14 = vld [vmem:[%s1849_s11 + $0x4c] ss:$16 sps:$4 sm:$0xff]   ;;  %v1600_v15 = vld [vmem:[%s1849_s11 + $0x40] ss:$16 sps:$4 sm:$0xff]   ;;  %v1601_v16 = vld [vmem:[%s1849_s11 + $0x48] ss:$16 sps:$4 sm:$0xff]  }
  0x2b   : > { %v1602_v17 = vld [vmem:[%s1849_s11 + $0x64] ss:$16 sps:$4 sm:$0xff]   ;;  %v1604_v18 = vld [vmem:[%s1849_s11 + $0x6c] ss:$16 sps:$4 sm:$0xff]   ;;  %v1606_v19 = vld [vmem:[%s1849_s11 + $0x60] ss:$16 sps:$4 sm:$0xff]  }
  0x2c   : > { %v1607_v20 = vld [vmem:[%s1849_s11 + $0x68] ss:$16 sps:$4 sm:$0xff]   ;;  %v1608_v21 = vld [vmem:[%s1849_s11 + $0x84] ss:$16 sps:$4 sm:$0xff]   ;;  %v1610_v22 = vld [vmem:[%s1849_s11 + $0x8c] ss:$16 sps:$4 sm:$0xff]  }
  0x2d   : > { %972 = vmatpush1.bf16.msra.mxu0 %v1594_v11  ;;  %1058 = vmatpush1.bf16.msra.mxu1 %v1595_v12  ;;  %v1612_v23 = vld [vmem:[%s1849_s11 + $0x80] ss:$16 sps:$4 sm:$0xff]   ;;  %v1613_v24 = vld [vmem:[%s1849_s11 + $0x88] ss:$16 sps:$4 sm:$0xff]   ;;  %v1614_v25 = vld [vmem:[%s1849_s11 + $0xa4] ss:$16 sps:$4 sm:$0xff]  }
  0x2e   : > { %973 = vmatprep.subr.bf16.mxu0 %v1596_v13  ;;  %1059 = vmatprep.subr.bf16.mxu1 %v1598_v14  ;;  %v1616_v26 = vld [vmem:[%s1849_s11 + $0xac] ss:$16 sps:$4 sm:$0xff]   ;;  %v1618_v27 = vld [vmem:[%s1849_s11 + $0xa0] ss:$16 sps:$4 sm:$0xff]   ;;  %v1619_v28 = vld [vmem:[%s1849_s11 + $0xa8] ss:$16 sps:$4 sm:$0xff]  }
  0x2f   : > { %v1620_v29 = vld [vmem:[%s1849_s11 + $0xc4] ss:$16 sps:$4 sm:$0xff]   ;;  %v1622_v30 = vld [vmem:[%s1849_s11 + $0xcc] ss:$16 sps:$4 sm:$0xff]   ;;  %v1624_v31 = vld [vmem:[%s1849_s11 + $0xc0] ss:$16 sps:$4 sm:$0xff]  }
  0x30   : > { %v1625_v32 = vld [vmem:[%s1849_s11 + $0xc8] ss:$16 sps:$4 sm:$0xff]   ;;  %v1626_v33 = vld [vmem:[%s1849_s11 + $0xe4] ss:$16 sps:$4 sm:$0xff]   ;;  %v1628_v34 = vld [vmem:[%s1849_s11 + $0xec] ss:$16 sps:$4 sm:$0xff]  }
  0x31   : > { %974 = vmatpush1.bf16.msra.mxu0 %v1600_v15  ;;  %1060 = vmatpush1.bf16.msra.mxu1 %v1601_v16  ;;  %v1630_v35 = vld [vmem:[%s1849_s11 + $0xe0] ss:$16 sps:$4 sm:$0xff]   ;;  %v1631_v36 = vld [vmem:[%s1849_s11 + $0xe8] ss:$16 sps:$4 sm:$0xff]   ;;  %v1632_v37 = vld [vmem:[%s1849_s11 + $0x104] ss:$16 sps:$4 sm:$0xff]  }
  0x32   : > { %975 = vmatprep.subr.bf16.mxu0 %v1602_v17  ;;  %1061 = vmatprep.subr.bf16.mxu1 %v1604_v18  ;;  %v1634_v38 = vld [vmem:[%s1849_s11 + $0x10c] ss:$16 sps:$4 sm:$0xff]   ;;  %v1636_v39 = vld [vmem:[%s1849_s11 + $0x100] ss:$16 sps:$4 sm:$0xff]   ;;  %v1637_v40 = vld [vmem:[%s1849_s11 + $0x108] ss:$16 sps:$4 sm:$0xff]  }
  0x33   : > { %v1638_v41 = vld [vmem:[%s1849_s11 + $0x124] ss:$16 sps:$4 sm:$0xff]   ;;  %v1640_v42 = vld [vmem:[%s1849_s11 + $0x12c] ss:$16 sps:$4 sm:$0xff]   ;;  %v1642_v43 = vld [vmem:[%s1849_s11 + $0x120] ss:$16 sps:$4 sm:$0xff]  }
  0x34   : > { %v1643_v44 = vld [vmem:[%s1849_s11 + $0x128] ss:$16 sps:$4 sm:$0xff]   ;;  %v1644_v45 = vld [vmem:[%s1849_s11 + $0x144] ss:$16 sps:$4 sm:$0xff]   ;;  %v1646_v46 = vld [vmem:[%s1849_s11 + $0x14c] ss:$16 sps:$4 sm:$0xff]  }
  0x35   : > { %976 = vmatpush1.bf16.msra.mxu0 %v1606_v19  ;;  %1062 = vmatpush1.bf16.msra.mxu1 %v1607_v20  ;;  %v1648_v47 = vld [vmem:[%s1849_s11 + $0x140] ss:$16 sps:$4 sm:$0xff]   ;;  %v1649_v48 = vld [vmem:[%s1849_s11 + $0x148] ss:$16 sps:$4 sm:$0xff]   ;;  %v1650_v49 = vld [vmem:[%s1849_s11 + $0x164] ss:$16 sps:$4 sm:$0xff]  }
  0x36   : > { %977 = vmatprep.subr.bf16.mxu0 %v1608_v21  ;;  %1063 = vmatprep.subr.bf16.mxu1 %v1610_v22  ;;  %v1652_v50 = vld [vmem:[%s1849_s11 + $0x16c] ss:$16 sps:$4 sm:$0xff]   ;;  %v1654_v51 = vld [vmem:[%s1849_s11 + $0x160] ss:$16 sps:$4 sm:$0xff]   ;;  %v1655_v52 = vld [vmem:[%s1849_s11 + $0x168] ss:$16 sps:$4 sm:$0xff]  }
  0x37   : > { %v1682_v53 = vld [vmem:[%s1851_s12 + $0x4] ss:$12 sps:$4 sm:$0xff]   ;;  %v1680_v8 = vld [vmem:[%s1851_s12] ss:$12 sps:$4 sm:$0xff]   ;;  %v1773_v17 = vmov 0   ;;  %p1517_p11 = scmp.ne.s32.totalorder %s1762_s17, 5 }
  0x38   : > { %v1656_v54 = vld [vmem:[%s1849_s11 + $0x184] ss:$16 sps:$4 sm:$0xff]   ;;  %v1658_v55 = vld [vmem:[%s1849_s11 + $0x18c] ss:$16 sps:$4 sm:$0xff]   ;;  %1001 = vmatprep.mubr.bf16.mxu0 %v1682_v53  ;;  %1087 = vmatprep.mubr.bf16.mxu1 %v1682_v53  ;;  %v1660_v56 = vld [vmem:[%s1849_s11 + $0x180] ss:$16 sps:$4 sm:$0xff]  }
  0x39   : > { %978 = vmatpush1.bf16.msra.mxu0 %v1612_v23  ;;  %1064 = vmatpush1.bf16.msra.mxu1 %v1613_v24  ;;  %v1661_v57 = vld [vmem:[%s1849_s11 + $0x188] ss:$16 sps:$4 sm:$0xff]   ;;  %v1662_v58 = vld [vmem:[%s1849_s11 + $0x1a4] ss:$16 sps:$4 sm:$0xff]   ;;  %v1664_v59 = vld [vmem:[%s1849_s11 + $0x1ac] ss:$16 sps:$4 sm:$0xff]  }
  0x3a   : > { %979 = vmatprep.subr.bf16.mxu0 %v1614_v25  ;;  %1065 = vmatprep.subr.bf16.mxu1 %v1616_v26  ;;  %v1666_v60 = vld [vmem:[%s1849_s11 + $0x1a0] ss:$16 sps:$4 sm:$0xff]   ;;  %v1667_v61 = vld [vmem:[%s1849_s11 + $0x1a8] ss:$16 sps:$4 sm:$0xff]   ;;  %v1668_v62 = vld [vmem:[%s1849_s11 + $0x1c4] ss:$16 sps:$4 sm:$0xff]  }
  0x3b   : > { %v1670_v63 = vld [vmem:[%s1849_s11 + $0x1cc] ss:$16 sps:$4 sm:$0xff]   ;;  %v1672_v0 = vld [vmem:[%s1849_s11 + $0x1c0] ss:$16 sps:$4 sm:$0xff]   ;;  %v1673_v1 = vld [vmem:[%s1849_s11 + $0x1c8] ss:$16 sps:$4 sm:$0xff]  }
  0x3c   : > { %v1674_v2 = vld [vmem:[%s1849_s11 + $0x1e4] ss:$16 sps:$4 sm:$0xff]   ;;  %v1676_v3 = vld [vmem:[%s1849_s11 + $0x1ec] ss:$16 sps:$4 sm:$0xff]   ;;  %v1678_v4 = vld [vmem:[%s1849_s11 + $0x1e0] ss:$16 sps:$4 sm:$0xff]  }
  0x3d   : > { %980 = vmatpush1.bf16.msra.mxu0 %v1618_v27  ;;  %1066 = vmatpush1.bf16.msra.mxu1 %v1619_v28  ;;  %v1679_v5 = vld [vmem:[%s1849_s11 + $0x1e8] ss:$16 sps:$4 sm:$0xff]   ;;  %v1685_v6 = vld [vmem:[%s1849_s11 + $0x204] ss:$16 sps:$4 sm:$0xff]   ;;  %v1688_v7 = vld [vmem:[%s1849_s11 + $0x20c] ss:$16 sps:$4 sm:$0xff]  }
  0x3e   : > { %981 = vmatprep.subr.bf16.mxu0 %v1620_v29  ;;  %1067 = vmatprep.subr.bf16.mxu1 %v1622_v30  ;;  %v1683_v9 = vld [vmem:[%s1849_s11 + $0x200] ss:$16 sps:$4 sm:$0xff]   ;;  %v1686_v10 = vld [vmem:[%s1849_s11 + $0x208] ss:$16 sps:$4 sm:$0xff]   ;;  %v1691_v11 = vld [vmem:[%s1849_s11 + $0x224] ss:$16 sps:$4 sm:$0xff]  }
  0x3f   : > { %v1694_v12 = vld [vmem:[%s1849_s11 + $0x22c] ss:$16 sps:$4 sm:$0xff]   ;;  %v1689_v13 = vld [vmem:[%s1849_s11 + $0x220] ss:$16 sps:$4 sm:$0xff]   ;;  %v1692_v14 = vld [vmem:[%s1849_s11 + $0x228] ss:$16 sps:$4 sm:$0xff]  }
  0x40   : > { %v1697_v15 = vld [vmem:[%s1849_s11 + $0x244] ss:$16 sps:$4 sm:$0xff]   ;;  %v1700_v16 = vld [vmem:[%s1849_s11 + $0x24c] ss:$16 sps:$4 sm:$0xff]   ;;  %v1695_v18 = vld [vmem:[%s1849_s11 + $0x240] ss:$16 sps:$4 sm:$0xff]  }
  0x41   : > { %982 = vmatpush1.bf16.msra.mxu0 %v1624_v31  ;;  %1068 = vmatpush1.bf16.msra.mxu1 %v1625_v32  ;;  %v1698_v19 = vld [vmem:[%s1849_s11 + $0x248] ss:$16 sps:$4 sm:$0xff]   ;;  %v1703_v20 = vld [vmem:[%s1849_s11 + $0x264] ss:$16 sps:$4 sm:$0xff]   ;;  %v1706_v21 = vld [vmem:[%s1849_s11 + $0x26c] ss:$16 sps:$4 sm:$0xff]  }
  0x42   : > { %983 = vmatprep.subr.bf16.mxu0 %v1626_v33  ;;  %1069 = vmatprep.subr.bf16.mxu1 %v1628_v34  ;;  %v1701_v22 = vld [vmem:[%s1849_s11 + $0x260] ss:$16 sps:$4 sm:$0xff]   ;;  %v1704_v23 = vld [vmem:[%s1849_s11 + $0x268] ss:$16 sps:$4 sm:$0xff]   ;;  %v1709_v24 = vld [vmem:[%s1849_s11 + $0x284] ss:$16 sps:$4 sm:$0xff]  }
  0x43   : > { %v1712_v25 = vld [vmem:[%s1849_s11 + $0x28c] ss:$16 sps:$4 sm:$0xff]   ;;  %v1707_v26 = vld [vmem:[%s1849_s11 + $0x280] ss:$16 sps:$4 sm:$0xff]   ;;  %v1710_v27 = vld [vmem:[%s1849_s11 + $0x288] ss:$16 sps:$4 sm:$0xff]  }
  0x44   : > { %v1715_v28 = vld [vmem:[%s1849_s11 + $0x2a4] ss:$16 sps:$4 sm:$0xff]   ;;  %v1718_v29 = vld [vmem:[%s1849_s11 + $0x2ac] ss:$16 sps:$4 sm:$0xff]   ;;  %v1713_v30 = vld [vmem:[%s1849_s11 + $0x2a0] ss:$16 sps:$4 sm:$0xff]  }
  0x45   : > { %984 = vmatpush1.bf16.msra.mxu0 %v1630_v35  ;;  %1070 = vmatpush1.bf16.msra.mxu1 %v1631_v36  ;;  %v1716_v31 = vld [vmem:[%s1849_s11 + $0x2a8] ss:$16 sps:$4 sm:$0xff]   ;;  %v1721_v32 = vld [vmem:[%s1849_s11 + $0x2c4] ss:$16 sps:$4 sm:$0xff]   ;;  %v1724_v33 = vld [vmem:[%s1849_s11 + $0x2cc] ss:$16 sps:$4 sm:$0xff]  }
  0x46   : > { %985 = vmatprep.subr.bf16.mxu0 %v1632_v37  ;;  %1071 = vmatprep.subr.bf16.mxu1 %v1634_v38  ;;  %v1719_v34 = vld [vmem:[%s1849_s11 + $0x2c0] ss:$16 sps:$4 sm:$0xff]   ;;  %v1722_v35 = vld [vmem:[%s1849_s11 + $0x2c8] ss:$16 sps:$4 sm:$0xff]   ;;  %v1727_v36 = vld [vmem:[%s1849_s11 + $0x2e4] ss:$16 sps:$4 sm:$0xff]  }
  0x47   : > { %v1730_v37 = vld [vmem:[%s1849_s11 + $0x2ec] ss:$16 sps:$4 sm:$0xff]   ;;  %v1725_v38 = vld [vmem:[%s1849_s11 + $0x2e0] ss:$16 sps:$4 sm:$0xff]  }
  0x48   : > { %v370_v53 = vld [vmem:[#allocation2 + $0x28] sm:$0xff] }
  0x49   : > { %986 = vmatpush1.bf16.msra.mxu0 %v1636_v39  ;;  %1072 = vmatpush1.bf16.msra.mxu1 %v1637_v40  ;;  %v1728_v39 = vld [vmem:[%s1849_s11 + $0x2e8] ss:$16 sps:$4 sm:$0xff]  }
  0x4a   : > { %987 = vmatprep.subr.bf16.mxu0 %v1638_v41  ;;  %1073 = vmatprep.subr.bf16.mxu1 %v1640_v42  ;;  %v1731_v40 = vld [vmem:[%s1851_s12 + $0x8] ss:$12 sps:$4 sm:$0xff]  }
  0x4b   : > { %v365_v41 = vld [vmem:[#allocation2] sm:$0xff]  ;;  %v367_v42 = vld [vmem:[#allocation2 + $0x10] sm:$0xff] }
  0x4d   : > { %988 = vmatpush1.bf16.msra.mxu0 %v1642_v43  ;;  %1074 = vmatpush1.bf16.msra.mxu1 %v1643_v44  ;;  %v366_v43 = vld [vmem:[#allocation2 + $0x8] sm:$0xff]  ;;  %v368_v44 = vld [vmem:[#allocation2 + $0x18] sm:$0xff] }
  0x4e   : > { %989 = vmatprep.subr.bf16.mxu0 %v1644_v45  ;;  %1075 = vmatprep.subr.bf16.mxu1 %v1646_v46 }
  0x51   : > { %990 = vmatpush1.bf16.msra.mxu0 %v1648_v47  ;;  %1076 = vmatpush1.bf16.msra.mxu1 %v1649_v48  ;;  %v369_v47 = vld [vmem:[#allocation2 + $0x20] sm:$0xff]  ;;  %v371_v48 = vld [vmem:[#allocation2 + $0x30] sm:$0xff] }
  0x52   : > { %991 = vmatprep.subr.bf16.mxu0 %v1650_v49  ;;  %1077 = vmatprep.subr.bf16.mxu1 %v1652_v50 }
  0x55   : > { %992 = vmatpush1.bf16.msra.mxu0 %v1654_v51  ;;  %1078 = vmatpush1.bf16.msra.mxu1 %v1655_v52 }
  0x56   : > { %993 = vmatprep.subr.bf16.mxu0 %v1656_v54  ;;  %1079 = vmatprep.subr.bf16.mxu1 %v1658_v55  ;;  %v372_v54 = vld [vmem:[#allocation2 + $0x38] sm:$0xff] }
  0x59   : > { %994 = vmatpush1.bf16.msra.mxu0 %v1660_v56  ;;  %1080 = vmatpush1.bf16.msra.mxu1 %v1661_v57 }
  0x5a   : > { %995 = vmatprep.subr.bf16.mxu0 %v1662_v58  ;;  %1081 = vmatprep.subr.bf16.mxu1 %v1664_v59 }
  0x5d   : > { %996 = vmatpush1.bf16.msra.mxu0 %v1666_v60  ;;  %1082 = vmatpush1.bf16.msra.mxu1 %v1667_v61 }
  0x5e   : > { %997 = vmatprep.subr.bf16.mxu0 %v1668_v62  ;;  %1083 = vmatprep.subr.bf16.mxu1 %v1670_v63 }
  0x61   : > { %998 = vmatpush1.bf16.msra.mxu0 %v1672_v0  ;;  %1084 = vmatpush1.bf16.msra.mxu1 %v1673_v1  ;;  %v1171_v1 = vlaneseq (!%p1517_p11) }
  0x62   : > { %999 = vmatprep.subr.bf16.mxu0 %v1674_v2  ;;  %1085 = vmatprep.subr.bf16.mxu1 %v1676_v3  ;;  %v1169_v3 = vld [vmem:[%s1989_s2] sm:$0xf] (!%p1517_p11) }
  0x63   : > { %v1172_v2 = vshrl.u32 (!%p1517_p11), %v1171_v1, 7 }
  0x65   : > { %1000 = vmatpush1.bf16.msra.mxu0 %v1678_v4  ;;  %1086 = vmatpush1.bf16.msra.mxu1 %v1679_v5  ;;  %v1199_v4 = vld [vmem:[%s1990_s3] sm:$0xf] (!%p1517_p11) }
  0x66   : > { %1012 = vmatprep.subr.bf16.mxu0 %v1685_v6  ;;  %1098 = vmatprep.subr.bf16.mxu1 %v1688_v7  ;;  %v1173_v7 = vsub.s32 (!%p1517_p11), 0, %v1172_v2 }
  0x68   : > { %1002 = vmatmul.mubr.bf16.vlgmr.msra.gmra.mrb[0].mxu0 %v1680_v8  ;;  %1088 = vmatmul.mubr.bf16.vlgmr.msra.gmra.mrb[0].mxu1 %v1680_v8  ;;  %v1177_v8 = vsub.s32 (!%p1517_p11), 1, %v1172_v2 }
  0x69   : > { %1013 = vmatpush1.bf16.msra.mxu0 %v1683_v9  ;;  %1099 = vmatpush1.bf16.msra.mxu1 %v1686_v10  ;;  %v1181_v9 = vsub.s32 (!%p1517_p11), 2, %v1172_v2  ;;  %v1185_v10 = vsub.s32 (!%p1517_p11), 3, %v1172_v2 }
  0x6a   : > { %1014 = vmatprep.subr.bf16.mxu0 %v1691_v11  ;;  %1100 = vmatprep.subr.bf16.mxu1 %v1694_v12 }
  0x6b   : > { %1044 = vmatprep.mubr.bf16.mxu0 %v1773_v17  ;;  %1130 = vmatprep.mubr.bf16.mxu1 %v1773_v17  ;;  %v1208_v17 = vrot.slane (!%p1517_p11), %v1199_v4, %v1177_v8 }
  0x6d   : > { %1015 = vmatpush1.bf16.msra.mxu0 %v1689_v13  ;;  %1101 = vmatpush1.bf16.msra.mxu1 %v1692_v14  ;;  %v1174_v14 = vrot.slane (!%p1517_p11), %v1169_v3, %v1173_v7 }
  0x6e   : > { %1016 = vmatprep.subr.bf16.mxu0 %v1697_v15  ;;  %1102 = vmatprep.subr.bf16.mxu1 %v1700_v16  ;;  %v1178_v15 = vrot.slane (!%p1517_p11), %v1169_v3, %v1177_v8  ;;  %v1204_v16 = vrot.slane (!%p1517_p11), %v1199_v4, %v1173_v7 }
  0x71   : > { %1017 = vmatpush1.bf16.msra.mxu0 %v1695_v18  ;;  %1103 = vmatpush1.bf16.msra.mxu1 %v1698_v19 }
  0x72   : > { %1018 = vmatprep.subr.bf16.mxu0 %v1703_v20  ;;  %1104 = vmatprep.subr.bf16.mxu1 %v1706_v21  ;;  %v1182_v21 = vrot.slane (!%p1517_p11), %v1169_v3, %v1181_v9 }
  0x75   : > { %1019 = vmatpush1.bf16.msra.mxu0 %v1701_v22  ;;  %1105 = vmatpush1.bf16.msra.mxu1 %v1704_v23  ;;  %v1186_v22 = vrot.slane (!%p1517_p11), %v1169_v3, %v1185_v10  ;;  %v1212_v23 = vrot.slane (!%p1517_p11), %v1199_v4, %v1181_v9 }
  0x76   : > { %1020 = vmatprep.subr.bf16.mxu0 %v1709_v24  ;;  %1106 = vmatprep.subr.bf16.mxu1 %v1712_v25  ;;  %v1216_v24 = vrot.slane (!%p1517_p11), %v1199_v4, %v1185_v10 }
  0x79   : > { %1021 = vmatpush1.bf16.msra.mxu0 %v1707_v26  ;;  %1107 = vmatpush1.bf16.msra.mxu1 %v1710_v27 }
  0x7a   : > { %1022 = vmatprep.subr.bf16.mxu0 %v1715_v28  ;;  %1108 = vmatprep.subr.bf16.mxu1 %v1718_v29 }
  0x7d   : > { %1023 = vmatpush1.bf16.msra.mxu0 %v1713_v30  ;;  %1109 = vmatpush1.bf16.msra.mxu1 %v1716_v31 }
  0x7e   : > { %1024 = vmatprep.subr.bf16.mxu0 %v1721_v32  ;;  %1110 = vmatprep.subr.bf16.mxu1 %v1724_v33 }
  0x81   : > { %1025 = vmatpush1.bf16.msra.mxu0 %v1719_v34  ;;  %1111 = vmatpush1.bf16.msra.mxu1 %v1722_v35 }
  0x82   : > { %1026 = vmatprep.subr.bf16.mxu0 %v1727_v36  ;;  %1112 = vmatprep.subr.bf16.mxu1 %v1730_v37 }
  0x85   : > { %1027 = vmatpush1.bf16.msra.mxu0 %v1725_v38  ;;  %1113 = vmatpush1.bf16.msra.mxu1 %v1728_v39 }
  0x88   : > { %1045 = vmatmul.mubr.bf16.vlgmr.msra.gmra.mrb[0].mxu0 %v1731_v40  ;;  %1131 = vmatmul.mubr.bf16.vlgmr.msra.gmra.mrb[0].mxu1 %v1731_v40 }
 0x15b   : > { %v1046_v45 = vpop.f32.mrb[0].mxu0  ;;  %v1132_v46 = vpop.f32.mrb[0].mxu1  ;;  %1160 = sbr.rel (%p1517_p11) target bundleno = 370 (0x172), region = 70 }
 0x15c   : > { %v1141_v49 = vadd.f32 %v1046_v45, %v365_v41  ;;  %v1143_v50 = vadd.f32 %v1132_v46, %v367_v42  ;;  %v1048_v51 = vpop.f32.mrb[1].mxu0  ;;  %v1134_v52 = vpop.f32.mrb[1].mxu1 }
 0x15d   : > { %v1142_v55 = vadd.f32 %v1048_v51, %v366_v43  ;;  %v1144_v56 = vadd.f32 %v1134_v52, %v368_v44  ;;  %v1050_v57 = vpop.f32.mrb[2].mxu0  ;;  %v1136_v58 = vpop.f32.mrb[2].mxu1 }
 0x15e   : > { %1149 = vst [vmem:[#allocation2] sm:$0xff] %v1141_v49  ;;  %1151 = vst [vmem:[#allocation2 + $0x10] sm:$0xff] %v1143_v50  ;;  %v1145_v59 = vadd.f32 %v1050_v57, %v369_v47  ;;  %v1147_v60 = vadd.f32 %v1136_v58, %v371_v48  ;;  %v1052_v61 = vpop.f32.mrb[3].mxu0  ;;  %v1138_v62 = vpop.f32.mrb[3].mxu1 }
 0x15f   : > { %1150 = vst [vmem:[#allocation2 + $0x8] sm:$0xff] %v1142_v55  ;;  %1152 = vst [vmem:[#allocation2 + $0x18] sm:$0xff] %v1144_v56  ;;  %v1146_v63 = vadd.f32 %v1052_v61, %v370_v53  ;;  %v1148_v0 = vadd.f32 %v1138_v62, %v372_v54 }
 0x160   : > { %1153 = vst [vmem:[#allocation2 + $0x20] sm:$0xff] %v1145_v59  ;;  %1155 = vst [vmem:[#allocation2 + $0x30] sm:$0xff] %v1147_v60 }
 0x161   : > { %1154 = vst [vmem:[#allocation2 + $0x28] sm:$0xff] %v1146_v63  ;;  %1156 = vst [vmem:[#allocation2 + $0x38] sm:$0xff] %v1148_v0 }
 0x165   : > { %v1161_v5 = vld [vmem:[#allocation2] sm:$0xff]  ;;  %v1163_v11 = vld [vmem:[#allocation2 + $0x10] sm:$0xff] }
 0x166   : > { %v1162_v6 = vld [vmem:[#allocation2 + $0x8] sm:$0xff]  ;;  %v1164_v18 = vld [vmem:[#allocation2 + $0x18] sm:$0xff]  ;;  %v1191_v25 = vmul.f32 %v1174_v14, %v1161_v5  ;;  %v1193_v29 = vmul.f32 %v1182_v21, %v1163_v11 }
 0x167   : > { %v1165_v12 = vld [vmem:[#allocation2 + $0x20] sm:$0xff]  ;;  %v1167_v19 = vld [vmem:[#allocation2 + $0x30] sm:$0xff]  ;;  %v1192_v26 = vmul.f32 %v1178_v15, %v1162_v6  ;;  %v1194_v30 = vmul.f32 %v1186_v22, %v1164_v18 }
 0x168   : > { %v1166_v13 = vld [vmem:[#allocation2 + $0x28] sm:$0xff]  ;;  %v1168_v20 = vld [vmem:[#allocation2 + $0x38] sm:$0xff]  ;;  %v1195_v27 = vmul.f32 %v1174_v14, %v1165_v12  ;;  %v1197_v31 = vmul.f32 %v1182_v21, %v1167_v19  ;;  %v1221_v33 = vadd.f32 %v1204_v16, %v1191_v25  ;;  %v1223_v37 = vadd.f32 %v1212_v23, %v1193_v29 }
 0x169   : > { %v1196_v28 = vmul.f32 %v1178_v15, %v1166_v13  ;;  %v1198_v32 = vmul.f32 %v1186_v22, %v1168_v20  ;;  %v1222_v34 = vadd.f32 %v1208_v17, %v1192_v26  ;;  %v1224_v38 = vadd.f32 %v1216_v24, %v1194_v30 }
 0x16a   : > { %v1225_v35 = vadd.f32 %v1204_v16, %v1195_v27  ;;  %v1227_v39 = vadd.f32 %v1212_v23, %v1197_v31  ;;  %v1229_v41 = vmax.f32 %v1221_v33, 0.0  ;;  %v1231_v45 = vmax.f32 %v1223_v37, 0.0 }
 0x16b   : > { %v1226_v36 = vadd.f32 %v1208_v17, %v1196_v28  ;;  %v1228_v40 = vadd.f32 %v1216_v24, %v1198_v32  ;;  %v1230_v42 = vmax.f32 %v1222_v34, 0.0  ;;  %v1232_v46 = vmax.f32 %v1224_v38, 0.0 }
 0x16c   : > { %v1233_v43 = vmax.f32 %v1225_v35, 0.0  ;;  %v1235_v47 = vmax.f32 %v1227_v39, 0.0 }
 0x16d   : > { %v1234_v44 = vmax.f32 %v1226_v36, 0.0  ;;  %v1236_v48 = vmax.f32 %v1228_v40, 0.0  ;;  %v1528_v49 = vpack.c.bf16 %v1230_v42, %v1229_v41  ;;  %v1529_v51 = vpack.c.bf16 %v1232_v46, %v1231_v45 }
 0x16f   : > { %v1530_v50 = vpack.c.bf16 %v1234_v44, %v1233_v43  ;;  %v1531_v52 = vpack.c.bf16 %v1236_v48, %v1235_v47  ;;  %1261 = vst [vmem:[%s1991_s4] sm:$0xff] %v1528_v49  ;;  %1262 = vst [vmem:[%s1991_s4 + $0x8] sm:$0xff] %v1529_v51 }
 0x171   : > { %1263 = vst [vmem:[%s1991_s4 + $0x10] sm:$0xff] %v1530_v50  ;;  %1264 = vst [vmem:[%s1991_s4 + $0x18] sm:$0xff] %v1531_v52 }
 0x172 PF: > { %s14_s19 = sadd.s32 1, %s1770_s19   ;;  %s1992_s15 = smov %s1758_s16 }
 0x173   : > { %p11_p12 = scmp.ge.s32.totalorder %s14_s19, 8   ;;  %s1993_s16 = smov %s1834_s23 }
 0x174   : > { %s1994_s17 = smov %s1766_s18  ;;  %s1995_s18 = smov %s1997_s20 }
 0x175   :  { %13 = sbr.rel (!%p11_p12) target bundleno = 3 (0x3), region = 120 }

// kernel: resnet34_forward.50
= control target key start
LH: loop header
LB: loop body
LE: loop exit
PB: predicated region body
PF: predicated region fallthrough
CT: control target
= control target key end

     0   :  { %s1052_s1 = inlined_call_operand.vmem [shape: bf16[256,512], index: 1, kind: input, shape index: {}]   ;;  %s1053_s0 = inlined_call_operand.vmem [shape: bf16[16,256], index: 0, kind: input, shape index: {}]   ;;  %s1054_s2 = inlined_call_operand.vmem [shape: f32[1,512], index: 2, kind: input, shape index: {}]   ;;  %s1055_s3 = inlined_call_operand.vmem [shape: f32[1,512], index: 3, kind: input, shape index: {}]   ;;  %s1056_s4 = inlined_call_operand.vmem [shape: bf16[16,512], index: 4, kind: output, shape index: {}]  }
   0x1   :  { %v712_v0 = vld [vmem:[%s1052_s1 + $0x4] ss:$16 sps:$4 sm:$0xff]   ;;  %v714_v1 = vld [vmem:[%s1052_s1 + $0xc] ss:$16 sps:$4 sm:$0xff]   ;;  %v716_v2 = vld [vmem:[%s1052_s1] ss:$16 sps:$4 sm:$0xff]  }
   0x2   :  { %433 = vmatprep.subr.bf16.mxu0 %v712_v0  ;;  %v717_v3 = vld [vmem:[%s1052_s1 + $0x8] ss:$16 sps:$4 sm:$0xff]   ;;  %476 = vmatprep.subr.bf16.mxu1 %v714_v1  ;;  %v718_v4 = vld [vmem:[%s1052_s1 + $0x24] ss:$16 sps:$4 sm:$0xff]   ;;  %v720_v5 = vld [vmem:[%s1052_s1 + $0x2c] ss:$16 sps:$4 sm:$0xff]  }
   0x3   :  { %434 = vmatpush1.bf16.msra.mxu0 %v716_v2  ;;  %477 = vmatpush1.bf16.msra.mxu1 %v717_v3  ;;  %v722_v6 = vld [vmem:[%s1052_s1 + $0x20] ss:$16 sps:$4 sm:$0xff]   ;;  %v723_v7 = vld [vmem:[%s1052_s1 + $0x28] ss:$16 sps:$4 sm:$0xff]   ;;  %v724_v8 = vld [vmem:[%s1052_s1 + $0x44] ss:$16 sps:$4 sm:$0xff]   ;;  %v548_v2 = vlaneseq }
   0x4   :  { %435 = vmatprep.subr.bf16.mxu0 %v718_v4  ;;  %478 = vmatprep.subr.bf16.mxu1 %v720_v5  ;;  %v726_v9 = vld [vmem:[%s1052_s1 + $0x4c] ss:$16 sps:$4 sm:$0xff]   ;;  %v728_v10 = vld [vmem:[%s1052_s1 + $0x40] ss:$16 sps:$4 sm:$0xff]   ;;  %v729_v11 = vld [vmem:[%s1052_s1 + $0x48] ss:$16 sps:$4 sm:$0xff]  }
   0x5   :  { %v730_v12 = vld [vmem:[%s1052_s1 + $0x64] ss:$16 sps:$4 sm:$0xff]   ;;  %v732_v13 = vld [vmem:[%s1052_s1 + $0x6c] ss:$16 sps:$4 sm:$0xff]   ;;  %v734_v14 = vld [vmem:[%s1052_s1 + $0x60] ss:$16 sps:$4 sm:$0xff]  }
   0x6   :  { %v735_v15 = vld [vmem:[%s1052_s1 + $0x68] ss:$16 sps:$4 sm:$0xff]   ;;  %v736_v16 = vld [vmem:[%s1052_s1 + $0x84] ss:$16 sps:$4 sm:$0xff]   ;;  %v738_v17 = vld [vmem:[%s1052_s1 + $0x8c] ss:$16 sps:$4 sm:$0xff]  }
   0x7   :  { %436 = vmatpush1.bf16.msra.mxu0 %v722_v6  ;;  %479 = vmatpush1.bf16.msra.mxu1 %v723_v7  ;;  %v740_v18 = vld [vmem:[%s1052_s1 + $0x80] ss:$16 sps:$4 sm:$0xff]   ;;  %v741_v19 = vld [vmem:[%s1052_s1 + $0x88] ss:$16 sps:$4 sm:$0xff]   ;;  %v742_v20 = vld [vmem:[%s1052_s1 + $0xa4] ss:$16 sps:$4 sm:$0xff]  }
   0x8   :  { %437 = vmatprep.subr.bf16.mxu0 %v724_v8  ;;  %480 = vmatprep.subr.bf16.mxu1 %v726_v9  ;;  %v744_v21 = vld [vmem:[%s1052_s1 + $0xac] ss:$16 sps:$4 sm:$0xff]   ;;  %v746_v22 = vld [vmem:[%s1052_s1 + $0xa0] ss:$16 sps:$4 sm:$0xff]   ;;  %v747_v23 = vld [vmem:[%s1052_s1 + $0xa8] ss:$16 sps:$4 sm:$0xff]  }
   0x9   :  { %v748_v24 = vld [vmem:[%s1052_s1 + $0xc4] ss:$16 sps:$4 sm:$0xff]   ;;  %v750_v25 = vld [vmem:[%s1052_s1 + $0xcc] ss:$16 sps:$4 sm:$0xff]   ;;  %v752_v26 = vld [vmem:[%s1052_s1 + $0xc0] ss:$16 sps:$4 sm:$0xff]  }
   0xa   :  { %v753_v27 = vld [vmem:[%s1052_s1 + $0xc8] ss:$16 sps:$4 sm:$0xff]   ;;  %v754_v28 = vld [vmem:[%s1052_s1 + $0xe4] ss:$16 sps:$4 sm:$0xff]   ;;  %v756_v29 = vld [vmem:[%s1052_s1 + $0xec] ss:$16 sps:$4 sm:$0xff]  }
   0xb   :  { %438 = vmatpush1.bf16.msra.mxu0 %v728_v10  ;;  %481 = vmatpush1.bf16.msra.mxu1 %v729_v11  ;;  %v758_v30 = vld [vmem:[%s1052_s1 + $0xe0] ss:$16 sps:$4 sm:$0xff]   ;;  %v759_v31 = vld [vmem:[%s1052_s1 + $0xe8] ss:$16 sps:$4 sm:$0xff]   ;;  %v760_v32 = vld [vmem:[%s1052_s1 + $0x104] ss:$16 sps:$4 sm:$0xff]  }
   0xc   :  { %439 = vmatprep.subr.bf16.mxu0 %v730_v12  ;;  %482 = vmatprep.subr.bf16.mxu1 %v732_v13  ;;  %v762_v33 = vld [vmem:[%s1052_s1 + $0x10c] ss:$16 sps:$4 sm:$0xff]   ;;  %v764_v34 = vld [vmem:[%s1052_s1 + $0x100] ss:$16 sps:$4 sm:$0xff]   ;;  %v765_v35 = vld [vmem:[%s1052_s1 + $0x108] ss:$16 sps:$4 sm:$0xff]  }
   0xd   :  { %v766_v36 = vld [vmem:[%s1052_s1 + $0x124] ss:$16 sps:$4 sm:$0xff]   ;;  %v768_v37 = vld [vmem:[%s1052_s1 + $0x12c] ss:$16 sps:$4 sm:$0xff]   ;;  %v770_v38 = vld [vmem:[%s1052_s1 + $0x120] ss:$16 sps:$4 sm:$0xff]  }
   0xe   :  { %v771_v39 = vld [vmem:[%s1052_s1 + $0x128] ss:$16 sps:$4 sm:$0xff]   ;;  %v772_v40 = vld [vmem:[%s1052_s1 + $0x144] ss:$16 sps:$4 sm:$0xff]   ;;  %v774_v41 = vld [vmem:[%s1052_s1 + $0x14c] ss:$16 sps:$4 sm:$0xff]  }
   0xf   :  { %440 = vmatpush1.bf16.msra.mxu0 %v734_v14  ;;  %483 = vmatpush1.bf16.msra.mxu1 %v735_v15  ;;  %v776_v42 = vld [vmem:[%s1052_s1 + $0x140] ss:$16 sps:$4 sm:$0xff]   ;;  %v777_v43 = vld [vmem:[%s1052_s1 + $0x148] ss:$16 sps:$4 sm:$0xff]   ;;  %v778_v44 = vld [vmem:[%s1052_s1 + $0x164] ss:$16 sps:$4 sm:$0xff]  }
  0x10   :  { %441 = vmatprep.subr.bf16.mxu0 %v736_v16  ;;  %484 = vmatprep.subr.bf16.mxu1 %v738_v17  ;;  %v780_v45 = vld [vmem:[%s1052_s1 + $0x16c] ss:$16 sps:$4 sm:$0xff]   ;;  %v782_v47 = vld [vmem:[%s1052_s1 + $0x160] ss:$16 sps:$4 sm:$0xff]   ;;  %v783_v48 = vld [vmem:[%s1052_s1 + $0x168] ss:$16 sps:$4 sm:$0xff]  }
  0x11   :  { %v810_v46 = vld [vmem:[%s1053_s0 + $0x4] ss:$8 sps:$4 sm:$0xff]   ;;  %v788_v51 = vld [vmem:[%s1052_s1 + $0x180] ss:$16 sps:$4 sm:$0xff]   ;;  %v789_v52 = vld [vmem:[%s1052_s1 + $0x188] ss:$16 sps:$4 sm:$0xff]  }
  0x12   :  { %v784_v49 = vld [vmem:[%s1052_s1 + $0x184] ss:$16 sps:$4 sm:$0xff]   ;;  %v786_v50 = vld [vmem:[%s1052_s1 + $0x18c] ss:$16 sps:$4 sm:$0xff]   ;;  %465 = vmatprep.mubr.bf16.mxu0 %v810_v46  ;;  %508 = vmatprep.mubr.bf16.mxu1 %v810_v46  ;;  %v794_v55 = vld [vmem:[%s1052_s1 + $0x1a0] ss:$16 sps:$4 sm:$0xff]  }
  0x13   :  { %442 = vmatpush1.bf16.msra.mxu0 %v740_v18  ;;  %485 = vmatpush1.bf16.msra.mxu1 %v741_v19  ;;  %v790_v53 = vld [vmem:[%s1052_s1 + $0x1a4] ss:$16 sps:$4 sm:$0xff]   ;;  %v792_v54 = vld [vmem:[%s1052_s1 + $0x1ac] ss:$16 sps:$4 sm:$0xff]   ;;  %v795_v56 = vld [vmem:[%s1052_s1 + $0x1a8] ss:$16 sps:$4 sm:$0xff]  }
  0x14   :  { %443 = vmatprep.subr.bf16.mxu0 %v742_v20  ;;  %486 = vmatprep.subr.bf16.mxu1 %v744_v21  ;;  %v796_v57 = vld [vmem:[%s1052_s1 + $0x1c4] ss:$16 sps:$4 sm:$0xff]   ;;  %v798_v58 = vld [vmem:[%s1052_s1 + $0x1cc] ss:$16 sps:$4 sm:$0xff]   ;;  %v800_v59 = vld [vmem:[%s1052_s1 + $0x1c0] ss:$16 sps:$4 sm:$0xff]  }
  0x15   :  { %v801_v60 = vld [vmem:[%s1052_s1 + $0x1c8] ss:$16 sps:$4 sm:$0xff]   ;;  %v802_v61 = vld [vmem:[%s1052_s1 + $0x1e4] ss:$16 sps:$4 sm:$0xff]   ;;  %v804_v62 = vld [vmem:[%s1052_s1 + $0x1ec] ss:$16 sps:$4 sm:$0xff]  }
  0x16   :  { %v806_v63 = vld [vmem:[%s1052_s1 + $0x1e0] ss:$16 sps:$4 sm:$0xff]   ;;  %v807_v0 = vld [vmem:[%s1052_s1 + $0x1e8] ss:$16 sps:$4 sm:$0xff]   ;;  %v549_v3 = vshrl.u32 %v548_v2, 7 }
  0x17   :  { %444 = vmatpush1.bf16.msra.mxu0 %v746_v22  ;;  %487 = vmatpush1.bf16.msra.mxu1 %v747_v23  ;;  %v808_v1 = vld [vmem:[%s1053_s0] ss:$8 sps:$4 sm:$0xff]  }
  0x18   :  { %445 = vmatprep.subr.bf16.mxu0 %v748_v24  ;;  %488 = vmatprep.subr.bf16.mxu1 %v750_v25  ;;  %v550_v4 = vsub.s32 0, %v549_v3  ;;  %v558_v5 = vsub.s32 2, %v549_v3  ;;  %v546_v6 = vld [vmem:[%s1054_s2] sm:$0xf]  ;;  %v554_v7 = vsub.s32 1, %v549_v3  ;;  %v562_v8 = vsub.s32 3, %v549_v3 }
  0x19   :  { %v576_v9 = vld [vmem:[%s1055_s3] sm:$0xf] }
  0x1a   :  { %v551_v10 = vrot.slane %v546_v6, %v550_v4  ;;  %v559_v11 = vrot.slane %v546_v6, %v558_v5  ;;  %v555_v12 = vrot.slane %v546_v6, %v554_v7  ;;  %v563_v13 = vrot.slane %v546_v6, %v562_v8 }
  0x1b   :  { %446 = vmatpush1.bf16.msra.mxu0 %v752_v26  ;;  %489 = vmatpush1.bf16.msra.mxu1 %v753_v27  ;;  %v581_v14 = vrot.slane %v576_v9, %v550_v4  ;;  %v589_v15 = vrot.slane %v576_v9, %v558_v5  ;;  %v585_v18 = vrot.slane %v576_v9, %v554_v7 }
  0x1c   :  { %447 = vmatprep.subr.bf16.mxu0 %v754_v28  ;;  %490 = vmatprep.subr.bf16.mxu1 %v756_v29  ;;  %v593_v19 = vrot.slane %v576_v9, %v562_v8 }
  0x1f   :  { %448 = vmatpush1.bf16.msra.mxu0 %v758_v30  ;;  %491 = vmatpush1.bf16.msra.mxu1 %v759_v31 }
  0x20   :  { %449 = vmatprep.subr.bf16.mxu0 %v760_v32  ;;  %492 = vmatprep.subr.bf16.mxu1 %v762_v33 }
  0x23   :  { %450 = vmatpush1.bf16.msra.mxu0 %v764_v34  ;;  %493 = vmatpush1.bf16.msra.mxu1 %v765_v35 }
  0x24   :  { %451 = vmatprep.subr.bf16.mxu0 %v766_v36  ;;  %494 = vmatprep.subr.bf16.mxu1 %v768_v37 }
  0x27   :  { %452 = vmatpush1.bf16.msra.mxu0 %v770_v38  ;;  %495 = vmatpush1.bf16.msra.mxu1 %v771_v39 }
  0x28   :  { %453 = vmatprep.subr.bf16.mxu0 %v772_v40  ;;  %496 = vmatprep.subr.bf16.mxu1 %v774_v41 }
  0x2b   :  { %454 = vmatpush1.bf16.msra.mxu0 %v776_v42  ;;  %497 = vmatpush1.bf16.msra.mxu1 %v777_v43 }
  0x2c   :  { %455 = vmatprep.subr.bf16.mxu0 %v778_v44  ;;  %498 = vmatprep.subr.bf16.mxu1 %v780_v45 }
  0x2f   :  { %456 = vmatpush1.bf16.msra.mxu0 %v782_v47  ;;  %499 = vmatpush1.bf16.msra.mxu1 %v783_v48 }
  0x30   :  { %457 = vmatprep.subr.bf16.mxu0 %v784_v49  ;;  %500 = vmatprep.subr.bf16.mxu1 %v786_v50 }
  0x33   :  { %458 = vmatpush1.bf16.msra.mxu0 %v788_v51  ;;  %501 = vmatpush1.bf16.msra.mxu1 %v789_v52 }
  0x34   :  { %459 = vmatprep.subr.bf16.mxu0 %v790_v53  ;;  %502 = vmatprep.subr.bf16.mxu1 %v792_v54 }
  0x37   :  { %460 = vmatpush1.bf16.msra.mxu0 %v794_v55  ;;  %503 = vmatpush1.bf16.msra.mxu1 %v795_v56 }
  0x38   :  { %461 = vmatprep.subr.bf16.mxu0 %v796_v57  ;;  %504 = vmatprep.subr.bf16.mxu1 %v798_v58 }
  0x3b   :  { %462 = vmatpush1.bf16.msra.mxu0 %v800_v59  ;;  %505 = vmatpush1.bf16.msra.mxu1 %v801_v60 }
  0x3c   :  { %463 = vmatprep.subr.bf16.mxu0 %v802_v61  ;;  %506 = vmatprep.subr.bf16.mxu1 %v804_v62 }
  0x3f   :  { %464 = vmatpush1.bf16.msra.mxu0 %v806_v63  ;;  %507 = vmatpush1.bf16.msra.mxu1 %v807_v0 }
  0x42   :  { %466 = vmatmul.mubr.bf16.vlgmr.msra.gmra.mrb[0].mxu0 %v808_v1  ;;  %509 = vmatmul.mubr.bf16.vlgmr.msra.gmra.mrb[0].mxu1 %v808_v1 }
 0x115   :  { %v467_v16 = vpop.f32.mrb[0].mxu0  ;;  %v510_v17 = vpop.f32.mrb[0].mxu1 }
 0x116   :  { %v568_v20 = vmul.f32 %v551_v10, %v467_v16  ;;  %v570_v21 = vmul.f32 %v559_v11, %v510_v17  ;;  %v469_v22 = vpop.f32.mrb[1].mxu0  ;;  %v512_v23 = vpop.f32.mrb[1].mxu1 }
 0x117   :  { %v569_v24 = vmul.f32 %v555_v12, %v469_v22  ;;  %v571_v25 = vmul.f32 %v563_v13, %v512_v23  ;;  %v471_v26 = vpop.f32.mrb[2].mxu0  ;;  %v514_v27 = vpop.f32.mrb[2].mxu1 }
 0x118   :  { %v598_v28 = vadd.f32 %v581_v14, %v568_v20  ;;  %v600_v29 = vadd.f32 %v589_v15, %v570_v21  ;;  %v572_v30 = vmul.f32 %v551_v10, %v471_v26  ;;  %v574_v31 = vmul.f32 %v559_v11, %v514_v27  ;;  %v473_v32 = vpop.f32.mrb[3].mxu0  ;;  %v516_v33 = vpop.f32.mrb[3].mxu1 }
 0x119   :  { %v599_v34 = vadd.f32 %v585_v18, %v569_v24  ;;  %v601_v35 = vadd.f32 %v593_v19, %v571_v25  ;;  %v573_v36 = vmul.f32 %v555_v12, %v473_v32  ;;  %v575_v37 = vmul.f32 %v563_v13, %v516_v33 }
 0x11a   :  { %v602_v38 = vadd.f32 %v581_v14, %v572_v30  ;;  %v604_v39 = vadd.f32 %v589_v15, %v574_v31 }
 0x11b   :  { %v708_v40 = vpack.c.bf16 %v599_v34, %v598_v28  ;;  %v709_v41 = vpack.c.bf16 %v601_v35, %v600_v29  ;;  %v603_v42 = vadd.f32 %v585_v18, %v573_v36  ;;  %v605_v43 = vadd.f32 %v593_v19, %v575_v37 }
 0x11d   :  { %630 = vst [vmem:[%s1056_s4] sm:$0xff] %v708_v40  ;;  %631 = vst [vmem:[%s1056_s4 + $0x8] sm:$0xff] %v709_v41  ;;  %v710_v44 = vpack.c.bf16 %v603_v42, %v602_v38  ;;  %v711_v45 = vpack.c.bf16 %v605_v43, %v604_v39 }
 0x11f   :  { %632 = vst [vmem:[%s1056_s4 + $0x10] sm:$0xff] %v710_v44  ;;  %633 = vst [vmem:[%s1056_s4 + $0x18] sm:$0xff] %v711_v45 }

// kernel: resnet34_forward.51
= control target key start
LH: loop header
LB: loop body
LE: loop exit
PB: predicated region body
PF: predicated region fallthrough
CT: control target
= control target key end

     0   :  { %s2175_s18 = smov 0   ;;  %s2177_s19 = smov 0   ;;  %s2408_s0 = inlined_call_operand.vmem [shape: bf16[16,4608], index: 0, kind: input, shape index: {}]   ;;  %s2409_s1 = inlined_call_operand.vmem [shape: bf16[4608,512], index: 1, kind: input, shape index: {}]   ;;  %s2410_s2 = inlined_call_operand.vmem [shape: f32[1,512], index: 2, kind: input, shape index: {}]   ;;  %s2411_s3 = inlined_call_operand.vmem [shape: f32[1,512], index: 3, kind: input, shape index: {}]   ;;  %s2412_s4 = inlined_call_operand.vmem [shape: bf16[16,512], index: 4, kind: input, shape index: {}]   ;;  %s2413_s5 = inlined_call_operand.vmem [shape: bf16[16,512], index: 5, kind: output, shape index: {}]  }
   0x1   :  { %s2179_s20 = smov 0   ;;  %s2181_s21 = smov 0  }
   0x2   :  { %s2183_s22 = smov 0  }
   0x3 LB: > { %s27_s23 = sadd.s32 1, %s2138_s21  ;;  %p50_p1 = scmp.ne.s32.totalorder %s2130_s19, %s2126_s18  ;;  %s2142_s22 = sphi %s2183_s22, %s15_s22   ;;  %s2138_s21 = sphi %s2181_s21, %s2417_s21   ;;  %s2134_s20 = sphi %s2179_s20, %s2416_s20   ;;  %s2130_s19 = sphi %s2177_s19, %s2415_s19   ;;  %s2126_s18 = sphi %s2175_s18, %s2414_s18  }
   0x4   : > { %p28_p0 = scmp.ge.s32.totalorder %s27_s23, 9  ;;  %p51_p2 = scmp.eq.s32.totalorder %s2142_s22, 0 }
   0x5   : > { %s43_s25 = sadd.s32 1, %s2130_s19  ;;  %p1700_p5 = scmp.ge.s32.totalorder %s2142_s22, 9 }
   0x6   : > { %s2419_s23 = smov (%p28_p0, %s27_s23), 0  ;;  %p52_p3 = por %p51_p2, %p50_p1 }
   0x7   : > { %s39_s24 = ssub.s32 %s2138_s21, %s2419_s23  ;;  %243 = sbr.rel (%p1700_p5) target bundleno = 21 (0x15), region = 28 }
   0x8   : > { %p41_p4 = scmp.eq.s32.totalorder %s39_s24, 0 }
   0xa   : > { %s2210_s26 = scalar_select %p41_p4, %s2130_s19, %s43_s25  }
   0xe   : > { %246 = sbr.rel (!%p52_p3) target bundleno = 21 (0x15), region = 32  ;;  %s248_s27 = sand.u32 (%p52_p3), 1, %s2130_s19  }
   0xf   : > { %s1851_s28 = sshll.u32 (%p52_p3), %s2138_s21, 4  ;;  %s1701_s29 = sshll.u32 (%p52_p3), %s248_s27, 5 }
  0x10   : > { %s256_s7 = scalar_lea.vmem (%p52_p3), %s2408_s0, %s1851_s28  ;;  %s250_s8 = scalar_lea.vmem (%p52_p3), [#allocation3], %s1701_s29 }
  0x11   : > { %v269_v0 = vld [vmem:[%s256_s7] sm:$0xff] (%p52_p3)  ;;  %v271_v1 = vld [vmem:[%s256_s7 + $0x8] sm:$0xff] (%p52_p3)  ;;  %v273_v2 = vld [vmem:[%s256_s7 + $0x90] sm:$0xff] (%p52_p3) }
  0x12   : > { %270 = vst [vmem:[%s250_s8] sm:$0xff] (%p52_p3), %v269_v0  ;;  %272 = vst [vmem:[%s250_s8 + $0x8] sm:$0xff] (%p52_p3), %v271_v1  ;;  %v275_v3 = vld [vmem:[%s256_s7 + $0x98] sm:$0xff] (%p52_p3) }
  0x13   : > { %274 = vst [vmem:[%s250_s8 + $0x10] sm:$0xff] (%p52_p3), %v273_v2  ;;  %276 = vst [vmem:[%s250_s8 + $0x18] sm:$0xff] (%p52_p3), %v275_v3 }
  0x15 PF: > { %p1704_p6 = scmp.ge.s32.totalorder %s2142_s22, 1  ;;  %p296_p7 = scmp.lt.s32.totalorder %s2142_s22, 10 }
  0x17   : > { %p297_p8 = pnand %p1704_p6, %p296_p7 }
  0x18   : > { %s303_s9 = sand.u32 (!%p297_p8), 1, %s2126_s18   ;;  %s1706_s10 = sshll.u32 (!%p297_p8), %s2134_s20, 6 }
  0x19   : > { %300 = sbr.rel (%p297_p8) target bundleno = 404 (0x194), region = 59  ;;  %s1705_s11 = sshll.u32 (!%p297_p8), %s303_s9, 5 }
  0x1a   : > { %p367_p9 = scmp.lt.s32.totalorder (!%p297_p8), %s1706_s10, 575  ;;  %s2227_s16 = scalar_lea.vmem (!%p297_p8), [#allocation3], %s1705_s11 }
  0x1b   : > { %p1709_p10 = scmp.ne.s32.totalorder (!%p297_p8), %s2134_s20, 0 }
  0x20   : > { %s2421_s10 = smov (!%p367_p9, %s1706_s10), 575  ;;  %414 = sbr.rel (%p1709_p10) target bundleno = 39 (0x27), region = 67 }
  0x21   : > { %s1852_s12 = sshll.u32 %s2421_s10, 4  ;;  %v2144_v4 = vmov (!%p1709_p10), 0.0  }
  0x22   : > { %s2225_s15 = scalar_lea.vmem %s2409_s1, %s1852_s12  ;;  %415 = vst [vmem:[#allocation2] sm:$0xff] (!%p1709_p10), %v2144_v4  ;;  %416 = vst [vmem:[#allocation2 + $0x8] sm:$0xff] (!%p1709_p10), %v2144_v4 }
  0x23   : > { %417 = vst [vmem:[#allocation2 + $0x10] sm:$0xff] (!%p1709_p10), %v2144_v4  ;;  %418 = vst [vmem:[#allocation2 + $0x18] sm:$0xff] (!%p1709_p10), %v2144_v4 }
  0x24   : > { %419 = vst [vmem:[#allocation2 + $0x20] sm:$0xff] (!%p1709_p10), %v2144_v4  ;;  %420 = vst [vmem:[#allocation2 + $0x28] sm:$0xff] (!%p1709_p10), %v2144_v4 }
  0x25   : > { %421 = vst [vmem:[#allocation2 + $0x30] sm:$0xff] (!%p1709_p10), %v2144_v4  ;;  %422 = vst [vmem:[#allocation2 + $0x38] sm:$0xff] (!%p1709_p10), %v2144_v4 }
  0x27 PF: > { %v1906_v5 = vld [vmem:[%s2225_s15 + $0x4] ss:$16 sps:$4 sm:$0xff]   ;;  %v1908_v6 = vld [vmem:[%s2225_s15 + $0xc] ss:$16 sps:$4 sm:$0xff]   ;;  %v1910_v7 = vld [vmem:[%s2225_s15] ss:$16 sps:$4 sm:$0xff]  }
  0x28   : > { %1223 = vmatprep.subr.bf16.mxu0 %v1906_v5  ;;  %v1911_v8 = vld [vmem:[%s2225_s15 + $0x8] ss:$16 sps:$4 sm:$0xff]   ;;  %1309 = vmatprep.subr.bf16.mxu1 %v1908_v6  ;;  %v1912_v9 = vld [vmem:[%s2225_s15 + $0x24] ss:$16 sps:$4 sm:$0xff]   ;;  %v1914_v10 = vld [vmem:[%s2225_s15 + $0x2c] ss:$16 sps:$4 sm:$0xff]  }
  0x29   : > { %1224 = vmatpush1.bf16.msra.mxu0 %v1910_v7  ;;  %1310 = vmatpush1.bf16.msra.mxu1 %v1911_v8  ;;  %v1916_v11 = vld [vmem:[%s2225_s15 + $0x20] ss:$16 sps:$4 sm:$0xff]   ;;  %v1917_v12 = vld [vmem:[%s2225_s15 + $0x28] ss:$16 sps:$4 sm:$0xff]   ;;  %v1918_v13 = vld [vmem:[%s2225_s15 + $0x44] ss:$16 sps:$4 sm:$0xff]  }
  0x2a   : > { %1225 = vmatprep.subr.bf16.mxu0 %v1912_v9  ;;  %1311 = vmatprep.subr.bf16.mxu1 %v1914_v10  ;;  %v1920_v14 = vld [vmem:[%s2225_s15 + $0x4c] ss:$16 sps:$4 sm:$0xff]   ;;  %v1922_v15 = vld [vmem:[%s2225_s15 + $0x40] ss:$16 sps:$4 sm:$0xff]   ;;  %v1923_v16 = vld [vmem:[%s2225_s15 + $0x48] ss:$16 sps:$4 sm:$0xff]  }
  0x2b   : > { %v1924_v17 = vld [vmem:[%s2225_s15 + $0x64] ss:$16 sps:$4 sm:$0xff]   ;;  %v1926_v18 = vld [vmem:[%s2225_s15 + $0x6c] ss:$16 sps:$4 sm:$0xff]   ;;  %v1928_v19 = vld [vmem:[%s2225_s15 + $0x60] ss:$16 sps:$4 sm:$0xff]  }
  0x2c   : > { %v1929_v20 = vld [vmem:[%s2225_s15 + $0x68] ss:$16 sps:$4 sm:$0xff]   ;;  %v1930_v21 = vld [vmem:[%s2225_s15 + $0x84] ss:$16 sps:$4 sm:$0xff]   ;;  %v1932_v22 = vld [vmem:[%s2225_s15 + $0x8c] ss:$16 sps:$4 sm:$0xff]  }
  0x2d   : > { %1226 = vmatpush1.bf16.msra.mxu0 %v1916_v11  ;;  %1312 = vmatpush1.bf16.msra.mxu1 %v1917_v12  ;;  %v1934_v23 = vld [vmem:[%s2225_s15 + $0x80] ss:$16 sps:$4 sm:$0xff]   ;;  %v1935_v24 = vld [vmem:[%s2225_s15 + $0x88] ss:$16 sps:$4 sm:$0xff]   ;;  %v1936_v25 = vld [vmem:[%s2225_s15 + $0xa4] ss:$16 sps:$4 sm:$0xff]  }
  0x2e   : > { %1227 = vmatprep.subr.bf16.mxu0 %v1918_v13  ;;  %1313 = vmatprep.subr.bf16.mxu1 %v1920_v14  ;;  %v1938_v26 = vld [vmem:[%s2225_s15 + $0xac] ss:$16 sps:$4 sm:$0xff]   ;;  %v1940_v27 = vld [vmem:[%s2225_s15 + $0xa0] ss:$16 sps:$4 sm:$0xff]   ;;  %v1941_v28 = vld [vmem:[%s2225_s15 + $0xa8] ss:$16 sps:$4 sm:$0xff]  }
  0x2f   : > { %v1942_v29 = vld [vmem:[%s2225_s15 + $0xc4] ss:$16 sps:$4 sm:$0xff]   ;;  %v1944_v30 = vld [vmem:[%s2225_s15 + $0xcc] ss:$16 sps:$4 sm:$0xff]   ;;  %v1946_v31 = vld [vmem:[%s2225_s15 + $0xc0] ss:$16 sps:$4 sm:$0xff]  }
  0x30   : > { %v1947_v32 = vld [vmem:[%s2225_s15 + $0xc8] ss:$16 sps:$4 sm:$0xff]   ;;  %v1948_v33 = vld [vmem:[%s2225_s15 + $0xe4] ss:$16 sps:$4 sm:$0xff]   ;;  %v1950_v34 = vld [vmem:[%s2225_s15 + $0xec] ss:$16 sps:$4 sm:$0xff]  }
  0x31   : > { %1228 = vmatpush1.bf16.msra.mxu0 %v1922_v15  ;;  %1314 = vmatpush1.bf16.msra.mxu1 %v1923_v16  ;;  %v1952_v35 = vld [vmem:[%s2225_s15 + $0xe0] ss:$16 sps:$4 sm:$0xff]   ;;  %v1953_v36 = vld [vmem:[%s2225_s15 + $0xe8] ss:$16 sps:$4 sm:$0xff]   ;;  %v1954_v37 = vld [vmem:[%s2225_s15 + $0x104] ss:$16 sps:$4 sm:$0xff]  }
  0x32   : > { %1229 = vmatprep.subr.bf16.mxu0 %v1924_v17  ;;  %1315 = vmatprep.subr.bf16.mxu1 %v1926_v18  ;;  %v1956_v38 = vld [vmem:[%s2225_s15 + $0x10c] ss:$16 sps:$4 sm:$0xff]   ;;  %v1958_v39 = vld [vmem:[%s2225_s15 + $0x100] ss:$16 sps:$4 sm:$0xff]   ;;  %v1959_v40 = vld [vmem:[%s2225_s15 + $0x108] ss:$16 sps:$4 sm:$0xff]  }
  0x33   : > { %v1960_v41 = vld [vmem:[%s2225_s15 + $0x124] ss:$16 sps:$4 sm:$0xff]   ;;  %v1962_v42 = vld [vmem:[%s2225_s15 + $0x12c] ss:$16 sps:$4 sm:$0xff]   ;;  %v1964_v43 = vld [vmem:[%s2225_s15 + $0x120] ss:$16 sps:$4 sm:$0xff]  }
  0x34   : > { %v1965_v44 = vld [vmem:[%s2225_s15 + $0x128] ss:$16 sps:$4 sm:$0xff]   ;;  %v1966_v45 = vld [vmem:[%s2225_s15 + $0x144] ss:$16 sps:$4 sm:$0xff]   ;;  %v1968_v46 = vld [vmem:[%s2225_s15 + $0x14c] ss:$16 sps:$4 sm:$0xff]  }
  0x35   : > { %1230 = vmatpush1.bf16.msra.mxu0 %v1928_v19  ;;  %1316 = vmatpush1.bf16.msra.mxu1 %v1929_v20  ;;  %v1970_v47 = vld [vmem:[%s2225_s15 + $0x140] ss:$16 sps:$4 sm:$0xff]   ;;  %v1971_v48 = vld [vmem:[%s2225_s15 + $0x148] ss:$16 sps:$4 sm:$0xff]   ;;  %v1972_v49 = vld [vmem:[%s2225_s15 + $0x164] ss:$16 sps:$4 sm:$0xff]  }
  0x36   : > { %1231 = vmatprep.subr.bf16.mxu0 %v1930_v21  ;;  %1317 = vmatprep.subr.bf16.mxu1 %v1932_v22  ;;  %v1974_v50 = vld [vmem:[%s2225_s15 + $0x16c] ss:$16 sps:$4 sm:$0xff]   ;;  %v1976_v51 = vld [vmem:[%s2225_s15 + $0x160] ss:$16 sps:$4 sm:$0xff]   ;;  %v1977_v52 = vld [vmem:[%s2225_s15 + $0x168] ss:$16 sps:$4 sm:$0xff]  }
  0x37   : > { %v2004_v53 = vld [vmem:[%s2227_s16 + $0x4] ss:$16 sps:$4 sm:$0xff]   ;;  %v1980_v55 = vld [vmem:[%s2225_s15 + $0x18c] ss:$16 sps:$4 sm:$0xff]   ;;  %v1982_v56 = vld [vmem:[%s2225_s15 + $0x180] ss:$16 sps:$4 sm:$0xff]  }
  0x38   : > { %v1978_v54 = vld [vmem:[%s2225_s15 + $0x184] ss:$16 sps:$4 sm:$0xff]   ;;  %1255 = vmatprep.mubr.bf16.mxu0 %v2004_v53  ;;  %1341 = vmatprep.mubr.bf16.mxu1 %v2004_v53  ;;  %v1983_v57 = vld [vmem:[%s2225_s15 + $0x188] ss:$16 sps:$4 sm:$0xff]   ;;  %v1986_v59 = vld [vmem:[%s2225_s15 + $0x1ac] ss:$16 sps:$4 sm:$0xff]  }
  0x39   : > { %1232 = vmatpush1.bf16.msra.mxu0 %v1934_v23  ;;  %1318 = vmatpush1.bf16.msra.mxu1 %v1935_v24  ;;  %v1984_v58 = vld [vmem:[%s2225_s15 + $0x1a4] ss:$16 sps:$4 sm:$0xff]   ;;  %v1988_v60 = vld [vmem:[%s2225_s15 + $0x1a0] ss:$16 sps:$4 sm:$0xff]   ;;  %v1989_v61 = vld [vmem:[%s2225_s15 + $0x1a8] ss:$16 sps:$4 sm:$0xff]  }
  0x3a   : > { %1233 = vmatprep.subr.bf16.mxu0 %v1936_v25  ;;  %1319 = vmatprep.subr.bf16.mxu1 %v1938_v26  ;;  %v1990_v62 = vld [vmem:[%s2225_s15 + $0x1c4] ss:$16 sps:$4 sm:$0xff]   ;;  %v1992_v63 = vld [vmem:[%s2225_s15 + $0x1cc] ss:$16 sps:$4 sm:$0xff]   ;;  %v1994_v0 = vld [vmem:[%s2225_s15 + $0x1c0] ss:$16 sps:$4 sm:$0xff]  }
  0x3b   : > { %v1995_v1 = vld [vmem:[%s2225_s15 + $0x1c8] ss:$16 sps:$4 sm:$0xff]   ;;  %v1996_v2 = vld [vmem:[%s2225_s15 + $0x1e4] ss:$16 sps:$4 sm:$0xff]   ;;  %v1998_v3 = vld [vmem:[%s2225_s15 + $0x1ec] ss:$16 sps:$4 sm:$0xff]  }
  0x3c   : > { %v2000_v4 = vld [vmem:[%s2225_s15 + $0x1e0] ss:$16 sps:$4 sm:$0xff]   ;;  %v2001_v5 = vld [vmem:[%s2225_s15 + $0x1e8] ss:$16 sps:$4 sm:$0xff]   ;;  %v2007_v6 = vld [vmem:[%s2225_s15 + $0x204] ss:$16 sps:$4 sm:$0xff]  }
  0x3d   : > { %1234 = vmatpush1.bf16.msra.mxu0 %v1940_v27  ;;  %1320 = vmatpush1.bf16.msra.mxu1 %v1941_v28  ;;  %v2010_v7 = vld [vmem:[%s2225_s15 + $0x20c] ss:$16 sps:$4 sm:$0xff]   ;;  %v2002_v8 = vld [vmem:[%s2227_s16] ss:$16 sps:$4 sm:$0xff]   ;;  %v2008_v10 = vld [vmem:[%s2225_s15 + $0x208] ss:$16 sps:$4 sm:$0xff]  }
  0x3e   : > { %1235 = vmatprep.subr.bf16.mxu0 %v1942_v29  ;;  %1321 = vmatprep.subr.bf16.mxu1 %v1944_v30  ;;  %v2005_v9 = vld [vmem:[%s2225_s15 + $0x200] ss:$16 sps:$4 sm:$0xff]   ;;  %v2013_v11 = vld [vmem:[%s2225_s15 + $0x224] ss:$16 sps:$4 sm:$0xff]   ;;  %v2016_v12 = vld [vmem:[%s2225_s15 + $0x22c] ss:$16 sps:$4 sm:$0xff]  }
  0x3f   : > { %v2011_v13 = vld [vmem:[%s2225_s15 + $0x220] ss:$16 sps:$4 sm:$0xff]   ;;  %v2014_v14 = vld [vmem:[%s2225_s15 + $0x228] ss:$16 sps:$4 sm:$0xff]   ;;  %v2019_v15 = vld [vmem:[%s2225_s15 + $0x244] ss:$16 sps:$4 sm:$0xff]  }
  0x40   : > { %v2022_v16 = vld [vmem:[%s2225_s15 + $0x24c] ss:$16 sps:$4 sm:$0xff]   ;;  %v2017_v17 = vld [vmem:[%s2225_s15 + $0x240] ss:$16 sps:$4 sm:$0xff]   ;;  %v2020_v18 = vld [vmem:[%s2225_s15 + $0x248] ss:$16 sps:$4 sm:$0xff]  }
  0x41   : > { %1236 = vmatpush1.bf16.msra.mxu0 %v1946_v31  ;;  %1322 = vmatpush1.bf16.msra.mxu1 %v1947_v32  ;;  %v2025_v19 = vld [vmem:[%s2225_s15 + $0x264] ss:$16 sps:$4 sm:$0xff]   ;;  %v2028_v20 = vld [vmem:[%s2225_s15 + $0x26c] ss:$16 sps:$4 sm:$0xff]   ;;  %v2023_v21 = vld [vmem:[%s2225_s15 + $0x260] ss:$16 sps:$4 sm:$0xff]  }
  0x42   : > { %1237 = vmatprep.subr.bf16.mxu0 %v1948_v33  ;;  %1323 = vmatprep.subr.bf16.mxu1 %v1950_v34  ;;  %v2026_v22 = vld [vmem:[%s2225_s15 + $0x268] ss:$16 sps:$4 sm:$0xff]   ;;  %v2031_v23 = vld [vmem:[%s2225_s15 + $0x284] ss:$16 sps:$4 sm:$0xff]   ;;  %v2034_v24 = vld [vmem:[%s2225_s15 + $0x28c] ss:$16 sps:$4 sm:$0xff]  }
  0x43   : > { %v2029_v25 = vld [vmem:[%s2225_s15 + $0x280] ss:$16 sps:$4 sm:$0xff]   ;;  %v2032_v26 = vld [vmem:[%s2225_s15 + $0x288] ss:$16 sps:$4 sm:$0xff]   ;;  %v2037_v27 = vld [vmem:[%s2225_s15 + $0x2a4] ss:$16 sps:$4 sm:$0xff]  }
  0x44   : > { %v2040_v28 = vld [vmem:[%s2225_s15 + $0x2ac] ss:$16 sps:$4 sm:$0xff]   ;;  %v2035_v29 = vld [vmem:[%s2225_s15 + $0x2a0] ss:$16 sps:$4 sm:$0xff]   ;;  %v2038_v30 = vld [vmem:[%s2225_s15 + $0x2a8] ss:$16 sps:$4 sm:$0xff]  }
  0x45   : > { %1238 = vmatpush1.bf16.msra.mxu0 %v1952_v35  ;;  %1324 = vmatpush1.bf16.msra.mxu1 %v1953_v36  ;;  %v2043_v31 = vld [vmem:[%s2225_s15 + $0x2c4] ss:$16 sps:$4 sm:$0xff]   ;;  %v2046_v32 = vld [vmem:[%s2225_s15 + $0x2cc] ss:$16 sps:$4 sm:$0xff]   ;;  %v2041_v34 = vld [vmem:[%s2225_s15 + $0x2c0] ss:$16 sps:$4 sm:$0xff]  }
  0x46   : > { %1239 = vmatprep.subr.bf16.mxu0 %v1954_v37  ;;  %1325 = vmatprep.subr.bf16.mxu1 %v1956_v38  ;;  %v2103_v33 = vld [vmem:[%s2227_s16 + $0xc] ss:$16 sps:$4 sm:$0xff]   ;;  %v2044_v35 = vld [vmem:[%s2225_s15 + $0x2c8] ss:$16 sps:$4 sm:$0xff]   ;;  %v2049_v36 = vld [vmem:[%s2225_s15 + $0x2e4] ss:$16 sps:$4 sm:$0xff]  }
  0x47   : > { %v2052_v37 = vld [vmem:[%s2225_s15 + $0x2ec] ss:$16 sps:$4 sm:$0xff]   ;;  %v2047_v38 = vld [vmem:[%s2225_s15 + $0x2e0] ss:$16 sps:$4 sm:$0xff]   ;;  %p1842_p11 = scmp.ne.s32.totalorder %s2134_s20, 8 }
  0x48   : > { %v2076_v53 = vld [vmem:[%s2225_s15 + $0x36c] ss:$16 sps:$4 sm:$0xff]  }
  0x49   : > { %1240 = vmatpush1.bf16.msra.mxu0 %v1958_v39  ;;  %1326 = vmatpush1.bf16.msra.mxu1 %v1959_v40  ;;  %v2050_v39 = vld [vmem:[%s2225_s15 + $0x2e8] ss:$16 sps:$4 sm:$0xff]   ;;  %v2055_v40 = vld [vmem:[%s2225_s15 + $0x304] ss:$16 sps:$4 sm:$0xff]  }
  0x4a   : > { %1241 = vmatprep.subr.bf16.mxu0 %v1960_v41  ;;  %1327 = vmatprep.subr.bf16.mxu1 %v1962_v42  ;;  %v2058_v41 = vld [vmem:[%s2225_s15 + $0x30c] ss:$16 sps:$4 sm:$0xff]   ;;  %v2053_v42 = vld [vmem:[%s2225_s15 + $0x300] ss:$16 sps:$4 sm:$0xff]  }
  0x4d   : > { %1242 = vmatpush1.bf16.msra.mxu0 %v1964_v43  ;;  %1328 = vmatpush1.bf16.msra.mxu1 %v1965_v44  ;;  %v2056_v43 = vld [vmem:[%s2225_s15 + $0x308] ss:$16 sps:$4 sm:$0xff]   ;;  %v2061_v44 = vld [vmem:[%s2225_s15 + $0x324] ss:$16 sps:$4 sm:$0xff]  }
  0x4e   : > { %1243 = vmatprep.subr.bf16.mxu0 %v1966_v45  ;;  %1329 = vmatprep.subr.bf16.mxu1 %v1968_v46  ;;  %v2064_v45 = vld [vmem:[%s2225_s15 + $0x32c] ss:$16 sps:$4 sm:$0xff]   ;;  %v2059_v46 = vld [vmem:[%s2225_s15 + $0x320] ss:$16 sps:$4 sm:$0xff]  }
  0x51   : > { %1244 = vmatpush1.bf16.msra.mxu0 %v1970_v47  ;;  %1330 = vmatpush1.bf16.msra.mxu1 %v1971_v48  ;;  %v2062_v47 = vld [vmem:[%s2225_s15 + $0x328] ss:$16 sps:$4 sm:$0xff]   ;;  %v2067_v48 = vld [vmem:[%s2225_s15 + $0x344] ss:$16 sps:$4 sm:$0xff]  }
  0x52   : > { %1245 = vmatprep.subr.bf16.mxu0 %v1972_v49  ;;  %1331 = vmatprep.subr.bf16.mxu1 %v1974_v50  ;;  %v2070_v49 = vld [vmem:[%s2225_s15 + $0x34c] ss:$16 sps:$4 sm:$0xff]   ;;  %v2065_v50 = vld [vmem:[%s2225_s15 + $0x340] ss:$16 sps:$4 sm:$0xff]  }
  0x55   : > { %1246 = vmatpush1.bf16.msra.mxu0 %v1976_v51  ;;  %1332 = vmatpush1.bf16.msra.mxu1 %v1977_v52  ;;  %v2068_v51 = vld [vmem:[%s2225_s15 + $0x348] ss:$16 sps:$4 sm:$0xff]   ;;  %v2073_v52 = vld [vmem:[%s2225_s15 + $0x364] ss:$16 sps:$4 sm:$0xff]  }
  0x56   : > { %1247 = vmatprep.subr.bf16.mxu0 %v1978_v54  ;;  %1333 = vmatprep.subr.bf16.mxu1 %v1980_v55  ;;  %v2071_v54 = vld [vmem:[%s2225_s15 + $0x360] ss:$16 sps:$4 sm:$0xff]   ;;  %v2074_v55 = vld [vmem:[%s2225_s15 + $0x368] ss:$16 sps:$4 sm:$0xff]  }
  0x59   : > { %1248 = vmatpush1.bf16.msra.mxu0 %v1982_v56  ;;  %1334 = vmatpush1.bf16.msra.mxu1 %v1983_v57  ;;  %v2079_v56 = vld [vmem:[%s2225_s15 + $0x384] ss:$16 sps:$4 sm:$0xff]   ;;  %v2082_v57 = vld [vmem:[%s2225_s15 + $0x38c] ss:$16 sps:$4 sm:$0xff]  }
  0x5a   : > { %1249 = vmatprep.subr.bf16.mxu0 %v1984_v58  ;;  %1335 = vmatprep.subr.bf16.mxu1 %v1986_v59  ;;  %v2077_v58 = vld [vmem:[%s2225_s15 + $0x380] ss:$16 sps:$4 sm:$0xff]   ;;  %v2080_v59 = vld [vmem:[%s2225_s15 + $0x388] ss:$16 sps:$4 sm:$0xff]  }
  0x5d   : > { %1250 = vmatpush1.bf16.msra.mxu0 %v1988_v60  ;;  %1336 = vmatpush1.bf16.msra.mxu1 %v1989_v61  ;;  %v2085_v60 = vld [vmem:[%s2225_s15 + $0x3a4] ss:$16 sps:$4 sm:$0xff]   ;;  %v2088_v61 = vld [vmem:[%s2225_s15 + $0x3ac] ss:$16 sps:$4 sm:$0xff]  }
  0x5e   : > { %1251 = vmatprep.subr.bf16.mxu0 %v1990_v62  ;;  %1337 = vmatprep.subr.bf16.mxu1 %v1992_v63  ;;  %v2083_v62 = vld [vmem:[%s2225_s15 + $0x3a0] ss:$16 sps:$4 sm:$0xff]   ;;  %v2086_v63 = vld [vmem:[%s2225_s15 + $0x3a8] ss:$16 sps:$4 sm:$0xff]  }
  0x61   : > { %1252 = vmatpush1.bf16.msra.mxu0 %v1994_v0  ;;  %1338 = vmatpush1.bf16.msra.mxu1 %v1995_v1  ;;  %v2091_v0 = vld [vmem:[%s2225_s15 + $0x3c4] ss:$16 sps:$4 sm:$0xff]   ;;  %v2094_v1 = vld [vmem:[%s2225_s15 + $0x3cc] ss:$16 sps:$4 sm:$0xff]  }
  0x62   : > { %1253 = vmatprep.subr.bf16.mxu0 %v1996_v2  ;;  %1339 = vmatprep.subr.bf16.mxu1 %v1998_v3  ;;  %v2089_v2 = vld [vmem:[%s2225_s15 + $0x3c0] ss:$16 sps:$4 sm:$0xff]   ;;  %v2092_v3 = vld [vmem:[%s2225_s15 + $0x3c8] ss:$16 sps:$4 sm:$0xff]  }
  0x65   : > { %1254 = vmatpush1.bf16.msra.mxu0 %v2000_v4  ;;  %1340 = vmatpush1.bf16.msra.mxu1 %v2001_v5  ;;  %v2097_v4 = vld [vmem:[%s2225_s15 + $0x3e4] ss:$16 sps:$4 sm:$0xff]   ;;  %v2100_v5 = vld [vmem:[%s2225_s15 + $0x3ec] ss:$16 sps:$4 sm:$0xff]  }
  0x66   : > { %1266 = vmatprep.subr.bf16.mxu0 %v2007_v6  ;;  %1352 = vmatprep.subr.bf16.mxu1 %v2010_v7  ;;  %v2095_v6 = vld [vmem:[%s2225_s15 + $0x3e0] ss:$16 sps:$4 sm:$0xff]   ;;  %v2098_v7 = vld [vmem:[%s2225_s15 + $0x3e8] ss:$16 sps:$4 sm:$0xff]  }
  0x68   : > { %1256 = vmatmul.mubr.bf16.vlgmr.msra.gmra.mrb[0].mxu0 %v2002_v8  ;;  %1342 = vmatmul.mubr.bf16.vlgmr.msra.gmra.mrb[0].mxu1 %v2002_v8  ;;  %v2101_v8 = vld [vmem:[%s2227_s16 + $0x8] ss:$16 sps:$4 sm:$0xff]  }
  0x69   : > { %1267 = vmatpush1.bf16.msra.mxu0 %v2005_v9  ;;  %1353 = vmatpush1.bf16.msra.mxu1 %v2008_v10  ;;  %v423_v9 = vld [vmem:[#allocation2] sm:$0xff]  ;;  %v425_v10 = vld [vmem:[#allocation2 + $0x10] sm:$0xff] }
  0x6a   : > { %1268 = vmatprep.subr.bf16.mxu0 %v2013_v11  ;;  %1354 = vmatprep.subr.bf16.mxu1 %v2016_v12  ;;  %v424_v11 = vld [vmem:[#allocation2 + $0x8] sm:$0xff]  ;;  %v426_v12 = vld [vmem:[#allocation2 + $0x18] sm:$0xff] }
  0x6b   : > { %1298 = vmatprep.mubr.bf16.mxu0 %v2103_v33  ;;  %1384 = vmatprep.mubr.bf16.mxu1 %v2103_v33  ;;  %v1425_v33 = vlaneseq (!%p1842_p11) }
  0x6d   : > { %1269 = vmatpush1.bf16.msra.mxu0 %v2011_v13  ;;  %1355 = vmatpush1.bf16.msra.mxu1 %v2014_v14 }
  0x6e   : > { %1270 = vmatprep.subr.bf16.mxu0 %v2019_v15  ;;  %1356 = vmatprep.subr.bf16.mxu1 %v2022_v16  ;;  %v427_v15 = vld [vmem:[#allocation2 + $0x20] sm:$0xff]  ;;  %v429_v16 = vld [vmem:[#allocation2 + $0x30] sm:$0xff] }
  0x71   : > { %1271 = vmatpush1.bf16.msra.mxu0 %v2017_v17  ;;  %1357 = vmatpush1.bf16.msra.mxu1 %v2020_v18 }
  0x72   : > { %1272 = vmatprep.subr.bf16.mxu0 %v2025_v19  ;;  %1358 = vmatprep.subr.bf16.mxu1 %v2028_v20 }
  0x75   : > { %1273 = vmatpush1.bf16.msra.mxu0 %v2023_v21  ;;  %1359 = vmatpush1.bf16.msra.mxu1 %v2026_v22  ;;  %v428_v21 = vld [vmem:[#allocation2 + $0x28] sm:$0xff]  ;;  %v430_v22 = vld [vmem:[#allocation2 + $0x38] sm:$0xff] }
  0x76   : > { %1274 = vmatprep.subr.bf16.mxu0 %v2031_v23  ;;  %1360 = vmatprep.subr.bf16.mxu1 %v2034_v24 }
  0x79   : > { %1275 = vmatpush1.bf16.msra.mxu0 %v2029_v25  ;;  %1361 = vmatpush1.bf16.msra.mxu1 %v2032_v26 }
  0x7a   : > { %1276 = vmatprep.subr.bf16.mxu0 %v2037_v27  ;;  %1362 = vmatprep.subr.bf16.mxu1 %v2040_v28 }
  0x7d   : > { %1277 = vmatpush1.bf16.msra.mxu0 %v2035_v29  ;;  %1363 = vmatpush1.bf16.msra.mxu1 %v2038_v30 }
  0x7e   : > { %1278 = vmatprep.subr.bf16.mxu0 %v2043_v31  ;;  %1364 = vmatprep.subr.bf16.mxu1 %v2046_v32 }
  0x81   : > { %1279 = vmatpush1.bf16.msra.mxu0 %v2041_v34  ;;  %1365 = vmatpush1.bf16.msra.mxu1 %v2044_v35  ;;  %v1483_v34 = vld [vmem:[%s2412_s4] sm:$0xff] (!%p1842_p11)  ;;  %v1426_v35 = vshrl.u32 (!%p1842_p11), %v1425_v33, 7 }
  0x82   : > { %1280 = vmatprep.subr.bf16.mxu0 %v2049_v36  ;;  %1366 = vmatprep.subr.bf16.mxu1 %v2052_v37  ;;  %v1484_v36 = vld [vmem:[%s2412_s4 + $0x8] sm:$0xff] (!%p1842_p11) }
  0x85   : > { %1281 = vmatpush1.bf16.msra.mxu0 %v2047_v38  ;;  %1367 = vmatpush1.bf16.msra.mxu1 %v2050_v39  ;;  %v1423_v38 = vld [vmem:[%s2410_s2] sm:$0xf] (!%p1842_p11) }
  0x86   : > { %1282 = vmatprep.subr.bf16.mxu0 %v2055_v40  ;;  %1368 = vmatprep.subr.bf16.mxu1 %v2058_v41  ;;  %v1453_v39 = vld [vmem:[%s2411_s3] sm:$0xf] (!%p1842_p11)  ;;  %v1487_v40 = vunpack.c.l.bf16 (!%p1842_p11), %v1483_v34  ;;  %v1488_v41 = vunpack.c.h.bf16 (!%p1842_p11), %v1483_v34 }
  0x89   : > { %1283 = vmatpush1.bf16.msra.mxu0 %v2053_v42  ;;  %1369 = vmatpush1.bf16.msra.mxu1 %v2056_v43  ;;  %v1489_v42 = vunpack.c.l.bf16 (!%p1842_p11), %v1484_v36  ;;  %v1490_v43 = vunpack.c.h.bf16 (!%p1842_p11), %v1484_v36 }
  0x8a   : > { %1284 = vmatprep.subr.bf16.mxu0 %v2061_v44  ;;  %1370 = vmatprep.subr.bf16.mxu1 %v2064_v45  ;;  %v1485_v44 = vld [vmem:[%s2412_s4 + $0x10] sm:$0xff] (!%p1842_p11) }
  0x8d   : > { %1285 = vmatpush1.bf16.msra.mxu0 %v2059_v46  ;;  %1371 = vmatpush1.bf16.msra.mxu1 %v2062_v47  ;;  %v1427_v46 = vsub.s32 (!%p1842_p11), 0, %v1426_v35  ;;  %v1431_v47 = vsub.s32 (!%p1842_p11), 1, %v1426_v35 }
  0x8e   : > { %1286 = vmatprep.subr.bf16.mxu0 %v2067_v48  ;;  %1372 = vmatprep.subr.bf16.mxu1 %v2070_v49  ;;  %v1435_v48 = vsub.s32 (!%p1842_p11), 2, %v1426_v35  ;;  %v1439_v49 = vsub.s32 (!%p1842_p11), 3, %v1426_v35 }
  0x91   : > { %1287 = vmatpush1.bf16.msra.mxu0 %v2065_v50  ;;  %1373 = vmatpush1.bf16.msra.mxu1 %v2068_v51  ;;  %v1486_v50 = vld [vmem:[%s2412_s4 + $0x18] sm:$0xff] (!%p1842_p11) }
  0x92   : > { %1288 = vmatprep.subr.bf16.mxu0 %v2073_v52  ;;  %1374 = vmatprep.subr.bf16.mxu1 %v2076_v53 }
  0x95   : > { %1289 = vmatpush1.bf16.msra.mxu0 %v2071_v54  ;;  %1375 = vmatpush1.bf16.msra.mxu1 %v2074_v55  ;;  %v1491_v54 = vunpack.c.l.bf16 (!%p1842_p11), %v1485_v44  ;;  %v1492_v55 = vunpack.c.h.bf16 (!%p1842_p11), %v1485_v44 }
  0x96   : > { %1290 = vmatprep.subr.bf16.mxu0 %v2079_v56  ;;  %1376 = vmatprep.subr.bf16.mxu1 %v2082_v57  ;;  %v1493_v56 = vunpack.c.l.bf16 (!%p1842_p11), %v1486_v50  ;;  %v1494_v57 = vunpack.c.h.bf16 (!%p1842_p11), %v1486_v50 }
  0x99   : > { %1291 = vmatpush1.bf16.msra.mxu0 %v2077_v58  ;;  %1377 = vmatpush1.bf16.msra.mxu1 %v2080_v59  ;;  %v1428_v58 = vrot.slane (!%p1842_p11), %v1423_v38, %v1427_v46  ;;  %v1432_v59 = vrot.slane (!%p1842_p11), %v1423_v38, %v1431_v47 }
  0x9a   : > { %1292 = vmatprep.subr.bf16.mxu0 %v2085_v60  ;;  %1378 = vmatprep.subr.bf16.mxu1 %v2088_v61  ;;  %v1458_v60 = vrot.slane (!%p1842_p11), %v1453_v39, %v1427_v46  ;;  %v1462_v61 = vrot.slane (!%p1842_p11), %v1453_v39, %v1431_v47 }
  0x9d   : > { %1293 = vmatpush1.bf16.msra.mxu0 %v2083_v62  ;;  %1379 = vmatpush1.bf16.msra.mxu1 %v2086_v63 }
  0x9e   : > { %1294 = vmatprep.subr.bf16.mxu0 %v2091_v0  ;;  %1380 = vmatprep.subr.bf16.mxu1 %v2094_v1  ;;  %v1436_v1 = vrot.slane (!%p1842_p11), %v1423_v38, %v1435_v48 }
  0xa1   : > { %1295 = vmatpush1.bf16.msra.mxu0 %v2089_v2  ;;  %1381 = vmatpush1.bf16.msra.mxu1 %v2092_v3  ;;  %v1440_v2 = vrot.slane (!%p1842_p11), %v1423_v38, %v1439_v49  ;;  %v1466_v3 = vrot.slane (!%p1842_p11), %v1453_v39, %v1435_v48 }
  0xa2   : > { %1296 = vmatprep.subr.bf16.mxu0 %v2097_v4  ;;  %1382 = vmatprep.subr.bf16.mxu1 %v2100_v5  ;;  %v1470_v4 = vrot.slane (!%p1842_p11), %v1453_v39, %v1439_v49 }
  0xa5   : > { %1297 = vmatpush1.bf16.msra.mxu0 %v2095_v6  ;;  %1383 = vmatpush1.bf16.msra.mxu1 %v2098_v7 }
  0xa8   : > { %1299 = vmatmul.mubr.bf16.vlgmr.msra.gmra.mrb[0].mxu0 %v2101_v8  ;;  %1385 = vmatmul.mubr.bf16.vlgmr.msra.gmra.mrb[0].mxu1 %v2101_v8 }
 0x17b   : > { %v1300_v13 = vpop.f32.mrb[0].mxu0  ;;  %v1386_v14 = vpop.f32.mrb[0].mxu1  ;;  %1414 = sbr.rel (%p1842_p11) target bundleno = 404 (0x194), region = 71 }
 0x17c   : > { %v1395_v17 = vadd.f32 %v1300_v13, %v423_v9  ;;  %v1397_v18 = vadd.f32 %v1386_v14, %v425_v10  ;;  %v1302_v19 = vpop.f32.mrb[1].mxu0  ;;  %v1388_v20 = vpop.f32.mrb[1].mxu1 }
 0x17d   : > { %v1396_v23 = vadd.f32 %v1302_v19, %v424_v11  ;;  %v1398_v24 = vadd.f32 %v1388_v20, %v426_v12  ;;  %v1304_v25 = vpop.f32.mrb[2].mxu0  ;;  %v1390_v26 = vpop.f32.mrb[2].mxu1 }
 0x17e   : > { %1403 = vst [vmem:[#allocation2] sm:$0xff] %v1395_v17  ;;  %1405 = vst [vmem:[#allocation2 + $0x10] sm:$0xff] %v1397_v18  ;;  %v1399_v27 = vadd.f32 %v1304_v25, %v427_v15  ;;  %v1401_v28 = vadd.f32 %v1390_v26, %v429_v16  ;;  %v1306_v29 = vpop.f32.mrb[3].mxu0  ;;  %v1392_v30 = vpop.f32.mrb[3].mxu1 }
 0x17f   : > { %1404 = vst [vmem:[#allocation2 + $0x8] sm:$0xff] %v1396_v23  ;;  %1406 = vst [vmem:[#allocation2 + $0x18] sm:$0xff] %v1398_v24  ;;  %v1400_v31 = vadd.f32 %v1306_v29, %v428_v21  ;;  %v1402_v32 = vadd.f32 %v1392_v30, %v430_v22 }
 0x180   : > { %1407 = vst [vmem:[#allocation2 + $0x20] sm:$0xff] %v1399_v27  ;;  %1409 = vst [vmem:[#allocation2 + $0x30] sm:$0xff] %v1401_v28 }
 0x181   : > { %1408 = vst [vmem:[#allocation2 + $0x28] sm:$0xff] %v1400_v31  ;;  %1410 = vst [vmem:[#allocation2 + $0x38] sm:$0xff] %v1402_v32 }
 0x185   : > { %v1415_v37 = vld [vmem:[#allocation2] sm:$0xff]  ;;  %v1417_v51 = vld [vmem:[#allocation2 + $0x10] sm:$0xff] }
 0x186   : > { %v1416_v45 = vld [vmem:[#allocation2 + $0x8] sm:$0xff]  ;;  %v1418_v62 = vld [vmem:[#allocation2 + $0x18] sm:$0xff]  ;;  %v1445_v5 = vmul.f32 %v1428_v58, %v1415_v37  ;;  %v1447_v9 = vmul.f32 %v1436_v1, %v1417_v51 }
 0x187   : > { %v1419_v52 = vld [vmem:[#allocation2 + $0x20] sm:$0xff]  ;;  %v1421_v63 = vld [vmem:[#allocation2 + $0x30] sm:$0xff]  ;;  %v1446_v6 = vmul.f32 %v1432_v59, %v1416_v45  ;;  %v1448_v10 = vmul.f32 %v1440_v2, %v1418_v62 }
 0x188   : > { %v1420_v53 = vld [vmem:[#allocation2 + $0x28] sm:$0xff]  ;;  %v1422_v0 = vld [vmem:[#allocation2 + $0x38] sm:$0xff]  ;;  %v1449_v7 = vmul.f32 %v1428_v58, %v1419_v52  ;;  %v1451_v11 = vmul.f32 %v1436_v1, %v1421_v63  ;;  %v1475_v13 = vadd.f32 %v1458_v60, %v1445_v5  ;;  %v1477_v17 = vadd.f32 %v1466_v3, %v1447_v9 }
 0x189   : > { %v1450_v8 = vmul.f32 %v1432_v59, %v1420_v53  ;;  %v1452_v12 = vmul.f32 %v1440_v2, %v1422_v0  ;;  %v1476_v14 = vadd.f32 %v1462_v61, %v1446_v6  ;;  %v1478_v18 = vadd.f32 %v1470_v4, %v1448_v10 }
 0x18a   : > { %v1479_v15 = vadd.f32 %v1458_v60, %v1449_v7  ;;  %v1481_v19 = vadd.f32 %v1466_v3, %v1451_v11  ;;  %v1495_v21 = vadd.f32 %v1487_v40, %v1475_v13  ;;  %v1497_v25 = vadd.f32 %v1489_v42, %v1477_v17 }
 0x18b   : > { %v1480_v16 = vadd.f32 %v1462_v61, %v1450_v8  ;;  %v1482_v20 = vadd.f32 %v1470_v4, %v1452_v12  ;;  %v1496_v22 = vadd.f32 %v1488_v41, %v1476_v14  ;;  %v1498_v26 = vadd.f32 %v1490_v43, %v1478_v18 }
 0x18c   : > { %v1499_v23 = vadd.f32 %v1491_v54, %v1479_v15  ;;  %v1501_v27 = vadd.f32 %v1493_v56, %v1481_v19  ;;  %v1503_v29 = vmax.f32 %v1495_v21, 0.0  ;;  %v1505_v33 = vmax.f32 %v1497_v25, 0.0 }
 0x18d   : > { %v1500_v24 = vadd.f32 %v1492_v55, %v1480_v16  ;;  %v1502_v28 = vadd.f32 %v1494_v57, %v1482_v20  ;;  %v1504_v30 = vmax.f32 %v1496_v22, 0.0  ;;  %v1506_v34 = vmax.f32 %v1498_v26, 0.0 }
 0x18e   : > { %v1507_v31 = vmax.f32 %v1499_v23, 0.0  ;;  %v1509_v35 = vmax.f32 %v1501_v27, 0.0 }
 0x18f   : > { %v1508_v32 = vmax.f32 %v1500_v24, 0.0  ;;  %v1510_v36 = vmax.f32 %v1502_v28, 0.0  ;;  %v1853_v37 = vpack.c.bf16 %v1504_v30, %v1503_v29  ;;  %v1854_v39 = vpack.c.bf16 %v1506_v34, %v1505_v33 }
 0x191   : > { %v1855_v38 = vpack.c.bf16 %v1508_v32, %v1507_v31  ;;  %v1856_v44 = vpack.c.bf16 %v1510_v36, %v1509_v35  ;;  %1535 = vst [vmem:[%s2413_s5] sm:$0xff] %v1853_v37  ;;  %1536 = vst [vmem:[%s2413_s5 + $0x8] sm:$0xff] %v1854_v39 }
 0x193   : > { %1537 = vst [vmem:[%s2413_s5 + $0x10] sm:$0xff] %v1855_v38  ;;  %1538 = vst [vmem:[%s2413_s5 + $0x18] sm:$0xff] %v1856_v44 }
 0x194 PF: > { %s15_s22 = sadd.s32 1, %s2142_s22   ;;  %s2414_s18 = smov %s2130_s19 }
 0x195   : > { %p12_p12 = scmp.ge.s32.totalorder %s15_s22, 11   ;;  %s2415_s19 = smov %s2210_s26 }
 0x196   : > { %s2416_s20 = smov %s2138_s21  ;;  %s2417_s21 = smov %s2419_s23 }
 0x197   :  { %14 = sbr.rel (!%p12_p12) target bundleno = 3 (0x3), region = 118 }

// kernel: resnet34_forward.52
= control target key start
LH: loop header
LB: loop body
LE: loop exit
PB: predicated region body
PF: predicated region fallthrough
CT: control target
= control target key end

     0   :  { %s2060_s15 = smov 0   ;;  %s2062_s16 = smov 0   ;;  %s2281_s0 = inlined_call_operand.vmem [shape: bf16[16,4608], index: 0, kind: input, shape index: {}]   ;;  %s2282_s1 = inlined_call_operand.vmem [shape: bf16[4608,512], index: 1, kind: input, shape index: {}]   ;;  %s2283_s2 = inlined_call_operand.vmem [shape: f32[1,512], index: 2, kind: input, shape index: {}]   ;;  %s2284_s3 = inlined_call_operand.vmem [shape: f32[1,512], index: 3, kind: input, shape index: {}]   ;;  %s2285_s4 = inlined_call_operand.vmem [shape: bf16[16,512], index: 4, kind: output, shape index: {}]  }
   0x1   :  { %s2064_s17 = smov 0   ;;  %s2066_s18 = smov 0  }
   0x2   :  { %s2068_s19 = smov 0  }
   0x3 LB: > { %s26_s20 = sadd.s32 1, %s2028_s18  ;;  %p49_p1 = scmp.ne.s32.totalorder %s2020_s16, %s2016_s15  ;;  %s2032_s19 = sphi %s2068_s19, %s14_s19   ;;  %s2028_s18 = sphi %s2066_s18, %s2289_s18   ;;  %s2024_s17 = sphi %s2064_s17, %s2288_s17   ;;  %s2020_s16 = sphi %s2062_s16, %s2287_s16   ;;  %s2016_s15 = sphi %s2060_s15, %s2286_s15  }
   0x4   : > { %p27_p0 = scmp.ge.s32.totalorder %s26_s20, 9  ;;  %p50_p2 = scmp.eq.s32.totalorder %s2032_s19, 0 }
   0x5   : > { %s42_s22 = sadd.s32 1, %s2020_s16  ;;  %p1590_p5 = scmp.ge.s32.totalorder %s2032_s19, 9 }
   0x6   : > { %s2291_s20 = smov (%p27_p0, %s26_s20), 0  ;;  %p51_p3 = por %p50_p2, %p49_p1 }
   0x7   : > { %s38_s21 = ssub.s32 %s2028_s18, %s2291_s20  ;;  %199 = sbr.rel (%p1590_p5) target bundleno = 21 (0x15), region = 24 }
   0x8   : > { %p40_p4 = scmp.eq.s32.totalorder %s38_s21, 0 }
   0xa   : > { %s2095_s23 = scalar_select %p40_p4, %s2020_s16, %s42_s22  }
   0xe   : > { %202 = sbr.rel (!%p51_p3) target bundleno = 21 (0x15), region = 28  ;;  %s204_s24 = sand.u32 (%p51_p3), 1, %s2020_s16  }
   0xf   : > { %s1741_s25 = sshll.u32 (%p51_p3), %s2028_s18, 4  ;;  %s1591_s26 = sshll.u32 (%p51_p3), %s204_s24, 5 }
  0x10   : > { %s212_s29 = scalar_lea.vmem (%p51_p3), %s2281_s0, %s1741_s25  ;;  %s206_s30 = scalar_lea.vmem (%p51_p3), [#allocation3], %s1591_s26 }
  0x11   : > { %v225_v0 = vld [vmem:[%s212_s29] sm:$0xff] (%p51_p3)  ;;  %v227_v1 = vld [vmem:[%s212_s29 + $0x8] sm:$0xff] (%p51_p3)  ;;  %v229_v2 = vld [vmem:[%s212_s29 + $0x90] sm:$0xff] (%p51_p3) }
  0x12   : > { %226 = vst [vmem:[%s206_s30] sm:$0xff] (%p51_p3), %v225_v0  ;;  %228 = vst [vmem:[%s206_s30 + $0x8] sm:$0xff] (%p51_p3), %v227_v1  ;;  %v231_v3 = vld [vmem:[%s212_s29 + $0x98] sm:$0xff] (%p51_p3) }
  0x13   : > { %230 = vst [vmem:[%s206_s30 + $0x10] sm:$0xff] (%p51_p3), %v229_v2  ;;  %232 = vst [vmem:[%s206_s30 + $0x18] sm:$0xff] (%p51_p3), %v231_v3 }
  0x15 PF: > { %p1594_p6 = scmp.ge.s32.totalorder %s2032_s19, 1  ;;  %p252_p7 = scmp.lt.s32.totalorder %s2032_s19, 10 }
  0x17   : > { %p253_p8 = pnand %p1594_p6, %p252_p7 }
  0x18   : > { %s259_s5 = sand.u32 (!%p253_p8), 1, %s2016_s15   ;;  %s1596_s6 = sshll.u32 (!%p253_p8), %s2024_s17, 6 }
  0x19   : > { %256 = sbr.rel (%p253_p8) target bundleno = 402 (0x192), region = 55  ;;  %s1595_s7 = sshll.u32 (!%p253_p8), %s259_s5, 5 }
  0x1a   : > { %p311_p9 = scmp.lt.s32.totalorder (!%p253_p8), %s1596_s6, 575  ;;  %s2112_s12 = scalar_lea.vmem (!%p253_p8), [#allocation3], %s1595_s7 }
  0x1b   : > { %p1599_p10 = scmp.ne.s32.totalorder (!%p253_p8), %s2024_s17, 0 }
  0x20   : > { %s2293_s6 = smov (!%p311_p9, %s1596_s6), 575  ;;  %346 = sbr.rel (%p1599_p10) target bundleno = 39 (0x27), region = 63 }
  0x21   : > { %s1742_s8 = sshll.u32 %s2293_s6, 4  ;;  %v2034_v4 = vmov (!%p1599_p10), 0.0  }
  0x22   : > { %s2110_s11 = scalar_lea.vmem %s2282_s1, %s1742_s8  ;;  %347 = vst [vmem:[#allocation2] sm:$0xff] (!%p1599_p10), %v2034_v4  ;;  %348 = vst [vmem:[#allocation2 + $0x8] sm:$0xff] (!%p1599_p10), %v2034_v4 }
  0x23   : > { %349 = vst [vmem:[#allocation2 + $0x10] sm:$0xff] (!%p1599_p10), %v2034_v4  ;;  %350 = vst [vmem:[#allocation2 + $0x18] sm:$0xff] (!%p1599_p10), %v2034_v4 }
  0x24   : > { %351 = vst [vmem:[#allocation2 + $0x20] sm:$0xff] (!%p1599_p10), %v2034_v4  ;;  %352 = vst [vmem:[#allocation2 + $0x28] sm:$0xff] (!%p1599_p10), %v2034_v4 }
  0x25   : > { %353 = vst [vmem:[#allocation2 + $0x30] sm:$0xff] (!%p1599_p10), %v2034_v4  ;;  %354 = vst [vmem:[#allocation2 + $0x38] sm:$0xff] (!%p1599_p10), %v2034_v4 }
  0x27 PF: > { %v1796_v5 = vld [vmem:[%s2110_s11 + $0x4] ss:$16 sps:$4 sm:$0xff]   ;;  %v1798_v6 = vld [vmem:[%s2110_s11 + $0xc] ss:$16 sps:$4 sm:$0xff]   ;;  %v1800_v7 = vld [vmem:[%s2110_s11] ss:$16 sps:$4 sm:$0xff]  }
  0x28   : > { %1155 = vmatprep.subr.bf16.mxu0 %v1796_v5  ;;  %v1801_v8 = vld [vmem:[%s2110_s11 + $0x8] ss:$16 sps:$4 sm:$0xff]   ;;  %1241 = vmatprep.subr.bf16.mxu1 %v1798_v6  ;;  %v1802_v9 = vld [vmem:[%s2110_s11 + $0x24] ss:$16 sps:$4 sm:$0xff]   ;;  %v1804_v10 = vld [vmem:[%s2110_s11 + $0x2c] ss:$16 sps:$4 sm:$0xff]  }
  0x29   : > { %1156 = vmatpush1.bf16.msra.mxu0 %v1800_v7  ;;  %1242 = vmatpush1.bf16.msra.mxu1 %v1801_v8  ;;  %v1806_v11 = vld [vmem:[%s2110_s11 + $0x20] ss:$16 sps:$4 sm:$0xff]   ;;  %v1807_v12 = vld [vmem:[%s2110_s11 + $0x28] ss:$16 sps:$4 sm:$0xff]   ;;  %v1808_v13 = vld [vmem:[%s2110_s11 + $0x44] ss:$16 sps:$4 sm:$0xff]  }
  0x2a   : > { %1157 = vmatprep.subr.bf16.mxu0 %v1802_v9  ;;  %1243 = vmatprep.subr.bf16.mxu1 %v1804_v10  ;;  %v1810_v14 = vld [vmem:[%s2110_s11 + $0x4c] ss:$16 sps:$4 sm:$0xff]   ;;  %v1812_v15 = vld [vmem:[%s2110_s11 + $0x40] ss:$16 sps:$4 sm:$0xff]   ;;  %v1813_v16 = vld [vmem:[%s2110_s11 + $0x48] ss:$16 sps:$4 sm:$0xff]  }
  0x2b   : > { %v1814_v17 = vld [vmem:[%s2110_s11 + $0x64] ss:$16 sps:$4 sm:$0xff]   ;;  %v1816_v18 = vld [vmem:[%s2110_s11 + $0x6c] ss:$16 sps:$4 sm:$0xff]   ;;  %v1818_v19 = vld [vmem:[%s2110_s11 + $0x60] ss:$16 sps:$4 sm:$0xff]  }
  0x2c   : > { %v1819_v20 = vld [vmem:[%s2110_s11 + $0x68] ss:$16 sps:$4 sm:$0xff]   ;;  %v1820_v21 = vld [vmem:[%s2110_s11 + $0x84] ss:$16 sps:$4 sm:$0xff]   ;;  %v1822_v22 = vld [vmem:[%s2110_s11 + $0x8c] ss:$16 sps:$4 sm:$0xff]  }
  0x2d   : > { %1158 = vmatpush1.bf16.msra.mxu0 %v1806_v11  ;;  %1244 = vmatpush1.bf16.msra.mxu1 %v1807_v12  ;;  %v1824_v23 = vld [vmem:[%s2110_s11 + $0x80] ss:$16 sps:$4 sm:$0xff]   ;;  %v1825_v24 = vld [vmem:[%s2110_s11 + $0x88] ss:$16 sps:$4 sm:$0xff]   ;;  %v1826_v25 = vld [vmem:[%s2110_s11 + $0xa4] ss:$16 sps:$4 sm:$0xff]  }
  0x2e   : > { %1159 = vmatprep.subr.bf16.mxu0 %v1808_v13  ;;  %1245 = vmatprep.subr.bf16.mxu1 %v1810_v14  ;;  %v1828_v26 = vld [vmem:[%s2110_s11 + $0xac] ss:$16 sps:$4 sm:$0xff]   ;;  %v1830_v27 = vld [vmem:[%s2110_s11 + $0xa0] ss:$16 sps:$4 sm:$0xff]   ;;  %v1831_v28 = vld [vmem:[%s2110_s11 + $0xa8] ss:$16 sps:$4 sm:$0xff]  }
  0x2f   : > { %v1832_v29 = vld [vmem:[%s2110_s11 + $0xc4] ss:$16 sps:$4 sm:$0xff]   ;;  %v1834_v30 = vld [vmem:[%s2110_s11 + $0xcc] ss:$16 sps:$4 sm:$0xff]   ;;  %v1836_v31 = vld [vmem:[%s2110_s11 + $0xc0] ss:$16 sps:$4 sm:$0xff]  }
  0x30   : > { %v1837_v32 = vld [vmem:[%s2110_s11 + $0xc8] ss:$16 sps:$4 sm:$0xff]   ;;  %v1838_v33 = vld [vmem:[%s2110_s11 + $0xe4] ss:$16 sps:$4 sm:$0xff]   ;;  %v1840_v34 = vld [vmem:[%s2110_s11 + $0xec] ss:$16 sps:$4 sm:$0xff]  }
  0x31   : > { %1160 = vmatpush1.bf16.msra.mxu0 %v1812_v15  ;;  %1246 = vmatpush1.bf16.msra.mxu1 %v1813_v16  ;;  %v1842_v35 = vld [vmem:[%s2110_s11 + $0xe0] ss:$16 sps:$4 sm:$0xff]   ;;  %v1843_v36 = vld [vmem:[%s2110_s11 + $0xe8] ss:$16 sps:$4 sm:$0xff]   ;;  %v1844_v37 = vld [vmem:[%s2110_s11 + $0x104] ss:$16 sps:$4 sm:$0xff]  }
  0x32   : > { %1161 = vmatprep.subr.bf16.mxu0 %v1814_v17  ;;  %1247 = vmatprep.subr.bf16.mxu1 %v1816_v18  ;;  %v1846_v38 = vld [vmem:[%s2110_s11 + $0x10c] ss:$16 sps:$4 sm:$0xff]   ;;  %v1848_v39 = vld [vmem:[%s2110_s11 + $0x100] ss:$16 sps:$4 sm:$0xff]   ;;  %v1849_v40 = vld [vmem:[%s2110_s11 + $0x108] ss:$16 sps:$4 sm:$0xff]  }
  0x33   : > { %v1850_v41 = vld [vmem:[%s2110_s11 + $0x124] ss:$16 sps:$4 sm:$0xff]   ;;  %v1852_v42 = vld [vmem:[%s2110_s11 + $0x12c] ss:$16 sps:$4 sm:$0xff]   ;;  %v1854_v43 = vld [vmem:[%s2110_s11 + $0x120] ss:$16 sps:$4 sm:$0xff]  }
  0x34   : > { %v1855_v44 = vld [vmem:[%s2110_s11 + $0x128] ss:$16 sps:$4 sm:$0xff]   ;;  %v1856_v45 = vld [vmem:[%s2110_s11 + $0x144] ss:$16 sps:$4 sm:$0xff]   ;;  %v1858_v46 = vld [vmem:[%s2110_s11 + $0x14c] ss:$16 sps:$4 sm:$0xff]  }
  0x35   : > { %1162 = vmatpush1.bf16.msra.mxu0 %v1818_v19  ;;  %1248 = vmatpush1.bf16.msra.mxu1 %v1819_v20  ;;  %v1860_v47 = vld [vmem:[%s2110_s11 + $0x140] ss:$16 sps:$4 sm:$0xff]   ;;  %v1861_v48 = vld [vmem:[%s2110_s11 + $0x148] ss:$16 sps:$4 sm:$0xff]   ;;  %v1862_v49 = vld [vmem:[%s2110_s11 + $0x164] ss:$16 sps:$4 sm:$0xff]  }
  0x36   : > { %1163 = vmatprep.subr.bf16.mxu0 %v1820_v21  ;;  %1249 = vmatprep.subr.bf16.mxu1 %v1822_v22  ;;  %v1864_v50 = vld [vmem:[%s2110_s11 + $0x16c] ss:$16 sps:$4 sm:$0xff]   ;;  %v1866_v51 = vld [vmem:[%s2110_s11 + $0x160] ss:$16 sps:$4 sm:$0xff]   ;;  %v1867_v52 = vld [vmem:[%s2110_s11 + $0x168] ss:$16 sps:$4 sm:$0xff]  }
  0x37   : > { %v1894_v53 = vld [vmem:[%s2112_s12 + $0x4] ss:$16 sps:$4 sm:$0xff]   ;;  %v1870_v55 = vld [vmem:[%s2110_s11 + $0x18c] ss:$16 sps:$4 sm:$0xff]   ;;  %v1872_v56 = vld [vmem:[%s2110_s11 + $0x180] ss:$16 sps:$4 sm:$0xff]  }
  0x38   : > { %v1868_v54 = vld [vmem:[%s2110_s11 + $0x184] ss:$16 sps:$4 sm:$0xff]   ;;  %1187 = vmatprep.mubr.bf16.mxu0 %v1894_v53  ;;  %1273 = vmatprep.mubr.bf16.mxu1 %v1894_v53  ;;  %v1873_v57 = vld [vmem:[%s2110_s11 + $0x188] ss:$16 sps:$4 sm:$0xff]   ;;  %v1876_v59 = vld [vmem:[%s2110_s11 + $0x1ac] ss:$16 sps:$4 sm:$0xff]  }
  0x39   : > { %1164 = vmatpush1.bf16.msra.mxu0 %v1824_v23  ;;  %1250 = vmatpush1.bf16.msra.mxu1 %v1825_v24  ;;  %v1874_v58 = vld [vmem:[%s2110_s11 + $0x1a4] ss:$16 sps:$4 sm:$0xff]   ;;  %v1878_v60 = vld [vmem:[%s2110_s11 + $0x1a0] ss:$16 sps:$4 sm:$0xff]   ;;  %v1879_v61 = vld [vmem:[%s2110_s11 + $0x1a8] ss:$16 sps:$4 sm:$0xff]  }
  0x3a   : > { %1165 = vmatprep.subr.bf16.mxu0 %v1826_v25  ;;  %1251 = vmatprep.subr.bf16.mxu1 %v1828_v26  ;;  %v1880_v62 = vld [vmem:[%s2110_s11 + $0x1c4] ss:$16 sps:$4 sm:$0xff]   ;;  %v1882_v63 = vld [vmem:[%s2110_s11 + $0x1cc] ss:$16 sps:$4 sm:$0xff]   ;;  %v1884_v0 = vld [vmem:[%s2110_s11 + $0x1c0] ss:$16 sps:$4 sm:$0xff]  }
  0x3b   : > { %v1885_v1 = vld [vmem:[%s2110_s11 + $0x1c8] ss:$16 sps:$4 sm:$0xff]   ;;  %v1886_v2 = vld [vmem:[%s2110_s11 + $0x1e4] ss:$16 sps:$4 sm:$0xff]   ;;  %v1888_v3 = vld [vmem:[%s2110_s11 + $0x1ec] ss:$16 sps:$4 sm:$0xff]  }
  0x3c   : > { %v1890_v4 = vld [vmem:[%s2110_s11 + $0x1e0] ss:$16 sps:$4 sm:$0xff]   ;;  %v1891_v5 = vld [vmem:[%s2110_s11 + $0x1e8] ss:$16 sps:$4 sm:$0xff]   ;;  %v1897_v6 = vld [vmem:[%s2110_s11 + $0x204] ss:$16 sps:$4 sm:$0xff]  }
  0x3d   : > { %1166 = vmatpush1.bf16.msra.mxu0 %v1830_v27  ;;  %1252 = vmatpush1.bf16.msra.mxu1 %v1831_v28  ;;  %v1900_v7 = vld [vmem:[%s2110_s11 + $0x20c] ss:$16 sps:$4 sm:$0xff]   ;;  %v1892_v8 = vld [vmem:[%s2112_s12] ss:$16 sps:$4 sm:$0xff]   ;;  %v1898_v10 = vld [vmem:[%s2110_s11 + $0x208] ss:$16 sps:$4 sm:$0xff]  }
  0x3e   : > { %1167 = vmatprep.subr.bf16.mxu0 %v1832_v29  ;;  %1253 = vmatprep.subr.bf16.mxu1 %v1834_v30  ;;  %v1895_v9 = vld [vmem:[%s2110_s11 + $0x200] ss:$16 sps:$4 sm:$0xff]   ;;  %v1903_v11 = vld [vmem:[%s2110_s11 + $0x224] ss:$16 sps:$4 sm:$0xff]   ;;  %v1906_v12 = vld [vmem:[%s2110_s11 + $0x22c] ss:$16 sps:$4 sm:$0xff]  }
  0x3f   : > { %v1901_v13 = vld [vmem:[%s2110_s11 + $0x220] ss:$16 sps:$4 sm:$0xff]   ;;  %v1904_v14 = vld [vmem:[%s2110_s11 + $0x228] ss:$16 sps:$4 sm:$0xff]   ;;  %v1909_v15 = vld [vmem:[%s2110_s11 + $0x244] ss:$16 sps:$4 sm:$0xff]  }
  0x40   : > { %v1912_v16 = vld [vmem:[%s2110_s11 + $0x24c] ss:$16 sps:$4 sm:$0xff]   ;;  %v1907_v17 = vld [vmem:[%s2110_s11 + $0x240] ss:$16 sps:$4 sm:$0xff]   ;;  %v1910_v18 = vld [vmem:[%s2110_s11 + $0x248] ss:$16 sps:$4 sm:$0xff]  }
  0x41   : > { %1168 = vmatpush1.bf16.msra.mxu0 %v1836_v31  ;;  %1254 = vmatpush1.bf16.msra.mxu1 %v1837_v32  ;;  %v1915_v19 = vld [vmem:[%s2110_s11 + $0x264] ss:$16 sps:$4 sm:$0xff]   ;;  %v1918_v20 = vld [vmem:[%s2110_s11 + $0x26c] ss:$16 sps:$4 sm:$0xff]   ;;  %v1913_v21 = vld [vmem:[%s2110_s11 + $0x260] ss:$16 sps:$4 sm:$0xff]  }
  0x42   : > { %1169 = vmatprep.subr.bf16.mxu0 %v1838_v33  ;;  %1255 = vmatprep.subr.bf16.mxu1 %v1840_v34  ;;  %v1916_v22 = vld [vmem:[%s2110_s11 + $0x268] ss:$16 sps:$4 sm:$0xff]   ;;  %v1921_v23 = vld [vmem:[%s2110_s11 + $0x284] ss:$16 sps:$4 sm:$0xff]   ;;  %v1924_v24 = vld [vmem:[%s2110_s11 + $0x28c] ss:$16 sps:$4 sm:$0xff]  }
  0x43   : > { %v1919_v25 = vld [vmem:[%s2110_s11 + $0x280] ss:$16 sps:$4 sm:$0xff]   ;;  %v1922_v26 = vld [vmem:[%s2110_s11 + $0x288] ss:$16 sps:$4 sm:$0xff]   ;;  %v1927_v27 = vld [vmem:[%s2110_s11 + $0x2a4] ss:$16 sps:$4 sm:$0xff]  }
  0x44   : > { %v1930_v28 = vld [vmem:[%s2110_s11 + $0x2ac] ss:$16 sps:$4 sm:$0xff]   ;;  %v1925_v29 = vld [vmem:[%s2110_s11 + $0x2a0] ss:$16 sps:$4 sm:$0xff]   ;;  %v1928_v30 = vld [vmem:[%s2110_s11 + $0x2a8] ss:$16 sps:$4 sm:$0xff]  }
  0x45   : > { %1170 = vmatpush1.bf16.msra.mxu0 %v1842_v35  ;;  %1256 = vmatpush1.bf16.msra.mxu1 %v1843_v36  ;;  %v1933_v31 = vld [vmem:[%s2110_s11 + $0x2c4] ss:$16 sps:$4 sm:$0xff]   ;;  %v1936_v32 = vld [vmem:[%s2110_s11 + $0x2cc] ss:$16 sps:$4 sm:$0xff]   ;;  %v1931_v34 = vld [vmem:[%s2110_s11 + $0x2c0] ss:$16 sps:$4 sm:$0xff]  }
  0x46   : > { %1171 = vmatprep.subr.bf16.mxu0 %v1844_v37  ;;  %1257 = vmatprep.subr.bf16.mxu1 %v1846_v38  ;;  %v1993_v33 = vld [vmem:[%s2112_s12 + $0xc] ss:$16 sps:$4 sm:$0xff]   ;;  %v1934_v35 = vld [vmem:[%s2110_s11 + $0x2c8] ss:$16 sps:$4 sm:$0xff]   ;;  %v1939_v36 = vld [vmem:[%s2110_s11 + $0x2e4] ss:$16 sps:$4 sm:$0xff]  }
  0x47   : > { %v1942_v37 = vld [vmem:[%s2110_s11 + $0x2ec] ss:$16 sps:$4 sm:$0xff]   ;;  %v1937_v38 = vld [vmem:[%s2110_s11 + $0x2e0] ss:$16 sps:$4 sm:$0xff]   ;;  %p1732_p11 = scmp.ne.s32.totalorder %s2024_s17, 8 }
  0x48   : > { %v1966_v53 = vld [vmem:[%s2110_s11 + $0x36c] ss:$16 sps:$4 sm:$0xff]  }
  0x49   : > { %1172 = vmatpush1.bf16.msra.mxu0 %v1848_v39  ;;  %1258 = vmatpush1.bf16.msra.mxu1 %v1849_v40  ;;  %v1940_v39 = vld [vmem:[%s2110_s11 + $0x2e8] ss:$16 sps:$4 sm:$0xff]   ;;  %v1945_v40 = vld [vmem:[%s2110_s11 + $0x304] ss:$16 sps:$4 sm:$0xff]  }
  0x4a   : > { %1173 = vmatprep.subr.bf16.mxu0 %v1850_v41  ;;  %1259 = vmatprep.subr.bf16.mxu1 %v1852_v42  ;;  %v1948_v41 = vld [vmem:[%s2110_s11 + $0x30c] ss:$16 sps:$4 sm:$0xff]   ;;  %v1943_v42 = vld [vmem:[%s2110_s11 + $0x300] ss:$16 sps:$4 sm:$0xff]  }
  0x4d   : > { %1174 = vmatpush1.bf16.msra.mxu0 %v1854_v43  ;;  %1260 = vmatpush1.bf16.msra.mxu1 %v1855_v44  ;;  %v1946_v43 = vld [vmem:[%s2110_s11 + $0x308] ss:$16 sps:$4 sm:$0xff]   ;;  %v1951_v44 = vld [vmem:[%s2110_s11 + $0x324] ss:$16 sps:$4 sm:$0xff]  }
  0x4e   : > { %1175 = vmatprep.subr.bf16.mxu0 %v1856_v45  ;;  %1261 = vmatprep.subr.bf16.mxu1 %v1858_v46  ;;  %v1954_v45 = vld [vmem:[%s2110_s11 + $0x32c] ss:$16 sps:$4 sm:$0xff]   ;;  %v1949_v46 = vld [vmem:[%s2110_s11 + $0x320] ss:$16 sps:$4 sm:$0xff]  }
  0x51   : > { %1176 = vmatpush1.bf16.msra.mxu0 %v1860_v47  ;;  %1262 = vmatpush1.bf16.msra.mxu1 %v1861_v48  ;;  %v1952_v47 = vld [vmem:[%s2110_s11 + $0x328] ss:$16 sps:$4 sm:$0xff]   ;;  %v1957_v48 = vld [vmem:[%s2110_s11 + $0x344] ss:$16 sps:$4 sm:$0xff]  }
  0x52   : > { %1177 = vmatprep.subr.bf16.mxu0 %v1862_v49  ;;  %1263 = vmatprep.subr.bf16.mxu1 %v1864_v50  ;;  %v1960_v49 = vld [vmem:[%s2110_s11 + $0x34c] ss:$16 sps:$4 sm:$0xff]   ;;  %v1955_v50 = vld [vmem:[%s2110_s11 + $0x340] ss:$16 sps:$4 sm:$0xff]  }
  0x55   : > { %1178 = vmatpush1.bf16.msra.mxu0 %v1866_v51  ;;  %1264 = vmatpush1.bf16.msra.mxu1 %v1867_v52  ;;  %v1958_v51 = vld [vmem:[%s2110_s11 + $0x348] ss:$16 sps:$4 sm:$0xff]   ;;  %v1963_v52 = vld [vmem:[%s2110_s11 + $0x364] ss:$16 sps:$4 sm:$0xff]  }
  0x56   : > { %1179 = vmatprep.subr.bf16.mxu0 %v1868_v54  ;;  %1265 = vmatprep.subr.bf16.mxu1 %v1870_v55  ;;  %v1961_v54 = vld [vmem:[%s2110_s11 + $0x360] ss:$16 sps:$4 sm:$0xff]   ;;  %v1964_v55 = vld [vmem:[%s2110_s11 + $0x368] ss:$16 sps:$4 sm:$0xff]  }
  0x59   : > { %1180 = vmatpush1.bf16.msra.mxu0 %v1872_v56  ;;  %1266 = vmatpush1.bf16.msra.mxu1 %v1873_v57  ;;  %v1969_v56 = vld [vmem:[%s2110_s11 + $0x384] ss:$16 sps:$4 sm:$0xff]   ;;  %v1972_v57 = vld [vmem:[%s2110_s11 + $0x38c] ss:$16 sps:$4 sm:$0xff]  }
  0x5a   : > { %1181 = vmatprep.subr.bf16.mxu0 %v1874_v58  ;;  %1267 = vmatprep.subr.bf16.mxu1 %v1876_v59  ;;  %v1967_v58 = vld [vmem:[%s2110_s11 + $0x380] ss:$16 sps:$4 sm:$0xff]   ;;  %v1970_v59 = vld [vmem:[%s2110_s11 + $0x388] ss:$16 sps:$4 sm:$0xff]  }
  0x5d   : > { %1182 = vmatpush1.bf16.msra.mxu0 %v1878_v60  ;;  %1268 = vmatpush1.bf16.msra.mxu1 %v1879_v61  ;;  %v1975_v60 = vld [vmem:[%s2110_s11 + $0x3a4] ss:$16 sps:$4 sm:$0xff]   ;;  %v1978_v61 = vld [vmem:[%s2110_s11 + $0x3ac] ss:$16 sps:$4 sm:$0xff]  }
  0x5e   : > { %1183 = vmatprep.subr.bf16.mxu0 %v1880_v62  ;;  %1269 = vmatprep.subr.bf16.mxu1 %v1882_v63  ;;  %v1973_v62 = vld [vmem:[%s2110_s11 + $0x3a0] ss:$16 sps:$4 sm:$0xff]   ;;  %v1976_v63 = vld [vmem:[%s2110_s11 + $0x3a8] ss:$16 sps:$4 sm:$0xff]  }
  0x61   : > { %1184 = vmatpush1.bf16.msra.mxu0 %v1884_v0  ;;  %1270 = vmatpush1.bf16.msra.mxu1 %v1885_v1  ;;  %v1981_v0 = vld [vmem:[%s2110_s11 + $0x3c4] ss:$16 sps:$4 sm:$0xff]   ;;  %v1984_v1 = vld [vmem:[%s2110_s11 + $0x3cc] ss:$16 sps:$4 sm:$0xff]  }
  0x62   : > { %1185 = vmatprep.subr.bf16.mxu0 %v1886_v2  ;;  %1271 = vmatprep.subr.bf16.mxu1 %v1888_v3  ;;  %v1979_v2 = vld [vmem:[%s2110_s11 + $0x3c0] ss:$16 sps:$4 sm:$0xff]   ;;  %v1982_v3 = vld [vmem:[%s2110_s11 + $0x3c8] ss:$16 sps:$4 sm:$0xff]  }
  0x65   : > { %1186 = vmatpush1.bf16.msra.mxu0 %v1890_v4  ;;  %1272 = vmatpush1.bf16.msra.mxu1 %v1891_v5  ;;  %v1987_v4 = vld [vmem:[%s2110_s11 + $0x3e4] ss:$16 sps:$4 sm:$0xff]   ;;  %v1990_v5 = vld [vmem:[%s2110_s11 + $0x3ec] ss:$16 sps:$4 sm:$0xff]  }
  0x66   : > { %1198 = vmatprep.subr.bf16.mxu0 %v1897_v6  ;;  %1284 = vmatprep.subr.bf16.mxu1 %v1900_v7  ;;  %v1985_v6 = vld [vmem:[%s2110_s11 + $0x3e0] ss:$16 sps:$4 sm:$0xff]   ;;  %v1988_v7 = vld [vmem:[%s2110_s11 + $0x3e8] ss:$16 sps:$4 sm:$0xff]  }
  0x68   : > { %1188 = vmatmul.mubr.bf16.vlgmr.msra.gmra.mrb[0].mxu0 %v1892_v8  ;;  %1274 = vmatmul.mubr.bf16.vlgmr.msra.gmra.mrb[0].mxu1 %v1892_v8  ;;  %v1991_v8 = vld [vmem:[%s2112_s12 + $0x8] ss:$16 sps:$4 sm:$0xff]  }
  0x69   : > { %1199 = vmatpush1.bf16.msra.mxu0 %v1895_v9  ;;  %1285 = vmatpush1.bf16.msra.mxu1 %v1898_v10  ;;  %v355_v9 = vld [vmem:[#allocation2] sm:$0xff]  ;;  %v357_v10 = vld [vmem:[#allocation2 + $0x10] sm:$0xff] }
  0x6a   : > { %1200 = vmatprep.subr.bf16.mxu0 %v1903_v11  ;;  %1286 = vmatprep.subr.bf16.mxu1 %v1906_v12  ;;  %v356_v11 = vld [vmem:[#allocation2 + $0x8] sm:$0xff]  ;;  %v358_v12 = vld [vmem:[#allocation2 + $0x18] sm:$0xff] }
  0x6b   : > { %1230 = vmatprep.mubr.bf16.mxu0 %v1993_v33  ;;  %1316 = vmatprep.mubr.bf16.mxu1 %v1993_v33  ;;  %v1357_v33 = vlaneseq (!%p1732_p11) }
  0x6d   : > { %1201 = vmatpush1.bf16.msra.mxu0 %v1901_v13  ;;  %1287 = vmatpush1.bf16.msra.mxu1 %v1904_v14 }
  0x6e   : > { %1202 = vmatprep.subr.bf16.mxu0 %v1909_v15  ;;  %1288 = vmatprep.subr.bf16.mxu1 %v1912_v16  ;;  %v359_v15 = vld [vmem:[#allocation2 + $0x20] sm:$0xff]  ;;  %v361_v16 = vld [vmem:[#allocation2 + $0x30] sm:$0xff] }
  0x71   : > { %1203 = vmatpush1.bf16.msra.mxu0 %v1907_v17  ;;  %1289 = vmatpush1.bf16.msra.mxu1 %v1910_v18 }
  0x72   : > { %1204 = vmatprep.subr.bf16.mxu0 %v1915_v19  ;;  %1290 = vmatprep.subr.bf16.mxu1 %v1918_v20 }
  0x75   : > { %1205 = vmatpush1.bf16.msra.mxu0 %v1913_v21  ;;  %1291 = vmatpush1.bf16.msra.mxu1 %v1916_v22  ;;  %v360_v21 = vld [vmem:[#allocation2 + $0x28] sm:$0xff]  ;;  %v362_v22 = vld [vmem:[#allocation2 + $0x38] sm:$0xff] }
  0x76   : > { %1206 = vmatprep.subr.bf16.mxu0 %v1921_v23  ;;  %1292 = vmatprep.subr.bf16.mxu1 %v1924_v24 }
  0x79   : > { %1207 = vmatpush1.bf16.msra.mxu0 %v1919_v25  ;;  %1293 = vmatpush1.bf16.msra.mxu1 %v1922_v26 }
  0x7a   : > { %1208 = vmatprep.subr.bf16.mxu0 %v1927_v27  ;;  %1294 = vmatprep.subr.bf16.mxu1 %v1930_v28 }
  0x7d   : > { %1209 = vmatpush1.bf16.msra.mxu0 %v1925_v29  ;;  %1295 = vmatpush1.bf16.msra.mxu1 %v1928_v30 }
  0x7e   : > { %1210 = vmatprep.subr.bf16.mxu0 %v1933_v31  ;;  %1296 = vmatprep.subr.bf16.mxu1 %v1936_v32 }
  0x81   : > { %1211 = vmatpush1.bf16.msra.mxu0 %v1931_v34  ;;  %1297 = vmatpush1.bf16.msra.mxu1 %v1934_v35  ;;  %v1358_v34 = vshrl.u32 (!%p1732_p11), %v1357_v33, 7  ;;  %v1355_v35 = vld [vmem:[%s2283_s2] sm:$0xf] (!%p1732_p11) }
  0x82   : > { %1212 = vmatprep.subr.bf16.mxu0 %v1939_v36  ;;  %1298 = vmatprep.subr.bf16.mxu1 %v1942_v37  ;;  %v1385_v36 = vld [vmem:[%s2284_s3] sm:$0xf] (!%p1732_p11) }
  0x85   : > { %1213 = vmatpush1.bf16.msra.mxu0 %v1937_v38  ;;  %1299 = vmatpush1.bf16.msra.mxu1 %v1940_v39  ;;  %v1359_v39 = vsub.s32 (!%p1732_p11), 0, %v1358_v34 }
  0x86   : > { %1214 = vmatprep.subr.bf16.mxu0 %v1945_v40  ;;  %1300 = vmatprep.subr.bf16.mxu1 %v1948_v41  ;;  %v1363_v40 = vsub.s32 (!%p1732_p11), 1, %v1358_v34  ;;  %v1367_v41 = vsub.s32 (!%p1732_p11), 2, %v1358_v34 }
  0x89   : > { %1215 = vmatpush1.bf16.msra.mxu0 %v1943_v42  ;;  %1301 = vmatpush1.bf16.msra.mxu1 %v1946_v43  ;;  %v1371_v42 = vsub.s32 (!%p1732_p11), 3, %v1358_v34 }
  0x8a   : > { %1216 = vmatprep.subr.bf16.mxu0 %v1951_v44  ;;  %1302 = vmatprep.subr.bf16.mxu1 %v1954_v45 }
  0x8d   : > { %1217 = vmatpush1.bf16.msra.mxu0 %v1949_v46  ;;  %1303 = vmatpush1.bf16.msra.mxu1 %v1952_v47  ;;  %v1360_v46 = vrot.slane (!%p1732_p11), %v1355_v35, %v1359_v39  ;;  %v1364_v47 = vrot.slane (!%p1732_p11), %v1355_v35, %v1363_v40 }
  0x8e   : > { %1218 = vmatprep.subr.bf16.mxu0 %v1957_v48  ;;  %1304 = vmatprep.subr.bf16.mxu1 %v1960_v49  ;;  %v1390_v48 = vrot.slane (!%p1732_p11), %v1385_v36, %v1359_v39  ;;  %v1394_v49 = vrot.slane (!%p1732_p11), %v1385_v36, %v1363_v40 }
  0x91   : > { %1219 = vmatpush1.bf16.msra.mxu0 %v1955_v50  ;;  %1305 = vmatpush1.bf16.msra.mxu1 %v1958_v51 }
  0x92   : > { %1220 = vmatprep.subr.bf16.mxu0 %v1963_v52  ;;  %1306 = vmatprep.subr.bf16.mxu1 %v1966_v53  ;;  %v1368_v53 = vrot.slane (!%p1732_p11), %v1355_v35, %v1367_v41 }
  0x95   : > { %1221 = vmatpush1.bf16.msra.mxu0 %v1961_v54  ;;  %1307 = vmatpush1.bf16.msra.mxu1 %v1964_v55  ;;  %v1372_v54 = vrot.slane (!%p1732_p11), %v1355_v35, %v1371_v42  ;;  %v1398_v55 = vrot.slane (!%p1732_p11), %v1385_v36, %v1367_v41 }
  0x96   : > { %1222 = vmatprep.subr.bf16.mxu0 %v1969_v56  ;;  %1308 = vmatprep.subr.bf16.mxu1 %v1972_v57  ;;  %v1402_v56 = vrot.slane (!%p1732_p11), %v1385_v36, %v1371_v42 }
  0x99   : > { %1223 = vmatpush1.bf16.msra.mxu0 %v1967_v58  ;;  %1309 = vmatpush1.bf16.msra.mxu1 %v1970_v59 }
  0x9a   : > { %1224 = vmatprep.subr.bf16.mxu0 %v1975_v60  ;;  %1310 = vmatprep.subr.bf16.mxu1 %v1978_v61 }
  0x9d   : > { %1225 = vmatpush1.bf16.msra.mxu0 %v1973_v62  ;;  %1311 = vmatpush1.bf16.msra.mxu1 %v1976_v63 }
  0x9e   : > { %1226 = vmatprep.subr.bf16.mxu0 %v1981_v0  ;;  %1312 = vmatprep.subr.bf16.mxu1 %v1984_v1 }
  0xa1   : > { %1227 = vmatpush1.bf16.msra.mxu0 %v1979_v2  ;;  %1313 = vmatpush1.bf16.msra.mxu1 %v1982_v3 }
  0xa2   : > { %1228 = vmatprep.subr.bf16.mxu0 %v1987_v4  ;;  %1314 = vmatprep.subr.bf16.mxu1 %v1990_v5 }
  0xa5   : > { %1229 = vmatpush1.bf16.msra.mxu0 %v1985_v6  ;;  %1315 = vmatpush1.bf16.msra.mxu1 %v1988_v7 }
  0xa8   : > { %1231 = vmatmul.mubr.bf16.vlgmr.msra.gmra.mrb[0].mxu0 %v1991_v8  ;;  %1317 = vmatmul.mubr.bf16.vlgmr.msra.gmra.mrb[0].mxu1 %v1991_v8 }
 0x17b   : > { %v1232_v13 = vpop.f32.mrb[0].mxu0  ;;  %v1318_v14 = vpop.f32.mrb[0].mxu1  ;;  %1346 = sbr.rel (%p1732_p11) target bundleno = 402 (0x192), region = 67 }
 0x17c   : > { %v1327_v17 = vadd.f32 %v1232_v13, %v355_v9  ;;  %v1329_v18 = vadd.f32 %v1318_v14, %v357_v10  ;;  %v1234_v19 = vpop.f32.mrb[1].mxu0  ;;  %v1320_v20 = vpop.f32.mrb[1].mxu1 }
 0x17d   : > { %v1328_v23 = vadd.f32 %v1234_v19, %v356_v11  ;;  %v1330_v24 = vadd.f32 %v1320_v20, %v358_v12  ;;  %v1236_v25 = vpop.f32.mrb[2].mxu0  ;;  %v1322_v26 = vpop.f32.mrb[2].mxu1 }
 0x17e   : > { %1335 = vst [vmem:[#allocation2] sm:$0xff] %v1327_v17  ;;  %1337 = vst [vmem:[#allocation2 + $0x10] sm:$0xff] %v1329_v18  ;;  %v1331_v27 = vadd.f32 %v1236_v25, %v359_v15  ;;  %v1333_v28 = vadd.f32 %v1322_v26, %v361_v16  ;;  %v1238_v29 = vpop.f32.mrb[3].mxu0  ;;  %v1324_v30 = vpop.f32.mrb[3].mxu1 }
 0x17f   : > { %1336 = vst [vmem:[#allocation2 + $0x8] sm:$0xff] %v1328_v23  ;;  %1338 = vst [vmem:[#allocation2 + $0x18] sm:$0xff] %v1330_v24  ;;  %v1332_v31 = vadd.f32 %v1238_v29, %v360_v21  ;;  %v1334_v32 = vadd.f32 %v1324_v30, %v362_v22 }
 0x180   : > { %1339 = vst [vmem:[#allocation2 + $0x20] sm:$0xff] %v1331_v27  ;;  %1341 = vst [vmem:[#allocation2 + $0x30] sm:$0xff] %v1333_v28 }
 0x181   : > { %1340 = vst [vmem:[#allocation2 + $0x28] sm:$0xff] %v1332_v31  ;;  %1342 = vst [vmem:[#allocation2 + $0x38] sm:$0xff] %v1334_v32 }
 0x185   : > { %v1347_v37 = vld [vmem:[#allocation2] sm:$0xff]  ;;  %v1349_v43 = vld [vmem:[#allocation2 + $0x10] sm:$0xff] }
 0x186   : > { %v1348_v38 = vld [vmem:[#allocation2 + $0x8] sm:$0xff]  ;;  %v1350_v50 = vld [vmem:[#allocation2 + $0x18] sm:$0xff]  ;;  %v1377_v57 = vmul.f32 %v1360_v46, %v1347_v37  ;;  %v1379_v61 = vmul.f32 %v1368_v53, %v1349_v43 }
 0x187   : > { %v1351_v44 = vld [vmem:[#allocation2 + $0x20] sm:$0xff]  ;;  %v1353_v51 = vld [vmem:[#allocation2 + $0x30] sm:$0xff]  ;;  %v1378_v58 = vmul.f32 %v1364_v47, %v1348_v38  ;;  %v1380_v62 = vmul.f32 %v1372_v54, %v1350_v50 }
 0x188   : > { %v1352_v45 = vld [vmem:[#allocation2 + $0x28] sm:$0xff]  ;;  %v1354_v52 = vld [vmem:[#allocation2 + $0x38] sm:$0xff]  ;;  %v1381_v59 = vmul.f32 %v1360_v46, %v1351_v44  ;;  %v1383_v63 = vmul.f32 %v1368_v53, %v1353_v51  ;;  %v1407_v1 = vadd.f32 %v1390_v48, %v1377_v57  ;;  %v1409_v5 = vadd.f32 %v1398_v55, %v1379_v61 }
 0x189   : > { %v1382_v60 = vmul.f32 %v1364_v47, %v1352_v45  ;;  %v1384_v0 = vmul.f32 %v1372_v54, %v1354_v52  ;;  %v1408_v2 = vadd.f32 %v1394_v49, %v1378_v58  ;;  %v1410_v6 = vadd.f32 %v1402_v56, %v1380_v62 }
 0x18a   : > { %v1411_v3 = vadd.f32 %v1390_v48, %v1381_v59  ;;  %v1413_v7 = vadd.f32 %v1398_v55, %v1383_v63  ;;  %v1415_v9 = vmax.f32 %v1407_v1, 0.0  ;;  %v1417_v13 = vmax.f32 %v1409_v5, 0.0 }
 0x18b   : > { %v1412_v4 = vadd.f32 %v1394_v49, %v1382_v60  ;;  %v1414_v8 = vadd.f32 %v1402_v56, %v1384_v0  ;;  %v1416_v10 = vmax.f32 %v1408_v2, 0.0  ;;  %v1418_v14 = vmax.f32 %v1410_v6, 0.0 }
 0x18c   : > { %v1419_v11 = vmax.f32 %v1411_v3, 0.0  ;;  %v1421_v15 = vmax.f32 %v1413_v7, 0.0 }
 0x18d   : > { %v1420_v12 = vmax.f32 %v1412_v4, 0.0  ;;  %v1422_v16 = vmax.f32 %v1414_v8, 0.0  ;;  %v1743_v17 = vpack.c.bf16 %v1416_v10, %v1415_v9  ;;  %v1744_v19 = vpack.c.bf16 %v1418_v14, %v1417_v13 }
 0x18f   : > { %v1745_v18 = vpack.c.bf16 %v1420_v12, %v1419_v11  ;;  %v1746_v20 = vpack.c.bf16 %v1422_v16, %v1421_v15  ;;  %1447 = vst [vmem:[%s2285_s4] sm:$0xff] %v1743_v17  ;;  %1448 = vst [vmem:[%s2285_s4 + $0x8] sm:$0xff] %v1744_v19 }
 0x191   : > { %1449 = vst [vmem:[%s2285_s4 + $0x10] sm:$0xff] %v1745_v18  ;;  %1450 = vst [vmem:[%s2285_s4 + $0x18] sm:$0xff] %v1746_v20 }
 0x192 PF: > { %s14_s19 = sadd.s32 1, %s2032_s19   ;;  %s2286_s15 = smov %s2020_s16 }
 0x193   : > { %p11_p12 = scmp.ge.s32.totalorder %s14_s19, 11   ;;  %s2287_s16 = smov %s2095_s23 }
 0x194   : > { %s2288_s17 = smov %s2028_s18  ;;  %s2289_s18 = smov %s2291_s20 }
 0x195   :  { %13 = sbr.rel (!%p11_p12) target bundleno = 3 (0x3), region = 111 }

</bundles_post_ra>
